<compile_context>
chip_gen: v5e
topology: v5e:2x2
jax: 0.10.0
libtpu: 0.0.40
codegen_flags: <defaults>
</compile_context>

<pallas_src>
import functools

import jax
import jax.numpy as jnp
from jax.experimental import pallas as pl
from jax.experimental.pallas import tpu as pltpu

LANE = 128


def _ceil_to(x, m):
    return ((x + m - 1) // m) * m


# ----------------------------- Pallas kernels -----------------------------

def _mm_fused_kernel(*refs, relu, has_residual):
    # 1x1-conv hot path: (TM, K) @ (K, N) on the MXU (bf16 in, f32 accumulate),
    # fused epilogue: + folded-BN shift, optional residual add, optional ReLU.
    idx = 0
    x_ref = refs[idx]; idx += 1
    w_ref = refs[idx]; idx += 1
    b_ref = refs[idx]; idx += 1
    r_ref = None
    if has_residual:
        r_ref = refs[idx]; idx += 1
    o_ref = refs[idx]

    acc = jnp.dot(x_ref[...], w_ref[...], preferred_element_type=jnp.float32)
    acc = acc + b_ref[...]
    if has_residual:
        acc = acc + r_ref[...].astype(jnp.float32)
    if relu:
        acc = jnp.maximum(acc, 0.0)
    o_ref[...] = acc.astype(o_ref.dtype)


def _mm_split_kernel(x_ref, w_ref, b_ref, o1_ref, o2_ref, *, split):
    # Merged [conv1 | downsample] 1x1 conv reading x once: ReLU on the first
    # `split` columns (conv1), plain affine on the rest (downsample identity).
    acc = jnp.dot(x_ref[...], w_ref[...], preferred_element_type=jnp.float32)
    acc = acc + b_ref[...]
    o1_ref[...] = jnp.maximum(acc[:, :split], 0.0).astype(o1_ref.dtype)
    o2_ref[...] = acc[:, split:].astype(o2_ref.dtype)


def _conv_tap_kernel(x_ref, w_ref, b_ref, o_ref, *, k, stride, ow, cin_p, relu):
    # Fused KxK conv: one output row per grid step, taps unrolled in-kernel.
    #   stride 1 : x_ref = (1, Hp, Wp, cin_p)
    #   stride 2 : x_ref = (1, Hp/2, 2, Wp/2, 2*cin_p)  (row parity dim 2,
    #              column parity folded into the lane dim -> aligned slices)
    i = pl.program_id(1)                       # output row
    cout_p = o_ref.shape[-1]
    acc = jnp.zeros((ow, cout_p), jnp.float32)
    for di in range(k):
        for dj in range(k):
            t = di * k + dj
            if stride == 1:
                v = x_ref[:, pl.ds(i + di, 1), dj:dj + ow, :]       # (1,1,ow,cin)
            else:
                pr, qr = di % 2, di // 2
                pc, qc = dj % 2, dj // 2
                v = x_ref[:, pl.ds(i + qr, 1), pr:pr + 1, qc:qc + ow,
                          pc * cin_p:(pc + 1) * cin_p]              # (1,1,1,ow,cin)
            acc = acc + jnp.dot(v.reshape(ow, cin_p), w_ref[t],
                                preferred_element_type=jnp.float32)
    acc = acc + b_ref[...]
    if relu:
        acc = jnp.maximum(acc, 0.0)
    o_ref[...] = acc.reshape(o_ref.shape).astype(o_ref.dtype)


def _maxpool_kernel(x_ref, o_ref, *, ow, cp):
    # 3x3/s2/p1 max pool over the whole batch in one step; same parity layout as
    # the stride-2 conv, nine taps as static slices of the VMEM-resident block.
    oh = o_ref.shape[1]
    res = None
    for di in range(3):
        for dj in range(3):
            v = x_ref[:, di // 2:di // 2 + oh, di % 2:di % 2 + 1,
                      dj // 2:dj // 2 + ow, (dj % 2) * cp:(dj % 2 + 1) * cp]
            v = v.reshape(o_ref.shape)
            res = v if res is None else jnp.maximum(res, v)
    o_ref[...] = res


def _avgpool_kernel(x_ref, o_ref):
    # AdaptiveAvgPool2d((1,1)): mean over flattened H*W for the whole batch.
    o_ref[...] = jnp.mean(x_ref[...].astype(jnp.float32), axis=1,
                          keepdims=True).astype(o_ref.dtype)


# ----------------------------- kernel wrappers -----------------------------

def _choose_tm(M):
    # Single tile for small M; otherwise >= 2 grid steps so v7x megacore can
    # shard the "parallel" M axis; bigger tiles amortize per-step overhead.
    if M <= 256:
        return M, M
    base = 1024 if M >= 4096 else 512
    tm = min(base, _ceil_to(-(-M // 2), 16))
    return tm, _ceil_to(M, tm)


def matmul_bias_act(x, w, shift, *, relu, residual=None, out_dtype=jnp.bfloat16):
    """(M,K)@(K,N) + shift (+residual) (+ReLU).  K, N already lane-padded."""
    M, K = x.shape
    N = w.shape[1]
    TM, Mp = _choose_tm(M)
    grid_m = Mp // TM

    xb = x.astype(jnp.bfloat16)
    if Mp != M:
        xb = jnp.pad(xb, ((0, Mp - M), (0, 0)))

    # v5e: deeper buffering on the small-K 1x1-conv steps (only when tiled).
    pipe = pl.Buffered(3) if (grid_m >= 3 and K <= 256) else None

    def _spec(shape, imap):
        if pipe is None:
            return pl.BlockSpec(shape, imap)
        return pl.BlockSpec(shape, imap, pipeline_mode=pipe)

    operands = [xb, w.astype(jnp.bfloat16), shift]
    in_specs = [_spec((TM, K), lambda i: (i, 0)),
                pl.BlockSpec((K, N), lambda i: (0, 0)),
                pl.BlockSpec((1, N), lambda i: (0, 0))]
    has_res = residual is not None
    if has_res:
        r = residual.astype(jnp.bfloat16)
        if Mp != M:
            r = jnp.pad(r, ((0, Mp - M), (0, 0)))
        operands.append(r)
        in_specs.append(pl.BlockSpec((TM, N), lambda i: (i, 0)))

    kern = functools.partial(_mm_fused_kernel, relu=relu, has_residual=has_res)
    bytes_accessed = 2 * (Mp * K + K * N + Mp * N) + 4 * N
    if has_res:
        bytes_accessed += 2 * Mp * N

    out = pl.pallas_call(
        kern,
        out_shape=jax.ShapeDtypeStruct((Mp, N), out_dtype),
        grid=(grid_m,),
        in_specs=in_specs,
        out_specs=_spec((TM, N), lambda i: (i, 0)),
        compiler_params=pltpu.CompilerParams(
            dimension_semantics=("parallel",),
            vmem_limit_bytes=32 * 1024 * 1024),
        cost_estimate=pl.CostEstimate(flops=2 * Mp * K * N, transcendentals=0,
                                      bytes_accessed=int(bytes_accessed)),
    )(*operands)
    if Mp != M:
        out = out[:M]
    return out


def matmul_split_relu(x, w, shift, *, split, out_dtype=jnp.bfloat16):
    """Merged [conv1 | downsample] 1x1 conv: two kernel outputs, no mask/slice."""
    M, K = x.shape
    N = w.shape[1]
    TM, Mp = _choose_tm(M)
    grid_m = Mp // TM
    xb = x.astype(jnp.bfloat16)
    if Mp != M:
        xb = jnp.pad(xb, ((0, Mp - M), (0, 0)))

    kern = functools.partial(_mm_split_kernel, split=split)
    o1, o2 = pl.pallas_call(
        kern,
        out_shape=(jax.ShapeDtypeStruct((Mp, split), out_dtype),
                   jax.ShapeDtypeStruct((Mp, N - split), out_dtype)),
        grid=(grid_m,),
        in_specs=[pl.BlockSpec((TM, K), lambda i: (i, 0)),
                  pl.BlockSpec((K, N), lambda i: (0, 0)),
                  pl.BlockSpec((1, N), lambda i: (0, 0))],
        out_specs=(pl.BlockSpec((TM, split), lambda i: (i, 0)),
                   pl.BlockSpec((TM, N - split), lambda i: (i, 0))),
        compiler_params=pltpu.CompilerParams(
            dimension_semantics=("parallel",),
            vmem_limit_bytes=32 * 1024 * 1024),
    )(xb, w.astype(jnp.bfloat16), shift)
    if Mp != M:
        o1, o2 = o1[:M], o2[:M]
    return o1, o2


def conv_fused(x, w_taps, shift, *, k, stride, pad, relu, out_dtype=jnp.bfloat16):
    """Fused KxK conv (+folded BN shift, +ReLU), NHWC with lane-padded channels.

    w_taps: (k*k, cin_p, cout_p) bf16 (BN scale folded); shift: (1, cout_p) f32.
    The padded image is read from HBM exactly once per batch element.
    """
    B, H, W, cin_p = x.shape
    taps = k * k
    cout_p = w_taps.shape[-1]
    Hp, Wp = H + 2 * pad, W + 2 * pad
    oh = (Hp - k) // stride + 1
    ow = (Wp - k) // stride + 1

    xb = x.astype(jnp.bfloat16)
    if stride == 1:
        if pad:
            xb = jnp.pad(xb, ((0, 0), (pad, pad), (pad, pad), (0, 0)))
        x_in = xb
        x_spec = pl.BlockSpec((1, Hp, Wp, cin_p), lambda b, i: (b, 0, 0, 0))
    else:
        Hpe, Wpe = _ceil_to(Hp, 2), _ceil_to(Wp, 2)
        xb = jnp.pad(xb, ((0, 0), (pad, Hpe - H - pad), (pad, Wpe - W - pad),
                          (0, 0)))
        # Free reshape: fold column parity into lanes -> aligned in-kernel slices.
        x_in = xb.reshape(B, Hpe // 2, 2, Wpe // 2, 2 * cin_p)
        x_spec = pl.BlockSpec((1, Hpe // 2, 2, Wpe // 2, 2 * cin_p),
                              lambda b, i: (b, 0, 0, 0, 0))

    kern = functools.partial(_conv_tap_kernel, k=k, stride=stride, ow=ow,
                             cin_p=cin_p, relu=relu)
    flops = 2 * B * oh * ow * taps * cin_p * cout_p
    bytes_accessed = (x_in.size * x_in.dtype.itemsize + w_taps.size * 2
                      + B * oh * ow * cout_p * 2 + 4 * cout_p)

    return pl.pallas_call(
        kern,
        out_shape=jax.ShapeDtypeStruct((B, oh, ow, cout_p), out_dtype),
        grid=(B, oh),
        in_specs=[x_spec,
                  pl.BlockSpec((taps, cin_p, cout_p), lambda b, i: (0, 0, 0)),
                  pl.BlockSpec((1, cout_p), lambda b, i: (0, 0))],
        out_specs=pl.BlockSpec((1, 1, ow, cout_p), lambda b, i: (b, i, 0, 0)),
        compiler_params=pltpu.CompilerParams(
            dimension_semantics=("parallel", "parallel"),
            vmem_limit_bytes=32 * 1024 * 1024),
        cost_estimate=pl.CostEstimate(flops=flops, transcendentals=0,
                                      bytes_accessed=int(bytes_accessed)),
    )(x_in, w_taps, shift)


def maxpool_3x3_s2_p1(x):
    B, H, W, cp = x.shape
    oh = (H - 1) // 2 + 1
    ow = (W - 1) // 2 + 1
    neg = float(jnp.finfo(x.dtype).min)
    Hpe, Wpe = _ceil_to(H + 2, 2), _ceil_to(W + 2, 2)
    xp = jnp.pad(x, ((0, 0), (1, Hpe - H - 1), (1, Wpe - W - 1), (0, 0)),
                 constant_values=neg)
    xr = xp.reshape(B, Hpe // 2, 2, Wpe // 2, 2 * cp)   # free reshape

    kern = functools.partial(_maxpool_kernel, ow=ow, cp=cp)
    return pl.pallas_call(
        kern,
        out_shape=jax.ShapeDtypeStruct((B, oh, ow, cp), x.dtype),
        grid=(1,),
        in_specs=[pl.BlockSpec((B, Hpe // 2, 2, Wpe // 2, 2 * cp),
                               lambda i: (0, 0, 0, 0, 0))],
        out_specs=pl.BlockSpec((B, oh, ow, cp), lambda i: (0, 0, 0, 0)),
        compiler_params=pltpu.CompilerParams(
            dimension_semantics=("arbitrary",)),
    )(xr)


def global_avgpool(x):
    # Returns (B, 1, Cp) == resnet(images).permute(0,2,3,1).view(B, -1, C) padded.
    B, H, W, cp = x.shape
    x3 = x.reshape(B, H * W, cp)
    return pl.pallas_call(
        _avgpool_kernel,
        out_shape=jax.ShapeDtypeStruct((B, 1, cp), jnp.float32),
        grid=(1,),
        in_specs=[pl.BlockSpec((B, H * W, cp), lambda i: (0, 0, 0))],
        out_specs=pl.BlockSpec((B, 1, cp), lambda i: (0, 0, 0)),
        compiler_params=pltpu.CompilerParams(
            dimension_semantics=("arbitrary",)),
    )(x3)


# ----------------------------- model definition -----------------------------

def _bn_fold(key, c):
    # Frozen eval-mode BatchNorm folded to y = x*scale + shift.
    k1, k2, k3, k4 = jax.random.split(key, 4)
    gamma = 1.0 + 0.1 * jax.random.normal(k1, (c,), jnp.float32)
    beta = 0.1 * jax.random.normal(k2, (c,), jnp.float32)
    mean = 0.1 * jax.random.normal(k3, (c,), jnp.float32)
    var = 0.5 + jnp.abs(jax.random.normal(k4, (c,), jnp.float32))
    scale = gamma / jnp.sqrt(var + 1e-5)
    shift = beta - mean * scale
    return scale, shift


def _conv_w(key, kh, kw, cin, cout):
    fan_in = kh * kw * cin
    return (jax.random.normal(key, (kh, kw, cin, cout), jnp.float32)
            / jnp.sqrt(float(fan_in)))


def _fold_pad(w_hwio, key_bn, cin_p, cout_p):
    # Fold BN scale into conv weight columns, zero-pad K rows / N cols to lane
    # multiples once at init (padded activation channels are exactly zero).
    kh, kw, cin, cout = w_hwio.shape
    scale, shift = _bn_fold(key_bn, cout)
    w = w_hwio * scale
    w = jnp.pad(w, ((0, 0), (0, 0), (0, cin_p - cin), (0, cout_p - cout)))
    w = w.reshape(kh * kw, cin_p, cout_p).astype(jnp.bfloat16)
    b = jnp.pad(shift, (0, cout_p - cout)).reshape(1, cout_p).astype(jnp.float32)
    return w, b


def init_params(key):
    keys = iter(jax.random.split(key, 64))
    params = {}
    # Stem: conv 7x7/s2/p3, 3 -> 16 channels (carried as 128 lanes end-to-end).
    params['stem_w'], params['stem_b'] = _fold_pad(
        _conv_w(next(keys), 7, 7, 3, 16), next(keys), LANE, LANE)
    # (cin, mid, cout, stride) per stage -- one bottleneck block each.
    cfg = [(16, 8, 32, 1), (32, 16, 64, 2), (64, 32, 128, 2), (128, 64, 256, 2)]
    stages = []
    for cin, mid, cout, stride in cfg:
        cin_p, mid_p, cout_p = (_ceil_to(c, LANE) for c in (cin, mid, cout))
        w1, b1 = _fold_pad(_conv_w(next(keys), 1, 1, cin, mid), next(keys),
                           cin_p, mid_p)
        w2, b2 = _fold_pad(_conv_w(next(keys), 3, 3, mid, mid), next(keys),
                           mid_p, mid_p)
        w3, b3 = _fold_pad(_conv_w(next(keys), 1, 1, mid, cout), next(keys),
                           mid_p, cout_p)
        wd, bd = _fold_pad(_conv_w(next(keys), 1, 1, cin, cout), next(keys),
                           cin_p, cout_p)
        p = {'stride': stride, 'mid_p': mid_p, 'cout_p': cout_p,
             'w2': w2, 'b2': b2,
             'w3': w3.reshape(mid_p, cout_p), 'b3': b3}
        if stride == 1:
            # Merge the two 1x1 convs that read the same x into one MXU pass.
            p['w1d'] = jnp.concatenate([w1.reshape(cin_p, mid_p),
                                        wd.reshape(cin_p, cout_p)], axis=1)
            p['b1d'] = jnp.concatenate([b1, bd], axis=1)
        else:
            p['w1'], p['b1'] = w1.reshape(cin_p, mid_p), b1
            p['wd'], p['bd'] = wd, bd        # (1, cin_p, cout_p): fused 1x1/s2 conv
        stages.append(p)
    params['stages'] = stages
    params['cout'] = cfg[-1][2]
    return params


def bottleneck(x, p):
    B, H, W, cin_p = x.shape
    s, mid_p, cout_p = p['stride'], p['mid_p'], p['cout_p']
    x2d = x.reshape(B * H * W, cin_p)

    if s == 1:
        # One MXU pass for [conv1(+ReLU) | downsample (no ReLU)], two outputs.
        out1_2d, identity = matmul_split_relu(x2d, p['w1d'], p['b1d'], split=mid_p)
        out1 = out1_2d.reshape(B, H, W, mid_p)
    else:
        out1 = matmul_bias_act(x2d, p['w1'], p['b1'],
                               relu=True).reshape(B, H, W, mid_p)
        # Downsample = fused 1x1/s2 conv (no XLA strided-slice materialization).
        ident4 = conv_fused(x, p['wd'], p['bd'], k=1, stride=2, pad=0, relu=False)
        identity = ident4.reshape(-1, cout_p)

    out2 = conv_fused(out1, p['w2'], p['b2'], k=3, stride=s, pad=1, relu=True)
    Bo, oh, ow, _ = out2.shape
    # w3 conv with fused residual add + final ReLU in the epilogue.
    # NOTE: residual carried in bf16 -> small drift vs an f32 PyTorch residual path.
    out = matmul_bias_act(out2.reshape(Bo * oh * ow, mid_p), p['w3'], p['b3'],
                          relu=True, residual=identity)
    return out.reshape(Bo, oh, ow, cout_p)


def encoder_cnn_forward(images_nchw, params):
    # PyTorch NCHW input -> kernel NHWC layout, channels padded to 128 lanes once.
    x = jnp.transpose(images_nchw, (0, 2, 3, 1)).astype(jnp.float32)
    C = x.shape[-1]
    if C < LANE:
        x = jnp.pad(x, ((0, 0), (0, 0), (0, 0), (0, LANE - C)))
    # Stem: conv7x7/s2/p3 + BN + ReLU (fused taps), then maxpool3x3/s2/p1.
    x = conv_fused(x, params['stem_w'], params['stem_b'], k=7, stride=2, pad=3,
                   relu=True)
    x = maxpool_3x3_s2_p1(x)
    for p in params['stages']:
        x = bottleneck(x, p)
    feats = global_avgpool(x)                 # (B, 1, Cp) f32
    # Only slice off channel padding at the very end (== permute+view of PyTorch).
    return feats[:, :, :params['cout']]


if __name__ == "__main__":
    key = jax.random.PRNGKey(0)
    pkey, xkey = jax.random.split(key)
    params = init_params(pkey)
    images = jax.random.normal(xkey, (2, 3, 16, 16), jnp.float32)  # NCHW

    fwd = jax.jit(lambda imgs: encoder_cnn_forward(imgs, params))
    features = jax.block_until_ready(fwd(images))

    assert features.shape == (2, 1, 256), features.shape
    assert bool(jnp.all(jnp.isfinite(features)))
    print("KERNEL_OK")
</pallas_src>

<mosaic_0001>
module attributes {stable_mosaic.version = 11 : i64} {
  func.func @_maxpool_kernel(%arg0: i32, %arg1: memref<2x5x2x5x256xbf16, #tpu.memory_space<vmem>>, %arg2: memref<2x4x4x128xbf16, #tpu.memory_space<vmem>>) attributes {dimension_semantics = [#tpu.dimension_semantics<arbitrary>], iteration_bounds = array<i64: 1>, scalar_prefetch = 0 : i64, scratch_operands = 0 : i64, tpu.core_type = #tpu.core_type<tc>, window_params = [{pipeline_mode = #tpu.pipeline_mode<synchronous>, transform_indices = @transform_0, window_bounds = array<i64: 2, 5, 2, 5, 256>}, {pipeline_mode = #tpu.pipeline_mode<synchronous>, transform_indices = @transform_1, window_bounds = array<i64: 2, 4, 4, 128>}]} {
    %c0 = arith.constant 0 : index
    %c0_0 = arith.constant 0 : index
    %c0_1 = arith.constant 0 : index
    %c0_2 = arith.constant 0 : index
    %c0_3 = arith.constant 0 : index
    %0 = vector.load %arg1[%c0, %c0_0, %c0_1, %c0_2, %c0_3] : memref<2x5x2x5x256xbf16, #tpu.memory_space<vmem>>, vector<2x4x1x4x128xbf16>
    %1 = vector.shape_cast %0 : vector<2x4x1x4x128xbf16> to vector<2x4x4x128xbf16>
    %c0_4 = arith.constant 0 : index
    %c0_5 = arith.constant 0 : index
    %c0_6 = arith.constant 0 : index
    %c0_7 = arith.constant 0 : index
    %c128 = arith.constant 128 : index
    %2 = vector.load %arg1[%c0_4, %c0_5, %c0_6, %c0_7, %c128] : memref<2x5x2x5x256xbf16, #tpu.memory_space<vmem>>, vector<2x4x1x4x128xbf16>
    %3 = vector.shape_cast %2 : vector<2x4x1x4x128xbf16> to vector<2x4x4x128xbf16>
    %4 = arith.maximumf %1, %3 : vector<2x4x4x128xbf16>
    %c0_8 = arith.constant 0 : index
    %c0_9 = arith.constant 0 : index
    %c0_10 = arith.constant 0 : index
    %c1 = arith.constant 1 : index
    %c0_11 = arith.constant 0 : index
    %5 = vector.load %arg1[%c0_8, %c0_9, %c0_10, %c1, %c0_11] : memref<2x5x2x5x256xbf16, #tpu.memory_space<vmem>>, vector<2x4x1x4x128xbf16>
    %6 = vector.shape_cast %5 : vector<2x4x1x4x128xbf16> to vector<2x4x4x128xbf16>
    %7 = arith.maximumf %4, %6 : vector<2x4x4x128xbf16>
    %c0_12 = arith.constant 0 : index
    %c0_13 = arith.constant 0 : index
    %c1_14 = arith.constant 1 : index
    %c0_15 = arith.constant 0 : index
    %c0_16 = arith.constant 0 : index
    %8 = vector.load %arg1[%c0_12, %c0_13, %c1_14, %c0_15, %c0_16] : memref<2x5x2x5x256xbf16, #tpu.memory_space<vmem>>, vector<2x4x1x4x128xbf16>
    %9 = vector.shape_cast %8 : vector<2x4x1x4x128xbf16> to vector<2x4x4x128xbf16>
    %10 = arith.maximumf %7, %9 : vector<2x4x4x128xbf16>
    %c0_17 = arith.constant 0 : index
    %c0_18 = arith.constant 0 : index
    %c1_19 = arith.constant 1 : index
    %c0_20 = arith.constant 0 : index
    %c128_21 = arith.constant 128 : index
    %11 = vector.load %arg1[%c0_17, %c0_18, %c1_19, %c0_20, %c128_21] : memref<2x5x2x5x256xbf16, #tpu.memory_space<vmem>>, vector<2x4x1x4x128xbf16>
    %12 = vector.shape_cast %11 : vector<2x4x1x4x128xbf16> to vector<2x4x4x128xbf16>
    %13 = arith.maximumf %10, %12 : vector<2x4x4x128xbf16>
    %c0_22 = arith.constant 0 : index
    %c0_23 = arith.constant 0 : index
    %c1_24 = arith.constant 1 : index
    %c1_25 = arith.constant 1 : index
    %c0_26 = arith.constant 0 : index
    %14 = vector.load %arg1[%c0_22, %c0_23, %c1_24, %c1_25, %c0_26] : memref<2x5x2x5x256xbf16, #tpu.memory_space<vmem>>, vector<2x4x1x4x128xbf16>
    %15 = vector.shape_cast %14 : vector<2x4x1x4x128xbf16> to vector<2x4x4x128xbf16>
    %16 = arith.maximumf %13, %15 : vector<2x4x4x128xbf16>
    %c0_27 = arith.constant 0 : index
    %c1_28 = arith.constant 1 : index
    %c0_29 = arith.constant 0 : index
    %c0_30 = arith.constant 0 : index
    %c0_31 = arith.constant 0 : index
    %17 = vector.load %arg1[%c0_27, %c1_28, %c0_29, %c0_30, %c0_31] : memref<2x5x2x5x256xbf16, #tpu.memory_space<vmem>>, vector<2x4x1x4x128xbf16>
    %18 = vector.shape_cast %17 : vector<2x4x1x4x128xbf16> to vector<2x4x4x128xbf16>
    %19 = arith.maximumf %16, %18 : vector<2x4x4x128xbf16>
    %c0_32 = arith.constant 0 : index
    %c1_33 = arith.constant 1 : index
    %c0_34 = arith.constant 0 : index
    %c0_35 = arith.constant 0 : index
    %c128_36 = arith.constant 128 : index
    %20 = vector.load %arg1[%c0_32, %c1_33, %c0_34, %c0_35, %c128_36] : memref<2x5x2x5x256xbf16, #tpu.memory_space<vmem>>, vector<2x4x1x4x128xbf16>
    %21 = vector.shape_cast %20 : vector<2x4x1x4x128xbf16> to vector<2x4x4x128xbf16>
    %22 = arith.maximumf %19, %21 : vector<2x4x4x128xbf16>
    %c0_37 = arith.constant 0 : index
    %c1_38 = arith.constant 1 : index
    %c0_39 = arith.constant 0 : index
    %c1_40 = arith.constant 1 : index
    %c0_41 = arith.constant 0 : index
    %23 = vector.load %arg1[%c0_37, %c1_38, %c0_39, %c1_40, %c0_41] : memref<2x5x2x5x256xbf16, #tpu.memory_space<vmem>>, vector<2x4x1x4x128xbf16>
    %24 = vector.shape_cast %23 : vector<2x4x1x4x128xbf16> to vector<2x4x4x128xbf16>
    %25 = arith.maximumf %22, %24 : vector<2x4x4x128xbf16>
    %c0_42 = arith.constant 0 : index
    %c0_43 = arith.constant 0 : index
    %c0_44 = arith.constant 0 : index
    %c0_45 = arith.constant 0 : index
    %26 = vector.load %arg2[%c0_42, %c0_43, %c0_44, %c0_45] : memref<2x4x4x128xbf16, #tpu.memory_space<vmem>>, vector<2x4x4x128xbf16>
    tpu.vector_store %arg2[%c0_42, %c0_43, %c0_44, %c0_45], %25 {strides = array<i32>} : memref<2x4x4x128xbf16, #tpu.memory_space<vmem>>, vector<2x4x4x128xbf16>,
    return
  }
  func.func @transform_0(%arg0: i32) -> (i32, i32, i32, i32, i32) {
    %c0_i32 = arith.constant 0 : i32
    %c0_i32_0 = arith.constant 0 : i32
    %c0_i32_1 = arith.constant 0 : i32
    %c0_i32_2 = arith.constant 0 : i32
    %c0_i32_3 = arith.constant 0 : i32
    %c0_i32_4 = arith.constant 0 : i32
    return %c0_i32, %c0_i32_0, %c0_i32_1, %c0_i32_2, %c0_i32_3 : i32, i32, i32, i32, i32
  }
  func.func @transform_1(%arg0: i32) -> (i32, i32, i32, i32) {
    %c0_i32 = arith.constant 0 : i32
    %c0_i32_0 = arith.constant 0 : i32
    %c0_i32_1 = arith.constant 0 : i32
    %c0_i32_2 = arith.constant 0 : i32
    %c0_i32_3 = arith.constant 0 : i32
    return %c0_i32, %c0_i32_0, %c0_i32_1, %c0_i32_2 : i32, i32, i32, i32
  }
}

module attributes {stable_mosaic.version = 11 : i64} {
  func.func @_conv_tap_kernel(%arg0: i32, %arg1: i32, %arg2: memref<1x11x2x11x256xbf16, #tpu.memory_space<vmem>>, %arg3: memref<49x128x128xbf16, #tpu.memory_space<vmem>>, %arg4: memref<1x128xf32, #tpu.memory_space<vmem>>, %arg5: memref<1x1x8x128xbf16, #tpu.memory_space<vmem>>) attributes {dimension_semantics = [#tpu.dimension_semantics<parallel>, #tpu.dimension_semantics<parallel>], iteration_bounds = array<i64: 2, 8>, scalar_prefetch = 0 : i64, scratch_operands = 0 : i64, tpu.core_type = #tpu.core_type<tc>, window_params = [{transform_indices = @transform_0, window_bounds = array<i64: 1, 11, 2, 11, 256>}, {pipeline_mode = #tpu.pipeline_mode<synchronous>, transform_indices = @transform_1, window_bounds = array<i64: 49, 128, 128>}, {pipeline_mode = #tpu.pipeline_mode<synchronous>, transform_indices = @transform_2, window_bounds = array<i64: 1, 128>}, {transform_indices = @transform_3, window_bounds = array<i64: 1, 1, 8, 128>}]} {
    %cst = arith.constant 0.000000e+00 : f32
    %0 = vector.broadcast %cst : f32 to vector<8x128xf32>
    %c0_i32 = arith.constant 0 : i32
    %1 = arith.addi %arg1, %c0_i32 : i32
    %c0 = arith.constant 0 : index
    %2 = arith.index_cast %1 : i32 to index
    %c0_0 = arith.constant 0 : index
    %c0_1 = arith.constant 0 : index
    %c0_2 = arith.constant 0 : index
    %3 = vector.load %arg2[%c0, %2, %c0_0, %c0_1, %c0_2] : memref<1x11x2x11x256xbf16, #tpu.memory_space<vmem>>, vector<1x1x1x8x128xbf16>
    %4 = vector.shape_cast %3 : vector<1x1x1x8x128xbf16> to vector<8x128xbf16>
    %c0_3 = arith.constant 0 : index
    %c0_4 = arith.constant 0 : index
    %c0_5 = arith.constant 0 : index
    %5 = vector.load %arg3[%c0_3, %c0_4, %c0_5] : memref<49x128x128xbf16, #tpu.memory_space<vmem>>, vector<1x128x128xbf16>
    %6 = vector.shape_cast %5 : vector<1x128x128xbf16> to vector<128x128xbf16>
    %cst_6 = arith.constant dense<0.000000e+00> : vector<8x128xf32>
    %7 = tpu.matmul %4, %6, %cst_6 {dimension_numbers = #tpu.dot_dimension_numbers<[1], [0], [0], [1], [0, 0, 1, 1], [], []>} : vector<8x128xbf16>, vector<128x128xbf16>, vector<8x128xf32> -> vector<8x128xf32>
    %8 = arith.addf %0, %7 : vector<8x128xf32>
    %c0_i32_7 = arith.constant 0 : i32
    %9 = arith.addi %arg1, %c0_i32_7 : i32
    %c0_8 = arith.constant 0 : index
    %10 = arith.index_cast %9 : i32 to index
    %c0_9 = arith.constant 0 : index
    %c0_10 = arith.constant 0 : index
    %c128 = arith.constant 128 : index
    %11 = vector.load %arg2[%c0_8, %10, %c0_9, %c0_10, %c128] : memref<1x11x2x11x256xbf16, #tpu.memory_space<vmem>>, vector<1x1x1x8x128xbf16>
    %12 = vector.shape_cast %11 : vector<1x1x1x8x128xbf16> to vector<8x128xbf16>
    %c1 = arith.constant 1 : index
    %c0_11 = arith.constant 0 : index
    %c0_12 = arith.constant 0 : index
    %13 = vector.load %arg3[%c1, %c0_11, %c0_12] : memref<49x128x128xbf16, #tpu.memory_space<vmem>>, vector<1x128x128xbf16>
    %14 = vector.shape_cast %13 : vector<1x128x128xbf16> to vector<128x128xbf16>
    %cst_13 = arith.constant dense<0.000000e+00> : vector<8x128xf32>
    %15 = tpu.matmul %12, %14, %cst_13 {dimension_numbers = #tpu.dot_dimension_numbers<[1], [0], [0], [1], [0, 0, 1, 1], [], []>} : vector<8x128xbf16>, vector<128x128xbf16>, vector<8x128xf32> -> vector<8x128xf32>
    %16 = arith.addf %8, %15 : vector<8x128xf32>
    %c0_i32_14 = arith.constant 0 : i32
    %17 = arith.addi %arg1, %c0_i32_14 : i32
    %c0_15 = arith.constant 0 : index
    %18 = arith.index_cast %17 : i32 to index
    %c0_16 = arith.constant 0 : index
    %c1_17 = arith.constant 1 : index
    %c0_18 = arith.constant 0 : index
    %19 = vector.load %arg2[%c0_15, %18, %c0_16, %c1_17, %c0_18] : memref<1x11x2x11x256xbf16, #tpu.memory_space<vmem>>, vector<1x1x1x8x128xbf16>
    %20 = vector.shape_cast %19 : vector<1x1x1x8x128xbf16> to vector<8x128xbf16>
    %c2 = arith.constant 2 : index
    %c0_19 = arith.constant 0 : index
    %c0_20 = arith.constant 0 : index
    %21 = vector.load %arg3[%c2, %c0_19, %c0_20] : memref<49x128x128xbf16, #tpu.memory_space<vmem>>, vector<1x128x128xbf16>
    %22 = vector.shape_cast %21 : vector<1x128x128xbf16> to vector<128x128xbf16>
    %cst_21 = arith.constant dense<0.000000e+00> : vector<8x128xf32>
    %23 = tpu.matmul %20, %22, %cst_21 {dimension_numbers = #tpu.dot_dimension_numbers<[1], [0], [0], [1], [0, 0, 1, 1], [], []>} : vector<8x128xbf16>, vector<128x128xbf16>, vector<8x128xf32> -> vector<8x128xf32>
    %24 = arith.addf %16, %23 : vector<8x128xf32>
    %c0_i32_22 = arith.constant 0 : i32
    %25 = arith.addi %arg1, %c0_i32_22 : i32
    %c0_23 = arith.constant 0 : index
    %26 = arith.index_cast %25 : i32 to index
    %c0_24 = arith.constant 0 : index
    %c1_25 = arith.constant 1 : index
    %c128_26 = arith.constant 128 : index
    %27 = vector.load %arg2[%c0_23, %26, %c0_24, %c1_25, %c128_26] : memref<1x11x2x11x256xbf16, #tpu.memory_space<vmem>>, vector<1x1x1x8x128xbf16>
    %28 = vector.shape_cast %27 : vector<1x1x1x8x128xbf16> to vector<8x128xbf16>
    %c3 = arith.constant 3 : index
    %c0_27 = arith.constant 0 : index
    %c0_28 = arith.constant 0 : index
    %29 = vector.load %arg3[%c3, %c0_27, %c0_28] : memref<49x128x128xbf16, #tpu.memory_space<vmem>>, vector<1x128x128xbf16>
    %30 = vector.shape_cast %29 : vector<1x128x128xbf16> to vector<128x128xbf16>
    %cst_29 = arith.constant dense<0.000000e+00> : vector<8x128xf32>
    %31 = tpu.matmul %28, %30, %cst_29 {dimension_numbers = #tpu.dot_dimension_numbers<[1], [0], [0], [1], [0, 0, 1, 1], [], []>} : vector<8x128xbf16>, vector<128x128xbf16>, vector<8x128xf32> -> vector<8x128xf32>
    %32 = arith.addf %24, %31 : vector<8x128xf32>
    %c0_i32_30 = arith.constant 0 : i32
    %33 = arith.addi %arg1, %c0_i32_30 : i32
    %c0_31 = arith.constant 0 : index
    %34 = arith.index_cast %33 : i32 to index
    %c0_32 = arith.constant 0 : index
    %c2_33 = arith.constant 2 : index
    %c0_34 = arith.constant 0 : index
    %35 = vector.load %arg2[%c0_31, %34, %c0_32, %c2_33, %c0_34] : memref<1x11x2x11x256xbf16, #tpu.memory_space<vmem>>, vector<1x1x1x8x128xbf16>
    %36 = vector.shape_cast %35 : vector<1x1x1x8x128xbf16> to vector<8x128xbf16>
    %c4 = arith.constant 4 : index
    %c0_35 = arith.constant 0 : index
    %c0_36 = arith.constant 0 : index
    %37 = vector.load %arg3[%c4, %c0_35, %c0_36] : memref<49x128x128xbf16, #tpu.memory_space<vmem>>, vector<1x128x128xbf16>
    %38 = vector.shape_cast %37 : vector<1x128x128xbf16> to vector<128x128xbf16>
    %cst_37 = arith.constant dense<0.000000e+00> : vector<8x128xf32>
    %39 = tpu.matmul %36, %38, %cst_37 {dimension_numbers = #tpu.dot_dimension_numbers<[1], [0], [0], [1], [0, 0, 1, 1], [], []>} : vector<8x128xbf16>, vector<128x128xbf16>, vector<8x128xf32> -> vector<8x128xf32>
    %40 = arith.addf %32, %39 : vector<8x128xf32>
    %c0_i32_38 = arith.constant 0 : i32
    %41 = arith.addi %arg1, %c0_i32_38 : i32
    %c0_39 = arith.constant 0 : index
    %42 = arith.index_cast %41 : i32 to index
    %c0_40 = arith.constant 0 : index
    %c2_41 = arith.constant 2 : index
    %c128_42 = arith.constant 128 : index
    %43 = vector.load %arg2[%c0_39, %42, %c0_40, %c2_41, %c128_42] : memref<1x11x2x11x256xbf16, #tpu.memory_space<vmem>>, vector<1x1x1x8x128xbf16>
    %44 = vector.shape_cast %43 : vector<1x1x1x8x128xbf16> to vector<8x128xbf16>
    %c5 = arith.constant 5 : index
    %c0_43 = arith.constant 0 : index
    %c0_44 = arith.constant 0 : index
    %45 = vector.load %arg3[%c5, %c0_43, %c0_44] : memref<49x128x128xbf16, #tpu.memory_space<vmem>>, vector<1x128x128xbf16>
    %46 = vector.shape_cast %45 : vector<1x128x128xbf16> to vector<128x128xbf16>
    %cst_45 = arith.constant dense<0.000000e+00> : vector<8x128xf32>
    %47 = tpu.matmul %44, %46, %cst_45 {dimension_numbers = #tpu.dot_dimension_numbers<[1], [0], [0], [1], [0, 0, 1, 1], [], []>} : vector<8x128xbf16>, vector<128x128xbf16>, vector<8x128xf32> -> vector<8x128xf32>
    %48 = arith.addf %40, %47 : vector<8x128xf32>
    %c0_i32_46 = arith.constant 0 : i32
    %49 = arith.addi %arg1, %c0_i32_46 : i32
    %c0_47 = arith.constant 0 : index
    %50 = arith.index_cast %49 : i32 to index
    %c0_48 = arith.constant 0 : index
    %c3_49 = arith.constant 3 : index
    %c0_50 = arith.constant 0 : index
    %51 = vector.load %arg2[%c0_47, %50, %c0_48, %c3_49, %c0_50] : memref<1x11x2x11x256xbf16, #tpu.memory_space<vmem>>, vector<1x1x1x8x128xbf16>
    %52 = vector.shape_cast %51 : vector<1x1x1x8x128xbf16> to vector<8x128xbf16>
    %c6 = arith.constant 6 : index
    %c0_51 = arith.constant 0 : index
    %c0_52 = arith.constant 0 : index
    %53 = vector.load %arg3[%c6, %c0_51, %c0_52] : memref<49x128x128xbf16, #tpu.memory_space<vmem>>, vector<1x128x128xbf16>
    %54 = vector.shape_cast %53 : vector<1x128x128xbf16> to vector<128x128xbf16>
    %cst_53 = arith.constant dense<0.000000e+00> : vector<8x128xf32>
    %55 = tpu.matmul %52, %54, %cst_53 {dimension_numbers = #tpu.dot_dimension_numbers<[1], [0], [0], [1], [0, 0, 1, 1], [], []>} : vector<8x128xbf16>, vector<128x128xbf16>, vector<8x128xf32> -> vector<8x128xf32>
    %56 = arith.addf %48, %55 : vector<8x128xf32>
    %c0_i32_54 = arith.constant 0 : i32
    %57 = arith.addi %arg1, %c0_i32_54 : i32
    %c0_55 = arith.constant 0 : index
    %58 = arith.index_cast %57 : i32 to index
    %c1_56 = arith.constant 1 : index
    %c0_57 = arith.constant 0 : index
    %c0_58 = arith.constant 0 : index
    %59 = vector.load %arg2[%c0_55, %58, %c1_56, %c0_57, %c0_58] : memref<1x11x2x11x256xbf16, #tpu.memory_space<vmem>>, vector<1x1x1x8x128xbf16>
    %60 = vector.shape_cast %59 : vector<1x1x1x8x128xbf16> to vector<8x128xbf16>
    %c7 = arith.constant 7 : index
    %c0_59 = arith.constant 0 : index
    %c0_60 = arith.constant 0 : index
    %61 = vector.load %arg3[%c7, %c0_59, %c0_60] : memref<49x128x128xbf16, #tpu.memory_space<vmem>>, vector<1x128x128xbf16>
    %62 = vector.shape_cast %61 : vector<1x128x128xbf16> to vector<128x128xbf16>
    %cst_61 = arith.constant dense<0.000000e+00> : vector<8x128xf32>
    %63 = tpu.matmul %60, %62, %cst_61 {dimension_numbers = #tpu.dot_dimension_numbers<[1], [0], [0], [1], [0, 0, 1, 1], [], []>} : vector<8x128xbf16>, vector<128x128xbf16>, vector<8x128xf32> -> vector<8x128xf32>
    %64 = arith.addf %56, %63 : vector<8x128xf32>
    %c0_i32_62 = arith.constant 0 : i32
    %65 = arith.addi %arg1, %c0_i32_62 : i32
    %c0_63 = arith.constant 0 : index
    %66 = arith.index_cast %65 : i32 to index
    %c1_64 = arith.constant 1 : index
    %c0_65 = arith.constant 0 : index
    %c128_66 = arith.constant 128 : index
    %67 = vector.load %arg2[%c0_63, %66, %c1_64, %c0_65, %c128_66] : memref<1x11x2x11x256xbf16, #tpu.memory_space<vmem>>, vector<1x1x1x8x128xbf16>
    %68 = vector.shape_cast %67 : vector<1x1x1x8x128xbf16> to vector<8x128xbf16>
    %c8 = arith.constant 8 : index
    %c0_67 = arith.constant 0 : index
    %c0_68 = arith.constant 0 : index
    %69 = vector.load %arg3[%c8, %c0_67, %c0_68] : memref<49x128x128xbf16, #tpu.memory_space<vmem>>, vector<1x128x128xbf16>
    %70 = vector.shape_cast %69 : vector<1x128x128xbf16> to vector<128x128xbf16>
    %cst_69 = arith.constant dense<0.000000e+00> : vector<8x128xf32>
    %71 = tpu.matmul %68, %70, %cst_69 {dimension_numbers = #tpu.dot_dimension_numbers<[1], [0], [0], [1], [0, 0, 1, 1], [], []>} : vector<8x128xbf16>, vector<128x128xbf16>, vector<8x128xf32> -> vector<8x128xf32>
    %72 = arith.addf %64, %71 : vector<8x128xf32>
    %c0_i32_70 = arith.constant 0 : i32
    %73 = arith.addi %arg1, %c0_i32_70 : i32
    %c0_71 = arith.constant 0 : index
    %74 = arith.index_cast %73 : i32 to index
    %c1_72 = arith.constant 1 : index
    %c1_73 = arith.constant 1 : index
    %c0_74 = arith.constant 0 : index
    %75 = vector.load %arg2[%c0_71, %74, %c1_72, %c1_73, %c0_74] : memref<1x11x2x11x256xbf16, #tpu.memory_space<vmem>>, vector<1x1x1x8x128xbf16>
    %76 = vector.shape_cast %75 : vector<1x1x1x8x128xbf16> to vector<8x128xbf16>
    %c9 = arith.constant 9 : index
    %c0_75 = arith.constant 0 : index
    %c0_76 = arith.constant 0 : index
    %77 = vector.load %arg3[%c9, %c0_75, %c0_76] : memref<49x128x128xbf16, #tpu.memory_space<vmem>>, vector<1x128x128xbf16>
    %78 = vector.shape_cast %77 : vector<1x128x128xbf16> to vector<128x128xbf16>
    %cst_77 = arith.constant dense<0.000000e+00> : vector<8x128xf32>
    %79 = tpu.matmul %76, %78, %cst_77 {dimension_numbers = #tpu.dot_dimension_numbers<[1], [0], [0], [1], [0, 0, 1, 1], [], []>} : vector<8x128xbf16>, vector<128x128xbf16>, vector<8x128xf32> -> vector<8x128xf32>
    %80 = arith.addf %72, %79 : vector<8x128xf32>
    %c0_i32_78 = arith.constant 0 : i32
    %81 = arith.addi %arg1, %c0_i32_78 : i32
    %c0_79 = arith.constant 0 : index
    %82 = arith.index_cast %81 : i32 to index
    %c1_80 = arith.constant 1 : index
    %c1_81 = arith.constant 1 : index
    %c128_82 = arith.constant 128 : index
    %83 = vector.load %arg2[%c0_79, %82, %c1_80, %c1_81, %c128_82] : memref<1x11x2x11x256xbf16, #tpu.memory_space<vmem>>, vector<1x1x1x8x128xbf16>
    %84 = vector.shape_cast %83 : vector<1x1x1x8x128xbf16> to vector<8x128xbf16>
    %c10 = arith.constant 10 : index
    %c0_83 = arith.constant 0 : index
    %c0_84 = arith.constant 0 : index
    %85 = vector.load %arg3[%c10, %c0_83, %c0_84] : memref<49x128x128xbf16, #tpu.memory_space<vmem>>, vector<1x128x128xbf16>
    %86 = vector.shape_cast %85 : vector<1x128x128xbf16> to vector<128x128xbf16>
    %cst_85 = arith.constant dense<0.000000e+00> : vector<8x128xf32>
    %87 = tpu.matmul %84, %86, %cst_85 {dimension_numbers = #tpu.dot_dimension_numbers<[1], [0], [0], [1], [0, 0, 1, 1], [], []>} : vector<8x128xbf16>, vector<128x128xbf16>, vector<8x128xf32> -> vector<8x128xf32>
    %88 = arith.addf %80, %87 : vector<8x128xf32>
    %c0_i32_86 = arith.constant 0 : i32
    %89 = arith.addi %arg1, %c0_i32_86 : i32
    %c0_87 = arith.constant 0 : index
    %90 = arith.index_cast %89 : i32 to index
    %c1_88 = arith.constant 1 : index
    %c2_89 = arith.constant 2 : index
    %c0_90 = arith.constant 0 : index
    %91 = vector.load %arg2[%c0_87, %90, %c1_88, %c2_89, %c0_90] : memref<1x11x2x11x256xbf16, #tpu.memory_space<vmem>>, vector<1x1x1x8x128xbf16>
    %92 = vector.shape_cast %91 : vector<1x1x1x8x128xbf16> to vector<8x128xbf16>
    %c11 = arith.constant 11 : index
    %c0_91 = arith.constant 0 : index
    %c0_92 = arith.constant 0 : index
    %93 = vector.load %arg3[%c11, %c0_91, %c0_92] : memref<49x128x128xbf16, #tpu.memory_space<vmem>>, vector<1x128x128xbf16>
    %94 = vector.shape_cast %93 : vector<1x128x128xbf16> to vector<128x128xbf16>
    %cst_93 = arith.constant dense<0.000000e+00> : vector<8x128xf32>
    %95 = tpu.matmul %92, %94, %cst_93 {dimension_numbers = #tpu.dot_dimension_numbers<[1], [0], [0], [1], [0, 0, 1, 1], [], []>} : vector<8x128xbf16>, vector<128x128xbf16>, vector<8x128xf32> -> vector<8x128xf32>
    %96 = arith.addf %88, %95 : vector<8x128xf32>
    %c0_i32_94 = arith.constant 0 : i32
    %97 = arith.addi %arg1, %c0_i32_94 : i32
    %c0_95 = arith.constant 0 : index
    %98 = arith.index_cast %97 : i32 to index
    %c1_96 = arith.constant 1 : index
    %c2_97 = arith.constant 2 : index
    %c128_98 = arith.constant 128 : index
    %99 = vector.load %arg2[%c0_95, %98, %c1_96, %c2_97, %c128_98] : memref<1x11x2x11x256xbf16, #tpu.memory_space<vmem>>, vector<1x1x1x8x128xbf16>
    %100 = vector.shape_cast %99 : vector<1x1x1x8x128xbf16> to vector<8x128xbf16>
    %c12 = arith.constant 12 : index
    %c0_99 = arith.constant 0 : index
    %c0_100 = arith.constant 0 : index
    %101 = vector.load %arg3[%c12, %c0_99, %c0_100] : memref<49x128x128xbf16, #tpu.memory_space<vmem>>, vector<1x128x128xbf16>
    %102 = vector.shape_cast %101 : vector<1x128x128xbf16> to vector<128x128xbf16>
    %cst_101 = arith.constant dense<0.000000e+00> : vector<8x128xf32>
    %103 = tpu.matmul %100, %102, %cst_101 {dimension_numbers = #tpu.dot_dimension_numbers<[1], [0], [0], [1], [0, 0, 1, 1], [], []>} : vector<8x128xbf16>, vector<128x128xbf16>, vector<8x128xf32> -> vector<8x128xf32>
    %104 = arith.addf %96, %103 : vector<8x128xf32>
    %c0_i32_102 = arith.constant 0 : i32
    %105 = arith.addi %arg1, %c0_i32_102 : i32
    %c0_103 = arith.constant 0 : index
    %106 = arith.index_cast %105 : i32 to index
    %c1_104 = arith.constant 1 : index
    %c3_105 = arith.constant 3 : index
    %c0_106 = arith.constant 0 : index
    %107 = vector.load %arg2[%c0_103, %106, %c1_104, %c3_105, %c0_106] : memref<1x11x2x11x256xbf16, #tpu.memory_space<vmem>>, vector<1x1x1x8x128xbf16>
    %108 = vector.shape_cast %107 : vector<1x1x1x8x128xbf16> to vector<8x128xbf16>
    %c13 = arith.constant 13 : index
    %c0_107 = arith.constant 0 : index
    %c0_108 = arith.constant 0 : index
    %109 = vector.load %arg3[%c13, %c0_107, %c0_108] : memref<49x128x128xbf16, #tpu.memory_space<vmem>>, vector<1x128x128xbf16>
    %110 = vector.shape_cast %109 : vector<1x128x128xbf16> to vector<128x128xbf16>
    %cst_109 = arith.constant dense<0.000000e+00> : vector<8x128xf32>
    %111 = tpu.matmul %108, %110, %cst_109 {dimension_numbers = #tpu.dot_dimension_numbers<[1], [0], [0], [1], [0, 0, 1, 1], [], []>} : vector<8x128xbf16>, vector<128x128xbf16>, vector<8x128xf32> -> vector<8x128xf32>
    %112 = arith.addf %104, %111 : vector<8x128xf32>
    %c1_i32 = arith.constant 1 : i32
    %113 = arith.addi %arg1, %c1_i32 : i32
    %c0_110 = arith.constant 0 : index
    %114 = arith.index_cast %113 : i32 to index
    %c0_111 = arith.constant 0 : index
    %c0_112 = arith.constant 0 : index
    %c0_113 = arith.constant 0 : index
    %115 = vector.load %arg2[%c0_110, %114, %c0_111, %c0_112, %c0_113] : memref<1x11x2x11x256xbf16, #tpu.memory_space<vmem>>, vector<1x1x1x8x128xbf16>
    %116 = vector.shape_cast %115 : vector<1x1x1x8x128xbf16> to vector<8x128xbf16>
    %c14 = arith.constant 14 : index
    %c0_114 = arith.constant 0 : index
    %c0_115 = arith.constant 0 : index
    %117 = vector.load %arg3[%c14, %c0_114, %c0_115] : memref<49x128x128xbf16, #tpu.memory_space<vmem>>, vector<1x128x128xbf16>
    %118 = vector.shape_cast %117 : vector<1x128x128xbf16> to vector<128x128xbf16>
    %cst_116 = arith.constant dense<0.000000e+00> : vector<8x128xf32>
    %119 = tpu.matmul %116, %118, %cst_116 {dimension_numbers = #tpu.dot_dimension_numbers<[1], [0], [0], [1], [0, 0, 1, 1], [], []>} : vector<8x128xbf16>, vector<128x128xbf16>, vector<8x128xf32> -> vector<8x128xf32>
    %120 = arith.addf %112, %119 : vector<8x128xf32>
    %c1_i32_117 = arith.constant 1 : i32
    %121 = arith.addi %arg1, %c1_i32_117 : i32
    %c0_118 = arith.constant 0 : index
    %122 = arith.index_cast %121 : i32 to index
    %c0_119 = arith.constant 0 : index
    %c0_120 = arith.constant 0 : index
    %c128_121 = arith.constant 128 : index
    %123 = vector.load %arg2[%c0_118, %122, %c0_119, %c0_120, %c128_121] : memref<1x11x2x11x256xbf16, #tpu.memory_space<vmem>>, vector<1x1x1x8x128xbf16>
    %124 = vector.shape_cast %123 : vector<1x1x1x8x128xbf16> to vector<8x128xbf16>
    %c15 = arith.constant 15 : index
    %c0_122 = arith.constant 0 : index
    %c0_123 = arith.constant 0 : index
    %125 = vector.load %arg3[%c15, %c0_122, %c0_123] : memref<49x128x128xbf16, #tpu.memory_space<vmem>>, vector<1x128x128xbf16>
    %126 = vector.shape_cast %125 : vector<1x128x128xbf16> to vector<128x128xbf16>
    %cst_124 = arith.constant dense<0.000000e+00> : vector<8x128xf32>
    %127 = tpu.matmul %124, %126, %cst_124 {dimension_numbers = #tpu.dot_dimension_numbers<[1], [0], [0], [1], [0, 0, 1, 1], [], []>} : vector<8x128xbf16>, vector<128x128xbf16>, vector<8x128xf32> -> vector<8x128xf32>
    %128 = arith.addf %120, %127 : vector<8x128xf32>
    %c1_i32_125 = arith.constant 1 : i32
    %129 = arith.addi %arg1, %c1_i32_125 : i32
    %c0_126 = arith.constant 0 : index
    %130 = arith.index_cast %129 : i32 to index
    %c0_127 = arith.constant 0 : index
    %c1_128 = arith.constant 1 : index
    %c0_129 = arith.constant 0 : index
    %131 = vector.load %arg2[%c0_126, %130, %c0_127, %c1_128, %c0_129] : memref<1x11x2x11x256xbf16, #tpu.memory_space<vmem>>, vector<1x1x1x8x128xbf16>
    %132 = vector.shape_cast %131 : vector<1x1x1x8x128xbf16> to vector<8x128xbf16>
    %c16 = arith.constant 16 : index
    %c0_130 = arith.constant 0 : index
    %c0_131 = arith.constant 0 : index
    %133 = vector.load %arg3[%c16, %c0_130, %c0_131] : memref<49x128x128xbf16, #tpu.memory_space<vmem>>, vector<1x128x128xbf16>
    %134 = vector.shape_cast %133 : vector<1x128x128xbf16> to vector<128x128xbf16>
    %cst_132 = arith.constant dense<0.000000e+00> : vector<8x128xf32>
    %135 = tpu.matmul %132, %134, %cst_132 {dimension_numbers = #tpu.dot_dimension_numbers<[1], [0], [0], [1], [0, 0, 1, 1], [], []>} : vector<8x128xbf16>, vector<128x128xbf16>, vector<8x128xf32> -> vector<8x128xf32>
    %136 = arith.addf %128, %135 : vector<8x128xf32>
    %c1_i32_133 = arith.constant 1 : i32
    %137 = arith.addi %arg1, %c1_i32_133 : i32
    %c0_134 = arith.constant 0 : index
    %138 = arith.index_cast %137 : i32 to index
    %c0_135 = arith.constant 0 : index
    %c1_136 = arith.constant 1 : index
    %c128_137 = arith.constant 128 : index
    %139 = vector.load %arg2[%c0_134, %138, %c0_135, %c1_136, %c128_137] : memref<1x11x2x11x256xbf16, #tpu.memory_space<vmem>>, vector<1x1x1x8x128xbf16>
    %140 = vector.shape_cast %139 : vector<1x1x1x8x128xbf16> to vector<8x128xbf16>
    %c17 = arith.constant 17 : index
    %c0_138 = arith.constant 0 : index
    %c0_139 = arith.constant 0 : index
    %141 = vector.load %arg3[%c17, %c0_138, %c0_139] : memref<49x128x128xbf16, #tpu.memory_space<vmem>>, vector<1x128x128xbf16>
    %142 = vector.shape_cast %141 : vector<1x128x128xbf16> to vector<128x128xbf16>
    %cst_140 = arith.constant dense<0.000000e+00> : vector<8x128xf32>
    %143 = tpu.matmul %140, %142, %cst_140 {dimension_numbers = #tpu.dot_dimension_numbers<[1], [0], [0], [1], [0, 0, 1, 1], [], []>} : vector<8x128xbf16>, vector<128x128xbf16>, vector<8x128xf32> -> vector<8x128xf32>
    %144 = arith.addf %136, %143 : vector<8x128xf32>
    %c1_i32_141 = arith.constant 1 : i32
    %145 = arith.addi %arg1, %c1_i32_141 : i32
    %c0_142 = arith.constant 0 : index
    %146 = arith.index_cast %145 : i32 to index
    %c0_143 = arith.constant 0 : index
    %c2_144 = arith.constant 2 : index
    %c0_145 = arith.constant 0 : index
    %147 = vector.load %arg2[%c0_142, %146, %c0_143, %c2_144, %c0_145] : memref<1x11x2x11x256xbf16, #tpu.memory_space<vmem>>, vector<1x1x1x8x128xbf16>
    %148 = vector.shape_cast %147 : vector<1x1x1x8x128xbf16> to vector<8x128xbf16>
    %c18 = arith.constant 18 : index
    %c0_146 = arith.constant 0 : index
    %c0_147 = arith.constant 0 : index
    %149 = vector.load %arg3[%c18, %c0_146, %c0_147] : memref<49x128x128xbf16, #tpu.memory_space<vmem>>, vector<1x128x128xbf16>
    %150 = vector.shape_cast %149 : vector<1x128x128xbf16> to vector<128x128xbf16>
    %cst_148 = arith.constant dense<0.000000e+00> : vector<8x128xf32>
    %151 = tpu.matmul %148, %150, %cst_148 {dimension_numbers = #tpu.dot_dimension_numbers<[1], [0], [0], [1], [0, 0, 1, 1], [], []>} : vector<8x128xbf16>, vector<128x128xbf16>, vector<8x128xf32> -> vector<8x128xf32>
    %152 = arith.addf %144, %151 : vector<8x128xf32>
    %c1_i32_149 = arith.constant 1 : i32
    %153 = arith.addi %arg1, %c1_i32_149 : i32
    %c0_150 = arith.constant 0 : index
    %154 = arith.index_cast %153 : i32 to index
    %c0_151 = arith.constant 0 : index
    %c2_152 = arith.constant 2 : index
    %c128_153 = arith.constant 128 : index
    %155 = vector.load %arg2[%c0_150, %154, %c0_151, %c2_152, %c128_153] : memref<1x11x2x11x256xbf16, #tpu.memory_space<vmem>>, vector<1x1x1x8x128xbf16>
    %156 = vector.shape_cast %155 : vector<1x1x1x8x128xbf16> to vector<8x128xbf16>
    %c19 = arith.constant 19 : index
    %c0_154 = arith.constant 0 : index
    %c0_155 = arith.constant 0 : index
    %157 = vector.load %arg3[%c19, %c0_154, %c0_155] : memref<49x128x128xbf16, #tpu.memory_space<vmem>>, vector<1x128x128xbf16>
    %158 = vector.shape_cast %157 : vector<1x128x128xbf16> to vector<128x128xbf16>
    %cst_156 = arith.constant dense<0.000000e+00> : vector<8x128xf32>
    %159 = tpu.matmul %156, %158, %cst_156 {dimension_numbers = #tpu.dot_dimension_numbers<[1], [0], [0], [1], [0, 0, 1, 1], [], []>} : vector<8x128xbf16>, vector<128x128xbf16>, vector<8x128xf32> -> vector<8x128xf32>
    %160 = arith.addf %152, %159 : vector<8x128xf32>
    %c1_i32_157 = arith.constant 1 : i32
    %161 = arith.addi %arg1, %c1_i32_157 : i32
    %c0_158 = arith.constant 0 : index
    %162 = arith.index_cast %161 : i32 to index
    %c0_159 = arith.constant 0 : index
    %c3_160 = arith.constant 3 : index
    %c0_161 = arith.constant 0 : index
    %163 = vector.load %arg2[%c0_158, %162, %c0_159, %c3_160, %c0_161] : memref<1x11x2x11x256xbf16, #tpu.memory_space<vmem>>, vector<1x1x1x8x128xbf16>
    %164 = vector.shape_cast %163 : vector<1x1x1x8x128xbf16> to vector<8x128xbf16>
    %c20 = arith.constant 20 : index
    %c0_162 = arith.constant 0 : index
    %c0_163 = arith.constant 0 : index
    %165 = vector.load %arg3[%c20, %c0_162, %c0_163] : memref<49x128x128xbf16, #tpu.memory_space<vmem>>, vector<1x128x128xbf16>
    %166 = vector.shape_cast %165 : vector<1x128x128xbf16> to vector<128x128xbf16>
    %cst_164 = arith.constant dense<0.000000e+00> : vector<8x128xf32>
    %167 = tpu.matmul %164, %166, %cst_164 {dimension_numbers = #tpu.dot_dimension_numbers<[1], [0], [0], [1], [0, 0, 1, 1], [], []>} : vector<8x128xbf16>, vector<128x128xbf16>, vector<8x128xf32> -> vector<8x128xf32>
    %168 = arith.addf %160, %167 : vector<8x128xf32>
    %c1_i32_165 = arith.constant 1 : i32
    %169 = arith.addi %arg1, %c1_i32_165 : i32
    %c0_166 = arith.constant 0 : index
    %170 = arith.index_cast %169 : i32 to index
    %c1_167 = arith.constant 1 : index
    %c0_168 = arith.constant 0 : index
    %c0_169 = arith.constant 0 : index
    %171 = vector.load %arg2[%c0_166, %170, %c1_167, %c0_168, %c0_169] : memref<1x11x2x11x256xbf16, #tpu.memory_space<vmem>>, vector<1x1x1x8x128xbf16>
    %172 = vector.shape_cast %171 : vector<1x1x1x8x128xbf16> to vector<8x128xbf16>
    %c21 = arith.constant 21 : index
    %c0_170 = arith.constant 0 : index
    %c0_171 = arith.constant 0 : index
    %173 = vector.load %arg3[%c21, %c0_170, %c0_171] : memref<49x128x128xbf16, #tpu.memory_space<vmem>>, vector<1x128x128xbf16>
    %174 = vector.shape_cast %173 : vector<1x128x128xbf16> to vector<128x128xbf16>
    %cst_172 = arith.constant dense<0.000000e+00> : vector<8x128xf32>
    %175 = tpu.matmul %172, %174, %cst_172 {dimension_numbers = #tpu.dot_dimension_numbers<[1], [0], [0], [1], [0, 0, 1, 1], [], []>} : vector<8x128xbf16>, vector<128x128xbf16>, vector<8x128xf32> -> vector<8x128xf32>
    %176 = arith.addf %168, %175 : vector<8x128xf32>
    %c1_i32_173 = arith.constant 1 : i32
    %177 = arith.addi %arg1, %c1_i32_173 : i32
    %c0_174 = arith.constant 0 : index
    %178 = arith.index_cast %177 : i32 to index
    %c1_175 = arith.constant 1 : index
    %c0_176 = arith.constant 0 : index
    %c128_177 = arith.constant 128 : index
    %179 = vector.load %arg2[%c0_174, %178, %c1_175, %c0_176, %c128_177] : memref<1x11x2x11x256xbf16, #tpu.memory_space<vmem>>, vector<1x1x1x8x128xbf16>
    %180 = vector.shape_cast %179 : vector<1x1x1x8x128xbf16> to vector<8x128xbf16>
    %c22 = arith.constant 22 : index
    %c0_178 = arith.constant 0 : index
    %c0_179 = arith.constant 0 : index
    %181 = vector.load %arg3[%c22, %c0_178, %c0_179] : memref<49x128x128xbf16, #tpu.memory_space<vmem>>, vector<1x128x128xbf16>
    %182 = vector.shape_cast %181 : vector<1x128x128xbf16> to vector<128x128xbf16>
    %cst_180 = arith.constant dense<0.000000e+00> : vector<8x128xf32>
    %183 = tpu.matmul %180, %182, %cst_180 {dimension_numbers = #tpu.dot_dimension_numbers<[1], [0], [0], [1], [0, 0, 1, 1], [], []>} : vector<8x128xbf16>, vector<128x128xbf16>, vector<8x128xf32> -> vector<8x128xf32>
    %184 = arith.addf %176, %183 : vector<8x128xf32>
    %c1_i32_181 = arith.constant 1 : i32
    %185 = arith.addi %arg1, %c1_i32_181 : i32
    %c0_182 = arith.constant 0 : index
    %186 = arith.index_cast %185 : i32 to index
    %c1_183 = arith.constant 1 : index
    %c1_184 = arith.constant 1 : index
    %c0_185 = arith.constant 0 : index
    %187 = vector.load %arg2[%c0_182, %186, %c1_183, %c1_184, %c0_185] : memref<1x11x2x11x256xbf16, #tpu.memory_space<vmem>>, vector<1x1x1x8x128xbf16>
    %188 = vector.shape_cast %187 : vector<1x1x1x8x128xbf16> to vector<8x128xbf16>
    %c23 = arith.constant 23 : index
    %c0_186 = arith.constant 0 : index
    %c0_187 = arith.constant 0 : index
    %189 = vector.load %arg3[%c23, %c0_186, %c0_187] : memref<49x128x128xbf16, #tpu.memory_space<vmem>>, vector<1x128x128xbf16>
    %190 = vector.shape_cast %189 : vector<1x128x128xbf16> to vector<128x128xbf16>
    %cst_188 = arith.constant dense<0.000000e+00> : vector<8x128xf32>
    %191 = tpu.matmul %188, %190, %cst_188 {dimension_numbers = #tpu.dot_dimension_numbers<[1], [0], [0], [1], [0, 0, 1, 1], [], []>} : vector<8x128xbf16>, vector<128x128xbf16>, vector<8x128xf32> -> vector<8x128xf32>
    %192 = arith.addf %184, %191 : vector<8x128xf32>
    %c1_i32_189 = arith.constant 1 : i32
    %193 = arith.addi %arg1, %c1_i32_189 : i32
    %c0_190 = arith.constant 0 : index
    %194 = arith.index_cast %193 : i32 to index
    %c1_191 = arith.constant 1 : index
    %c1_192 = arith.constant 1 : index
    %c128_193 = arith.constant 128 : index
    %195 = vector.load %arg2[%c0_190, %194, %c1_191, %c1_192, %c128_193] : memref<1x11x2x11x256xbf16, #tpu.memory_space<vmem>>, vector<1x1x1x8x128xbf16>
    %196 = vector.shape_cast %195 : vector<1x1x1x8x128xbf16> to vector<8x128xbf16>
    %c24 = arith.constant 24 : index
    %c0_194 = arith.constant 0 : index
    %c0_195 = arith.constant 0 : index
    %197 = vector.load %arg3[%c24, %c0_194, %c0_195] : memref<49x128x128xbf16, #tpu.memory_space<vmem>>, vector<1x128x128xbf16>
    %198 = vector.shape_cast %197 : vector<1x128x128xbf16> to vector<128x128xbf16>
    %cst_196 = arith.constant dense<0.000000e+00> : vector<8x128xf32>
    %199 = tpu.matmul %196, %198, %cst_196 {dimension_numbers = #tpu.dot_dimension_numbers<[1], [0], [0], [1], [0, 0, 1, 1], [], []>} : vector<8x128xbf16>, vector<128x128xbf16>, vector<8x128xf32> -> vector<8x128xf32>
    %200 = arith.addf %192, %199 : vector<8x128xf32>
    %c1_i32_197 = arith.constant 1 : i32
    %201 = arith.addi %arg1, %c1_i32_197 : i32
    %c0_198 = arith.constant 0 : index
    %202 = arith.index_cast %201 : i32 to index
    %c1_199 = arith.constant 1 : index
    %c2_200 = arith.constant 2 : index
    %c0_201 = arith.constant 0 : index
    %203 = vector.load %arg2[%c0_198, %202, %c1_199, %c2_200, %c0_201] : memref<1x11x2x11x256xbf16, #tpu.memory_space<vmem>>, vector<1x1x1x8x128xbf16>
    %204 = vector.shape_cast %203 : vector<1x1x1x8x128xbf16> to vector<8x128xbf16>
    %c25 = arith.constant 25 : index
    %c0_202 = arith.constant 0 : index
    %c0_203 = arith.constant 0 : index
    %205 = vector.load %arg3[%c25, %c0_202, %c0_203] : memref<49x128x128xbf16, #tpu.memory_space<vmem>>, vector<1x128x128xbf16>
    %206 = vector.shape_cast %205 : vector<1x128x128xbf16> to vector<128x128xbf16>
    %cst_204 = arith.constant dense<0.000000e+00> : vector<8x128xf32>
    %207 = tpu.matmul %204, %206, %cst_204 {dimension_numbers = #tpu.dot_dimension_numbers<[1], [0], [0], [1], [0, 0, 1, 1], [], []>} : vector<8x128xbf16>, vector<128x128xbf16>, vector<8x128xf32> -> vector<8x128xf32>
    %208 = arith.addf %200, %207 : vector<8x128xf32>
    %c1_i32_205 = arith.constant 1 : i32
    %209 = arith.addi %arg1, %c1_i32_205 : i32
    %c0_206 = arith.constant 0 : index
    %210 = arith.index_cast %209 : i32 to index
    %c1_207 = arith.constant 1 : index
    %c2_208 = arith.constant 2 : index
    %c128_209 = arith.constant 128 : index
    %211 = vector.load %arg2[%c0_206, %210, %c1_207, %c2_208, %c128_209] : memref<1x11x2x11x256xbf16, #tpu.memory_space<vmem>>, vector<1x1x1x8x128xbf16>
    %212 = vector.shape_cast %211 : vector<1x1x1x8x128xbf16> to vector<8x128xbf16>
    %c26 = arith.constant 26 : index
    %c0_210 = arith.constant 0 : index
    %c0_211 = arith.constant 0 : index
    %213 = vector.load %arg3[%c26, %c0_210, %c0_211] : memref<49x128x128xbf16, #tpu.memory_space<vmem>>, vector<1x128x128xbf16>
    %214 = vector.shape_cast %213 : vector<1x128x128xbf16> to vector<128x128xbf16>
    %cst_212 = arith.constant dense<0.000000e+00> : vector<8x128xf32>
    %215 = tpu.matmul %212, %214, %cst_212 {dimension_numbers = #tpu.dot_dimension_numbers<[1], [0], [0], [1], [0, 0, 1, 1], [], []>} : vector<8x128xbf16>, vector<128x128xbf16>, vector<8x128xf32> -> vector<8x128xf32>
    %216 = arith.addf %208, %215 : vector<8x128xf32>
    %c1_i32_213 = arith.constant 1 : i32
    %217 = arith.addi %arg1, %c1_i32_213 : i32
    %c0_214 = arith.constant 0 : index
    %218 = arith.index_cast %217 : i32 to index
    %c1_215 = arith.constant 1 : index
    %c3_216 = arith.constant 3 : index
    %c0_217 = arith.constant 0 : index
    %219 = vector.load %arg2[%c0_214, %218, %c1_215, %c3_216, %c0_217] : memref<1x11x2x11x256xbf16, #tpu.memory_space<vmem>>, vector<1x1x1x8x128xbf16>
    %220 = vector.shape_cast %219 : vector<1x1x1x8x128xbf16> to vector<8x128xbf16>
    %c27 = arith.constant 27 : index
    %c0_218 = arith.constant 0 : index
    %c0_219 = arith.constant 0 : index
    %221 = vector.load %arg3[%c27, %c0_218, %c0_219] : memref<49x128x128xbf16, #tpu.memory_space<vmem>>, vector<1x128x128xbf16>
    %222 = vector.shape_cast %221 : vector<1x128x128xbf16> to vector<128x128xbf16>
    %cst_220 = arith.constant dense<0.000000e+00> : vector<8x128xf32>
    %223 = tpu.matmul %220, %222, %cst_220 {dimension_numbers = #tpu.dot_dimension_numbers<[1], [0], [0], [1], [0, 0, 1, 1], [], []>} : vector<8x128xbf16>, vector<128x128xbf16>, vector<8x128xf32> -> vector<8x128xf32>
    %224 = arith.addf %216, %223 : vector<8x128xf32>
    %c2_i32 = arith.constant 2 : i32
    %225 = arith.addi %arg1, %c2_i32 : i32
    %c0_221 = arith.constant 0 : index
    %226 = arith.index_cast %225 : i32 to index
    %c0_222 = arith.constant 0 : index
    %c0_223 = arith.constant 0 : index
    %c0_224 = arith.constant 0 : index
    %227 = vector.load %arg2[%c0_221, %226, %c0_222, %c0_223, %c0_224] : memref<1x11x2x11x256xbf16, #tpu.memory_space<vmem>>, vector<1x1x1x8x128xbf16>
    %228 = vector.shape_cast %227 : vector<1x1x1x8x128xbf16> to vector<8x128xbf16>
    %c28 = arith.constant 28 : index
    %c0_225 = arith.constant 0 : index
    %c0_226 = arith.constant 0 : index
    %229 = vector.load %arg3[%c28, %c0_225, %c0_226] : memref<49x128x128xbf16, #tpu.memory_space<vmem>>, vector<1x128x128xbf16>
    %230 = vector.shape_cast %229 : vector<1x128x128xbf16> to vector<128x128xbf16>
    %cst_227 = arith.constant dense<0.000000e+00> : vector<8x128xf32>
    %231 = tpu.matmul %228, %230, %cst_227 {dimension_numbers = #tpu.dot_dimension_numbers<[1], [0], [0], [1], [0, 0, 1, 1], [], []>} : vector<8x128xbf16>, vector<128x128xbf16>, vector<8x128xf32> -> vector<8x128xf32>
    %232 = arith.addf %224, %231 : vector<8x128xf32>
    %c2_i32_228 = arith.constant 2 : i32
    %233 = arith.addi %arg1, %c2_i32_228 : i32
    %c0_229 = arith.constant 0 : index
    %234 = arith.index_cast %233 : i32 to index
    %c0_230 = arith.constant 0 : index
    %c0_231 = arith.constant 0 : index
    %c128_232 = arith.constant 128 : index
    %235 = vector.load %arg2[%c0_229, %234, %c0_230, %c0_231, %c128_232] : memref<1x11x2x11x256xbf16, #tpu.memory_space<vmem>>, vector<1x1x1x8x128xbf16>
    %236 = vector.shape_cast %235 : vector<1x1x1x8x128xbf16> to vector<8x128xbf16>
    %c29 = arith.constant 29 : index
    %c0_233 = arith.constant 0 : index
    %c0_234 = arith.constant 0 : index
    %237 = vector.load %arg3[%c29, %c0_233, %c0_234] : memref<49x128x128xbf16, #tpu.memory_space<vmem>>, vector<1x128x128xbf16>
    %238 = vector.shape_cast %237 : vector<1x128x128xbf16> to vector<128x128xbf16>
    %cst_235 = arith.constant dense<0.000000e+00> : vector<8x128xf32>
    %239 = tpu.matmul %236, %238, %cst_235 {dimension_numbers = #tpu.dot_dimension_numbers<[1], [0], [0], [1], [0, 0, 1, 1], [], []>} : vector<8x128xbf16>, vector<128x128xbf16>, vector<8x128xf32> -> vector<8x128xf32>
    %240 = arith.addf %232, %239 : vector<8x128xf32>
    %c2_i32_236 = arith.constant 2 : i32
    %241 = arith.addi %arg1, %c2_i32_236 : i32
    %c0_237 = arith.constant 0 : index
    %242 = arith.index_cast %241 : i32 to index
    %c0_238 = arith.constant 0 : index
    %c1_239 = arith.constant 1 : index
    %c0_240 = arith.constant 0 : index
    %243 = vector.load %arg2[%c0_237, %242, %c0_238, %c1_239, %c0_240] : memref<1x11x2x11x256xbf16, #tpu.memory_space<vmem>>, vector<1x1x1x8x128xbf16>
    %244 = vector.shape_cast %243 : vector<1x1x1x8x128xbf16> to vector<8x128xbf16>
    %c30 = arith.constant 30 : index
    %c0_241 = arith.constant 0 : index
    %c0_242 = arith.constant 0 : index
    %245 = vector.load %arg3[%c30, %c0_241, %c0_242] : memref<49x128x128xbf16, #tpu.memory_space<vmem>>, vector<1x128x128xbf16>
    %246 = vector.shape_cast %245 : vector<1x128x128xbf16> to vector<128x128xbf16>
    %cst_243 = arith.constant dense<0.000000e+00> : vector<8x128xf32>
    %247 = tpu.matmul %244, %246, %cst_243 {dimension_numbers = #tpu.dot_dimension_numbers<[1], [0], [0], [1], [0, 0, 1, 1], [], []>} : vector<8x128xbf16>, vector<128x128xbf16>, vector<8x128xf32> -> vector<8x128xf32>
    %248 = arith.addf %240, %247 : vector<8x128xf32>
    %c2_i32_244 = arith.constant 2 : i32
    %249 = arith.addi %arg1, %c2_i32_244 : i32
    %c0_245 = arith.constant 0 : index
    %250 = arith.index_cast %249 : i32 to index
    %c0_246 = arith.constant 0 : index
    %c1_247 = arith.constant 1 : index
    %c128_248 = arith.constant 128 : index
    %251 = vector.load %arg2[%c0_245, %250, %c0_246, %c1_247, %c128_248] : memref<1x11x2x11x256xbf16, #tpu.memory_space<vmem>>, vector<1x1x1x8x128xbf16>
    %252 = vector.shape_cast %251 : vector<1x1x1x8x128xbf16> to vector<8x128xbf16>
    %c31 = arith.constant 31 : index
    %c0_249 = arith.constant 0 : index
    %c0_250 = arith.constant 0 : index
    %253 = vector.load %arg3[%c31, %c0_249, %c0_250] : memref<49x128x128xbf16, #tpu.memory_space<vmem>>, vector<1x128x128xbf16>
    %254 = vector.shape_cast %253 : vector<1x128x128xbf16> to vector<128x128xbf16>
    %cst_251 = arith.constant dense<0.000000e+00> : vector<8x128xf32>
    %255 = tpu.matmul %252, %254, %cst_251 {dimension_numbers = #tpu.dot_dimension_numbers<[1], [0], [0], [1], [0, 0, 1, 1], [], []>} : vector<8x128xbf16>, vector<128x128xbf16>, vector<8x128xf32> -> vector<8x128xf32>
    %256 = arith.addf %248, %255 : vector<8x128xf32>
    %c2_i32_252 = arith.constant 2 : i32
    %257 = arith.addi %arg1, %c2_i32_252 : i32
    %c0_253 = arith.constant 0 : index
    %258 = arith.index_cast %257 : i32 to index
    %c0_254 = arith.constant 0 : index
    %c2_255 = arith.constant 2 : index
    %c0_256 = arith.constant 0 : index
    %259 = vector.load %arg2[%c0_253, %258, %c0_254, %c2_255, %c0_256] : memref<1x11x2x11x256xbf16, #tpu.memory_space<vmem>>, vector<1x1x1x8x128xbf16>
    %260 = vector.shape_cast %259 : vector<1x1x1x8x128xbf16> to vector<8x128xbf16>
    %c32 = arith.constant 32 : index
    %c0_257 = arith.constant 0 : index
    %c0_258 = arith.constant 0 : index
    %261 = vector.load %arg3[%c32, %c0_257, %c0_258] : memref<49x128x128xbf16, #tpu.memory_space<vmem>>, vector<1x128x128xbf16>
    %262 = vector.shape_cast %261 : vector<1x128x128xbf16> to vector<128x128xbf16>
    %cst_259 = arith.constant dense<0.000000e+00> : vector<8x128xf32>
    %263 = tpu.matmul %260, %262, %cst_259 {dimension_numbers = #tpu.dot_dimension_numbers<[1], [0], [0], [1], [0, 0, 1, 1], [], []>} : vector<8x128xbf16>, vector<128x128xbf16>, vector<8x128xf32> -> vector<8x128xf32>
    %264 = arith.addf %256, %263 : vector<8x128xf32>
    %c2_i32_260 = arith.constant 2 : i32
    %265 = arith.addi %arg1, %c2_i32_260 : i32
    %c0_261 = arith.constant 0 : index
    %266 = arith.index_cast %265 : i32 to index
    %c0_262 = arith.constant 0 : index
    %c2_263 = arith.constant 2 : index
    %c128_264 = arith.constant 128 : index
    %267 = vector.load %arg2[%c0_261, %266, %c0_262, %c2_263, %c128_264] : memref<1x11x2x11x256xbf16, #tpu.memory_space<vmem>>, vector<1x1x1x8x128xbf16>
    %268 = vector.shape_cast %267 : vector<1x1x1x8x128xbf16> to vector<8x128xbf16>
    %c33 = arith.constant 33 : index
    %c0_265 = arith.constant 0 : index
    %c0_266 = arith.constant 0 : index
    %269 = vector.load %arg3[%c33, %c0_265, %c0_266] : memref<49x128x128xbf16, #tpu.memory_space<vmem>>, vector<1x128x128xbf16>
    %270 = vector.shape_cast %269 : vector<1x128x128xbf16> to vector<128x128xbf16>
    %cst_267 = arith.constant dense<0.000000e+00> : vector<8x128xf32>
    %271 = tpu.matmul %268, %270, %cst_267 {dimension_numbers = #tpu.dot_dimension_numbers<[1], [0], [0], [1], [0, 0, 1, 1], [], []>} : vector<8x128xbf16>, vector<128x128xbf16>, vector<8x128xf32> -> vector<8x128xf32>
    %272 = arith.addf %264, %271 : vector<8x128xf32>
    %c2_i32_268 = arith.constant 2 : i32
    %273 = arith.addi %arg1, %c2_i32_268 : i32
    %c0_269 = arith.constant 0 : index
    %274 = arith.index_cast %273 : i32 to index
    %c0_270 = arith.constant 0 : index
    %c3_271 = arith.constant 3 : index
    %c0_272 = arith.constant 0 : index
    %275 = vector.load %arg2[%c0_269, %274, %c0_270, %c3_271, %c0_272] : memref<1x11x2x11x256xbf16, #tpu.memory_space<vmem>>, vector<1x1x1x8x128xbf16>
    %276 = vector.shape_cast %275 : vector<1x1x1x8x128xbf16> to vector<8x128xbf16>
    %c34 = arith.constant 34 : index
    %c0_273 = arith.constant 0 : index
    %c0_274 = arith.constant 0 : index
    %277 = vector.load %arg3[%c34, %c0_273, %c0_274] : memref<49x128x128xbf16, #tpu.memory_space<vmem>>, vector<1x128x128xbf16>
    %278 = vector.shape_cast %277 : vector<1x128x128xbf16> to vector<128x128xbf16>
    %cst_275 = arith.constant dense<0.000000e+00> : vector<8x128xf32>
    %279 = tpu.matmul %276, %278, %cst_275 {dimension_numbers = #tpu.dot_dimension_numbers<[1], [0], [0], [1], [0, 0, 1, 1], [], []>} : vector<8x128xbf16>, vector<128x128xbf16>, vector<8x128xf32> -> vector<8x128xf32>
    %280 = arith.addf %272, %279 : vector<8x128xf32>
    %c2_i32_276 = arith.constant 2 : i32
    %281 = arith.addi %arg1, %c2_i32_276 : i32
    %c0_277 = arith.constant 0 : index
    %282 = arith.index_cast %281 : i32 to index
    %c1_278 = arith.constant 1 : index
    %c0_279 = arith.constant 0 : index
    %c0_280 = arith.constant 0 : index
    %283 = vector.load %arg2[%c0_277, %282, %c1_278, %c0_279, %c0_280] : memref<1x11x2x11x256xbf16, #tpu.memory_space<vmem>>, vector<1x1x1x8x128xbf16>
    %284 = vector.shape_cast %283 : vector<1x1x1x8x128xbf16> to vector<8x128xbf16>
    %c35 = arith.constant 35 : index
    %c0_281 = arith.constant 0 : index
    %c0_282 = arith.constant 0 : index
    %285 = vector.load %arg3[%c35, %c0_281, %c0_282] : memref<49x128x128xbf16, #tpu.memory_space<vmem>>, vector<1x128x128xbf16>
    %286 = vector.shape_cast %285 : vector<1x128x128xbf16> to vector<128x128xbf16>
    %cst_283 = arith.constant dense<0.000000e+00> : vector<8x128xf32>
    %287 = tpu.matmul %284, %286, %cst_283 {dimension_numbers = #tpu.dot_dimension_numbers<[1], [0], [0], [1], [0, 0, 1, 1], [], []>} : vector<8x128xbf16>, vector<128x128xbf16>, vector<8x128xf32> -> vector<8x128xf32>
    %288 = arith.addf %280, %287 : vector<8x128xf32>
    %c2_i32_284 = arith.constant 2 : i32
    %289 = arith.addi %arg1, %c2_i32_284 : i32
    %c0_285 = arith.constant 0 : index
    %290 = arith.index_cast %289 : i32 to index
    %c1_286 = arith.constant 1 : index
    %c0_287 = arith.constant 0 : index
    %c128_288 = arith.constant 128 : index
    %291 = vector.load %arg2[%c0_285, %290, %c1_286, %c0_287, %c128_288] : memref<1x11x2x11x256xbf16, #tpu.memory_space<vmem>>, vector<1x1x1x8x128xbf16>
    %292 = vector.shape_cast %291 : vector<1x1x1x8x128xbf16> to vector<8x128xbf16>
    %c36 = arith.constant 36 : index
    %c0_289 = arith.constant 0 : index
    %c0_290 = arith.constant 0 : index
    %293 = vector.load %arg3[%c36, %c0_289, %c0_290] : memref<49x128x128xbf16, #tpu.memory_space<vmem>>, vector<1x128x128xbf16>
    %294 = vector.shape_cast %293 : vector<1x128x128xbf16> to vector<128x128xbf16>
    %cst_291 = arith.constant dense<0.000000e+00> : vector<8x128xf32>
    %295 = tpu.matmul %292, %294, %cst_291 {dimension_numbers = #tpu.dot_dimension_numbers<[1], [0], [0], [1], [0, 0, 1, 1], [], []>} : vector<8x128xbf16>, vector<128x128xbf16>, vector<8x128xf32> -> vector<8x128xf32>
    %296 = arith.addf %288, %295 : vector<8x128xf32>
    %c2_i32_292 = arith.constant 2 : i32
    %297 = arith.addi %arg1, %c2_i32_292 : i32
    %c0_293 = arith.constant 0 : index
    %298 = arith.index_cast %297 : i32 to index
    %c1_294 = arith.constant 1 : index
    %c1_295 = arith.constant 1 : index
    %c0_296 = arith.constant 0 : index
    %299 = vector.load %arg2[%c0_293, %298, %c1_294, %c1_295, %c0_296] : memref<1x11x2x11x256xbf16, #tpu.memory_space<vmem>>, vector<1x1x1x8x128xbf16>
    %300 = vector.shape_cast %299 : vector<1x1x1x8x128xbf16> to vector<8x128xbf16>
    %c37 = arith.constant 37 : index
    %c0_297 = arith.constant 0 : index
    %c0_298 = arith.constant 0 : index
    %301 = vector.load %arg3[%c37, %c0_297, %c0_298] : memref<49x128x128xbf16, #tpu.memory_space<vmem>>, vector<1x128x128xbf16>
    %302 = vector.shape_cast %301 : vector<1x128x128xbf16> to vector<128x128xbf16>
    %cst_299 = arith.constant dense<0.000000e+00> : vector<8x128xf32>
    %303 = tpu.matmul %300, %302, %cst_299 {dimension_numbers = #tpu.dot_dimension_numbers<[1], [0], [0], [1], [0, 0, 1, 1], [], []>} : vector<8x128xbf16>, vector<128x128xbf16>, vector<8x128xf32> -> vector<8x128xf32>
    %304 = arith.addf %296, %303 : vector<8x128xf32>
    %c2_i32_300 = arith.constant 2 : i32
    %305 = arith.addi %arg1, %c2_i32_300 : i32
    %c0_301 = arith.constant 0 : index
    %306 = arith.index_cast %305 : i32 to index
    %c1_302 = arith.constant 1 : index
    %c1_303 = arith.constant 1 : index
    %c128_304 = arith.constant 128 : index
    %307 = vector.load %arg2[%c0_301, %306, %c1_302, %c1_303, %c128_304] : memref<1x11x2x11x256xbf16, #tpu.memory_space<vmem>>, vector<1x1x1x8x128xbf16>
    %308 = vector.shape_cast %307 : vector<1x1x1x8x128xbf16> to vector<8x128xbf16>
    %c38 = arith.constant 38 : index
    %c0_305 = arith.constant 0 : index
    %c0_306 = arith.constant 0 : index
    %309 = vector.load %arg3[%c38, %c0_305, %c0_306] : memref<49x128x128xbf16, #tpu.memory_space<vmem>>, vector<1x128x128xbf16>
    %310 = vector.shape_cast %309 : vector<1x128x128xbf16> to vector<128x128xbf16>
    %cst_307 = arith.constant dense<0.000000e+00> : vector<8x128xf32>
    %311 = tpu.matmul %308, %310, %cst_307 {dimension_numbers = #tpu.dot_dimension_numbers<[1], [0], [0], [1], [0, 0, 1, 1], [], []>} : vector<8x128xbf16>, vector<128x128xbf16>, vector<8x128xf32> -> vector<8x128xf32>
    %312 = arith.addf %304, %311 : vector<8x128xf32>
    %c2_i32_308 = arith.constant 2 : i32
    %313 = arith.addi %arg1, %c2_i32_308 : i32
    %c0_309 = arith.constant 0 : index
    %314 = arith.index_cast %313 : i32 to index
    %c1_310 = arith.constant 1 : index
    %c2_311 = arith.constant 2 : index
    %c0_312 = arith.constant 0 : index
    %315 = vector.load %arg2[%c0_309, %314, %c1_310, %c2_311, %c0_312] : memref<1x11x2x11x256xbf16, #tpu.memory_space<vmem>>, vector<1x1x1x8x128xbf16>
    %316 = vector.shape_cast %315 : vector<1x1x1x8x128xbf16> to vector<8x128xbf16>
    %c39 = arith.constant 39 : index
    %c0_313 = arith.constant 0 : index
    %c0_314 = arith.constant 0 : index
    %317 = vector.load %arg3[%c39, %c0_313, %c0_314] : memref<49x128x128xbf16, #tpu.memory_space<vmem>>, vector<1x128x128xbf16>
    %318 = vector.shape_cast %317 : vector<1x128x128xbf16> to vector<128x128xbf16>
    %cst_315 = arith.constant dense<0.000000e+00> : vector<8x128xf32>
    %319 = tpu.matmul %316, %318, %cst_315 {dimension_numbers = #tpu.dot_dimension_numbers<[1], [0], [0], [1], [0, 0, 1, 1], [], []>} : vector<8x128xbf16>, vector<128x128xbf16>, vector<8x128xf32> -> vector<8x128xf32>
    %320 = arith.addf %312, %319 : vector<8x128xf32>
    %c2_i32_316 = arith.constant 2 : i32
    %321 = arith.addi %arg1, %c2_i32_316 : i32
    %c0_317 = arith.constant 0 : index
    %322 = arith.index_cast %321 : i32 to index
    %c1_318 = arith.constant 1 : index
    %c2_319 = arith.constant 2 : index
    %c128_320 = arith.constant 128 : index
    %323 = vector.load %arg2[%c0_317, %322, %c1_318, %c2_319, %c128_320] : memref<1x11x2x11x256xbf16, #tpu.memory_space<vmem>>, vector<1x1x1x8x128xbf16>
    %324 = vector.shape_cast %323 : vector<1x1x1x8x128xbf16> to vector<8x128xbf16>
    %c40 = arith.constant 40 : index
    %c0_321 = arith.constant 0 : index
    %c0_322 = arith.constant 0 : index
    %325 = vector.load %arg3[%c40, %c0_321, %c0_322] : memref<49x128x128xbf16, #tpu.memory_space<vmem>>, vector<1x128x128xbf16>
    %326 = vector.shape_cast %325 : vector<1x128x128xbf16> to vector<128x128xbf16>
    %cst_323 = arith.constant dense<0.000000e+00> : vector<8x128xf32>
    %327 = tpu.matmul %324, %326, %cst_323 {dimension_numbers = #tpu.dot_dimension_numbers<[1], [0], [0], [1], [0, 0, 1, 1], [], []>} : vector<8x128xbf16>, vector<128x128xbf16>, vector<8x128xf32> -> vector<8x128xf32>
    %328 = arith.addf %320, %327 : vector<8x128xf32>
    %c2_i32_324 = arith.constant 2 : i32
    %329 = arith.addi %arg1, %c2_i32_324 : i32
    %c0_325 = arith.constant 0 : index
    %330 = arith.index_cast %329 : i32 to index
    %c1_326 = arith.constant 1 : index
    %c3_327 = arith.constant 3 : index
    %c0_328 = arith.constant 0 : index
    %331 = vector.load %arg2[%c0_325, %330, %c1_326, %c3_327, %c0_328] : memref<1x11x2x11x256xbf16, #tpu.memory_space<vmem>>, vector<1x1x1x8x128xbf16>
    %332 = vector.shape_cast %331 : vector<1x1x1x8x128xbf16> to vector<8x128xbf16>
    %c41 = arith.constant 41 : index
    %c0_329 = arith.constant 0 : index
    %c0_330 = arith.constant 0 : index
    %333 = vector.load %arg3[%c41, %c0_329, %c0_330] : memref<49x128x128xbf16, #tpu.memory_space<vmem>>, vector<1x128x128xbf16>
    %334 = vector.shape_cast %333 : vector<1x128x128xbf16> to vector<128x128xbf16>
    %cst_331 = arith.constant dense<0.000000e+00> : vector<8x128xf32>
    %335 = tpu.matmul %332, %334, %cst_331 {dimension_numbers = #tpu.dot_dimension_numbers<[1], [0], [0], [1], [0, 0, 1, 1], [], []>} : vector<8x128xbf16>, vector<128x128xbf16>, vector<8x128xf32> -> vector<8x128xf32>
    %336 = arith.addf %328, %335 : vector<8x128xf32>
    %c3_i32 = arith.constant 3 : i32
    %337 = arith.addi %arg1, %c3_i32 : i32
    %c0_332 = arith.constant 0 : index
    %338 = arith.index_cast %337 : i32 to index
    %c0_333 = arith.constant 0 : index
    %c0_334 = arith.constant 0 : index
    %c0_335 = arith.constant 0 : index
    %339 = vector.load %arg2[%c0_332, %338, %c0_333, %c0_334, %c0_335] : memref<1x11x2x11x256xbf16, #tpu.memory_space<vmem>>, vector<1x1x1x8x128xbf16>
    %340 = vector.shape_cast %339 : vector<1x1x1x8x128xbf16> to vector<8x128xbf16>
    %c42 = arith.constant 42 : index
    %c0_336 = arith.constant 0 : index
    %c0_337 = arith.constant 0 : index
    %341 = vector.load %arg3[%c42, %c0_336, %c0_337] : memref<49x128x128xbf16, #tpu.memory_space<vmem>>, vector<1x128x128xbf16>
    %342 = vector.shape_cast %341 : vector<1x128x128xbf16> to vector<128x128xbf16>
    %cst_338 = arith.constant dense<0.000000e+00> : vector<8x128xf32>
    %343 = tpu.matmul %340, %342, %cst_338 {dimension_numbers = #tpu.dot_dimension_numbers<[1], [0], [0], [1], [0, 0, 1, 1], [], []>} : vector<8x128xbf16>, vector<128x128xbf16>, vector<8x128xf32> -> vector<8x128xf32>
    %344 = arith.addf %336, %343 : vector<8x128xf32>
    %c3_i32_339 = arith.constant 3 : i32
    %345 = arith.addi %arg1, %c3_i32_339 : i32
    %c0_340 = arith.constant 0 : index
    %346 = arith.index_cast %345 : i32 to index
    %c0_341 = arith.constant 0 : index
    %c0_342 = arith.constant 0 : index
    %c128_343 = arith.constant 128 : index
    %347 = vector.load %arg2[%c0_340, %346, %c0_341, %c0_342, %c128_343] : memref<1x11x2x11x256xbf16, #tpu.memory_space<vmem>>, vector<1x1x1x8x128xbf16>
    %348 = vector.shape_cast %347 : vector<1x1x1x8x128xbf16> to vector<8x128xbf16>
    %c43 = arith.constant 43 : index
    %c0_344 = arith.constant 0 : index
    %c0_345 = arith.constant 0 : index
    %349 = vector.load %arg3[%c43, %c0_344, %c0_345] : memref<49x128x128xbf16, #tpu.memory_space<vmem>>, vector<1x128x128xbf16>
    %350 = vector.shape_cast %349 : vector<1x128x128xbf16> to vector<128x128xbf16>
    %cst_346 = arith.constant dense<0.000000e+00> : vector<8x128xf32>
    %351 = tpu.matmul %348, %350, %cst_346 {dimension_numbers = #tpu.dot_dimension_numbers<[1], [0], [0], [1], [0, 0, 1, 1], [], []>} : vector<8x128xbf16>, vector<128x128xbf16>, vector<8x128xf32> -> vector<8x128xf32>
    %352 = arith.addf %344, %351 : vector<8x128xf32>
    %c3_i32_347 = arith.constant 3 : i32
    %353 = arith.addi %arg1, %c3_i32_347 : i32
    %c0_348 = arith.constant 0 : index
    %354 = arith.index_cast %353 : i32 to index
    %c0_349 = arith.constant 0 : index
    %c1_350 = arith.constant 1 : index
    %c0_351 = arith.constant 0 : index
    %355 = vector.load %arg2[%c0_348, %354, %c0_349, %c1_350, %c0_351] : memref<1x11x2x11x256xbf16, #tpu.memory_space<vmem>>, vector<1x1x1x8x128xbf16>
    %356 = vector.shape_cast %355 : vector<1x1x1x8x128xbf16> to vector<8x128xbf16>
    %c44 = arith.constant 44 : index
    %c0_352 = arith.constant 0 : index
    %c0_353 = arith.constant 0 : index
    %357 = vector.load %arg3[%c44, %c0_352, %c0_353] : memref<49x128x128xbf16, #tpu.memory_space<vmem>>, vector<1x128x128xbf16>
    %358 = vector.shape_cast %357 : vector<1x128x128xbf16> to vector<128x128xbf16>
    %cst_354 = arith.constant dense<0.000000e+00> : vector<8x128xf32>
    %359 = tpu.matmul %356, %358, %cst_354 {dimension_numbers = #tpu.dot_dimension_numbers<[1], [0], [0], [1], [0, 0, 1, 1], [], []>} : vector<8x128xbf16>, vector<128x128xbf16>, vector<8x128xf32> -> vector<8x128xf32>
    %360 = arith.addf %352, %359 : vector<8x128xf32>
    %c3_i32_355 = arith.constant 3 : i32
    %361 = arith.addi %arg1, %c3_i32_355 : i32
    %c0_356 = arith.constant 0 : index
    %362 = arith.index_cast %361 : i32 to index
    %c0_357 = arith.constant 0 : index
    %c1_358 = arith.constant 1 : index
    %c128_359 = arith.constant 128 : index
    %363 = vector.load %arg2[%c0_356, %362, %c0_357, %c1_358, %c128_359] : memref<1x11x2x11x256xbf16, #tpu.memory_space<vmem>>, vector<1x1x1x8x128xbf16>
    %364 = vector.shape_cast %363 : vector<1x1x1x8x128xbf16> to vector<8x128xbf16>
    %c45 = arith.constant 45 : index
    %c0_360 = arith.constant 0 : index
    %c0_361 = arith.constant 0 : index
    %365 = vector.load %arg3[%c45, %c0_360, %c0_361] : memref<49x128x128xbf16, #tpu.memory_space<vmem>>, vector<1x128x128xbf16>
    %366 = vector.shape_cast %365 : vector<1x128x128xbf16> to vector<128x128xbf16>
    %cst_362 = arith.constant dense<0.000000e+00> : vector<8x128xf32>
    %367 = tpu.matmul %364, %366, %cst_362 {dimension_numbers = #tpu.dot_dimension_numbers<[1], [0], [0], [1], [0, 0, 1, 1], [], []>} : vector<8x128xbf16>, vector<128x128xbf16>, vector<8x128xf32> -> vector<8x128xf32>
    %368 = arith.addf %360, %367 : vector<8x128xf32>
    %c3_i32_363 = arith.constant 3 : i32
    %369 = arith.addi %arg1, %c3_i32_363 : i32
    %c0_364 = arith.constant 0 : index
    %370 = arith.index_cast %369 : i32 to index
    %c0_365 = arith.constant 0 : index
    %c2_366 = arith.constant 2 : index
    %c0_367 = arith.constant 0 : index
    %371 = vector.load %arg2[%c0_364, %370, %c0_365, %c2_366, %c0_367] : memref<1x11x2x11x256xbf16, #tpu.memory_space<vmem>>, vector<1x1x1x8x128xbf16>
    %372 = vector.shape_cast %371 : vector<1x1x1x8x128xbf16> to vector<8x128xbf16>
    %c46 = arith.constant 46 : index
    %c0_368 = arith.constant 0 : index
    %c0_369 = arith.constant 0 : index
    %373 = vector.load %arg3[%c46, %c0_368, %c0_369] : memref<49x128x128xbf16, #tpu.memory_space<vmem>>, vector<1x128x128xbf16>
    %374 = vector.shape_cast %373 : vector<1x128x128xbf16> to vector<128x128xbf16>
    %cst_370 = arith.constant dense<0.000000e+00> : vector<8x128xf32>
    %375 = tpu.matmul %372, %374, %cst_370 {dimension_numbers = #tpu.dot_dimension_numbers<[1], [0], [0], [1], [0, 0, 1, 1], [], []>} : vector<8x128xbf16>, vector<128x128xbf16>, vector<8x128xf32> -> vector<8x128xf32>
    %376 = arith.addf %368, %375 : vector<8x128xf32>
    %c3_i32_371 = arith.constant 3 : i32
    %377 = arith.addi %arg1, %c3_i32_371 : i32
    %c0_372 = arith.constant 0 : index
    %378 = arith.index_cast %377 : i32 to index
    %c0_373 = arith.constant 0 : index
    %c2_374 = arith.constant 2 : index
    %c128_375 = arith.constant 128 : index
    %379 = vector.load %arg2[%c0_372, %378, %c0_373, %c2_374, %c128_375] : memref<1x11x2x11x256xbf16, #tpu.memory_space<vmem>>, vector<1x1x1x8x128xbf16>
    %380 = vector.shape_cast %379 : vector<1x1x1x8x128xbf16> to vector<8x128xbf16>
    %c47 = arith.constant 47 : index
    %c0_376 = arith.constant 0 : index
    %c0_377 = arith.constant 0 : index
    %381 = vector.load %arg3[%c47, %c0_376, %c0_377] : memref<49x128x128xbf16, #tpu.memory_space<vmem>>, vector<1x128x128xbf16>
    %382 = vector.shape_cast %381 : vector<1x128x128xbf16> to vector<128x128xbf16>
    %cst_378 = arith.constant dense<0.000000e+00> : vector<8x128xf32>
    %383 = tpu.matmul %380, %382, %cst_378 {dimension_numbers = #tpu.dot_dimension_numbers<[1], [0], [0], [1], [0, 0, 1, 1], [], []>} : vector<8x128xbf16>, vector<128x128xbf16>, vector<8x128xf32> -> vector<8x128xf32>
    %384 = arith.addf %376, %383 : vector<8x128xf32>
    %c3_i32_379 = arith.constant 3 : i32
    %385 = arith.addi %arg1, %c3_i32_379 : i32
    %c0_380 = arith.constant 0 : index
    %386 = arith.index_cast %385 : i32 to index
    %c0_381 = arith.constant 0 : index
    %c3_382 = arith.constant 3 : index
    %c0_383 = arith.constant 0 : index
    %387 = vector.load %arg2[%c0_380, %386, %c0_381, %c3_382, %c0_383] : memref<1x11x2x11x256xbf16, #tpu.memory_space<vmem>>, vector<1x1x1x8x128xbf16>
    %388 = vector.shape_cast %387 : vector<1x1x1x8x128xbf16> to vector<8x128xbf16>
    %c48 = arith.constant 48 : index
    %c0_384 = arith.constant 0 : index
    %c0_385 = arith.constant 0 : index
    %389 = vector.load %arg3[%c48, %c0_384, %c0_385] : memref<49x128x128xbf16, #tpu.memory_space<vmem>>, vector<1x128x128xbf16>
    %390 = vector.shape_cast %389 : vector<1x128x128xbf16> to vector<128x128xbf16>
    %cst_386 = arith.constant dense<0.000000e+00> : vector<8x128xf32>
    %391 = tpu.matmul %388, %390, %cst_386 {dimension_numbers = #tpu.dot_dimension_numbers<[1], [0], [0], [1], [0, 0, 1, 1], [], []>} : vector<8x128xbf16>, vector<128x128xbf16>, vector<8x128xf32> -> vector<8x128xf32>
    %392 = arith.addf %384, %391 : vector<8x128xf32>
    %c0_387 = arith.constant 0 : index
    %c0_388 = arith.constant 0 : index
    %393 = vector.load %arg4[%c0_387, %c0_388] : memref<1x128xf32, #tpu.memory_space<vmem>>, vector<1x128xf32>
    %394 = vector.broadcast %393 : vector<1x128xf32> to vector<8x128xf32>
    %395 = arith.addf %392, %394 : vector<8x128xf32>
    %cst_389 = arith.constant 0.000000e+00 : f32
    %396 = vector.broadcast %cst_389 : f32 to vector<8x128xf32>
    %397 = arith.maximumf %395, %396 : vector<8x128xf32>
    %398 = vector.shape_cast %397 : vector<8x128xf32> to vector<1x1x8x128xf32>
    %399 = arith.truncf %398 : vector<1x1x8x128xf32> to vector<1x1x8x128xbf16>
    %c0_390 = arith.constant 0 : index
    %c0_391 = arith.constant 0 : index
    %c0_392 = arith.constant 0 : index
    %c0_393 = arith.constant 0 : index
    %400 = vector.load %arg5[%c0_390, %c0_391, %c0_392, %c0_393] : memref<1x1x8x128xbf16, #tpu.memory_space<vmem>>, vector<1x1x8x128xbf16>
    tpu.vector_store %arg5[%c0_390, %c0_391, %c0_392, %c0_393], %399 {strides = array<i32>} : memref<1x1x8x128xbf16, #tpu.memory_space<vmem>>, vector<1x1x8x128xbf16>,
    return
  }
  func.func @transform_0(%arg0: i32, %arg1: i32) -> (i32, i32, i32, i32, i32) {
    %c0_i32 = arith.constant 0 : i32
    %c0_i32_0 = arith.constant 0 : i32
    %c0_i32_1 = arith.constant 0 : i32
    %c0_i32_2 = arith.constant 0 : i32
    %c0_i32_3 = arith.constant 0 : i32
    return %arg0, %c0_i32, %c0_i32_0, %c0_i32_1, %c0_i32_2 : i32, i32, i32, i32, i32
  }
  func.func @transform_1(%arg0: i32, %arg1: i32) -> (i32, i32, i32) {
    %c0_i32 = arith.constant 0 : i32
    %c0_i32_0 = arith.constant 0 : i32
    %c0_i32_1 = arith.constant 0 : i32
    %c0_i32_2 = arith.constant 0 : i32
    return %c0_i32, %c0_i32_0, %c0_i32_1 : i32, i32, i32
  }
  func.func @transform_2(%arg0: i32, %arg1: i32) -> (i32, i32) {
    %c0_i32 = arith.constant 0 : i32
    %c0_i32_0 = arith.constant 0 : i32
    %c0_i32_1 = arith.constant 0 : i32
    return %c0_i32, %c0_i32_0 : i32, i32
  }
  func.func @transform_3(%arg0: i32, %arg1: i32) -> (i32, i32, i32, i32) {
    %c0_i32 = arith.constant 0 : i32
    %c0_i32_0 = arith.constant 0 : i32
    %c0_i32_1 = arith.constant 0 : i32
    return %arg0, %arg1, %c0_i32, %c0_i32_0 : i32, i32, i32, i32
  }
}

module attributes {stable_mosaic.version = 11 : i64} {
  func.func @_mm_split_kernel(%arg0: i32, %arg1: memref<32x128xbf16, #tpu.memory_space<vmem>>, %arg2: memref<128x256xbf16, #tpu.memory_space<vmem>>, %arg3: memref<1x256xf32, #tpu.memory_space<vmem>>, %arg4: memref<32x128xbf16, #tpu.memory_space<vmem>>, %arg5: memref<32x128xbf16, #tpu.memory_space<vmem>>) attributes {dimension_semantics = [#tpu.dimension_semantics<parallel>], iteration_bounds = array<i64: 1>, scalar_prefetch = 0 : i64, scratch_operands = 0 : i64, tpu.core_type = #tpu.core_type<tc>, window_params = [{transform_indices = @transform_0, window_bounds = array<i64: 32, 128>}, {pipeline_mode = #tpu.pipeline_mode<synchronous>, transform_indices = @transform_1, window_bounds = array<i64: 128, 256>}, {pipeline_mode = #tpu.pipeline_mode<synchronous>, transform_indices = @transform_2, window_bounds = array<i64: 1, 256>}, {transform_indices = @transform_3, window_bounds = array<i64: 32, 128>}, {transform_indices = @transform_4, window_bounds = array<i64: 32, 128>}]} {
    %c0 = arith.constant 0 : index
    %c0_0 = arith.constant 0 : index
    %0 = vector.load %arg1[%c0, %c0_0] : memref<32x128xbf16, #tpu.memory_space<vmem>>, vector<32x128xbf16>
    %c0_1 = arith.constant 0 : index
    %c0_2 = arith.constant 0 : index
    %1 = vector.load %arg2[%c0_1, %c0_2] : memref<128x256xbf16, #tpu.memory_space<vmem>>, vector<128x256xbf16>
    %cst = arith.constant dense<0.000000e+00> : vector<32x256xf32>
    %2 = tpu.matmul %0, %1, %cst {dimension_numbers = #tpu.dot_dimension_numbers<[1], [0], [0], [1], [0, 0, 1, 1], [], []>} : vector<32x128xbf16>, vector<128x256xbf16>, vector<32x256xf32> -> vector<32x256xf32>
    %c0_3 = arith.constant 0 : index
    %c0_4 = arith.constant 0 : index
    %3 = vector.load %arg3[%c0_3, %c0_4] : memref<1x256xf32, #tpu.memory_space<vmem>>, vector<1x256xf32>
    %4 = vector.broadcast %3 : vector<1x256xf32> to vector<32x256xf32>
    %5 = arith.addf %2, %4 : vector<32x256xf32>
    %6 = vector.extract_strided_slice %5 {offsets = [0, 0], sizes = [32, 128], strides = [1, 1]} : vector<32x256xf32> to vector<32x128xf32>
    %cst_5 = arith.constant 0.000000e+00 : f32
    %7 = vector.broadcast %cst_5 : f32 to vector<32x128xf32>
    %8 = arith.maximumf %6, %7 : vector<32x128xf32>
    %9 = arith.truncf %8 : vector<32x128xf32> to vector<32x128xbf16>
    %c0_6 = arith.constant 0 : index
    %c0_7 = arith.constant 0 : index
    %10 = vector.load %arg4[%c0_6, %c0_7] : memref<32x128xbf16, #tpu.memory_space<vmem>>, vector<32x128xbf16>
    tpu.vector_store %arg4[%c0_6, %c0_7], %9 {strides = array<i32>} : memref<32x128xbf16, #tpu.memory_space<vmem>>, vector<32x128xbf16>,
    %11 = vector.extract_strided_slice %5 {offsets = [0, 128], sizes = [32, 128], strides = [1, 1]} : vector<32x256xf32> to vector<32x128xf32>
    %12 = arith.truncf %11 : vector<32x128xf32> to vector<32x128xbf16>
    %c0_8 = arith.constant 0 : index
    %c0_9 = arith.constant 0 : index
    %13 = vector.load %arg5[%c0_8, %c0_9] : memref<32x128xbf16, #tpu.memory_space<vmem>>, vector<32x128xbf16>
    tpu.vector_store %arg5[%c0_8, %c0_9], %12 {strides = array<i32>} : memref<32x128xbf16, #tpu.memory_space<vmem>>, vector<32x128xbf16>,
    return
  }
  func.func @transform_0(%arg0: i32) -> (i32, i32) {
    %c0_i32 = arith.constant 0 : i32
    %c0_i32_0 = arith.constant 0 : i32
    return %arg0, %c0_i32 : i32, i32
  }
  func.func @transform_1(%arg0: i32) -> (i32, i32) {
    %c0_i32 = arith.constant 0 : i32
    %c0_i32_0 = arith.constant 0 : i32
    %c0_i32_1 = arith.constant 0 : i32
    return %c0_i32, %c0_i32_0 : i32, i32
  }
  func.func @transform_2(%arg0: i32) -> (i32, i32) {
    %c0_i32 = arith.constant 0 : i32
    %c0_i32_0 = arith.constant 0 : i32
    %c0_i32_1 = arith.constant 0 : i32
    return %c0_i32, %c0_i32_0 : i32, i32
  }
  func.func @transform_3(%arg0: i32) -> (i32, i32) {
    %c0_i32 = arith.constant 0 : i32
    %c0_i32_0 = arith.constant 0 : i32
    return %arg0, %c0_i32 : i32, i32
  }
  func.func @transform_4(%arg0: i32) -> (i32, i32) {
    %c0_i32 = arith.constant 0 : i32
    %c0_i32_0 = arith.constant 0 : i32
    return %arg0, %c0_i32 : i32, i32
  }
}

module attributes {stable_mosaic.version = 11 : i64} {
  func.func @_mm_fused_kernel(%arg0: i32, %arg1: memref<32x128xbf16, #tpu.memory_space<vmem>>, %arg2: memref<128x128xbf16, #tpu.memory_space<vmem>>, %arg3: memref<1x128xf32, #tpu.memory_space<vmem>>, %arg4: memref<32x128xbf16, #tpu.memory_space<vmem>>, %arg5: memref<32x128xbf16, #tpu.memory_space<vmem>>) attributes {dimension_semantics = [#tpu.dimension_semantics<parallel>], iteration_bounds = array<i64: 1>, scalar_prefetch = 0 : i64, scratch_operands = 0 : i64, tpu.core_type = #tpu.core_type<tc>, window_params = [{transform_indices = @transform_0, window_bounds = array<i64: 32, 128>}, {pipeline_mode = #tpu.pipeline_mode<synchronous>, transform_indices = @transform_1, window_bounds = array<i64: 128, 128>}, {pipeline_mode = #tpu.pipeline_mode<synchronous>, transform_indices = @transform_2, window_bounds = array<i64: 1, 128>}, {transform_indices = @transform_3, window_bounds = array<i64: 32, 128>}, {transform_indices = @transform_4, window_bounds = array<i64: 32, 128>}]} {
    %c0 = arith.constant 0 : index
    %c0_0 = arith.constant 0 : index
    %0 = vector.load %arg1[%c0, %c0_0] : memref<32x128xbf16, #tpu.memory_space<vmem>>, vector<32x128xbf16>
    %c0_1 = arith.constant 0 : index
    %c0_2 = arith.constant 0 : index
    %1 = vector.load %arg2[%c0_1, %c0_2] : memref<128x128xbf16, #tpu.memory_space<vmem>>, vector<128x128xbf16>
    %cst = arith.constant dense<0.000000e+00> : vector<32x128xf32>
    %2 = tpu.matmul %0, %1, %cst {dimension_numbers = #tpu.dot_dimension_numbers<[1], [0], [0], [1], [0, 0, 1, 1], [], []>} : vector<32x128xbf16>, vector<128x128xbf16>, vector<32x128xf32> -> vector<32x128xf32>
    %c0_3 = arith.constant 0 : index
    %c0_4 = arith.constant 0 : index
    %3 = vector.load %arg3[%c0_3, %c0_4] : memref<1x128xf32, #tpu.memory_space<vmem>>, vector<1x128xf32>
    %4 = vector.broadcast %3 : vector<1x128xf32> to vector<32x128xf32>
    %5 = arith.addf %2, %4 : vector<32x128xf32>
    %c0_5 = arith.constant 0 : index
    %c0_6 = arith.constant 0 : index
    %6 = vector.load %arg4[%c0_5, %c0_6] : memref<32x128xbf16, #tpu.memory_space<vmem>>, vector<32x128xbf16>
    %7 = arith.extf %6 : vector<32x128xbf16> to vector<32x128xf32>
    %8 = arith.addf %5, %7 : vector<32x128xf32>
    %cst_7 = arith.constant 0.000000e+00 : f32
    %9 = vector.broadcast %cst_7 : f32 to vector<32x128xf32>
    %10 = arith.maximumf %8, %9 : vector<32x128xf32>
    %11 = arith.truncf %10 : vector<32x128xf32> to vector<32x128xbf16>
    %c0_8 = arith.constant 0 : index
    %c0_9 = arith.constant 0 : index
    %12 = vector.load %arg5[%c0_8, %c0_9] : memref<32x128xbf16, #tpu.memory_space<vmem>>, vector<32x128xbf16>
    tpu.vector_store %arg5[%c0_8, %c0_9], %11 {strides = array<i32>} : memref<32x128xbf16, #tpu.memory_space<vmem>>, vector<32x128xbf16>,
    return
  }
  func.func @transform_0(%arg0: i32) -> (i32, i32) {
    %c0_i32 = arith.constant 0 : i32
    %c0_i32_0 = arith.constant 0 : i32
    return %arg0, %c0_i32 : i32, i32
  }
  func.func @transform_1(%arg0: i32) -> (i32, i32) {
    %c0_i32 = arith.constant 0 : i32
    %c0_i32_0 = arith.constant 0 : i32
    %c0_i32_1 = arith.constant 0 : i32
    return %c0_i32, %c0_i32_0 : i32, i32
  }
  func.func @transform_2(%arg0: i32) -> (i32, i32) {
    %c0_i32 = arith.constant 0 : i32
    %c0_i32_0 = arith.constant 0 : i32
    %c0_i32_1 = arith.constant 0 : i32
    return %c0_i32, %c0_i32_0 : i32, i32
  }
  func.func @transform_3(%arg0: i32) -> (i32, i32) {
    %c0_i32 = arith.constant 0 : i32
    %c0_i32_0 = arith.constant 0 : i32
    return %arg0, %c0_i32 : i32, i32
  }
  func.func @transform_4(%arg0: i32) -> (i32, i32) {
    %c0_i32 = arith.constant 0 : i32
    %c0_i32_0 = arith.constant 0 : i32
    return %arg0, %c0_i32 : i32, i32
  }
}

module attributes {stable_mosaic.version = 11 : i64} {
  func.func @_conv_tap_kernel(%arg0: i32, %arg1: i32, %arg2: memref<1x6x6x128xbf16, #tpu.memory_space<vmem>>, %arg3: memref<9x128x128xbf16, #tpu.memory_space<vmem>>, %arg4: memref<1x128xf32, #tpu.memory_space<vmem>>, %arg5: memref<1x1x4x128xbf16, #tpu.memory_space<vmem>>) attributes {dimension_semantics = [#tpu.dimension_semantics<parallel>, #tpu.dimension_semantics<parallel>], iteration_bounds = array<i64: 2, 4>, scalar_prefetch = 0 : i64, scratch_operands = 0 : i64, tpu.core_type = #tpu.core_type<tc>, window_params = [{transform_indices = @transform_0, window_bounds = array<i64: 1, 6, 6, 128>}, {pipeline_mode = #tpu.pipeline_mode<synchronous>, transform_indices = @transform_1, window_bounds = array<i64: 9, 128, 128>}, {pipeline_mode = #tpu.pipeline_mode<synchronous>, transform_indices = @transform_2, window_bounds = array<i64: 1, 128>}, {transform_indices = @transform_3, window_bounds = array<i64: 1, 1, 4, 128>}]} {
    %cst = arith.constant 0.000000e+00 : f32
    %0 = vector.broadcast %cst : f32 to vector<4x128xf32>
    %c0_i32 = arith.constant 0 : i32
    %1 = arith.addi %arg1, %c0_i32 : i32
    %c0 = arith.constant 0 : index
    %2 = arith.index_cast %1 : i32 to index
    %c0_0 = arith.constant 0 : index
    %c0_1 = arith.constant 0 : index
    %3 = vector.load %arg2[%c0, %2, %c0_0, %c0_1] : memref<1x6x6x128xbf16, #tpu.memory_space<vmem>>, vector<1x1x4x128xbf16>
    %4 = vector.shape_cast %3 : vector<1x1x4x128xbf16> to vector<4x128xbf16>
    %c0_2 = arith.constant 0 : index
    %c0_3 = arith.constant 0 : index
    %c0_4 = arith.constant 0 : index
    %5 = vector.load %arg3[%c0_2, %c0_3, %c0_4] : memref<9x128x128xbf16, #tpu.memory_space<vmem>>, vector<1x128x128xbf16>
    %6 = vector.shape_cast %5 : vector<1x128x128xbf16> to vector<128x128xbf16>
    %cst_5 = arith.constant dense<0.000000e+00> : vector<4x128xf32>
    %7 = tpu.matmul %4, %6, %cst_5 {dimension_numbers = #tpu.dot_dimension_numbers<[1], [0], [0], [1], [0, 0, 1, 1], [], []>} : vector<4x128xbf16>, vector<128x128xbf16>, vector<4x128xf32> -> vector<4x128xf32>
    %8 = arith.addf %0, %7 : vector<4x128xf32>
    %c0_i32_6 = arith.constant 0 : i32
    %9 = arith.addi %arg1, %c0_i32_6 : i32
    %c0_7 = arith.constant 0 : index
    %10 = arith.index_cast %9 : i32 to index
    %c1 = arith.constant 1 : index
    %c0_8 = arith.constant 0 : index
    %11 = vector.load %arg2[%c0_7, %10, %c1, %c0_8] : memref<1x6x6x128xbf16, #tpu.memory_space<vmem>>, vector<1x1x4x128xbf16>
    %12 = vector.shape_cast %11 : vector<1x1x4x128xbf16> to vector<4x128xbf16>
    %c1_9 = arith.constant 1 : index
    %c0_10 = arith.constant 0 : index
    %c0_11 = arith.constant 0 : index
    %13 = vector.load %arg3[%c1_9, %c0_10, %c0_11] : memref<9x128x128xbf16, #tpu.memory_space<vmem>>, vector<1x128x128xbf16>
    %14 = vector.shape_cast %13 : vector<1x128x128xbf16> to vector<128x128xbf16>
    %cst_12 = arith.constant dense<0.000000e+00> : vector<4x128xf32>
    %15 = tpu.matmul %12, %14, %cst_12 {dimension_numbers = #tpu.dot_dimension_numbers<[1], [0], [0], [1], [0, 0, 1, 1], [], []>} : vector<4x128xbf16>, vector<128x128xbf16>, vector<4x128xf32> -> vector<4x128xf32>
    %16 = arith.addf %8, %15 : vector<4x128xf32>
    %c0_i32_13 = arith.constant 0 : i32
    %17 = arith.addi %arg1, %c0_i32_13 : i32
    %c0_14 = arith.constant 0 : index
    %18 = arith.index_cast %17 : i32 to index
    %c2 = arith.constant 2 : index
    %c0_15 = arith.constant 0 : index
    %19 = vector.load %arg2[%c0_14, %18, %c2, %c0_15] : memref<1x6x6x128xbf16, #tpu.memory_space<vmem>>, vector<1x1x4x128xbf16>
    %20 = vector.shape_cast %19 : vector<1x1x4x128xbf16> to vector<4x128xbf16>
    %c2_16 = arith.constant 2 : index
    %c0_17 = arith.constant 0 : index
    %c0_18 = arith.constant 0 : index
    %21 = vector.load %arg3[%c2_16, %c0_17, %c0_18] : memref<9x128x128xbf16, #tpu.memory_space<vmem>>, vector<1x128x128xbf16>
    %22 = vector.shape_cast %21 : vector<1x128x128xbf16> to vector<128x128xbf16>
    %cst_19 = arith.constant dense<0.000000e+00> : vector<4x128xf32>
    %23 = tpu.matmul %20, %22, %cst_19 {dimension_numbers = #tpu.dot_dimension_numbers<[1], [0], [0], [1], [0, 0, 1, 1], [], []>} : vector<4x128xbf16>, vector<128x128xbf16>, vector<4x128xf32> -> vector<4x128xf32>
    %24 = arith.addf %16, %23 : vector<4x128xf32>
    %c1_i32 = arith.constant 1 : i32
    %25 = arith.addi %arg1, %c1_i32 : i32
    %c0_20 = arith.constant 0 : index
    %26 = arith.index_cast %25 : i32 to index
    %c0_21 = arith.constant 0 : index
    %c0_22 = arith.constant 0 : index
    %27 = vector.load %arg2[%c0_20, %26, %c0_21, %c0_22] : memref<1x6x6x128xbf16, #tpu.memory_space<vmem>>, vector<1x1x4x128xbf16>
    %28 = vector.shape_cast %27 : vector<1x1x4x128xbf16> to vector<4x128xbf16>
    %c3 = arith.constant 3 : index
    %c0_23 = arith.constant 0 : index
    %c0_24 = arith.constant 0 : index
    %29 = vector.load %arg3[%c3, %c0_23, %c0_24] : memref<9x128x128xbf16, #tpu.memory_space<vmem>>, vector<1x128x128xbf16>
    %30 = vector.shape_cast %29 : vector<1x128x128xbf16> to vector<128x128xbf16>
    %cst_25 = arith.constant dense<0.000000e+00> : vector<4x128xf32>
    %31 = tpu.matmul %28, %30, %cst_25 {dimension_numbers = #tpu.dot_dimension_numbers<[1], [0], [0], [1], [0, 0, 1, 1], [], []>} : vector<4x128xbf16>, vector<128x128xbf16>, vector<4x128xf32> -> vector<4x128xf32>
    %32 = arith.addf %24, %31 : vector<4x128xf32>
    %c1_i32_26 = arith.constant 1 : i32
    %33 = arith.addi %arg1, %c1_i32_26 : i32
    %c0_27 = arith.constant 0 : index
    %34 = arith.index_cast %33 : i32 to index
    %c1_28 = arith.constant 1 : index
    %c0_29 = arith.constant 0 : index
    %35 = vector.load %arg2[%c0_27, %34, %c1_28, %c0_29] : memref<1x6x6x128xbf16, #tpu.memory_space<vmem>>, vector<1x1x4x128xbf16>
    %36 = vector.shape_cast %35 : vector<1x1x4x128xbf16> to vector<4x128xbf16>
    %c4 = arith.constant 4 : index
    %c0_30 = arith.constant 0 : index
    %c0_31 = arith.constant 0 : index
    %37 = vector.load %arg3[%c4, %c0_30, %c0_31] : memref<9x128x128xbf16, #tpu.memory_space<vmem>>, vector<1x128x128xbf16>
    %38 = vector.shape_cast %37 : vector<1x128x128xbf16> to vector<128x128xbf16>
    %cst_32 = arith.constant dense<0.000000e+00> : vector<4x128xf32>
    %39 = tpu.matmul %36, %38, %cst_32 {dimension_numbers = #tpu.dot_dimension_numbers<[1], [0], [0], [1], [0, 0, 1, 1], [], []>} : vector<4x128xbf16>, vector<128x128xbf16>, vector<4x128xf32> -> vector<4x128xf32>
    %40 = arith.addf %32, %39 : vector<4x128xf32>
    %c1_i32_33 = arith.constant 1 : i32
    %41 = arith.addi %arg1, %c1_i32_33 : i32
    %c0_34 = arith.constant 0 : index
    %42 = arith.index_cast %41 : i32 to index
    %c2_35 = arith.constant 2 : index
    %c0_36 = arith.constant 0 : index
    %43 = vector.load %arg2[%c0_34, %42, %c2_35, %c0_36] : memref<1x6x6x128xbf16, #tpu.memory_space<vmem>>, vector<1x1x4x128xbf16>
    %44 = vector.shape_cast %43 : vector<1x1x4x128xbf16> to vector<4x128xbf16>
    %c5 = arith.constant 5 : index
    %c0_37 = arith.constant 0 : index
    %c0_38 = arith.constant 0 : index
    %45 = vector.load %arg3[%c5, %c0_37, %c0_38] : memref<9x128x128xbf16, #tpu.memory_space<vmem>>, vector<1x128x128xbf16>
    %46 = vector.shape_cast %45 : vector<1x128x128xbf16> to vector<128x128xbf16>
    %cst_39 = arith.constant dense<0.000000e+00> : vector<4x128xf32>
    %47 = tpu.matmul %44, %46, %cst_39 {dimension_numbers = #tpu.dot_dimension_numbers<[1], [0], [0], [1], [0, 0, 1, 1], [], []>} : vector<4x128xbf16>, vector<128x128xbf16>, vector<4x128xf32> -> vector<4x128xf32>
    %48 = arith.addf %40, %47 : vector<4x128xf32>
    %c2_i32 = arith.constant 2 : i32
    %49 = arith.addi %arg1, %c2_i32 : i32
    %c0_40 = arith.constant 0 : index
    %50 = arith.index_cast %49 : i32 to index
    %c0_41 = arith.constant 0 : index
    %c0_42 = arith.constant 0 : index
    %51 = vector.load %arg2[%c0_40, %50, %c0_41, %c0_42] : memref<1x6x6x128xbf16, #tpu.memory_space<vmem>>, vector<1x1x4x128xbf16>
    %52 = vector.shape_cast %51 : vector<1x1x4x128xbf16> to vector<4x128xbf16>
    %c6 = arith.constant 6 : index
    %c0_43 = arith.constant 0 : index
    %c0_44 = arith.constant 0 : index
    %53 = vector.load %arg3[%c6, %c0_43, %c0_44] : memref<9x128x128xbf16, #tpu.memory_space<vmem>>, vector<1x128x128xbf16>
    %54 = vector.shape_cast %53 : vector<1x128x128xbf16> to vector<128x128xbf16>
    %cst_45 = arith.constant dense<0.000000e+00> : vector<4x128xf32>
    %55 = tpu.matmul %52, %54, %cst_45 {dimension_numbers = #tpu.dot_dimension_numbers<[1], [0], [0], [1], [0, 0, 1, 1], [], []>} : vector<4x128xbf16>, vector<128x128xbf16>, vector<4x128xf32> -> vector<4x128xf32>
    %56 = arith.addf %48, %55 : vector<4x128xf32>
    %c2_i32_46 = arith.constant 2 : i32
    %57 = arith.addi %arg1, %c2_i32_46 : i32
    %c0_47 = arith.constant 0 : index
    %58 = arith.index_cast %57 : i32 to index
    %c1_48 = arith.constant 1 : index
    %c0_49 = arith.constant 0 : index
    %59 = vector.load %arg2[%c0_47, %58, %c1_48, %c0_49] : memref<1x6x6x128xbf16, #tpu.memory_space<vmem>>, vector<1x1x4x128xbf16>
    %60 = vector.shape_cast %59 : vector<1x1x4x128xbf16> to vector<4x128xbf16>
    %c7 = arith.constant 7 : index
    %c0_50 = arith.constant 0 : index
    %c0_51 = arith.constant 0 : index
    %61 = vector.load %arg3[%c7, %c0_50, %c0_51] : memref<9x128x128xbf16, #tpu.memory_space<vmem>>, vector<1x128x128xbf16>
    %62 = vector.shape_cast %61 : vector<1x128x128xbf16> to vector<128x128xbf16>
    %cst_52 = arith.constant dense<0.000000e+00> : vector<4x128xf32>
    %63 = tpu.matmul %60, %62, %cst_52 {dimension_numbers = #tpu.dot_dimension_numbers<[1], [0], [0], [1], [0, 0, 1, 1], [], []>} : vector<4x128xbf16>, vector<128x128xbf16>, vector<4x128xf32> -> vector<4x128xf32>
    %64 = arith.addf %56, %63 : vector<4x128xf32>
    %c2_i32_53 = arith.constant 2 : i32
    %65 = arith.addi %arg1, %c2_i32_53 : i32
    %c0_54 = arith.constant 0 : index
    %66 = arith.index_cast %65 : i32 to index
    %c2_55 = arith.constant 2 : index
    %c0_56 = arith.constant 0 : index
    %67 = vector.load %arg2[%c0_54, %66, %c2_55, %c0_56] : memref<1x6x6x128xbf16, #tpu.memory_space<vmem>>, vector<1x1x4x128xbf16>
    %68 = vector.shape_cast %67 : vector<1x1x4x128xbf16> to vector<4x128xbf16>
    %c8 = arith.constant 8 : index
    %c0_57 = arith.constant 0 : index
    %c0_58 = arith.constant 0 : index
    %69 = vector.load %arg3[%c8, %c0_57, %c0_58] : memref<9x128x128xbf16, #tpu.memory_space<vmem>>, vector<1x128x128xbf16>
    %70 = vector.shape_cast %69 : vector<1x128x128xbf16> to vector<128x128xbf16>
    %cst_59 = arith.constant dense<0.000000e+00> : vector<4x128xf32>
    %71 = tpu.matmul %68, %70, %cst_59 {dimension_numbers = #tpu.dot_dimension_numbers<[1], [0], [0], [1], [0, 0, 1, 1], [], []>} : vector<4x128xbf16>, vector<128x128xbf16>, vector<4x128xf32> -> vector<4x128xf32>
    %72 = arith.addf %64, %71 : vector<4x128xf32>
    %c0_60 = arith.constant 0 : index
    %c0_61 = arith.constant 0 : index
    %73 = vector.load %arg4[%c0_60, %c0_61] : memref<1x128xf32, #tpu.memory_space<vmem>>, vector<1x128xf32>
    %74 = vector.broadcast %73 : vector<1x128xf32> to vector<4x128xf32>
    %75 = arith.addf %72, %74 : vector<4x128xf32>
    %cst_62 = arith.constant 0.000000e+00 : f32
    %76 = vector.broadcast %cst_62 : f32 to vector<4x128xf32>
    %77 = arith.maximumf %75, %76 : vector<4x128xf32>
    %78 = vector.shape_cast %77 : vector<4x128xf32> to vector<1x1x4x128xf32>
    %79 = arith.truncf %78 : vector<1x1x4x128xf32> to vector<1x1x4x128xbf16>
    %c0_63 = arith.constant 0 : index
    %c0_64 = arith.constant 0 : index
    %c0_65 = arith.constant 0 : index
    %c0_66 = arith.constant 0 : index
    %80 = vector.load %arg5[%c0_63, %c0_64, %c0_65, %c0_66] : memref<1x1x4x128xbf16, #tpu.memory_space<vmem>>, vector<1x1x4x128xbf16>
    tpu.vector_store %arg5[%c0_63, %c0_64, %c0_65, %c0_66], %79 {strides = array<i32>} : memref<1x1x4x128xbf16, #tpu.memory_space<vmem>>, vector<1x1x4x128xbf16>,
    return
  }
  func.func @transform_0(%arg0: i32, %arg1: i32) -> (i32, i32, i32, i32) {
    %c0_i32 = arith.constant 0 : i32
    %c0_i32_0 = arith.constant 0 : i32
    %c0_i32_1 = arith.constant 0 : i32
    %c0_i32_2 = arith.constant 0 : i32
    return %arg0, %c0_i32, %c0_i32_0, %c0_i32_1 : i32, i32, i32, i32
  }
  func.func @transform_1(%arg0: i32, %arg1: i32) -> (i32, i32, i32) {
    %c0_i32 = arith.constant 0 : i32
    %c0_i32_0 = arith.constant 0 : i32
    %c0_i32_1 = arith.constant 0 : i32
    %c0_i32_2 = arith.constant 0 : i32
    return %c0_i32, %c0_i32_0, %c0_i32_1 : i32, i32, i32
  }
  func.func @transform_2(%arg0: i32, %arg1: i32) -> (i32, i32) {
    %c0_i32 = arith.constant 0 : i32
    %c0_i32_0 = arith.constant 0 : i32
    %c0_i32_1 = arith.constant 0 : i32
    return %c0_i32, %c0_i32_0 : i32, i32
  }
  func.func @transform_3(%arg0: i32, %arg1: i32) -> (i32, i32, i32, i32) {
    %c0_i32 = arith.constant 0 : i32
    %c0_i32_0 = arith.constant 0 : i32
    %c0_i32_1 = arith.constant 0 : i32
    return %arg0, %arg1, %c0_i32, %c0_i32_0 : i32, i32, i32, i32
  }
}

module attributes {stable_mosaic.version = 11 : i64} {
  func.func @_mm_fused_kernel(%arg0: i32, %arg1: memref<32x128xbf16, #tpu.memory_space<vmem>>, %arg2: memref<128x128xbf16, #tpu.memory_space<vmem>>, %arg3: memref<1x128xf32, #tpu.memory_space<vmem>>, %arg4: memref<32x128xbf16, #tpu.memory_space<vmem>>) attributes {dimension_semantics = [#tpu.dimension_semantics<parallel>], iteration_bounds = array<i64: 1>, scalar_prefetch = 0 : i64, scratch_operands = 0 : i64, tpu.core_type = #tpu.core_type<tc>, window_params = [{transform_indices = @transform_0, window_bounds = array<i64: 32, 128>}, {pipeline_mode = #tpu.pipeline_mode<synchronous>, transform_indices = @transform_1, window_bounds = array<i64: 128, 128>}, {pipeline_mode = #tpu.pipeline_mode<synchronous>, transform_indices = @transform_2, window_bounds = array<i64: 1, 128>}, {transform_indices = @transform_3, window_bounds = array<i64: 32, 128>}]} {
    %c0 = arith.constant 0 : index
    %c0_0 = arith.constant 0 : index
    %0 = vector.load %arg1[%c0, %c0_0] : memref<32x128xbf16, #tpu.memory_space<vmem>>, vector<32x128xbf16>
    %c0_1 = arith.constant 0 : index
    %c0_2 = arith.constant 0 : index
    %1 = vector.load %arg2[%c0_1, %c0_2] : memref<128x128xbf16, #tpu.memory_space<vmem>>, vector<128x128xbf16>
    %cst = arith.constant dense<0.000000e+00> : vector<32x128xf32>
    %2 = tpu.matmul %0, %1, %cst {dimension_numbers = #tpu.dot_dimension_numbers<[1], [0], [0], [1], [0, 0, 1, 1], [], []>} : vector<32x128xbf16>, vector<128x128xbf16>, vector<32x128xf32> -> vector<32x128xf32>
    %c0_3 = arith.constant 0 : index
    %c0_4 = arith.constant 0 : index
    %3 = vector.load %arg3[%c0_3, %c0_4] : memref<1x128xf32, #tpu.memory_space<vmem>>, vector<1x128xf32>
    %4 = vector.broadcast %3 : vector<1x128xf32> to vector<32x128xf32>
    %5 = arith.addf %2, %4 : vector<32x128xf32>
    %cst_5 = arith.constant 0.000000e+00 : f32
    %6 = vector.broadcast %cst_5 : f32 to vector<32x128xf32>
    %7 = arith.maximumf %5, %6 : vector<32x128xf32>
    %8 = arith.truncf %7 : vector<32x128xf32> to vector<32x128xbf16>
    %c0_6 = arith.constant 0 : index
    %c0_7 = arith.constant 0 : index
    %9 = vector.load %arg4[%c0_6, %c0_7] : memref<32x128xbf16, #tpu.memory_space<vmem>>, vector<32x128xbf16>
    tpu.vector_store %arg4[%c0_6, %c0_7], %8 {strides = array<i32>} : memref<32x128xbf16, #tpu.memory_space<vmem>>, vector<32x128xbf16>,
    return
  }
  func.func @transform_0(%arg0: i32) -> (i32, i32) {
    %c0_i32 = arith.constant 0 : i32
    %c0_i32_0 = arith.constant 0 : i32
    return %arg0, %c0_i32 : i32, i32
  }
  func.func @transform_1(%arg0: i32) -> (i32, i32) {
    %c0_i32 = arith.constant 0 : i32
    %c0_i32_0 = arith.constant 0 : i32
    %c0_i32_1 = arith.constant 0 : i32
    return %c0_i32, %c0_i32_0 : i32, i32
  }
  func.func @transform_2(%arg0: i32) -> (i32, i32) {
    %c0_i32 = arith.constant 0 : i32
    %c0_i32_0 = arith.constant 0 : i32
    %c0_i32_1 = arith.constant 0 : i32
    return %c0_i32, %c0_i32_0 : i32, i32
  }
  func.func @transform_3(%arg0: i32) -> (i32, i32) {
    %c0_i32 = arith.constant 0 : i32
    %c0_i32_0 = arith.constant 0 : i32
    return %arg0, %c0_i32 : i32, i32
  }
}

module attributes {stable_mosaic.version = 11 : i64} {
  func.func @_conv_tap_kernel(%arg0: i32, %arg1: i32, %arg2: memref<1x2x2x2x256xbf16, #tpu.memory_space<vmem>>, %arg3: memref<1x128x128xbf16, #tpu.memory_space<vmem>>, %arg4: memref<1x128xf32, #tpu.memory_space<vmem>>, %arg5: memref<1x1x2x128xbf16, #tpu.memory_space<vmem>>) attributes {dimension_semantics = [#tpu.dimension_semantics<parallel>, #tpu.dimension_semantics<parallel>], iteration_bounds = array<i64: 2, 2>, scalar_prefetch = 0 : i64, scratch_operands = 0 : i64, tpu.core_type = #tpu.core_type<tc>, window_params = [{transform_indices = @transform_0, window_bounds = array<i64: 1, 2, 2, 2, 256>}, {pipeline_mode = #tpu.pipeline_mode<synchronous>, transform_indices = @transform_1, window_bounds = array<i64: 1, 128, 128>}, {pipeline_mode = #tpu.pipeline_mode<synchronous>, transform_indices = @transform_2, window_bounds = array<i64: 1, 128>}, {transform_indices = @transform_3, window_bounds = array<i64: 1, 1, 2, 128>}]} {
    %cst = arith.constant 0.000000e+00 : f32
    %0 = vector.broadcast %cst : f32 to vector<2x128xf32>
    %c0_i32 = arith.constant 0 : i32
    %1 = arith.addi %arg1, %c0_i32 : i32
    %c0 = arith.constant 0 : index
    %2 = arith.index_cast %1 : i32 to index
    %c0_0 = arith.constant 0 : index
    %c0_1 = arith.constant 0 : index
    %c0_2 = arith.constant 0 : index
    %3 = vector.load %arg2[%c0, %2, %c0_0, %c0_1, %c0_2] : memref<1x2x2x2x256xbf16, #tpu.memory_space<vmem>>, vector<1x1x1x2x128xbf16>
    %4 = vector.shape_cast %3 : vector<1x1x1x2x128xbf16> to vector<2x128xbf16>
    %c0_3 = arith.constant 0 : index
    %c0_4 = arith.constant 0 : index
    %c0_5 = arith.constant 0 : index
    %5 = vector.load %arg3[%c0_3, %c0_4, %c0_5] : memref<1x128x128xbf16, #tpu.memory_space<vmem>>, vector<1x128x128xbf16>
    %6 = vector.shape_cast %5 : vector<1x128x128xbf16> to vector<128x128xbf16>
    %cst_6 = arith.constant dense<0.000000e+00> : vector<2x128xf32>
    %7 = tpu.matmul %4, %6, %cst_6 {dimension_numbers = #tpu.dot_dimension_numbers<[1], [0], [0], [1], [0, 0, 1, 1], [], []>} : vector<2x128xbf16>, vector<128x128xbf16>, vector<2x128xf32> -> vector<2x128xf32>
    %8 = arith.addf %0, %7 : vector<2x128xf32>
    %c0_7 = arith.constant 0 : index
    %c0_8 = arith.constant 0 : index
    %9 = vector.load %arg4[%c0_7, %c0_8] : memref<1x128xf32, #tpu.memory_space<vmem>>, vector<1x128xf32>
    %10 = vector.broadcast %9 : vector<1x128xf32> to vector<2x128xf32>
    %11 = arith.addf %8, %10 : vector<2x128xf32>
    %12 = vector.shape_cast %11 : vector<2x128xf32> to vector<1x1x2x128xf32>
    %13 = arith.truncf %12 : vector<1x1x2x128xf32> to vector<1x1x2x128xbf16>
    %c0_9 = arith.constant 0 : index
    %c0_10 = arith.constant 0 : index
    %c0_11 = arith.constant 0 : index
    %c0_12 = arith.constant 0 : index
    %14 = vector.load %arg5[%c0_9, %c0_10, %c0_11, %c0_12] : memref<1x1x2x128xbf16, #tpu.memory_space<vmem>>, vector<1x1x2x128xbf16>
    tpu.vector_store %arg5[%c0_9, %c0_10, %c0_11, %c0_12], %13 {strides = array<i32>} : memref<1x1x2x128xbf16, #tpu.memory_space<vmem>>, vector<1x1x2x128xbf16>,
    return
  }
  func.func @transform_0(%arg0: i32, %arg1: i32) -> (i32, i32, i32, i32, i32) {
    %c0_i32 = arith.constant 0 : i32
    %c0_i32_0 = arith.constant 0 : i32
    %c0_i32_1 = arith.constant 0 : i32
    %c0_i32_2 = arith.constant 0 : i32
    %c0_i32_3 = arith.constant 0 : i32
    return %arg0, %c0_i32, %c0_i32_0, %c0_i32_1, %c0_i32_2 : i32, i32, i32, i32, i32
  }
  func.func @transform_1(%arg0: i32, %arg1: i32) -> (i32, i32, i32) {
    %c0_i32 = arith.constant 0 : i32
    %c0_i32_0 = arith.constant 0 : i32
    %c0_i32_1 = arith.constant 0 : i32
    %c0_i32_2 = arith.constant 0 : i32
    return %c0_i32, %c0_i32_0, %c0_i32_1 : i32, i32, i32
  }
  func.func @transform_2(%arg0: i32, %arg1: i32) -> (i32, i32) {
    %c0_i32 = arith.constant 0 : i32
    %c0_i32_0 = arith.constant 0 : i32
    %c0_i32_1 = arith.constant 0 : i32
    return %c0_i32, %c0_i32_0 : i32, i32
  }
  func.func @transform_3(%arg0: i32, %arg1: i32) -> (i32, i32, i32, i32) {
    %c0_i32 = arith.constant 0 : i32
    %c0_i32_0 = arith.constant 0 : i32
    %c0_i32_1 = arith.constant 0 : i32
    return %arg0, %arg1, %c0_i32, %c0_i32_0 : i32, i32, i32, i32
  }
}

module attributes {stable_mosaic.version = 11 : i64} {
  func.func @_mm_fused_kernel(%arg0: i32, %arg1: memref<8x128xbf16, #tpu.memory_space<vmem>>, %arg2: memref<128x128xbf16, #tpu.memory_space<vmem>>, %arg3: memref<1x128xf32, #tpu.memory_space<vmem>>, %arg4: memref<8x128xbf16, #tpu.memory_space<vmem>>) attributes {dimension_semantics = [#tpu.dimension_semantics<parallel>], iteration_bounds = array<i64: 1>, scalar_prefetch = 0 : i64, scratch_operands = 0 : i64, tpu.core_type = #tpu.core_type<tc>, window_params = [{transform_indices = @transform_0, window_bounds = array<i64: 8, 128>}, {pipeline_mode = #tpu.pipeline_mode<synchronous>, transform_indices = @transform_1, window_bounds = array<i64: 128, 128>}, {pipeline_mode = #tpu.pipeline_mode<synchronous>, transform_indices = @transform_2, window_bounds = array<i64: 1, 128>}, {transform_indices = @transform_3, window_bounds = array<i64: 8, 128>}]} {
    %c0 = arith.constant 0 : index
    %c0_0 = arith.constant 0 : index
    %0 = vector.load %arg1[%c0, %c0_0] : memref<8x128xbf16, #tpu.memory_space<vmem>>, vector<8x128xbf16>
    %c0_1 = arith.constant 0 : index
    %c0_2 = arith.constant 0 : index
    %1 = vector.load %arg2[%c0_1, %c0_2] : memref<128x128xbf16, #tpu.memory_space<vmem>>, vector<128x128xbf16>
    %cst = arith.constant dense<0.000000e+00> : vector<8x128xf32>
    %2 = tpu.matmul %0, %1, %cst {dimension_numbers = #tpu.dot_dimension_numbers<[1], [0], [0], [1], [0, 0, 1, 1], [], []>} : vector<8x128xbf16>, vector<128x128xbf16>, vector<8x128xf32> -> vector<8x128xf32>
    %c0_3 = arith.constant 0 : index
    %c0_4 = arith.constant 0 : index
    %3 = vector.load %arg3[%c0_3, %c0_4] : memref<1x128xf32, #tpu.memory_space<vmem>>, vector<1x128xf32>
    %4 = vector.broadcast %3 : vector<1x128xf32> to vector<8x128xf32>
    %5 = arith.addf %2, %4 : vector<8x128xf32>
    %cst_5 = arith.constant 0.000000e+00 : f32
    %6 = vector.broadcast %cst_5 : f32 to vector<8x128xf32>
    %7 = arith.maximumf %5, %6 : vector<8x128xf32>
    %8 = arith.truncf %7 : vector<8x128xf32> to vector<8x128xbf16>
    %c0_6 = arith.constant 0 : index
    %c0_7 = arith.constant 0 : index
    %9 = vector.load %arg4[%c0_6, %c0_7] : memref<8x128xbf16, #tpu.memory_space<vmem>>, vector<8x128xbf16>
    tpu.vector_store %arg4[%c0_6, %c0_7], %8 {strides = array<i32>} : memref<8x128xbf16, #tpu.memory_space<vmem>>, vector<8x128xbf16>,
    return
  }
  func.func @transform_0(%arg0: i32) -> (i32, i32) {
    %c0_i32 = arith.constant 0 : i32
    %c0_i32_0 = arith.constant 0 : i32
    return %arg0, %c0_i32 : i32, i32
  }
  func.func @transform_1(%arg0: i32) -> (i32, i32) {
    %c0_i32 = arith.constant 0 : i32
    %c0_i32_0 = arith.constant 0 : i32
    %c0_i32_1 = arith.constant 0 : i32
    return %c0_i32, %c0_i32_0 : i32, i32
  }
  func.func @transform_2(%arg0: i32) -> (i32, i32) {
    %c0_i32 = arith.constant 0 : i32
    %c0_i32_0 = arith.constant 0 : i32
    %c0_i32_1 = arith.constant 0 : i32
    return %c0_i32, %c0_i32_0 : i32, i32
  }
  func.func @transform_3(%arg0: i32) -> (i32, i32) {
    %c0_i32 = arith.constant 0 : i32
    %c0_i32_0 = arith.constant 0 : i32
    return %arg0, %c0_i32 : i32, i32
  }
}

module attributes {stable_mosaic.version = 11 : i64} {
  func.func @_mm_fused_kernel(%arg0: i32, %arg1: memref<8x128xbf16, #tpu.memory_space<vmem>>, %arg2: memref<128x128xbf16, #tpu.memory_space<vmem>>, %arg3: memref<1x128xf32, #tpu.memory_space<vmem>>, %arg4: memref<8x128xbf16, #tpu.memory_space<vmem>>, %arg5: memref<8x128xbf16, #tpu.memory_space<vmem>>) attributes {dimension_semantics = [#tpu.dimension_semantics<parallel>], iteration_bounds = array<i64: 1>, scalar_prefetch = 0 : i64, scratch_operands = 0 : i64, tpu.core_type = #tpu.core_type<tc>, window_params = [{transform_indices = @transform_0, window_bounds = array<i64: 8, 128>}, {pipeline_mode = #tpu.pipeline_mode<synchronous>, transform_indices = @transform_1, window_bounds = array<i64: 128, 128>}, {pipeline_mode = #tpu.pipeline_mode<synchronous>, transform_indices = @transform_2, window_bounds = array<i64: 1, 128>}, {transform_indices = @transform_3, window_bounds = array<i64: 8, 128>}, {transform_indices = @transform_4, window_bounds = array<i64: 8, 128>}]} {
    %c0 = arith.constant 0 : index
    %c0_0 = arith.constant 0 : index
    %0 = vector.load %arg1[%c0, %c0_0] : memref<8x128xbf16, #tpu.memory_space<vmem>>, vector<8x128xbf16>
    %c0_1 = arith.constant 0 : index
    %c0_2 = arith.constant 0 : index
    %1 = vector.load %arg2[%c0_1, %c0_2] : memref<128x128xbf16, #tpu.memory_space<vmem>>, vector<128x128xbf16>
    %cst = arith.constant dense<0.000000e+00> : vector<8x128xf32>
    %2 = tpu.matmul %0, %1, %cst {dimension_numbers = #tpu.dot_dimension_numbers<[1], [0], [0], [1], [0, 0, 1, 1], [], []>} : vector<8x128xbf16>, vector<128x128xbf16>, vector<8x128xf32> -> vector<8x128xf32>
    %c0_3 = arith.constant 0 : index
    %c0_4 = arith.constant 0 : index
    %3 = vector.load %arg3[%c0_3, %c0_4] : memref<1x128xf32, #tpu.memory_space<vmem>>, vector<1x128xf32>
    %4 = vector.broadcast %3 : vector<1x128xf32> to vector<8x128xf32>
    %5 = arith.addf %2, %4 : vector<8x128xf32>
    %c0_5 = arith.constant 0 : index
    %c0_6 = arith.constant 0 : index
    %6 = vector.load %arg4[%c0_5, %c0_6] : memref<8x128xbf16, #tpu.memory_space<vmem>>, vector<8x128xbf16>
    %7 = arith.extf %6 : vector<8x128xbf16> to vector<8x128xf32>
    %8 = arith.addf %5, %7 : vector<8x128xf32>
    %cst_7 = arith.constant 0.000000e+00 : f32
    %9 = vector.broadcast %cst_7 : f32 to vector<8x128xf32>
    %10 = arith.maximumf %8, %9 : vector<8x128xf32>
    %11 = arith.truncf %10 : vector<8x128xf32> to vector<8x128xbf16>
    %c0_8 = arith.constant 0 : index
    %c0_9 = arith.constant 0 : index
    %12 = vector.load %arg5[%c0_8, %c0_9] : memref<8x128xbf16, #tpu.memory_space<vmem>>, vector<8x128xbf16>
    tpu.vector_store %arg5[%c0_8, %c0_9], %11 {strides = array<i32>} : memref<8x128xbf16, #tpu.memory_space<vmem>>, vector<8x128xbf16>,
    return
  }
  func.func @transform_0(%arg0: i32) -> (i32, i32) {
    %c0_i32 = arith.constant 0 : i32
    %c0_i32_0 = arith.constant 0 : i32
    return %arg0, %c0_i32 : i32, i32
  }
  func.func @transform_1(%arg0: i32) -> (i32, i32) {
    %c0_i32 = arith.constant 0 : i32
    %c0_i32_0 = arith.constant 0 : i32
    %c0_i32_1 = arith.constant 0 : i32
    return %c0_i32, %c0_i32_0 : i32, i32
  }
  func.func @transform_2(%arg0: i32) -> (i32, i32) {
    %c0_i32 = arith.constant 0 : i32
    %c0_i32_0 = arith.constant 0 : i32
    %c0_i32_1 = arith.constant 0 : i32
    return %c0_i32, %c0_i32_0 : i32, i32
  }
  func.func @transform_3(%arg0: i32) -> (i32, i32) {
    %c0_i32 = arith.constant 0 : i32
    %c0_i32_0 = arith.constant 0 : i32
    return %arg0, %c0_i32 : i32, i32
  }
  func.func @transform_4(%arg0: i32) -> (i32, i32) {
    %c0_i32 = arith.constant 0 : i32
    %c0_i32_0 = arith.constant 0 : i32
    return %arg0, %c0_i32 : i32, i32
  }
}

module attributes {stable_mosaic.version = 11 : i64} {
  func.func @_conv_tap_kernel(%arg0: i32, %arg1: i32, %arg2: memref<1x3x2x3x256xbf16, #tpu.memory_space<vmem>>, %arg3: memref<9x128x128xbf16, #tpu.memory_space<vmem>>, %arg4: memref<1x128xf32, #tpu.memory_space<vmem>>, %arg5: memref<1x1x2x128xbf16, #tpu.memory_space<vmem>>) attributes {dimension_semantics = [#tpu.dimension_semantics<parallel>, #tpu.dimension_semantics<parallel>], iteration_bounds = array<i64: 2, 2>, scalar_prefetch = 0 : i64, scratch_operands = 0 : i64, tpu.core_type = #tpu.core_type<tc>, window_params = [{transform_indices = @transform_0, window_bounds = array<i64: 1, 3, 2, 3, 256>}, {pipeline_mode = #tpu.pipeline_mode<synchronous>, transform_indices = @transform_1, window_bounds = array<i64: 9, 128, 128>}, {pipeline_mode = #tpu.pipeline_mode<synchronous>, transform_indices = @transform_2, window_bounds = array<i64: 1, 128>}, {transform_indices = @transform_3, window_bounds = array<i64: 1, 1, 2, 128>}]} {
    %cst = arith.constant 0.000000e+00 : f32
    %0 = vector.broadcast %cst : f32 to vector<2x128xf32>
    %c0_i32 = arith.constant 0 : i32
    %1 = arith.addi %arg1, %c0_i32 : i32
    %c0 = arith.constant 0 : index
    %2 = arith.index_cast %1 : i32 to index
    %c0_0 = arith.constant 0 : index
    %c0_1 = arith.constant 0 : index
    %c0_2 = arith.constant 0 : index
    %3 = vector.load %arg2[%c0, %2, %c0_0, %c0_1, %c0_2] : memref<1x3x2x3x256xbf16, #tpu.memory_space<vmem>>, vector<1x1x1x2x128xbf16>
    %4 = vector.shape_cast %3 : vector<1x1x1x2x128xbf16> to vector<2x128xbf16>
    %c0_3 = arith.constant 0 : index
    %c0_4 = arith.constant 0 : index
    %c0_5 = arith.constant 0 : index
    %5 = vector.load %arg3[%c0_3, %c0_4, %c0_5] : memref<9x128x128xbf16, #tpu.memory_space<vmem>>, vector<1x128x128xbf16>
    %6 = vector.shape_cast %5 : vector<1x128x128xbf16> to vector<128x128xbf16>
    %cst_6 = arith.constant dense<0.000000e+00> : vector<2x128xf32>
    %7 = tpu.matmul %4, %6, %cst_6 {dimension_numbers = #tpu.dot_dimension_numbers<[1], [0], [0], [1], [0, 0, 1, 1], [], []>} : vector<2x128xbf16>, vector<128x128xbf16>, vector<2x128xf32> -> vector<2x128xf32>
    %8 = arith.addf %0, %7 : vector<2x128xf32>
    %c0_i32_7 = arith.constant 0 : i32
    %9 = arith.addi %arg1, %c0_i32_7 : i32
    %c0_8 = arith.constant 0 : index
    %10 = arith.index_cast %9 : i32 to index
    %c0_9 = arith.constant 0 : index
    %c0_10 = arith.constant 0 : index
    %c128 = arith.constant 128 : index
    %11 = vector.load %arg2[%c0_8, %10, %c0_9, %c0_10, %c128] : memref<1x3x2x3x256xbf16, #tpu.memory_space<vmem>>, vector<1x1x1x2x128xbf16>
    %12 = vector.shape_cast %11 : vector<1x1x1x2x128xbf16> to vector<2x128xbf16>
    %c1 = arith.constant 1 : index
    %c0_11 = arith.constant 0 : index
    %c0_12 = arith.constant 0 : index
    %13 = vector.load %arg3[%c1, %c0_11, %c0_12] : memref<9x128x128xbf16, #tpu.memory_space<vmem>>, vector<1x128x128xbf16>
    %14 = vector.shape_cast %13 : vector<1x128x128xbf16> to vector<128x128xbf16>
    %cst_13 = arith.constant dense<0.000000e+00> : vector<2x128xf32>
    %15 = tpu.matmul %12, %14, %cst_13 {dimension_numbers = #tpu.dot_dimension_numbers<[1], [0], [0], [1], [0, 0, 1, 1], [], []>} : vector<2x128xbf16>, vector<128x128xbf16>, vector<2x128xf32> -> vector<2x128xf32>
    %16 = arith.addf %8, %15 : vector<2x128xf32>
    %c0_i32_14 = arith.constant 0 : i32
    %17 = arith.addi %arg1, %c0_i32_14 : i32
    %c0_15 = arith.constant 0 : index
    %18 = arith.index_cast %17 : i32 to index
    %c0_16 = arith.constant 0 : index
    %c1_17 = arith.constant 1 : index
    %c0_18 = arith.constant 0 : index
    %19 = vector.load %arg2[%c0_15, %18, %c0_16, %c1_17, %c0_18] : memref<1x3x2x3x256xbf16, #tpu.memory_space<vmem>>, vector<1x1x1x2x128xbf16>
    %20 = vector.shape_cast %19 : vector<1x1x1x2x128xbf16> to vector<2x128xbf16>
    %c2 = arith.constant 2 : index
    %c0_19 = arith.constant 0 : index
    %c0_20 = arith.constant 0 : index
    %21 = vector.load %arg3[%c2, %c0_19, %c0_20] : memref<9x128x128xbf16, #tpu.memory_space<vmem>>, vector<1x128x128xbf16>
    %22 = vector.shape_cast %21 : vector<1x128x128xbf16> to vector<128x128xbf16>
    %cst_21 = arith.constant dense<0.000000e+00> : vector<2x128xf32>
    %23 = tpu.matmul %20, %22, %cst_21 {dimension_numbers = #tpu.dot_dimension_numbers<[1], [0], [0], [1], [0, 0, 1, 1], [], []>} : vector<2x128xbf16>, vector<128x128xbf16>, vector<2x128xf32> -> vector<2x128xf32>
    %24 = arith.addf %16, %23 : vector<2x128xf32>
    %c0_i32_22 = arith.constant 0 : i32
    %25 = arith.addi %arg1, %c0_i32_22 : i32
    %c0_23 = arith.constant 0 : index
    %26 = arith.index_cast %25 : i32 to index
    %c1_24 = arith.constant 1 : index
    %c0_25 = arith.constant 0 : index
    %c0_26 = arith.constant 0 : index
    %27 = vector.load %arg2[%c0_23, %26, %c1_24, %c0_25, %c0_26] : memref<1x3x2x3x256xbf16, #tpu.memory_space<vmem>>, vector<1x1x1x2x128xbf16>
    %28 = vector.shape_cast %27 : vector<1x1x1x2x128xbf16> to vector<2x128xbf16>
    %c3 = arith.constant 3 : index
    %c0_27 = arith.constant 0 : index
    %c0_28 = arith.constant 0 : index
    %29 = vector.load %arg3[%c3, %c0_27, %c0_28] : memref<9x128x128xbf16, #tpu.memory_space<vmem>>, vector<1x128x128xbf16>
    %30 = vector.shape_cast %29 : vector<1x128x128xbf16> to vector<128x128xbf16>
    %cst_29 = arith.constant dense<0.000000e+00> : vector<2x128xf32>
    %31 = tpu.matmul %28, %30, %cst_29 {dimension_numbers = #tpu.dot_dimension_numbers<[1], [0], [0], [1], [0, 0, 1, 1], [], []>} : vector<2x128xbf16>, vector<128x128xbf16>, vector<2x128xf32> -> vector<2x128xf32>
    %32 = arith.addf %24, %31 : vector<2x128xf32>
    %c0_i32_30 = arith.constant 0 : i32
    %33 = arith.addi %arg1, %c0_i32_30 : i32
    %c0_31 = arith.constant 0 : index
    %34 = arith.index_cast %33 : i32 to index
    %c1_32 = arith.constant 1 : index
    %c0_33 = arith.constant 0 : index
    %c128_34 = arith.constant 128 : index
    %35 = vector.load %arg2[%c0_31, %34, %c1_32, %c0_33, %c128_34] : memref<1x3x2x3x256xbf16, #tpu.memory_space<vmem>>, vector<1x1x1x2x128xbf16>
    %36 = vector.shape_cast %35 : vector<1x1x1x2x128xbf16> to vector<2x128xbf16>
    %c4 = arith.constant 4 : index
    %c0_35 = arith.constant 0 : index
    %c0_36 = arith.constant 0 : index
    %37 = vector.load %arg3[%c4, %c0_35, %c0_36] : memref<9x128x128xbf16, #tpu.memory_space<vmem>>, vector<1x128x128xbf16>
    %38 = vector.shape_cast %37 : vector<1x128x128xbf16> to vector<128x128xbf16>
    %cst_37 = arith.constant dense<0.000000e+00> : vector<2x128xf32>
    %39 = tpu.matmul %36, %38, %cst_37 {dimension_numbers = #tpu.dot_dimension_numbers<[1], [0], [0], [1], [0, 0, 1, 1], [], []>} : vector<2x128xbf16>, vector<128x128xbf16>, vector<2x128xf32> -> vector<2x128xf32>
    %40 = arith.addf %32, %39 : vector<2x128xf32>
    %c0_i32_38 = arith.constant 0 : i32
    %41 = arith.addi %arg1, %c0_i32_38 : i32
    %c0_39 = arith.constant 0 : index
    %42 = arith.index_cast %41 : i32 to index
    %c1_40 = arith.constant 1 : index
    %c1_41 = arith.constant 1 : index
    %c0_42 = arith.constant 0 : index
    %43 = vector.load %arg2[%c0_39, %42, %c1_40, %c1_41, %c0_42] : memref<1x3x2x3x256xbf16, #tpu.memory_space<vmem>>, vector<1x1x1x2x128xbf16>
    %44 = vector.shape_cast %43 : vector<1x1x1x2x128xbf16> to vector<2x128xbf16>
    %c5 = arith.constant 5 : index
    %c0_43 = arith.constant 0 : index
    %c0_44 = arith.constant 0 : index
    %45 = vector.load %arg3[%c5, %c0_43, %c0_44] : memref<9x128x128xbf16, #tpu.memory_space<vmem>>, vector<1x128x128xbf16>
    %46 = vector.shape_cast %45 : vector<1x128x128xbf16> to vector<128x128xbf16>
    %cst_45 = arith.constant dense<0.000000e+00> : vector<2x128xf32>
    %47 = tpu.matmul %44, %46, %cst_45 {dimension_numbers = #tpu.dot_dimension_numbers<[1], [0], [0], [1], [0, 0, 1, 1], [], []>} : vector<2x128xbf16>, vector<128x128xbf16>, vector<2x128xf32> -> vector<2x128xf32>
    %48 = arith.addf %40, %47 : vector<2x128xf32>
    %c1_i32 = arith.constant 1 : i32
    %49 = arith.addi %arg1, %c1_i32 : i32
    %c0_46 = arith.constant 0 : index
    %50 = arith.index_cast %49 : i32 to index
    %c0_47 = arith.constant 0 : index
    %c0_48 = arith.constant 0 : index
    %c0_49 = arith.constant 0 : index
    %51 = vector.load %arg2[%c0_46, %50, %c0_47, %c0_48, %c0_49] : memref<1x3x2x3x256xbf16, #tpu.memory_space<vmem>>, vector<1x1x1x2x128xbf16>
    %52 = vector.shape_cast %51 : vector<1x1x1x2x128xbf16> to vector<2x128xbf16>
    %c6 = arith.constant 6 : index
    %c0_50 = arith.constant 0 : index
    %c0_51 = arith.constant 0 : index
    %53 = vector.load %arg3[%c6, %c0_50, %c0_51] : memref<9x128x128xbf16, #tpu.memory_space<vmem>>, vector<1x128x128xbf16>
    %54 = vector.shape_cast %53 : vector<1x128x128xbf16> to vector<128x128xbf16>
    %cst_52 = arith.constant dense<0.000000e+00> : vector<2x128xf32>
    %55 = tpu.matmul %52, %54, %cst_52 {dimension_numbers = #tpu.dot_dimension_numbers<[1], [0], [0], [1], [0, 0, 1, 1], [], []>} : vector<2x128xbf16>, vector<128x128xbf16>, vector<2x128xf32> -> vector<2x128xf32>
    %56 = arith.addf %48, %55 : vector<2x128xf32>
    %c1_i32_53 = arith.constant 1 : i32
    %57 = arith.addi %arg1, %c1_i32_53 : i32
    %c0_54 = arith.constant 0 : index
    %58 = arith.index_cast %57 : i32 to index
    %c0_55 = arith.constant 0 : index
    %c0_56 = arith.constant 0 : index
    %c128_57 = arith.constant 128 : index
    %59 = vector.load %arg2[%c0_54, %58, %c0_55, %c0_56, %c128_57] : memref<1x3x2x3x256xbf16, #tpu.memory_space<vmem>>, vector<1x1x1x2x128xbf16>
    %60 = vector.shape_cast %59 : vector<1x1x1x2x128xbf16> to vector<2x128xbf16>
    %c7 = arith.constant 7 : index
    %c0_58 = arith.constant 0 : index
    %c0_59 = arith.constant 0 : index
    %61 = vector.load %arg3[%c7, %c0_58, %c0_59] : memref<9x128x128xbf16, #tpu.memory_space<vmem>>, vector<1x128x128xbf16>
    %62 = vector.shape_cast %61 : vector<1x128x128xbf16> to vector<128x128xbf16>
    %cst_60 = arith.constant dense<0.000000e+00> : vector<2x128xf32>
    %63 = tpu.matmul %60, %62, %cst_60 {dimension_numbers = #tpu.dot_dimension_numbers<[1], [0], [0], [1], [0, 0, 1, 1], [], []>} : vector<2x128xbf16>, vector<128x128xbf16>, vector<2x128xf32> -> vector<2x128xf32>
    %64 = arith.addf %56, %63 : vector<2x128xf32>
    %c1_i32_61 = arith.constant 1 : i32
    %65 = arith.addi %arg1, %c1_i32_61 : i32
    %c0_62 = arith.constant 0 : index
    %66 = arith.index_cast %65 : i32 to index
    %c0_63 = arith.constant 0 : index
    %c1_64 = arith.constant 1 : index
    %c0_65 = arith.constant 0 : index
    %67 = vector.load %arg2[%c0_62, %66, %c0_63, %c1_64, %c0_65] : memref<1x3x2x3x256xbf16, #tpu.memory_space<vmem>>, vector<1x1x1x2x128xbf16>
    %68 = vector.shape_cast %67 : vector<1x1x1x2x128xbf16> to vector<2x128xbf16>
    %c8 = arith.constant 8 : index
    %c0_66 = arith.constant 0 : index
    %c0_67 = arith.constant 0 : index
    %69 = vector.load %arg3[%c8, %c0_66, %c0_67] : memref<9x128x128xbf16, #tpu.memory_space<vmem>>, vector<1x128x128xbf16>
    %70 = vector.shape_cast %69 : vector<1x128x128xbf16> to vector<128x128xbf16>
    %cst_68 = arith.constant dense<0.000000e+00> : vector<2x128xf32>
    %71 = tpu.matmul %68, %70, %cst_68 {dimension_numbers = #tpu.dot_dimension_numbers<[1], [0], [0], [1], [0, 0, 1, 1], [], []>} : vector<2x128xbf16>, vector<128x128xbf16>, vector<2x128xf32> -> vector<2x128xf32>
    %72 = arith.addf %64, %71 : vector<2x128xf32>
    %c0_69 = arith.constant 0 : index
    %c0_70 = arith.constant 0 : index
    %73 = vector.load %arg4[%c0_69, %c0_70] : memref<1x128xf32, #tpu.memory_space<vmem>>, vector<1x128xf32>
    %74 = vector.broadcast %73 : vector<1x128xf32> to vector<2x128xf32>
    %75 = arith.addf %72, %74 : vector<2x128xf32>
    %cst_71 = arith.constant 0.000000e+00 : f32
    %76 = vector.broadcast %cst_71 : f32 to vector<2x128xf32>
    %77 = arith.maximumf %75, %76 : vector<2x128xf32>
    %78 = vector.shape_cast %77 : vector<2x128xf32> to vector<1x1x2x128xf32>
    %79 = arith.truncf %78 : vector<1x1x2x128xf32> to vector<1x1x2x128xbf16>
    %c0_72 = arith.constant 0 : index
    %c0_73 = arith.constant 0 : index
    %c0_74 = arith.constant 0 : index
    %c0_75 = arith.constant 0 : index
    %80 = vector.load %arg5[%c0_72, %c0_73, %c0_74, %c0_75] : memref<1x1x2x128xbf16, #tpu.memory_space<vmem>>, vector<1x1x2x128xbf16>
    tpu.vector_store %arg5[%c0_72, %c0_73, %c0_74, %c0_75], %79 {strides = array<i32>} : memref<1x1x2x128xbf16, #tpu.memory_space<vmem>>, vector<1x1x2x128xbf16>,
    return
  }
  func.func @transform_0(%arg0: i32, %arg1: i32) -> (i32, i32, i32, i32, i32) {
    %c0_i32 = arith.constant 0 : i32
    %c0_i32_0 = arith.constant 0 : i32
    %c0_i32_1 = arith.constant 0 : i32
    %c0_i32_2 = arith.constant 0 : i32
    %c0_i32_3 = arith.constant 0 : i32
    return %arg0, %c0_i32, %c0_i32_0, %c0_i32_1, %c0_i32_2 : i32, i32, i32, i32, i32
  }
  func.func @transform_1(%arg0: i32, %arg1: i32) -> (i32, i32, i32) {
    %c0_i32 = arith.constant 0 : i32
    %c0_i32_0 = arith.constant 0 : i32
    %c0_i32_1 = arith.constant 0 : i32
    %c0_i32_2 = arith.constant 0 : i32
    return %c0_i32, %c0_i32_0, %c0_i32_1 : i32, i32, i32
  }
  func.func @transform_2(%arg0: i32, %arg1: i32) -> (i32, i32) {
    %c0_i32 = arith.constant 0 : i32
    %c0_i32_0 = arith.constant 0 : i32
    %c0_i32_1 = arith.constant 0 : i32
    return %c0_i32, %c0_i32_0 : i32, i32
  }
  func.func @transform_3(%arg0: i32, %arg1: i32) -> (i32, i32, i32, i32) {
    %c0_i32 = arith.constant 0 : i32
    %c0_i32_0 = arith.constant 0 : i32
    %c0_i32_1 = arith.constant 0 : i32
    return %arg0, %arg1, %c0_i32, %c0_i32_0 : i32, i32, i32, i32
  }
}

module attributes {stable_mosaic.version = 11 : i64} {
  func.func @_conv_tap_kernel(%arg0: i32, %arg1: i32, %arg2: memref<1x1x2x1x256xbf16, #tpu.memory_space<vmem>>, %arg3: memref<1x128x128xbf16, #tpu.memory_space<vmem>>, %arg4: memref<1x128xf32, #tpu.memory_space<vmem>>, %arg5: memref<1x1x1x128xbf16, #tpu.memory_space<vmem>>) attributes {dimension_semantics = [#tpu.dimension_semantics<parallel>, #tpu.dimension_semantics<parallel>], iteration_bounds = array<i64: 2, 1>, scalar_prefetch = 0 : i64, scratch_operands = 0 : i64, tpu.core_type = #tpu.core_type<tc>, window_params = [{transform_indices = @transform_0, window_bounds = array<i64: 1, 1, 2, 1, 256>}, {pipeline_mode = #tpu.pipeline_mode<synchronous>, transform_indices = @transform_1, window_bounds = array<i64: 1, 128, 128>}, {pipeline_mode = #tpu.pipeline_mode<synchronous>, transform_indices = @transform_2, window_bounds = array<i64: 1, 128>}, {transform_indices = @transform_3, window_bounds = array<i64: 1, 1, 1, 128>}]} {
    %cst = arith.constant 0.000000e+00 : f32
    %0 = vector.broadcast %cst : f32 to vector<1x128xf32>
    %c0_i32 = arith.constant 0 : i32
    %1 = arith.addi %arg1, %c0_i32 : i32
    %c0 = arith.constant 0 : index
    %2 = arith.index_cast %1 : i32 to index
    %c0_0 = arith.constant 0 : index
    %c0_1 = arith.constant 0 : index
    %c0_2 = arith.constant 0 : index
    %3 = vector.load %arg2[%c0, %2, %c0_0, %c0_1, %c0_2] : memref<1x1x2x1x256xbf16, #tpu.memory_space<vmem>>, vector<1x1x1x1x128xbf16>
    %4 = vector.shape_cast %3 : vector<1x1x1x1x128xbf16> to vector<1x128xbf16>
    %c0_3 = arith.constant 0 : index
    %c0_4 = arith.constant 0 : index
    %c0_5 = arith.constant 0 : index
    %5 = vector.load %arg3[%c0_3, %c0_4, %c0_5] : memref<1x128x128xbf16, #tpu.memory_space<vmem>>, vector<1x128x128xbf16>
    %6 = vector.shape_cast %5 : vector<1x128x128xbf16> to vector<128x128xbf16>
    %cst_6 = arith.constant dense<0.000000e+00> : vector<1x128xf32>
    %7 = tpu.matmul %4, %6, %cst_6 {dimension_numbers = #tpu.dot_dimension_numbers<[1], [0], [0], [1], [0, 0, 1, 1], [], []>} : vector<1x128xbf16>, vector<128x128xbf16>, vector<1x128xf32> -> vector<1x128xf32>
    %8 = arith.addf %0, %7 : vector<1x128xf32>
    %c0_7 = arith.constant 0 : index
    %c0_8 = arith.constant 0 : index
    %9 = vector.load %arg4[%c0_7, %c0_8] : memref<1x128xf32, #tpu.memory_space<vmem>>, vector<1x128xf32>
    %10 = arith.addf %8, %9 : vector<1x128xf32>
    %11 = vector.shape_cast %10 : vector<1x128xf32> to vector<1x1x1x128xf32>
    %12 = arith.truncf %11 : vector<1x1x1x128xf32> to vector<1x1x1x128xbf16>
    %c0_9 = arith.constant 0 : index
    %c0_10 = arith.constant 0 : index
    %c0_11 = arith.constant 0 : index
    %c0_12 = arith.constant 0 : index
    %13 = vector.load %arg5[%c0_9, %c0_10, %c0_11, %c0_12] : memref<1x1x1x128xbf16, #tpu.memory_space<vmem>>, vector<1x1x1x128xbf16>
    tpu.vector_store %arg5[%c0_9, %c0_10, %c0_11, %c0_12], %12 {strides = array<i32>} : memref<1x1x1x128xbf16, #tpu.memory_space<vmem>>, vector<1x1x1x128xbf16>,
    return
  }
  func.func @transform_0(%arg0: i32, %arg1: i32) -> (i32, i32, i32, i32, i32) {
    %c0_i32 = arith.constant 0 : i32
    %c0_i32_0 = arith.constant 0 : i32
    %c0_i32_1 = arith.constant 0 : i32
    %c0_i32_2 = arith.constant 0 : i32
    %c0_i32_3 = arith.constant 0 : i32
    return %arg0, %c0_i32, %c0_i32_0, %c0_i32_1, %c0_i32_2 : i32, i32, i32, i32, i32
  }
  func.func @transform_1(%arg0: i32, %arg1: i32) -> (i32, i32, i32) {
    %c0_i32 = arith.constant 0 : i32
    %c0_i32_0 = arith.constant 0 : i32
    %c0_i32_1 = arith.constant 0 : i32
    %c0_i32_2 = arith.constant 0 : i32
    return %c0_i32, %c0_i32_0, %c0_i32_1 : i32, i32, i32
  }
  func.func @transform_2(%arg0: i32, %arg1: i32) -> (i32, i32) {
    %c0_i32 = arith.constant 0 : i32
    %c0_i32_0 = arith.constant 0 : i32
    %c0_i32_1 = arith.constant 0 : i32
    return %c0_i32, %c0_i32_0 : i32, i32
  }
  func.func @transform_3(%arg0: i32, %arg1: i32) -> (i32, i32, i32, i32) {
    %c0_i32 = arith.constant 0 : i32
    %c0_i32_0 = arith.constant 0 : i32
    %c0_i32_1 = arith.constant 0 : i32
    return %arg0, %arg1, %c0_i32, %c0_i32_0 : i32, i32, i32, i32
  }
}

module attributes {stable_mosaic.version = 11 : i64} {
  func.func @_conv_tap_kernel(%arg0: i32, %arg1: i32, %arg2: memref<1x2x2x2x256xbf16, #tpu.memory_space<vmem>>, %arg3: memref<9x128x128xbf16, #tpu.memory_space<vmem>>, %arg4: memref<1x128xf32, #tpu.memory_space<vmem>>, %arg5: memref<1x1x1x128xbf16, #tpu.memory_space<vmem>>) attributes {dimension_semantics = [#tpu.dimension_semantics<parallel>, #tpu.dimension_semantics<parallel>], iteration_bounds = array<i64: 2, 1>, scalar_prefetch = 0 : i64, scratch_operands = 0 : i64, tpu.core_type = #tpu.core_type<tc>, window_params = [{transform_indices = @transform_0, window_bounds = array<i64: 1, 2, 2, 2, 256>}, {pipeline_mode = #tpu.pipeline_mode<synchronous>, transform_indices = @transform_1, window_bounds = array<i64: 9, 128, 128>}, {pipeline_mode = #tpu.pipeline_mode<synchronous>, transform_indices = @transform_2, window_bounds = array<i64: 1, 128>}, {transform_indices = @transform_3, window_bounds = array<i64: 1, 1, 1, 128>}]} {
    %cst = arith.constant 0.000000e+00 : f32
    %0 = vector.broadcast %cst : f32 to vector<1x128xf32>
    %c0_i32 = arith.constant 0 : i32
    %1 = arith.addi %arg1, %c0_i32 : i32
    %c0 = arith.constant 0 : index
    %2 = arith.index_cast %1 : i32 to index
    %c0_0 = arith.constant 0 : index
    %c0_1 = arith.constant 0 : index
    %c0_2 = arith.constant 0 : index
    %3 = vector.load %arg2[%c0, %2, %c0_0, %c0_1, %c0_2] : memref<1x2x2x2x256xbf16, #tpu.memory_space<vmem>>, vector<1x1x1x1x128xbf16>
    %4 = vector.shape_cast %3 : vector<1x1x1x1x128xbf16> to vector<1x128xbf16>
    %c0_3 = arith.constant 0 : index
    %c0_4 = arith.constant 0 : index
    %c0_5 = arith.constant 0 : index
    %5 = vector.load %arg3[%c0_3, %c0_4, %c0_5] : memref<9x128x128xbf16, #tpu.memory_space<vmem>>, vector<1x128x128xbf16>
    %6 = vector.shape_cast %5 : vector<1x128x128xbf16> to vector<128x128xbf16>
    %cst_6 = arith.constant dense<0.000000e+00> : vector<1x128xf32>
    %7 = tpu.matmul %4, %6, %cst_6 {dimension_numbers = #tpu.dot_dimension_numbers<[1], [0], [0], [1], [0, 0, 1, 1], [], []>} : vector<1x128xbf16>, vector<128x128xbf16>, vector<1x128xf32> -> vector<1x128xf32>
    %8 = arith.addf %0, %7 : vector<1x128xf32>
    %c0_i32_7 = arith.constant 0 : i32
    %9 = arith.addi %arg1, %c0_i32_7 : i32
    %c0_8 = arith.constant 0 : index
    %10 = arith.index_cast %9 : i32 to index
    %c0_9 = arith.constant 0 : index
    %c0_10 = arith.constant 0 : index
    %c128 = arith.constant 128 : index
    %11 = vector.load %arg2[%c0_8, %10, %c0_9, %c0_10, %c128] : memref<1x2x2x2x256xbf16, #tpu.memory_space<vmem>>, vector<1x1x1x1x128xbf16>
    %12 = vector.shape_cast %11 : vector<1x1x1x1x128xbf16> to vector<1x128xbf16>
    %c1 = arith.constant 1 : index
    %c0_11 = arith.constant 0 : index
    %c0_12 = arith.constant 0 : index
    %13 = vector.load %arg3[%c1, %c0_11, %c0_12] : memref<9x128x128xbf16, #tpu.memory_space<vmem>>, vector<1x128x128xbf16>
    %14 = vector.shape_cast %13 : vector<1x128x128xbf16> to vector<128x128xbf16>
    %cst_13 = arith.constant dense<0.000000e+00> : vector<1x128xf32>
    %15 = tpu.matmul %12, %14, %cst_13 {dimension_numbers = #tpu.dot_dimension_numbers<[1], [0], [0], [1], [0, 0, 1, 1], [], []>} : vector<1x128xbf16>, vector<128x128xbf16>, vector<1x128xf32> -> vector<1x128xf32>
    %16 = arith.addf %8, %15 : vector<1x128xf32>
    %c0_i32_14 = arith.constant 0 : i32
    %17 = arith.addi %arg1, %c0_i32_14 : i32
    %c0_15 = arith.constant 0 : index
    %18 = arith.index_cast %17 : i32 to index
    %c0_16 = arith.constant 0 : index
    %c1_17 = arith.constant 1 : index
    %c0_18 = arith.constant 0 : index
    %19 = vector.load %arg2[%c0_15, %18, %c0_16, %c1_17, %c0_18] : memref<1x2x2x2x256xbf16, #tpu.memory_space<vmem>>, vector<1x1x1x1x128xbf16>
    %20 = vector.shape_cast %19 : vector<1x1x1x1x128xbf16> to vector<1x128xbf16>
    %c2 = arith.constant 2 : index
    %c0_19 = arith.constant 0 : index
    %c0_20 = arith.constant 0 : index
    %21 = vector.load %arg3[%c2, %c0_19, %c0_20] : memref<9x128x128xbf16, #tpu.memory_space<vmem>>, vector<1x128x128xbf16>
    %22 = vector.shape_cast %21 : vector<1x128x128xbf16> to vector<128x128xbf16>
    %cst_21 = arith.constant dense<0.000000e+00> : vector<1x128xf32>
    %23 = tpu.matmul %20, %22, %cst_21 {dimension_numbers = #tpu.dot_dimension_numbers<[1], [0], [0], [1], [0, 0, 1, 1], [], []>} : vector<1x128xbf16>, vector<128x128xbf16>, vector<1x128xf32> -> vector<1x128xf32>
    %24 = arith.addf %16, %23 : vector<1x128xf32>
    %c0_i32_22 = arith.constant 0 : i32
    %25 = arith.addi %arg1, %c0_i32_22 : i32
    %c0_23 = arith.constant 0 : index
    %26 = arith.index_cast %25 : i32 to index
    %c1_24 = arith.constant 1 : index
    %c0_25 = arith.constant 0 : index
    %c0_26 = arith.constant 0 : index
    %27 = vector.load %arg2[%c0_23, %26, %c1_24, %c0_25, %c0_26] : memref<1x2x2x2x256xbf16, #tpu.memory_space<vmem>>, vector<1x1x1x1x128xbf16>
    %28 = vector.shape_cast %27 : vector<1x1x1x1x128xbf16> to vector<1x128xbf16>
    %c3 = arith.constant 3 : index
    %c0_27 = arith.constant 0 : index
    %c0_28 = arith.constant 0 : index
    %29 = vector.load %arg3[%c3, %c0_27, %c0_28] : memref<9x128x128xbf16, #tpu.memory_space<vmem>>, vector<1x128x128xbf16>
    %30 = vector.shape_cast %29 : vector<1x128x128xbf16> to vector<128x128xbf16>
    %cst_29 = arith.constant dense<0.000000e+00> : vector<1x128xf32>
    %31 = tpu.matmul %28, %30, %cst_29 {dimension_numbers = #tpu.dot_dimension_numbers<[1], [0], [0], [1], [0, 0, 1, 1], [], []>} : vector<1x128xbf16>, vector<128x128xbf16>, vector<1x128xf32> -> vector<1x128xf32>
    %32 = arith.addf %24, %31 : vector<1x128xf32>
    %c0_i32_30 = arith.constant 0 : i32
    %33 = arith.addi %arg1, %c0_i32_30 : i32
    %c0_31 = arith.constant 0 : index
    %34 = arith.index_cast %33 : i32 to index
    %c1_32 = arith.constant 1 : index
    %c0_33 = arith.constant 0 : index
    %c128_34 = arith.constant 128 : index
    %35 = vector.load %arg2[%c0_31, %34, %c1_32, %c0_33, %c128_34] : memref<1x2x2x2x256xbf16, #tpu.memory_space<vmem>>, vector<1x1x1x1x128xbf16>
    %36 = vector.shape_cast %35 : vector<1x1x1x1x128xbf16> to vector<1x128xbf16>
    %c4 = arith.constant 4 : index
    %c0_35 = arith.constant 0 : index
    %c0_36 = arith.constant 0 : index
    %37 = vector.load %arg3[%c4, %c0_35, %c0_36] : memref<9x128x128xbf16, #tpu.memory_space<vmem>>, vector<1x128x128xbf16>
    %38 = vector.shape_cast %37 : vector<1x128x128xbf16> to vector<128x128xbf16>
    %cst_37 = arith.constant dense<0.000000e+00> : vector<1x128xf32>
    %39 = tpu.matmul %36, %38, %cst_37 {dimension_numbers = #tpu.dot_dimension_numbers<[1], [0], [0], [1], [0, 0, 1, 1], [], []>} : vector<1x128xbf16>, vector<128x128xbf16>, vector<1x128xf32> -> vector<1x128xf32>
    %40 = arith.addf %32, %39 : vector<1x128xf32>
    %c0_i32_38 = arith.constant 0 : i32
    %41 = arith.addi %arg1, %c0_i32_38 : i32
    %c0_39 = arith.constant 0 : index
    %42 = arith.index_cast %41 : i32 to index
    %c1_40 = arith.constant 1 : index
    %c1_41 = arith.constant 1 : index
    %c0_42 = arith.constant 0 : index
    %43 = vector.load %arg2[%c0_39, %42, %c1_40, %c1_41, %c0_42] : memref<1x2x2x2x256xbf16, #tpu.memory_space<vmem>>, vector<1x1x1x1x128xbf16>
    %44 = vector.shape_cast %43 : vector<1x1x1x1x128xbf16> to vector<1x128xbf16>
    %c5 = arith.constant 5 : index
    %c0_43 = arith.constant 0 : index
    %c0_44 = arith.constant 0 : index
    %45 = vector.load %arg3[%c5, %c0_43, %c0_44] : memref<9x128x128xbf16, #tpu.memory_space<vmem>>, vector<1x128x128xbf16>
    %46 = vector.shape_cast %45 : vector<1x128x128xbf16> to vector<128x128xbf16>
    %cst_45 = arith.constant dense<0.000000e+00> : vector<1x128xf32>
    %47 = tpu.matmul %44, %46, %cst_45 {dimension_numbers = #tpu.dot_dimension_numbers<[1], [0], [0], [1], [0, 0, 1, 1], [], []>} : vector<1x128xbf16>, vector<128x128xbf16>, vector<1x128xf32> -> vector<1x128xf32>
    %48 = arith.addf %40, %47 : vector<1x128xf32>
    %c1_i32 = arith.constant 1 : i32
    %49 = arith.addi %arg1, %c1_i32 : i32
    %c0_46 = arith.constant 0 : index
    %50 = arith.index_cast %49 : i32 to index
    %c0_47 = arith.constant 0 : index
    %c0_48 = arith.constant 0 : index
    %c0_49 = arith.constant 0 : index
    %51 = vector.load %arg2[%c0_46, %50, %c0_47, %c0_48, %c0_49] : memref<1x2x2x2x256xbf16, #tpu.memory_space<vmem>>, vector<1x1x1x1x128xbf16>
    %52 = vector.shape_cast %51 : vector<1x1x1x1x128xbf16> to vector<1x128xbf16>
    %c6 = arith.constant 6 : index
    %c0_50 = arith.constant 0 : index
    %c0_51 = arith.constant 0 : index
    %53 = vector.load %arg3[%c6, %c0_50, %c0_51] : memref<9x128x128xbf16, #tpu.memory_space<vmem>>, vector<1x128x128xbf16>
    %54 = vector.shape_cast %53 : vector<1x128x128xbf16> to vector<128x128xbf16>
    %cst_52 = arith.constant dense<0.000000e+00> : vector<1x128xf32>
    %55 = tpu.matmul %52, %54, %cst_52 {dimension_numbers = #tpu.dot_dimension_numbers<[1], [0], [0], [1], [0, 0, 1, 1], [], []>} : vector<1x128xbf16>, vector<128x128xbf16>, vector<1x128xf32> -> vector<1x128xf32>
    %56 = arith.addf %48, %55 : vector<1x128xf32>
    %c1_i32_53 = arith.constant 1 : i32
    %57 = arith.addi %arg1, %c1_i32_53 : i32
    %c0_54 = arith.constant 0 : index
    %58 = arith.index_cast %57 : i32 to index
    %c0_55 = arith.constant 0 : index
    %c0_56 = arith.constant 0 : index
    %c128_57 = arith.constant 128 : index
    %59 = vector.load %arg2[%c0_54, %58, %c0_55, %c0_56, %c128_57] : memref<1x2x2x2x256xbf16, #tpu.memory_space<vmem>>, vector<1x1x1x1x128xbf16>
    %60 = vector.shape_cast %59 : vector<1x1x1x1x128xbf16> to vector<1x128xbf16>
    %c7 = arith.constant 7 : index
    %c0_58 = arith.constant 0 : index
    %c0_59 = arith.constant 0 : index
    %61 = vector.load %arg3[%c7, %c0_58, %c0_59] : memref<9x128x128xbf16, #tpu.memory_space<vmem>>, vector<1x128x128xbf16>
    %62 = vector.shape_cast %61 : vector<1x128x128xbf16> to vector<128x128xbf16>
    %cst_60 = arith.constant dense<0.000000e+00> : vector<1x128xf32>
    %63 = tpu.matmul %60, %62, %cst_60 {dimension_numbers = #tpu.dot_dimension_numbers<[1], [0], [0], [1], [0, 0, 1, 1], [], []>} : vector<1x128xbf16>, vector<128x128xbf16>, vector<1x128xf32> -> vector<1x128xf32>
    %64 = arith.addf %56, %63 : vector<1x128xf32>
    %c1_i32_61 = arith.constant 1 : i32
    %65 = arith.addi %arg1, %c1_i32_61 : i32
    %c0_62 = arith.constant 0 : index
    %66 = arith.index_cast %65 : i32 to index
    %c0_63 = arith.constant 0 : index
    %c1_64 = arith.constant 1 : index
    %c0_65 = arith.constant 0 : index
    %67 = vector.load %arg2[%c0_62, %66, %c0_63, %c1_64, %c0_65] : memref<1x2x2x2x256xbf16, #tpu.memory_space<vmem>>, vector<1x1x1x1x128xbf16>
    %68 = vector.shape_cast %67 : vector<1x1x1x1x128xbf16> to vector<1x128xbf16>
    %c8 = arith.constant 8 : index
    %c0_66 = arith.constant 0 : index
    %c0_67 = arith.constant 0 : index
    %69 = vector.load %arg3[%c8, %c0_66, %c0_67] : memref<9x128x128xbf16, #tpu.memory_space<vmem>>, vector<1x128x128xbf16>
    %70 = vector.shape_cast %69 : vector<1x128x128xbf16> to vector<128x128xbf16>
    %cst_68 = arith.constant dense<0.000000e+00> : vector<1x128xf32>
    %71 = tpu.matmul %68, %70, %cst_68 {dimension_numbers = #tpu.dot_dimension_numbers<[1], [0], [0], [1], [0, 0, 1, 1], [], []>} : vector<1x128xbf16>, vector<128x128xbf16>, vector<1x128xf32> -> vector<1x128xf32>
    %72 = arith.addf %64, %71 : vector<1x128xf32>
    %c0_69 = arith.constant 0 : index
    %c0_70 = arith.constant 0 : index
    %73 = vector.load %arg4[%c0_69, %c0_70] : memref<1x128xf32, #tpu.memory_space<vmem>>, vector<1x128xf32>
    %74 = arith.addf %72, %73 : vector<1x128xf32>
    %cst_71 = arith.constant 0.000000e+00 : f32
    %75 = vector.broadcast %cst_71 : f32 to vector<1x128xf32>
    %76 = arith.maximumf %74, %75 : vector<1x128xf32>
    %77 = vector.shape_cast %76 : vector<1x128xf32> to vector<1x1x1x128xf32>
    %78 = arith.truncf %77 : vector<1x1x1x128xf32> to vector<1x1x1x128xbf16>
    %c0_72 = arith.constant 0 : index
    %c0_73 = arith.constant 0 : index
    %c0_74 = arith.constant 0 : index
    %c0_75 = arith.constant 0 : index
    %79 = vector.load %arg5[%c0_72, %c0_73, %c0_74, %c0_75] : memref<1x1x1x128xbf16, #tpu.memory_space<vmem>>, vector<1x1x1x128xbf16>
    tpu.vector_store %arg5[%c0_72, %c0_73, %c0_74, %c0_75], %78 {strides = array<i32>} : memref<1x1x1x128xbf16, #tpu.memory_space<vmem>>, vector<1x1x1x128xbf16>,
    return
  }
  func.func @transform_0(%arg0: i32, %arg1: i32) -> (i32, i32, i32, i32, i32) {
    %c0_i32 = arith.constant 0 : i32
    %c0_i32_0 = arith.constant 0 : i32
    %c0_i32_1 = arith.constant 0 : i32
    %c0_i32_2 = arith.constant 0 : i32
    %c0_i32_3 = arith.constant 0 : i32
    return %arg0, %c0_i32, %c0_i32_0, %c0_i32_1, %c0_i32_2 : i32, i32, i32, i32, i32
  }
  func.func @transform_1(%arg0: i32, %arg1: i32) -> (i32, i32, i32) {
    %c0_i32 = arith.constant 0 : i32
    %c0_i32_0 = arith.constant 0 : i32
    %c0_i32_1 = arith.constant 0 : i32
    %c0_i32_2 = arith.constant 0 : i32
    return %c0_i32, %c0_i32_0, %c0_i32_1 : i32, i32, i32
  }
  func.func @transform_2(%arg0: i32, %arg1: i32) -> (i32, i32) {
    %c0_i32 = arith.constant 0 : i32
    %c0_i32_0 = arith.constant 0 : i32
    %c0_i32_1 = arith.constant 0 : i32
    return %c0_i32, %c0_i32_0 : i32, i32
  }
  func.func @transform_3(%arg0: i32, %arg1: i32) -> (i32, i32, i32, i32) {
    %c0_i32 = arith.constant 0 : i32
    %c0_i32_0 = arith.constant 0 : i32
    %c0_i32_1 = arith.constant 0 : i32
    return %arg0, %arg1, %c0_i32, %c0_i32_0 : i32, i32, i32, i32
  }
}

module attributes {stable_mosaic.version = 11 : i64} {
  func.func @_mm_fused_kernel(%arg0: i32, %arg1: memref<2x128xbf16, #tpu.memory_space<vmem>>, %arg2: memref<128x128xbf16, #tpu.memory_space<vmem>>, %arg3: memref<1x128xf32, #tpu.memory_space<vmem>>, %arg4: memref<2x128xbf16, #tpu.memory_space<vmem>>) attributes {dimension_semantics = [#tpu.dimension_semantics<parallel>], iteration_bounds = array<i64: 1>, scalar_prefetch = 0 : i64, scratch_operands = 0 : i64, tpu.core_type = #tpu.core_type<tc>, window_params = [{transform_indices = @transform_0, window_bounds = array<i64: 2, 128>}, {pipeline_mode = #tpu.pipeline_mode<synchronous>, transform_indices = @transform_1, window_bounds = array<i64: 128, 128>}, {pipeline_mode = #tpu.pipeline_mode<synchronous>, transform_indices = @transform_2, window_bounds = array<i64: 1, 128>}, {transform_indices = @transform_3, window_bounds = array<i64: 2, 128>}]} {
    %c0 = arith.constant 0 : index
    %c0_0 = arith.constant 0 : index
    %0 = vector.load %arg1[%c0, %c0_0] : memref<2x128xbf16, #tpu.memory_space<vmem>>, vector<2x128xbf16>
    %c0_1 = arith.constant 0 : index
    %c0_2 = arith.constant 0 : index
    %1 = vector.load %arg2[%c0_1, %c0_2] : memref<128x128xbf16, #tpu.memory_space<vmem>>, vector<128x128xbf16>
    %cst = arith.constant dense<0.000000e+00> : vector<2x128xf32>
    %2 = tpu.matmul %0, %1, %cst {dimension_numbers = #tpu.dot_dimension_numbers<[1], [0], [0], [1], [0, 0, 1, 1], [], []>} : vector<2x128xbf16>, vector<128x128xbf16>, vector<2x128xf32> -> vector<2x128xf32>
    %c0_3 = arith.constant 0 : index
    %c0_4 = arith.constant 0 : index
    %3 = vector.load %arg3[%c0_3, %c0_4] : memref<1x128xf32, #tpu.memory_space<vmem>>, vector<1x128xf32>
    %4 = vector.broadcast %3 : vector<1x128xf32> to vector<2x128xf32>
    %5 = arith.addf %2, %4 : vector<2x128xf32>
    %cst_5 = arith.constant 0.000000e+00 : f32
    %6 = vector.broadcast %cst_5 : f32 to vector<2x128xf32>
    %7 = arith.maximumf %5, %6 : vector<2x128xf32>
    %8 = arith.truncf %7 : vector<2x128xf32> to vector<2x128xbf16>
    %c0_6 = arith.constant 0 : index
    %c0_7 = arith.constant 0 : index
    %9 = vector.load %arg4[%c0_6, %c0_7] : memref<2x128xbf16, #tpu.memory_space<vmem>>, vector<2x128xbf16>
    tpu.vector_store %arg4[%c0_6, %c0_7], %8 {strides = array<i32>} : memref<2x128xbf16, #tpu.memory_space<vmem>>, vector<2x128xbf16>,
    return
  }
  func.func @transform_0(%arg0: i32) -> (i32, i32) {
    %c0_i32 = arith.constant 0 : i32
    %c0_i32_0 = arith.constant 0 : i32
    return %arg0, %c0_i32 : i32, i32
  }
  func.func @transform_1(%arg0: i32) -> (i32, i32) {
    %c0_i32 = arith.constant 0 : i32
    %c0_i32_0 = arith.constant 0 : i32
    %c0_i32_1 = arith.constant 0 : i32
    return %c0_i32, %c0_i32_0 : i32, i32
  }
  func.func @transform_2(%arg0: i32) -> (i32, i32) {
    %c0_i32 = arith.constant 0 : i32
    %c0_i32_0 = arith.constant 0 : i32
    %c0_i32_1 = arith.constant 0 : i32
    return %c0_i32, %c0_i32_0 : i32, i32
  }
  func.func @transform_3(%arg0: i32) -> (i32, i32) {
    %c0_i32 = arith.constant 0 : i32
    %c0_i32_0 = arith.constant 0 : i32
    return %arg0, %c0_i32 : i32, i32
  }
}

module attributes {stable_mosaic.version = 11 : i64} {
  func.func @_mm_fused_kernel(%arg0: i32, %arg1: memref<2x128xbf16, #tpu.memory_space<vmem>>, %arg2: memref<128x128xbf16, #tpu.memory_space<vmem>>, %arg3: memref<1x128xf32, #tpu.memory_space<vmem>>, %arg4: memref<2x128xbf16, #tpu.memory_space<vmem>>, %arg5: memref<2x128xbf16, #tpu.memory_space<vmem>>) attributes {dimension_semantics = [#tpu.dimension_semantics<parallel>], iteration_bounds = array<i64: 1>, scalar_prefetch = 0 : i64, scratch_operands = 0 : i64, tpu.core_type = #tpu.core_type<tc>, window_params = [{transform_indices = @transform_0, window_bounds = array<i64: 2, 128>}, {pipeline_mode = #tpu.pipeline_mode<synchronous>, transform_indices = @transform_1, window_bounds = array<i64: 128, 128>}, {pipeline_mode = #tpu.pipeline_mode<synchronous>, transform_indices = @transform_2, window_bounds = array<i64: 1, 128>}, {transform_indices = @transform_3, window_bounds = array<i64: 2, 128>}, {transform_indices = @transform_4, window_bounds = array<i64: 2, 128>}]} {
    %c0 = arith.constant 0 : index
    %c0_0 = arith.constant 0 : index
    %0 = vector.load %arg1[%c0, %c0_0] : memref<2x128xbf16, #tpu.memory_space<vmem>>, vector<2x128xbf16>
    %c0_1 = arith.constant 0 : index
    %c0_2 = arith.constant 0 : index
    %1 = vector.load %arg2[%c0_1, %c0_2] : memref<128x128xbf16, #tpu.memory_space<vmem>>, vector<128x128xbf16>
    %cst = arith.constant dense<0.000000e+00> : vector<2x128xf32>
    %2 = tpu.matmul %0, %1, %cst {dimension_numbers = #tpu.dot_dimension_numbers<[1], [0], [0], [1], [0, 0, 1, 1], [], []>} : vector<2x128xbf16>, vector<128x128xbf16>, vector<2x128xf32> -> vector<2x128xf32>
    %c0_3 = arith.constant 0 : index
    %c0_4 = arith.constant 0 : index
    %3 = vector.load %arg3[%c0_3, %c0_4] : memref<1x128xf32, #tpu.memory_space<vmem>>, vector<1x128xf32>
    %4 = vector.broadcast %3 : vector<1x128xf32> to vector<2x128xf32>
    %5 = arith.addf %2, %4 : vector<2x128xf32>
    %c0_5 = arith.constant 0 : index
    %c0_6 = arith.constant 0 : index
    %6 = vector.load %arg4[%c0_5, %c0_6] : memref<2x128xbf16, #tpu.memory_space<vmem>>, vector<2x128xbf16>
    %7 = arith.extf %6 : vector<2x128xbf16> to vector<2x128xf32>
    %8 = arith.addf %5, %7 : vector<2x128xf32>
    %cst_7 = arith.constant 0.000000e+00 : f32
    %9 = vector.broadcast %cst_7 : f32 to vector<2x128xf32>
    %10 = arith.maximumf %8, %9 : vector<2x128xf32>
    %11 = arith.truncf %10 : vector<2x128xf32> to vector<2x128xbf16>
    %c0_8 = arith.constant 0 : index
    %c0_9 = arith.constant 0 : index
    %12 = vector.load %arg5[%c0_8, %c0_9] : memref<2x128xbf16, #tpu.memory_space<vmem>>, vector<2x128xbf16>
    tpu.vector_store %arg5[%c0_8, %c0_9], %11 {strides = array<i32>} : memref<2x128xbf16, #tpu.memory_space<vmem>>, vector<2x128xbf16>,
    return
  }
  func.func @transform_0(%arg0: i32) -> (i32, i32) {
    %c0_i32 = arith.constant 0 : i32
    %c0_i32_0 = arith.constant 0 : i32
    return %arg0, %c0_i32 : i32, i32
  }
  func.func @transform_1(%arg0: i32) -> (i32, i32) {
    %c0_i32 = arith.constant 0 : i32
    %c0_i32_0 = arith.constant 0 : i32
    %c0_i32_1 = arith.constant 0 : i32
    return %c0_i32, %c0_i32_0 : i32, i32
  }
  func.func @transform_2(%arg0: i32) -> (i32, i32) {
    %c0_i32 = arith.constant 0 : i32
    %c0_i32_0 = arith.constant 0 : i32
    %c0_i32_1 = arith.constant 0 : i32
    return %c0_i32, %c0_i32_0 : i32, i32
  }
  func.func @transform_3(%arg0: i32) -> (i32, i32) {
    %c0_i32 = arith.constant 0 : i32
    %c0_i32_0 = arith.constant 0 : i32
    return %arg0, %c0_i32 : i32, i32
  }
  func.func @transform_4(%arg0: i32) -> (i32, i32) {
    %c0_i32 = arith.constant 0 : i32
    %c0_i32_0 = arith.constant 0 : i32
    return %arg0, %c0_i32 : i32, i32
  }
}

module attributes {stable_mosaic.version = 11 : i64} {
  func.func @_conv_tap_kernel(%arg0: i32, %arg1: i32, %arg2: memref<1x1x2x1x256xbf16, #tpu.memory_space<vmem>>, %arg3: memref<1x128x256xbf16, #tpu.memory_space<vmem>>, %arg4: memref<1x256xf32, #tpu.memory_space<vmem>>, %arg5: memref<1x1x1x256xbf16, #tpu.memory_space<vmem>>) attributes {dimension_semantics = [#tpu.dimension_semantics<parallel>, #tpu.dimension_semantics<parallel>], iteration_bounds = array<i64: 2, 1>, scalar_prefetch = 0 : i64, scratch_operands = 0 : i64, tpu.core_type = #tpu.core_type<tc>, window_params = [{transform_indices = @transform_0, window_bounds = array<i64: 1, 1, 2, 1, 256>}, {pipeline_mode = #tpu.pipeline_mode<synchronous>, transform_indices = @transform_1, window_bounds = array<i64: 1, 128, 256>}, {pipeline_mode = #tpu.pipeline_mode<synchronous>, transform_indices = @transform_2, window_bounds = array<i64: 1, 256>}, {transform_indices = @transform_3, window_bounds = array<i64: 1, 1, 1, 256>}]} {
    %cst = arith.constant 0.000000e+00 : f32
    %0 = vector.broadcast %cst : f32 to vector<1x256xf32>
    %c0_i32 = arith.constant 0 : i32
    %1 = arith.addi %arg1, %c0_i32 : i32
    %c0 = arith.constant 0 : index
    %2 = arith.index_cast %1 : i32 to index
    %c0_0 = arith.constant 0 : index
    %c0_1 = arith.constant 0 : index
    %c0_2 = arith.constant 0 : index
    %3 = vector.load %arg2[%c0, %2, %c0_0, %c0_1, %c0_2] : memref<1x1x2x1x256xbf16, #tpu.memory_space<vmem>>, vector<1x1x1x1x128xbf16>
    %4 = vector.shape_cast %3 : vector<1x1x1x1x128xbf16> to vector<1x128xbf16>
    %c0_3 = arith.constant 0 : index
    %c0_4 = arith.constant 0 : index
    %c0_5 = arith.constant 0 : index
    %5 = vector.load %arg3[%c0_3, %c0_4, %c0_5] : memref<1x128x256xbf16, #tpu.memory_space<vmem>>, vector<1x128x256xbf16>
    %6 = vector.shape_cast %5 : vector<1x128x256xbf16> to vector<128x256xbf16>
    %cst_6 = arith.constant dense<0.000000e+00> : vector<1x256xf32>
    %7 = tpu.matmul %4, %6, %cst_6 {dimension_numbers = #tpu.dot_dimension_numbers<[1], [0], [0], [1], [0, 0, 1, 1], [], []>} : vector<1x128xbf16>, vector<128x256xbf16>, vector<1x256xf32> -> vector<1x256xf32>
    %8 = arith.addf %0, %7 : vector<1x256xf32>
    %c0_7 = arith.constant 0 : index
    %c0_8 = arith.constant 0 : index
    %9 = vector.load %arg4[%c0_7, %c0_8] : memref<1x256xf32, #tpu.memory_space<vmem>>, vector<1x256xf32>
    %10 = arith.addf %8, %9 : vector<1x256xf32>
    %11 = vector.shape_cast %10 : vector<1x256xf32> to vector<1x1x1x256xf32>
    %12 = arith.truncf %11 : vector<1x1x1x256xf32> to vector<1x1x1x256xbf16>
    %c0_9 = arith.constant 0 : index
    %c0_10 = arith.constant 0 : index
    %c0_11 = arith.constant 0 : index
    %c0_12 = arith.constant 0 : index
    %13 = vector.load %arg5[%c0_9, %c0_10, %c0_11, %c0_12] : memref<1x1x1x256xbf16, #tpu.memory_space<vmem>>, vector<1x1x1x256xbf16>
    tpu.vector_store %arg5[%c0_9, %c0_10, %c0_11, %c0_12], %12 {strides = array<i32>} : memref<1x1x1x256xbf16, #tpu.memory_space<vmem>>, vector<1x1x1x256xbf16>,
    return
  }
  func.func @transform_0(%arg0: i32, %arg1: i32) -> (i32, i32, i32, i32, i32) {
    %c0_i32 = arith.constant 0 : i32
    %c0_i32_0 = arith.constant 0 : i32
    %c0_i32_1 = arith.constant 0 : i32
    %c0_i32_2 = arith.constant 0 : i32
    %c0_i32_3 = arith.constant 0 : i32
    return %arg0, %c0_i32, %c0_i32_0, %c0_i32_1, %c0_i32_2 : i32, i32, i32, i32, i32
  }
  func.func @transform_1(%arg0: i32, %arg1: i32) -> (i32, i32, i32) {
    %c0_i32 = arith.constant 0 : i32
    %c0_i32_0 = arith.constant 0 : i32
    %c0_i32_1 = arith.constant 0 : i32
    %c0_i32_2 = arith.constant 0 : i32
    return %c0_i32, %c0_i32_0, %c0_i32_1 : i32, i32, i32
  }
  func.func @transform_2(%arg0: i32, %arg1: i32) -> (i32, i32) {
    %c0_i32 = arith.constant 0 : i32
    %c0_i32_0 = arith.constant 0 : i32
    %c0_i32_1 = arith.constant 0 : i32
    return %c0_i32, %c0_i32_0 : i32, i32
  }
  func.func @transform_3(%arg0: i32, %arg1: i32) -> (i32, i32, i32, i32) {
    %c0_i32 = arith.constant 0 : i32
    %c0_i32_0 = arith.constant 0 : i32
    %c0_i32_1 = arith.constant 0 : i32
    return %arg0, %arg1, %c0_i32, %c0_i32_0 : i32, i32, i32, i32
  }
}

module attributes {stable_mosaic.version = 11 : i64} {
  func.func @_avgpool_kernel(%arg0: i32, %arg1: memref<2x1x256xbf16, #tpu.memory_space<vmem>>, %arg2: memref<2x1x256xf32, #tpu.memory_space<vmem>>) attributes {dimension_semantics = [#tpu.dimension_semantics<arbitrary>], iteration_bounds = array<i64: 1>, scalar_prefetch = 0 : i64, scratch_operands = 0 : i64, tpu.core_type = #tpu.core_type<tc>, window_params = [{pipeline_mode = #tpu.pipeline_mode<synchronous>, transform_indices = @transform_0, window_bounds = array<i64: 2, 1, 256>}, {pipeline_mode = #tpu.pipeline_mode<synchronous>, transform_indices = @transform_1, window_bounds = array<i64: 2, 1, 256>}]} {
    %c0 = arith.constant 0 : index
    %c0_0 = arith.constant 0 : index
    %c0_1 = arith.constant 0 : index
    %0 = vector.load %arg1[%c0, %c0_0, %c0_1] : memref<2x1x256xbf16, #tpu.memory_space<vmem>>, vector<2x1x256xbf16>
    %1 = arith.extf %0 : vector<2x1x256xbf16> to vector<2x1x256xf32>
    %cst = arith.constant dense<0.000000e+00> : vector<2x256xf32>
    %2 = vector.multi_reduction <add>, %1, %cst [1] : vector<2x1x256xf32> to vector<2x256xf32>
    %3 = vector.shape_cast %2 : vector<2x256xf32> to vector<2x1x256xf32>
    %cst_2 = arith.constant 1.000000e+00 : f32
    %4 = vector.broadcast %cst_2 : f32 to vector<2x1x256xf32>
    %5 = arith.divf %3, %4 : vector<2x1x256xf32>
    %c0_3 = arith.constant 0 : index
    %c0_4 = arith.constant 0 : index
    %c0_5 = arith.constant 0 : index
    %6 = vector.load %arg2[%c0_3, %c0_4, %c0_5] : memref<2x1x256xf32, #tpu.memory_space<vmem>>, vector<2x1x256xf32>
    tpu.vector_store %arg2[%c0_3, %c0_4, %c0_5], %5 {strides = array<i32>} : memref<2x1x256xf32, #tpu.memory_space<vmem>>, vector<2x1x256xf32>,
    return
  }
  func.func @transform_0(%arg0: i32) -> (i32, i32, i32) {
    %c0_i32 = arith.constant 0 : i32
    %c0_i32_0 = arith.constant 0 : i32
    %c0_i32_1 = arith.constant 0 : i32
    %c0_i32_2 = arith.constant 0 : i32
    return %c0_i32, %c0_i32_0, %c0_i32_1 : i32, i32, i32
  }
  func.func @transform_1(%arg0: i32) -> (i32, i32, i32) {
    %c0_i32 = arith.constant 0 : i32
    %c0_i32_0 = arith.constant 0 : i32
    %c0_i32_1 = arith.constant 0 : i32
    %c0_i32_2 = arith.constant 0 : i32
    return %c0_i32, %c0_i32_0, %c0_i32_1 : i32, i32, i32
  }
}

module attributes {stable_mosaic.version = 11 : i64} {
  func.func @_mm_fused_kernel(%arg0: i32, %arg1: memref<2x128xbf16, #tpu.memory_space<vmem>>, %arg2: memref<128x256xbf16, #tpu.memory_space<vmem>>, %arg3: memref<1x256xf32, #tpu.memory_space<vmem>>, %arg4: memref<2x256xbf16, #tpu.memory_space<vmem>>, %arg5: memref<2x256xbf16, #tpu.memory_space<vmem>>) attributes {dimension_semantics = [#tpu.dimension_semantics<parallel>], iteration_bounds = array<i64: 1>, scalar_prefetch = 0 : i64, scratch_operands = 0 : i64, tpu.core_type = #tpu.core_type<tc>, window_params = [{transform_indices = @transform_0, window_bounds = array<i64: 2, 128>}, {pipeline_mode = #tpu.pipeline_mode<synchronous>, transform_indices = @transform_1, window_bounds = array<i64: 128, 256>}, {pipeline_mode = #tpu.pipeline_mode<synchronous>, transform_indices = @transform_2, window_bounds = array<i64: 1, 256>}, {transform_indices = @transform_3, window_bounds = array<i64: 2, 256>}, {transform_indices = @transform_4, window_bounds = array<i64: 2, 256>}]} {
    %c0 = arith.constant 0 : index
    %c0_0 = arith.constant 0 : index
    %0 = vector.load %arg1[%c0, %c0_0] : memref<2x128xbf16, #tpu.memory_space<vmem>>, vector<2x128xbf16>
    %c0_1 = arith.constant 0 : index
    %c0_2 = arith.constant 0 : index
    %1 = vector.load %arg2[%c0_1, %c0_2] : memref<128x256xbf16, #tpu.memory_space<vmem>>, vector<128x256xbf16>
    %cst = arith.constant dense<0.000000e+00> : vector<2x256xf32>
    %2 = tpu.matmul %0, %1, %cst {dimension_numbers = #tpu.dot_dimension_numbers<[1], [0], [0], [1], [0, 0, 1, 1], [], []>} : vector<2x128xbf16>, vector<128x256xbf16>, vector<2x256xf32> -> vector<2x256xf32>
    %c0_3 = arith.constant 0 : index
    %c0_4 = arith.constant 0 : index
    %3 = vector.load %arg3[%c0_3, %c0_4] : memref<1x256xf32, #tpu.memory_space<vmem>>, vector<1x256xf32>
    %4 = vector.broadcast %3 : vector<1x256xf32> to vector<2x256xf32>
    %5 = arith.addf %2, %4 : vector<2x256xf32>
    %c0_5 = arith.constant 0 : index
    %c0_6 = arith.constant 0 : index
    %6 = vector.load %arg4[%c0_5, %c0_6] : memref<2x256xbf16, #tpu.memory_space<vmem>>, vector<2x256xbf16>
    %7 = arith.extf %6 : vector<2x256xbf16> to vector<2x256xf32>
    %8 = arith.addf %5, %7 : vector<2x256xf32>
    %cst_7 = arith.constant 0.000000e+00 : f32
    %9 = vector.broadcast %cst_7 : f32 to vector<2x256xf32>
    %10 = arith.maximumf %8, %9 : vector<2x256xf32>
    %11 = arith.truncf %10 : vector<2x256xf32> to vector<2x256xbf16>
    %c0_8 = arith.constant 0 : index
    %c0_9 = arith.constant 0 : index
    %12 = vector.load %arg5[%c0_8, %c0_9] : memref<2x256xbf16, #tpu.memory_space<vmem>>, vector<2x256xbf16>
    tpu.vector_store %arg5[%c0_8, %c0_9], %11 {strides = array<i32>} : memref<2x256xbf16, #tpu.memory_space<vmem>>, vector<2x256xbf16>,
    return
  }
  func.func @transform_0(%arg0: i32) -> (i32, i32) {
    %c0_i32 = arith.constant 0 : i32
    %c0_i32_0 = arith.constant 0 : i32
    return %arg0, %c0_i32 : i32, i32
  }
  func.func @transform_1(%arg0: i32) -> (i32, i32) {
    %c0_i32 = arith.constant 0 : i32
    %c0_i32_0 = arith.constant 0 : i32
    %c0_i32_1 = arith.constant 0 : i32
    return %c0_i32, %c0_i32_0 : i32, i32
  }
  func.func @transform_2(%arg0: i32) -> (i32, i32) {
    %c0_i32 = arith.constant 0 : i32
    %c0_i32_0 = arith.constant 0 : i32
    %c0_i32_1 = arith.constant 0 : i32
    return %c0_i32, %c0_i32_0 : i32, i32
  }
  func.func @transform_3(%arg0: i32) -> (i32, i32) {
    %c0_i32 = arith.constant 0 : i32
    %c0_i32_0 = arith.constant 0 : i32
    return %arg0, %c0_i32 : i32, i32
  }
  func.func @transform_4(%arg0: i32) -> (i32, i32) {
    %c0_i32 = arith.constant 0 : i32
    %c0_i32_0 = arith.constant 0 : i32
    return %arg0, %c0_i32 : i32, i32
  }
}

</mosaic_0001>

<bundles_post_ra>
// kernel: _lambda_.19
= control target key start
LH: loop header
LB: loop body
LE: loop exit
PB: predicated region body
PF: predicated region fallthrough
CT: control target
= control target key end

     0   :  { %s729_s0 = inlined_call_operand.vmem [shape: bf16[2,5,2,5,256], index: 0, kind: input, shape index: {}]   ;;  %s730_s1 = inlined_call_operand.vmem [shape: bf16[2,4,4,128], index: 1, kind: output, shape index: {}]  }
   0x1   :  { %v8_v0 = vld [vmem:[%s729_s0] sm:$0x3]  ;;  %v16_v1 = vld [vmem:[%s729_s0 + $0x4] sm:$0x3]  ;;  %v422_v6 = vld [vmem:[%s729_s0 + $0x8] sm:$0x3] }
   0x2   :  { %v56_v2 = vld [vmem:[%s729_s0] sm:$0x7]  ;;  %v24_v3 = vunpack.c.l.bf16 %v8_v0  ;;  %v32_v4 = vunpack.c.l.bf16 %v16_v1  ;;  %v430_v7 = vld [vmem:[%s729_s0 + $0xc] sm:$0x3]  ;;  %v438_v8 = vld [vmem:[%s729_s0 + $0x8] sm:$0x7]  ;;  %v137_v14 = vunpack.c.l.bf16 %v422_v6 }
   0x3   :  { %v72_v5 = vunpack.c.l.bf16 %v56_v2  ;;  %v446_v9 = vld [vmem:[%s729_s0 + $0x10] sm:$0x3]  ;;  %v504_v10 = vld [vmem:[%s729_s0 + $0x14] sm:$0x3]  ;;  %v217_v15 = vunpack.c.l.bf16 %v438_v8  ;;  %v423_v22 = vld [vmem:[%s729_s0 + $0x18] sm:$0x3]  ;;  %v177_v24 = vunpack.c.l.bf16 %v430_v7 }
   0x4   :  { %v462_v11 = vld [vmem:[%s729_s0 + $0x10] sm:$0x7]  ;;  %v40_v12 = vmax.f32 %v24_v3, %v32_v4  ;;  %v17_v17 = vld [vmem:[%s729_s0 + $0x14] sm:$0x3]  ;;  %v431_v26 = vld [vmem:[%s729_s0 + $0x1c] sm:$0x3]  ;;  %v282_v28 = vunpack.c.l.bf16 %v446_v9  ;;  %v322_v29 = vunpack.c.l.bf16 %v504_v10  ;;  %v138_v37 = vunpack.c.l.bf16 %v423_v22 }
   0x5   :  { %v88_v13 = vrot.slane %v72_v5, 1  ;;  %v9_v16 = vld [vmem:[%s729_s0 + $0x10] sm:$0x3]  ;;  %v362_v18 = vunpack.c.l.bf16 %v462_v11  ;;  %v33_v20 = vunpack.c.l.bf16 %v17_v17  ;;  %v439_v27 = vld [vmem:[%s729_s0 + $0x18] sm:$0x7]  ;;  %v233_v35 = vrot.slane %v217_v15, 1 }
   0x6   :  { %v25_v19 = vunpack.c.l.bf16 %v9_v16  ;;  %v57_v21 = vld [vmem:[%s729_s0 + $0x10] sm:$0x7]  ;;  %v218_v31 = vunpack.c.l.bf16 %v439_v27  ;;  %v531_v32 = vld [vmem:[%s729_s0 + $0x20] sm:$0x3]  ;;  %v18_v39 = vld [vmem:[%s729_s0 + $0x24] sm:$0x3]  ;;  %v178_v41 = vunpack.c.l.bf16 %v431_v26 }
   0x7   :  { %v104_v23 = vmax.f32 %v40_v12, %v88_v13  ;;  %v73_v25 = vunpack.c.l.bf16 %v57_v21  ;;  %v463_v33 = vld [vmem:[%s729_s0 + $0x20] sm:$0x7]  ;;  %v378_v40 = vrot.slane %v362_v18, 1  ;;  %v34_v43 = vunpack.c.l.bf16 %v18_v39  ;;  %v424_v45 = vld [vmem:[%s729_s0 + $0x28] sm:$0x3] }
   0x8   :  { %v41_v30 = vmax.f32 %v25_v19, %v33_v20  ;;  %v10_v38 = vld [vmem:[%s729_s0 + $0x20] sm:$0x3]  ;;  %v283_v48 = vunpack.c.l.bf16 %v531_v32  ;;  %v455_v49 = vld [vmem:[%s729_s0 + $0x24] sm:$0x3]  ;;  %v432_v51 = vld [vmem:[%s729_s0 + $0x2c] sm:$0x3]  ;;  %v363_v54 = vunpack.c.l.bf16 %v463_v33  ;;  %v139_v62 = vunpack.c.l.bf16 %v424_v45 }
   0x9   :  { %v145_v34 = vmax.f32 %v104_v23, %v137_v14  ;;  %v89_v36 = vrot.slane %v73_v25, 1  ;;  %v26_v42 = vunpack.c.l.bf16 %v10_v38  ;;  %v58_v44 = vld [vmem:[%s729_s0 + $0x20] sm:$0x7]  ;;  %v440_v52 = vld [vmem:[%s729_s0 + $0x28] sm:$0x7]  ;;  %v234_v53 = vrot.slane %v218_v31, 1 }
   0xa   :  { %v74_v50 = vunpack.c.l.bf16 %v58_v44  ;;  %v219_v56 = vunpack.c.l.bf16 %v440_v52  ;;  %v561_v57 = vld [vmem:[%s729_s0 + $0x30] sm:$0x3]  ;;  %v19_v0 = vld [vmem:[%s729_s0 + $0x34] sm:$0x3]  ;;  %v323_v1 = vunpack.c.l.bf16 %v455_v49  ;;  %v179_v2 = vunpack.c.l.bf16 %v432_v51  ;;  %v425_v11 = vld [vmem:[%s729_s0 + $0x38] sm:$0x3] }
   0xb   :  { %v185_v46 = vmax.f32 %v145_v34, %v177_v24  ;;  %v105_v47 = vmax.f32 %v41_v30, %v89_v36  ;;  %v42_v55 = vmax.f32 %v26_v42, %v34_v43  ;;  %v464_v58 = vld [vmem:[%s729_s0 + $0x30] sm:$0x7]  ;;  %v456_v9 = vld [vmem:[%s729_s0 + $0x34] sm:$0x3]  ;;  %v35_v10 = vunpack.c.l.bf16 %v19_v0  ;;  %v441_v12 = vld [vmem:[%s729_s0 + $0x38] sm:$0x7] }
   0xc   :  { %v90_v61 = vrot.slane %v74_v50, 1  ;;  %v11_v63 = vld [vmem:[%s729_s0 + $0x30] sm:$0x3]  ;;  %v364_v3 = vunpack.c.l.bf16 %v464_v58  ;;  %v379_v13 = vrot.slane %v363_v54, 1  ;;  %v235_v14 = vrot.slane %v219_v56, 1 }
   0xd   :  { %v249_v59 = vmax.f32 %v185_v46, %v233_v35  ;;  %v146_v60 = vmax.f32 %v105_v47, %v138_v37  ;;  %v27_v4 = vunpack.c.l.bf16 %v11_v63  ;;  %v59_v5 = vld [vmem:[%s729_s0 + $0x30] sm:$0x7]  ;;  %v284_v15 = vunpack.c.l.bf16 %v561_v57  ;;  %v433_v21 = vld [vmem:[%s729_s0 + $0x3c] sm:$0x3]  ;;  %v20_v23 = vld [vmem:[%s729_s0 + $0x54] sm:$0x3] }
   0xe   :  { %v106_v8 = vmax.f32 %v42_v55, %v90_v61  ;;  %v75_v16 = vunpack.c.l.bf16 %v59_v5  ;;  %v12_v22 = vld [vmem:[%s729_s0 + $0x50] sm:$0x3]  ;;  %v324_v24 = vunpack.c.l.bf16 %v456_v9  ;;  %v140_v26 = vunpack.c.l.bf16 %v425_v11  ;;  %v457_v36 = vld [vmem:[%s729_s0 + $0x44] sm:$0x3]  ;;  %v465_v37 = vld [vmem:[%s729_s0 + $0x40] sm:$0x7] }
   0xf   :  { %v290_v6 = vmax.f32 %v249_v59, %v282_v28  ;;  %v186_v7 = vmax.f32 %v146_v60, %v178_v41  ;;  %v43_v20 = vmax.f32 %v27_v4, %v35_v10  ;;  %v220_v27 = vunpack.c.l.bf16 %v441_v12  ;;  %v449_v28 = vld [vmem:[%s729_s0 + $0x40] sm:$0x3]  ;;  %v60_v33 = vld [vmem:[%s729_s0 + $0x50] sm:$0x7]  ;;  %v426_v44 = vld [vmem:[%s729_s0 + $0x58] sm:$0x3] }
  0x10   :  { %v147_v19 = vmax.f32 %v106_v8, %v139_v62  ;;  %v91_v25 = vrot.slane %v75_v16, 1  ;;  %v380_v32 = vrot.slane %v364_v3, 1  ;;  %v180_v35 = vunpack.c.l.bf16 %v433_v21  ;;  %v442_v45 = vld [vmem:[%s729_s0 + $0x58] sm:$0x7]  ;;  %v434_v50 = vld [vmem:[%s729_s0 + $0x5c] sm:$0x3] }
  0x11   :  { %v330_v17 = vmax.f32 %v290_v6, %v322_v29  ;;  %v250_v18 = vmax.f32 %v186_v7, %v234_v53  ;;  %v28_v38 = vunpack.c.l.bf16 %v12_v22  ;;  %v36_v39 = vunpack.c.l.bf16 %v20_v23  ;;  %v466_v51 = vld [vmem:[%s729_s0 + $0x60] sm:$0x7]  ;;  %v21_v57 = vld [vmem:[%s729_s0 + $0x64] sm:$0x3]  ;;  %v427_v9 = vld [vmem:[%s729_s0 + $0x68] sm:$0x3] }
  0x12   :  { %v187_v31 = vmax.f32 %v147_v19, %v179_v2  ;;  %v107_v34 = vmax.f32 %v43_v20, %v91_v25  ;;  %v285_v43 = vunpack.c.l.bf16 %v449_v28  ;;  %v236_v47 = vrot.slane %v220_v27, 1  ;;  %v13_v56 = vld [vmem:[%s729_s0 + $0x60] sm:$0x3]  ;;  %v458_v6 = vld [vmem:[%s729_s0 + $0x64] sm:$0x3] }
  0x13   :  { %v394_v29 = vmax.f32 %v330_v17, %v378_v40  ;;  %v291_v30 = vmax.f32 %v250_v18, %v283_v48  ;;  %v44_v48 = vmax.f32 %v28_v38, %v36_v39  ;;  %v76_v49 = vunpack.c.l.bf16 %v60_v33  ;;  %v450_v62 = vld [vmem:[%s729_s0 + $0x60] sm:$0x3]  ;;  %v443_v10 = vld [vmem:[%s729_s0 + $0x68] sm:$0x7]  ;;  %v14_v20 = vld [vmem:[%s729_s0 + $0x70] sm:$0x3] }
  0x14   :  { %v251_v42 = vmax.f32 %v187_v31, %v235_v14  ;;  %v148_v46 = vmax.f32 %v107_v34, %v140_v26  ;;  %v325_v54 = vunpack.c.l.bf16 %v457_v36  ;;  %v365_v55 = vunpack.c.l.bf16 %v465_v37  ;;  %v61_v63 = vld [vmem:[%s729_s0 + $0x60] sm:$0x7]  ;;  %v22_v21 = vld [vmem:[%s729_s0 + $0x74] sm:$0x3]  ;;  %v467_v26 = vld [vmem:[%s729_s0 + $0x70] sm:$0x7] }
  0x15   :  { %v402_v40 = vpack.c.bf16 %v394_v29, %v394_v29  ;;  %v331_v41 = vmax.f32 %v291_v30, %v323_v1  ;;  %v92_v59 = vrot.slane %v76_v49, 1  ;;  %v141_v60 = vunpack.c.l.bf16 %v426_v44  ;;  %v62_v27 = vld [vmem:[%s729_s0 + $0x70] sm:$0x7]  ;;  %v444_v37 = vld [vmem:[%s729_s0 + $0x78] sm:$0x7] }
  0x16   :  { %v292_v53 = vmax.f32 %v251_v42, %v284_v15  ;;  %v188_v58 = vmax.f32 %v148_v46, %v180_v35  ;;  %v221_v61 = vunpack.c.l.bf16 %v442_v45  ;;  %v181_v2 = vunpack.c.l.bf16 %v434_v50  ;;  %v435_v15 = vld [vmem:[%s729_s0 + $0x6c] sm:$0x3]  ;;  %v15_v49 = vld [vmem:[%s729_s0 + $0x80] sm:$0x3] }
  0x17   :  { %410 = vst [vmem:[%s730_s1] sm:$0x3] %v402_v40  ;;  %v395_v52 = vmax.f32 %v331_v41, %v379_v13  ;;  %v366_v3 = vunpack.c.l.bf16 %v466_v51  ;;  %v108_v5 = vmax.f32 %v44_v48, %v92_v59  ;;  %v29_v7 = vunpack.c.l.bf16 %v13_v56  ;;  %v451_v40 = vld [vmem:[%s729_s0 + $0x70] sm:$0x3]  ;;  %v459_v41 = vld [vmem:[%s729_s0 + $0x74] sm:$0x3] }
  0x18   :  { %v332_v1 = vmax.f32 %v292_v53, %v324_v24  ;;  %v252_v4 = vmax.f32 %v188_v58, %v236_v47  ;;  %v37_v8 = vunpack.c.l.bf16 %v21_v57  ;;  %v381_v12 = vrot.slane %v365_v55, 1  ;;  %v436_v48 = vld [vmem:[%s729_s0 + $0x7c] sm:$0x3]  ;;  %v63_v55 = vld [vmem:[%s729_s0 + $0x80] sm:$0x7] }
  0x19   :  { %v403_v0 = vpack.c.bf16 %v395_v52, %v395_v52  ;;  %v286_v13 = vunpack.c.l.bf16 %v450_v62  ;;  %v77_v14 = vunpack.c.l.bf16 %v61_v63  ;;  %v149_v17 = vmax.f32 %v108_v5, %v141_v60  ;;  %v429_v59 = vld [vmem:[%s729_s0 + $0x88] sm:$0x3] }
  0x1a   :  { %v396_v11 = vmax.f32 %v332_v1, %v380_v32  ;;  %v293_v16 = vmax.f32 %v252_v4, %v285_v43  ;;  %v237_v18 = vrot.slane %v221_v61, 1  ;;  %v45_v19 = vmax.f32 %v29_v7, %v37_v8  ;;  %v428_v32 = vld [vmem:[%s729_s0 + $0x78] sm:$0x3]  ;;  %v468_v4 = vld [vmem:[%s729_s0 + $0x80] sm:$0x7] }
  0x1b   :  { %411 = vst [vmem:[%s730_s1 + $0x2] sm:$0x3] %v403_v0  ;;  %v93_v23 = vrot.slane %v77_v14, 1  ;;  %v142_v24 = vunpack.c.l.bf16 %v427_v9  ;;  %v222_v25 = vunpack.c.l.bf16 %v443_v10  ;;  %v189_v29 = vmax.f32 %v149_v17, %v181_v2  ;;  %v445_v0 = vld [vmem:[%s729_s0 + $0x88] sm:$0x7] }
  0x1c   :  { %v404_v22 = vpack.c.bf16 %v396_v11, %v396_v11  ;;  %v333_v28 = vmax.f32 %v293_v16, %v325_v54  ;;  %v326_v30 = vunpack.c.l.bf16 %v458_v6  ;;  %v382_v31 = vrot.slane %v366_v3, 1  ;;  %v23_v54 = vld [vmem:[%s729_s0 + $0x84] sm:$0x3]  ;;  %v452_v3 = vld [vmem:[%s729_s0 + $0x80] sm:$0x3] }
  0x1d   :  { %v109_v33 = vmax.f32 %v45_v19, %v93_v23  ;;  %v182_v34 = vunpack.c.l.bf16 %v435_v15  ;;  %v30_v35 = vunpack.c.l.bf16 %v14_v20  ;;  %v38_v36 = vunpack.c.l.bf16 %v22_v21  ;;  %v437_v11 = vld [vmem:[%s729_s0 + $0x8c] sm:$0x3] }
  0x1e   :  { %412 = vst [vmem:[%s730_s1 + $0x4] sm:$0x3] %v404_v22  ;;  %v397_v38 = vmax.f32 %v333_v28, %v381_v12  ;;  %v253_v39 = vmax.f32 %v189_v29, %v237_v18  ;;  %v367_v42 = vunpack.c.l.bf16 %v467_v26  ;;  %v78_v43 = vunpack.c.l.bf16 %v62_v27  ;;  %v453_v26 = vld [vmem:[%s729_s0 + $0x90] sm:$0x3] }
  0x1f   :  { %v150_v44 = vmax.f32 %v109_v33, %v142_v24  ;;  %v238_v45 = vrot.slane %v222_v25, 1  ;;  %v46_v46 = vmax.f32 %v30_v35, %v38_v36  ;;  %v143_v47 = vunpack.c.l.bf16 %v428_v32  ;;  %v469_v27 = vld [vmem:[%s729_s0 + $0x90] sm:$0x7]  ;;  %v461_v33 = vld [vmem:[%s729_s0 + $0x94] sm:$0x3] }
  0x20   :  { %v405_v50 = vpack.c.bf16 %v397_v38, %v397_v38  ;;  %v294_v51 = vmax.f32 %v253_v39, %v286_v13  ;;  %v94_v52 = vrot.slane %v78_v43, 1  ;;  %v223_v53 = vunpack.c.l.bf16 %v444_v37  ;;  %v460_v13 = vld [vmem:[%s729_s0 + $0x84] sm:$0x3] }
  0x21   :  { %v190_v56 = vmax.f32 %v150_v44, %v182_v34  ;;  %v287_v57 = vunpack.c.l.bf16 %v451_v40  ;;  %v327_v58 = vunpack.c.l.bf16 %v459_v41  ;;  %v183_v62 = vunpack.c.l.bf16 %v436_v48 }
  0x22   :  { %413 = vst [vmem:[%s730_s1 + $0x6] sm:$0x3] %v405_v50  ;;  %v334_v60 = vmax.f32 %v294_v51, %v326_v30  ;;  %v110_v61 = vmax.f32 %v46_v46, %v94_v52  ;;  %v31_v63 = vunpack.c.l.bf16 %v15_v49  ;;  %v383_v2 = vrot.slane %v367_v42, 1 }
  0x23   :  { %v254_v1 = vmax.f32 %v190_v56, %v238_v45  ;;  %v39_v5 = vunpack.c.l.bf16 %v23_v54  ;;  %v79_v6 = vunpack.c.l.bf16 %v63_v55  ;;  %v239_v9 = vrot.slane %v223_v53, 1 }
  0x24   :  { %v398_v7 = vmax.f32 %v334_v60, %v382_v31  ;;  %v151_v8 = vmax.f32 %v110_v61, %v143_v47  ;;  %v144_v10 = vunpack.c.l.bf16 %v429_v59  ;;  %v224_v16 = vunpack.c.l.bf16 %v445_v0 }
  0x25   :  { %v295_v12 = vmax.f32 %v254_v1, %v287_v57  ;;  %v47_v14 = vmax.f32 %v31_v63, %v39_v5  ;;  %v95_v15 = vrot.slane %v79_v6, 1  ;;  %v288_v19 = vunpack.c.l.bf16 %v452_v3 }
  0x26   :  { %v406_v17 = vpack.c.bf16 %v398_v7, %v398_v7  ;;  %v191_v18 = vmax.f32 %v151_v8, %v183_v62  ;;  %v368_v20 = vunpack.c.l.bf16 %v468_v4  ;;  %v184_v23 = vunpack.c.l.bf16 %v437_v11 }
  0x27   :  { %v335_v21 = vmax.f32 %v295_v12, %v327_v58  ;;  %v111_v22 = vmax.f32 %v47_v14, %v95_v15  ;;  %v328_v25 = vunpack.c.l.bf16 %v460_v13  ;;  %v240_v30 = vrot.slane %v224_v16, 1 }
  0x28   :  { %414 = vst [vmem:[%s730_s1 + $0x8] sm:$0x3] %v406_v17  ;;  %v255_v24 = vmax.f32 %v191_v18, %v239_v9  ;;  %v384_v32 = vrot.slane %v368_v20, 1  ;;  %v289_v36 = vunpack.c.l.bf16 %v453_v26  ;;  %v369_v37 = vunpack.c.l.bf16 %v469_v27 }
  0x29   :  { %v399_v28 = vmax.f32 %v335_v21, %v383_v2  ;;  %v152_v29 = vmax.f32 %v111_v22, %v144_v10  ;;  %v329_v40 = vunpack.c.l.bf16 %v461_v33 }
  0x2a   :  { %v296_v31 = vmax.f32 %v255_v24, %v288_v19  ;;  %v385_v43 = vrot.slane %v369_v37, 1 }
  0x2b   :  { %v407_v34 = vpack.c.bf16 %v399_v28, %v399_v28  ;;  %v192_v35 = vmax.f32 %v152_v29, %v184_v23 }
  0x2c   :  { %v336_v38 = vmax.f32 %v296_v31, %v328_v25 }
  0x2d   :  { %415 = vst [vmem:[%s730_s1 + $0xa] sm:$0x3] %v407_v34  ;;  %v256_v39 = vmax.f32 %v192_v35, %v240_v30 }
  0x2e   :  { %v400_v41 = vmax.f32 %v336_v38, %v384_v32 }
  0x2f   :  { %v297_v42 = vmax.f32 %v256_v39, %v289_v36 }
  0x30   :  { %v408_v44 = vpack.c.bf16 %v400_v41, %v400_v41 }
  0x31   :  { %v337_v45 = vmax.f32 %v297_v42, %v329_v40 }
  0x32   :  { %416 = vst [vmem:[%s730_s1 + $0xc] sm:$0x3] %v408_v44 }
  0x33   :  { %v401_v46 = vmax.f32 %v337_v45, %v385_v43 }
  0x35   :  { %v409_v47 = vpack.c.bf16 %v401_v46, %v401_v46 }
  0x37   :  { %417 = vst [vmem:[%s730_s1 + $0xe] sm:$0x3] %v409_v47 }

// kernel: _lambda_.20
= control target key start
LH: loop header
LB: loop body
LE: loop exit
PB: predicated region body
PF: predicated region fallthrough
CT: control target
= control target key end

     0   :  { %s470_s1 = inlined_call_operand.vmem [shape: bf16[128,256], index: 1, kind: input, shape index: {}]   ;;  %s471_s0 = inlined_call_operand.vmem [shape: bf16[32,128], index: 0, kind: input, shape index: {}]   ;;  %s472_s2 = inlined_call_operand.vmem [shape: f32[1,256], index: 2, kind: input, shape index: {}]   ;;  %s473_s4 = inlined_call_operand.vmem [shape: bf16[32,128], index: 4, kind: output, shape index: {1}]   ;;  %s474_s3 = inlined_call_operand.vmem [shape: bf16[32,128], index: 3, kind: output, shape index: {0}]  }
   0x1   :  { %v266_v0 = vld [vmem:[%s470_s1 + $0x70] sm:$0xf]  ;;  %v289_v1 = vld [vmem:[%s470_s1 + $0x74] sm:$0xf0]  ;;  %v288_v2 = vld [vmem:[%s470_s1 + $0x74] sm:$0xf] }
   0x2   :  { %v267_v3 = vor.u32 %v289_v1, %v266_v0  ;;  %v268_v4 = vld [vmem:[%s470_s1 + $0x78] sm:$0xf0]  ;;  %v258_v5 = vld [vmem:[%s470_s1 + $0x60] sm:$0xf]  ;;  %v287_v6 = vld [vmem:[%s470_s1 + $0x64] sm:$0xf0] }
   0x3   :  { %v271_v7 = vor.u32 %v288_v2, %v268_v4  ;;  %v286_v8 = vld [vmem:[%s470_s1 + $0x64] sm:$0xf]  ;;  %v260_v9 = vld [vmem:[%s470_s1 + $0x68] sm:$0xf0]  ;;  %v259_v10 = vor.u32 %v287_v6, %v258_v5  ;;  %v250_v12 = vld [vmem:[%s470_s1 + $0x50] sm:$0xf] }
   0x4   :  { %134 = vmatpush.bf16.msra.mxu0 %v267_v3  ;;  %312 = vmatpush.bf16.msra.mxu2 %v267_v3  ;;  %v263_v11 = vor.u32 %v286_v8, %v260_v9  ;;  %v285_v13 = vld [vmem:[%s470_s1 + $0x54] sm:$0xf0]  ;;  %v284_v14 = vld [vmem:[%s470_s1 + $0x54] sm:$0xf]  ;;  %v252_v15 = vld [vmem:[%s470_s1 + $0x58] sm:$0xf0] }
   0x5   :  { %153 = vmatpush.bf16.msra.mxu1 %v271_v7  ;;  %320 = vmatpush.bf16.msra.mxu3 %v271_v7  ;;  %v251_v16 = vor.u32 %v285_v13, %v250_v12  ;;  %v255_v17 = vor.u32 %v284_v14, %v252_v15  ;;  %v242_v18 = vld [vmem:[%s470_s1 + $0x40] sm:$0xf]  ;;  %v283_v19 = vld [vmem:[%s470_s1 + $0x44] sm:$0xf0]  ;;  %v282_v20 = vld [vmem:[%s470_s1 + $0x44] sm:$0xf] }
   0x6   :  { %v244_v21 = vld [vmem:[%s470_s1 + $0x48] sm:$0xf0]  ;;  %v243_v22 = vor.u32 %v283_v19, %v242_v18  ;;  %v234_v24 = vld [vmem:[%s470_s1 + $0x30] sm:$0xf]  ;;  %v281_v25 = vld [vmem:[%s470_s1 + $0x34] sm:$0xf0] }
   0x7   :  { %v247_v23 = vor.u32 %v282_v20, %v244_v21  ;;  %v280_v26 = vld [vmem:[%s470_s1 + $0x34] sm:$0xf]  ;;  %v236_v27 = vld [vmem:[%s470_s1 + $0x38] sm:$0xf0]  ;;  %v235_v28 = vor.u32 %v281_v25, %v234_v24  ;;  %v226_v30 = vld [vmem:[%s470_s1 + $0x20] sm:$0xf] }
   0x8   :  { %135 = vmatpush.bf16.msra.mxu0 %v259_v10  ;;  %313 = vmatpush.bf16.msra.mxu2 %v259_v10  ;;  %v239_v29 = vor.u32 %v280_v26, %v236_v27  ;;  %v279_v31 = vld [vmem:[%s470_s1 + $0x24] sm:$0xf0]  ;;  %v278_v32 = vld [vmem:[%s470_s1 + $0x24] sm:$0xf]  ;;  %v228_v33 = vld [vmem:[%s470_s1 + $0x28] sm:$0xf0] }
   0x9   :  { %154 = vmatpush.bf16.msra.mxu1 %v263_v11  ;;  %321 = vmatpush.bf16.msra.mxu3 %v263_v11  ;;  %v227_v34 = vor.u32 %v279_v31, %v226_v30  ;;  %v231_v35 = vor.u32 %v278_v32, %v228_v33  ;;  %v218_v36 = vld [vmem:[%s470_s1 + $0x10] sm:$0xf]  ;;  %v277_v37 = vld [vmem:[%s470_s1 + $0x14] sm:$0xf0]  ;;  %v276_v38 = vld [vmem:[%s470_s1 + $0x14] sm:$0xf] }
   0xa   :  { %v220_v39 = vld [vmem:[%s470_s1 + $0x18] sm:$0xf0]  ;;  %v219_v40 = vor.u32 %v277_v37, %v218_v36  ;;  %v210_v42 = vld [vmem:[%s470_s1] sm:$0xf]  ;;  %v275_v43 = vld [vmem:[%s470_s1 + $0x4] sm:$0xf0] }
   0xb   :  { %v223_v41 = vor.u32 %v276_v38, %v220_v39  ;;  %v274_v44 = vld [vmem:[%s470_s1 + $0x4] sm:$0xf]  ;;  %v212_v45 = vld [vmem:[%s470_s1 + $0x8] sm:$0xf0]  ;;  %v211_v46 = vor.u32 %v275_v43, %v210_v42  ;;  %v36_v50 = vld [vmem:[%s472_s2] sm:$0x3] }
   0xc   :  { %136 = vmatpush.bf16.msra.mxu0 %v251_v16  ;;  %314 = vmatpush.bf16.msra.mxu2 %v251_v16  ;;  %v215_v47 = vor.u32 %v274_v44, %v212_v45  ;;  %v272_v48 = vld [vmem:[%s471_s0] sm:$0xff]  ;;  %v273_v49 = vld [vmem:[%s471_s0 + $0x8] sm:$0xff]  ;;  %v38_v53 = vperm.slane %v36_v50, 0  ;;  %v39_v54 = vperm.slane %v36_v50, 1 }
   0xd   :  { %155 = vmatpush.bf16.msra.mxu1 %v255_v17  ;;  %322 = vmatpush.bf16.msra.mxu3 %v255_v17 }
  0x10   :  { %137 = vmatpush.bf16.msra.mxu0 %v243_v22  ;;  %315 = vmatpush.bf16.msra.mxu2 %v243_v22 }
  0x11   :  { %156 = vmatpush.bf16.msra.mxu1 %v247_v23  ;;  %323 = vmatpush.bf16.msra.mxu3 %v247_v23 }
  0x14   :  { %138 = vmatpush.bf16.msra.mxu0 %v235_v28  ;;  %316 = vmatpush.bf16.msra.mxu2 %v235_v28 }
  0x15   :  { %157 = vmatpush.bf16.msra.mxu1 %v239_v29  ;;  %324 = vmatpush.bf16.msra.mxu3 %v239_v29 }
  0x18   :  { %139 = vmatpush.bf16.msra.mxu0 %v227_v34  ;;  %317 = vmatpush.bf16.msra.mxu2 %v227_v34 }
  0x19   :  { %158 = vmatpush.bf16.msra.mxu1 %v231_v35  ;;  %325 = vmatpush.bf16.msra.mxu3 %v231_v35 }
  0x1c   :  { %140 = vmatpush.bf16.msra.mxu0 %v219_v40  ;;  %318 = vmatpush.bf16.msra.mxu2 %v219_v40 }
  0x1d   :  { %159 = vmatpush.bf16.msra.mxu1 %v223_v41  ;;  %326 = vmatpush.bf16.msra.mxu3 %v223_v41 }
  0x20   :  { %141 = vmatpush.bf16.msra.mxu0 %v211_v46  ;;  %319 = vmatpush.bf16.msra.mxu2 %v211_v46 }
  0x21   :  { %160 = vmatpush.bf16.msra.mxu1 %v215_v47  ;;  %327 = vmatpush.bf16.msra.mxu3 %v215_v47 }
  0x23   :  { %142 = vmatmul.bf16.vlgmr.msra.gmra.mxu0 %v272_v48  ;;  %147 = vmatmul.bf16.vlgmr.msra.gmra.mxu2 %v273_v49 }
  0x24   :  { %161 = vmatmul.bf16.vlgmr.msra.gmra.mxu1 %v272_v48  ;;  %166 = vmatmul.bf16.vlgmr.msra.gmra.mxu3 %v273_v49 }
  0xa0   :  { %v143_v51 = vpop.f32.mrf.mxu0 }
  0xa1   :  { %v162_v52 = vpop.f32.mrf.mxu1  ;;  %v144_v56 = vadd.f32 %v143_v51, %v38_v53 }
  0xa2   :  { %v163_v58 = vadd.f32 %v162_v52, %v39_v54 }
  0xa3   :  { %v172_v63 = vmax.f32 %v144_v56, 0.0 }
  0xa6   :  { %v148_v55 = vpop.f32.mrf.mxu2 }
  0xa7   :  { %v167_v57 = vpop.f32.mrf.mxu3  ;;  %v149_v2 = vadd.f32 %v148_v55, %v38_v53 }
  0xa8   :  { %v145_v59 = vpop.f32.mrf.mxu0  ;;  %v168_v7 = vadd.f32 %v167_v57, %v39_v54 }
  0xa9   :  { %v146_v60 = vadd.f32 %v145_v59, %v38_v53  ;;  %v164_v61 = vpop.f32.mrf.mxu1  ;;  %v174_v9 = vmax.f32 %v149_v2, 0.0 }
  0xaa   :  { %v165_v62 = vadd.f32 %v164_v61, %v39_v54 }
  0xab   :  { %v173_v0 = vmax.f32 %v146_v60, 0.0 }
  0xac   :  { %v303_v1 = vpack.c.bf16 %v165_v62, %v163_v58 }
  0xad   :  { %v293_v3 = vpack.c.bf16 %v173_v0, %v172_v63 }
  0xae   :  { %304 = vst [vmem:[%s473_s4] sm:$0xff] %v303_v1   ;;  %v150_v4 = vpop.f32.mrf.mxu2 }
  0xaf   :  { %294 = vst [vmem:[%s474_s3] sm:$0xff] %v293_v3   ;;  %v151_v5 = vadd.f32 %v150_v4, %v38_v53  ;;  %v169_v6 = vpop.f32.mrf.mxu3 }
  0xb0   :  { %v170_v8 = vadd.f32 %v169_v6, %v39_v54 }
  0xb1   :  { %v175_v10 = vmax.f32 %v151_v5, 0.0 }
  0xb2   :  { %v308_v11 = vpack.c.bf16 %v170_v8, %v168_v7 }
  0xb3   :  { %v298_v12 = vpack.c.bf16 %v175_v10, %v174_v9 }
  0xb4   :  { %311 = vst [vmem:[%s473_s4 + $0x8] sm:$0xff] %v308_v11  }
  0xb5   :  { %310 = vst [vmem:[%s474_s3 + $0x8] sm:$0xff] %v298_v12  }

// kernel: _lambda_.22
= control target key start
LH: loop header
LB: loop body
LE: loop exit
PB: predicated region body
PF: predicated region fallthrough
CT: control target
= control target key end

     0   :  { %s297_s1 = inlined_call_operand.vmem [shape: bf16[128,128], index: 1, kind: input, shape index: {}]   ;;  %s298_s2 = inlined_call_operand.vmem [shape: f32[1,128], index: 2, kind: input, shape index: {}]   ;;  %s299_s0 = inlined_call_operand.vmem [shape: bf16[32,128], index: 0, kind: input, shape index: {}]   ;;  %s300_s3 = inlined_call_operand.vmem [shape: bf16[32,128], index: 3, kind: input, shape index: {}]   ;;  %s301_s4 = inlined_call_operand.vmem [shape: bf16[32,128], index: 4, kind: output, shape index: {}]  }
   0x1   :  { %v197_v0 = vld [vmem:[%s297_s1 + $0x38] sm:$0xff]  ;;  %v196_v1 = vld [vmem:[%s297_s1 + $0x30] sm:$0xff]  ;;  %v195_v2 = vld [vmem:[%s297_s1 + $0x28] sm:$0xff] }
   0x2   :  { %101 = vmatpush.bf16.msra.mxu0 %v197_v0  ;;  %218 = vmatpush.bf16.msra.mxu1 %v197_v0  ;;  %v194_v3 = vld [vmem:[%s297_s1 + $0x20] sm:$0xff]  ;;  %v193_v4 = vld [vmem:[%s297_s1 + $0x18] sm:$0xff]  ;;  %v192_v5 = vld [vmem:[%s297_s1 + $0x10] sm:$0xff] }
   0x3   :  { %v191_v6 = vld [vmem:[%s297_s1 + $0x8] sm:$0xff]  ;;  %v190_v7 = vld [vmem:[%s297_s1] sm:$0xff] }
   0x4   :  { %v188_v8 = vld [vmem:[%s299_s0] sm:$0xff]  ;;  %v189_v9 = vld [vmem:[%s299_s0 + $0x8] sm:$0xff] }
   0x5   :  { %v226_v12 = vld [vmem:[%s298_s2] ss:$0 sm:$0xff]  ;;  %v216_v14 = vld [vmem:[%s300_s3 + $0x8] sm:$0xff]  }
   0x6   :  { %102 = vmatpush.bf16.msra.mxu0 %v196_v1  ;;  %219 = vmatpush.bf16.msra.mxu1 %v196_v1  ;;  %v199_v13 = vld [vmem:[%s300_s3] sm:$0xff]   ;;  %v204_v18 = vunpack.c.l.bf16 %v216_v14  ;;  %v205_v20 = vunpack.c.h.bf16 %v216_v14 }
   0x7   :  { %v200_v16 = vunpack.c.l.bf16 %v199_v13  ;;  %v201_v19 = vunpack.c.h.bf16 %v199_v13 }
   0xa   :  { %103 = vmatpush.bf16.msra.mxu0 %v195_v2  ;;  %220 = vmatpush.bf16.msra.mxu1 %v195_v2 }
   0xe   :  { %104 = vmatpush.bf16.msra.mxu0 %v194_v3  ;;  %221 = vmatpush.bf16.msra.mxu1 %v194_v3 }
  0x12   :  { %105 = vmatpush.bf16.msra.mxu0 %v193_v4  ;;  %222 = vmatpush.bf16.msra.mxu1 %v193_v4 }
  0x16   :  { %106 = vmatpush.bf16.msra.mxu0 %v192_v5  ;;  %223 = vmatpush.bf16.msra.mxu1 %v192_v5 }
  0x1a   :  { %107 = vmatpush.bf16.msra.mxu0 %v191_v6  ;;  %224 = vmatpush.bf16.msra.mxu1 %v191_v6 }
  0x1e   :  { %108 = vmatpush.bf16.msra.mxu0 %v190_v7  ;;  %225 = vmatpush.bf16.msra.mxu1 %v190_v7 }
  0x21   :  { %109 = vmatmul.bf16.vlgmr.msra.gmra.mxu0 %v188_v8  ;;  %114 = vmatmul.bf16.vlgmr.msra.gmra.mxu1 %v189_v9 }
  0x9e   :  { %v110_v10 = vpop.f32.mrf.mxu0  ;;  %v115_v11 = vpop.f32.mrf.mxu1 }
  0x9f   :  { %v111_v15 = vadd.f32 %v226_v12, %v110_v10  ;;  %v116_v17 = vadd.f32 %v226_v12, %v115_v11 }
  0xa1   :  { %v128_v23 = vadd.f32 %v200_v16, %v111_v15  ;;  %v130_v24 = vadd.f32 %v204_v18, %v116_v17 }
  0xa3   :  { %v132_v29 = vmax.f32 %v128_v23, 0.0  ;;  %v134_v30 = vmax.f32 %v130_v24, 0.0 }
  0xa6   :  { %v112_v21 = vpop.f32.mrf.mxu0  ;;  %v117_v22 = vpop.f32.mrf.mxu1 }
  0xa7   :  { %v113_v25 = vadd.f32 %v226_v12, %v112_v21  ;;  %v118_v26 = vadd.f32 %v226_v12, %v117_v22 }
  0xa9   :  { %v129_v27 = vadd.f32 %v201_v19, %v113_v25  ;;  %v131_v28 = vadd.f32 %v205_v20, %v118_v26 }
  0xab   :  { %v133_v31 = vmax.f32 %v129_v27, 0.0  ;;  %v135_v32 = vmax.f32 %v131_v28, 0.0 }
  0xad   :  { %v209_v33 = vpack.c.bf16 %v133_v31, %v132_v29  ;;  %v214_v34 = vpack.c.bf16 %v135_v32, %v134_v30 }
  0xaf   :  { %210 = vst [vmem:[%s301_s4] sm:$0xff] %v209_v33  }
  0xb0   :  { %217 = vst [vmem:[%s301_s4 + $0x8] sm:$0xff] %v214_v34  }

// kernel: _lambda_.23
= control target key start
LH: loop header
LB: loop body
LE: loop exit
PB: predicated region body
PF: predicated region fallthrough
CT: control target
= control target key end

     0   :  { %s262_s1 = inlined_call_operand.vmem [shape: bf16[128,128], index: 1, kind: input, shape index: {}]   ;;  %s263_s2 = inlined_call_operand.vmem [shape: f32[1,128], index: 2, kind: input, shape index: {}]   ;;  %s264_s0 = inlined_call_operand.vmem [shape: bf16[32,128], index: 0, kind: input, shape index: {}]   ;;  %s265_s3 = inlined_call_operand.vmem [shape: bf16[32,128], index: 3, kind: output, shape index: {}]  }
   0x1   :  { %v182_v0 = vld [vmem:[%s262_s1 + $0x38] sm:$0xff]  ;;  %v181_v1 = vld [vmem:[%s262_s1 + $0x30] sm:$0xff]  ;;  %v180_v2 = vld [vmem:[%s262_s1 + $0x28] sm:$0xff] }
   0x2   :  { %98 = vmatpush.bf16.msra.mxu0 %v182_v0  ;;  %194 = vmatpush.bf16.msra.mxu1 %v182_v0  ;;  %v179_v3 = vld [vmem:[%s262_s1 + $0x20] sm:$0xff]  ;;  %v178_v4 = vld [vmem:[%s262_s1 + $0x18] sm:$0xff]  ;;  %v177_v5 = vld [vmem:[%s262_s1 + $0x10] sm:$0xff] }
   0x3   :  { %v176_v6 = vld [vmem:[%s262_s1 + $0x8] sm:$0xff]  ;;  %v175_v7 = vld [vmem:[%s262_s1] sm:$0xff] }
   0x4   :  { %v173_v8 = vld [vmem:[%s264_s0] sm:$0xff]  ;;  %v174_v9 = vld [vmem:[%s264_s0 + $0x8] sm:$0xff] }
   0x5   :  { %v202_v12 = vld [vmem:[%s263_s2] ss:$0 sm:$0xff] }
   0x6   :  { %99 = vmatpush.bf16.msra.mxu0 %v181_v1  ;;  %195 = vmatpush.bf16.msra.mxu1 %v181_v1 }
   0xa   :  { %100 = vmatpush.bf16.msra.mxu0 %v180_v2  ;;  %196 = vmatpush.bf16.msra.mxu1 %v180_v2 }
   0xe   :  { %101 = vmatpush.bf16.msra.mxu0 %v179_v3  ;;  %197 = vmatpush.bf16.msra.mxu1 %v179_v3 }
  0x12   :  { %102 = vmatpush.bf16.msra.mxu0 %v178_v4  ;;  %198 = vmatpush.bf16.msra.mxu1 %v178_v4 }
  0x16   :  { %103 = vmatpush.bf16.msra.mxu0 %v177_v5  ;;  %199 = vmatpush.bf16.msra.mxu1 %v177_v5 }
  0x1a   :  { %104 = vmatpush.bf16.msra.mxu0 %v176_v6  ;;  %200 = vmatpush.bf16.msra.mxu1 %v176_v6 }
  0x1e   :  { %105 = vmatpush.bf16.msra.mxu0 %v175_v7  ;;  %201 = vmatpush.bf16.msra.mxu1 %v175_v7 }
  0x21   :  { %106 = vmatmul.bf16.vlgmr.msra.gmra.mxu0 %v173_v8  ;;  %111 = vmatmul.bf16.vlgmr.msra.gmra.mxu1 %v174_v9 }
  0x9e   :  { %v107_v10 = vpop.f32.mrf.mxu0  ;;  %v112_v11 = vpop.f32.mrf.mxu1 }
  0x9f   :  { %v108_v13 = vadd.f32 %v202_v12, %v107_v10  ;;  %v113_v14 = vadd.f32 %v202_v12, %v112_v11 }
  0xa1   :  { %v117_v19 = vmax.f32 %v108_v13, 0.0  ;;  %v119_v20 = vmax.f32 %v113_v14, 0.0 }
  0xa6   :  { %v109_v15 = vpop.f32.mrf.mxu0  ;;  %v114_v16 = vpop.f32.mrf.mxu1 }
  0xa7   :  { %v110_v17 = vadd.f32 %v202_v12, %v109_v15  ;;  %v115_v18 = vadd.f32 %v202_v12, %v114_v16 }
  0xa9   :  { %v118_v21 = vmax.f32 %v110_v17, 0.0  ;;  %v120_v22 = vmax.f32 %v115_v18, 0.0 }
  0xab   :  { %v186_v23 = vpack.c.bf16 %v118_v21, %v117_v19  ;;  %v191_v24 = vpack.c.bf16 %v120_v22, %v119_v20 }
  0xad   :  { %187 = vst [vmem:[%s265_s3] sm:$0xff] %v186_v23  }
  0xae   :  { %193 = vst [vmem:[%s265_s3 + $0x8] sm:$0xff] %v191_v24  }

// kernel: _lambda_.24
= control target key start
LH: loop header
LB: loop body
LE: loop exit
PB: predicated region body
PF: predicated region fallthrough
CT: control target
= control target key end

     0   :  { %s499_s12 = smov 0   ;;  %s501_s13 = smov 0   ;;  %s582_s0 = inlined_call_operand.vmem [shape: bf16[2,2,2,2,256], index: 0, kind: input, shape index: {}]   ;;  %s583_s1 = inlined_call_operand.vmem [shape: bf16[1,128,128], index: 1, kind: input, shape index: {}]   ;;  %s584_s2 = inlined_call_operand.vmem [shape: f32[1,128], index: 2, kind: input, shape index: {}]   ;;  %s585_s3 = inlined_call_operand.vmem [shape: bf16[2,2,2,128], index: 3, kind: output, shape index: {}]  }
   0x1   :  { %s503_s14 = smov 0   ;;  %s505_s15 = smov 0  }
   0x2   :  { %s507_s16 = smov 0  }
   0x3 LB: > { %s22_s17 = sadd.s32 1, %s469_s14  ;;  %s25_s18 = sadd.s32 1, %s473_s15  ;;  %s477_s16 = sphi %s507_s16, %s13_s16   ;;  %s473_s15 = sphi %s505_s15, %s589_s15   ;;  %s469_s14 = sphi %s503_s14, %s588_s14   ;;  %s465_s13 = sphi %s501_s13, %s587_s13   ;;  %s461_s12 = sphi %s499_s12, %s586_s12  }
   0x4   : > { %p23_p0 = scmp.ge.s32.totalorder %s22_s17, 2  ;;  %p352_p1 = scmp.ge.s32.totalorder %s477_s16, 1 }
   0x5   : > { %p150_p2 = scmp.lt.s32.totalorder %s477_s16, 5 }
   0x6   : > { %s591_s17 = smov (%p23_p0, %s22_s17), 0  ;;  %s593_s18 = smov (!%p23_p0, %s25_s18), %s473_s15 }
   0x7   : > { %p151_p3 = pnand %p352_p1, %p150_p2  ;;  %p27_p4 = scmp.ge.s32.totalorder %s593_s18, 2 }
   0x8   : > { %p175_p5 = scmp.lt.s32.totalorder (!%p151_p3), %s465_s13, 1  ;;  %s355_s10 = sshll.u32 (!%p151_p3), %s461_s12, 2 }
   0x9   : > { %s595_s18 = smov (%p27_p4, %s593_s18), 0  ;;  %154 = sbr.rel (%p151_p3) target bundleno = 180 (0xb4), region = 32 }
   0xa   : > { %p181_p6 = scmp.lt.s32.totalorder (!%p151_p3), %s461_s12, 1 }
   0xe   : > { %v397_v0 = vld [vmem:[%s583_s1 + $0x38] sm:$0xff]  ;;  %v396_v1 = vld [vmem:[%s583_s1 + $0x30] sm:$0xff]  ;;  %v395_v2 = vld [vmem:[%s583_s1 + $0x28] sm:$0xff]  ;;  %s597_s13 = smov (!%p175_p5, %s465_s13), 1  ;;  %s599_s12 = smov (!%p181_p6, %s461_s12), 1 }
   0xf   : > { %257 = vmatpush.bf16.msra.mxu0 %v397_v0  ;;  %v394_v3 = vld [vmem:[%s583_s1 + $0x20] sm:$0xff]  ;;  %v393_v4 = vld [vmem:[%s583_s1 + $0x18] sm:$0xff]  ;;  %v392_v5 = vld [vmem:[%s583_s1 + $0x10] sm:$0xff]  ;;  %s353_s4 = sshll.u32 %s597_s13, 3  ;;  %s354_s21 = sshll.u32 %s597_s13, 1 }
  0x10   : > { %v391_v6 = vld [vmem:[%s583_s1 + $0x8] sm:$0xff]  ;;  %s178_s9 = scalar_lea.vmem %s582_s0, %s353_s4  ;;  %v390_v7 = vld [vmem:[%s583_s1] sm:$0xff]  ;;  %s184_s24 = sadd.s32 %s354_s21, %s599_s12 }
  0x11   : > { %s187_s20 = scalar_lea.vmem %s178_s9, %s355_s10  ;;  %v438_v9 = vld [vmem:[%s584_s2] ss:$0 sm:$0xff]  ;;  %s185_s27 = scalar_lea.vmem %s585_s3, %s184_s24 }
  0x12   : > { %v188_v8 = vld [vmem:[%s187_s20] sm:$0x1] }
  0x13   : > { %258 = vmatpush.bf16.msra.mxu0 %v396_v1 }
  0x17   : > { %259 = vmatpush.bf16.msra.mxu0 %v395_v2 }
  0x1b   : > { %260 = vmatpush.bf16.msra.mxu0 %v394_v3 }
  0x1f   : > { %261 = vmatpush.bf16.msra.mxu0 %v393_v4 }
  0x23   : > { %262 = vmatpush.bf16.msra.mxu0 %v392_v5 }
  0x27   : > { %263 = vmatpush.bf16.msra.mxu0 %v391_v6 }
  0x2b   : > { %264 = vmatpush.bf16.msra.mxu0 %v390_v7 }
  0x2e   : > { %265 = vmatmul.bf16.vlgmr.msra.gmra.mxu0 %v188_v8 }
  0xab   : > { %v266_v10 = vpop.f32.mrf.mxu0 }
  0xac   : > { %v267_v11 = vadd.f32 %v438_v9, %v266_v10 }
  0xae   : > { %v270_v12 = vpack.c.bf16 %v267_v11, %v267_v11 }
  0xb0   : > { %271 = vst [vmem:[%s185_s27] sm:$0x1] %v270_v12 }
  0xb3   : > { %v268_v13 = vpop.f32.mrf.mxu0 }
  0xb4 PF: > { %s13_s16 = sadd.s32 1, %s477_s16   ;;  %s586_s12 = smov %s469_s14 }
  0xb5   : > { %p10_p7 = scmp.ge.s32.totalorder %s13_s16, 6   ;;  %s587_s13 = smov %s473_s15 }
  0xb6   : > { %s588_s14 = smov %s591_s17  ;;  %s589_s15 = smov %s595_s18 }
  0xb7   :  { %12 = sbr.rel (!%p10_p7) target bundleno = 3 (0x3), region = 63 }

// kernel: _lambda_.21
= control target key start
LH: loop header
LB: loop body
LE: loop exit
PB: predicated region body
PF: predicated region fallthrough
CT: control target
= control target key end

     0   :  { %s1669_s12 = smov 0   ;;  %s1671_s13 = smov 0   ;;  %s1959_s0 = inlined_call_operand.vmem [shape: bf16[2,6,6,128], index: 0, kind: input, shape index: {}]   ;;  %s1960_s1 = inlined_call_operand.vmem [shape: bf16[9,128,128], index: 1, kind: input, shape index: {}]   ;;  %s1961_s2 = inlined_call_operand.vmem [shape: f32[1,128], index: 2, kind: input, shape index: {}]   ;;  %s1962_s3 = inlined_call_operand.vmem [shape: bf16[2,4,4,128], index: 3, kind: output, shape index: {}]  }
   0x1   :  { %s1673_s14 = smov 0   ;;  %s1675_s15 = smov 0  }
   0x2   :  { %s1677_s16 = smov 0  }
   0x3 LB: > { %s22_s17 = sadd.s32 1, %s1639_s14  ;;  %s25_s18 = sadd.s32 1, %s1643_s15  ;;  %s1647_s16 = sphi %s1677_s16, %s13_s16   ;;  %s1643_s15 = sphi %s1675_s15, %s1966_s15   ;;  %s1639_s14 = sphi %s1673_s14, %s1965_s14   ;;  %s1635_s13 = sphi %s1671_s13, %s1964_s13   ;;  %s1631_s12 = sphi %s1669_s12, %s1963_s12  }
   0x4   : > { %p23_p0 = scmp.ge.s32.totalorder %s22_s17, 4  ;;  %p1064_p1 = scmp.ge.s32.totalorder %s1647_s16, 1 }
   0x5   : > { %p151_p2 = scmp.lt.s32.totalorder %s1647_s16, 9 }
   0x6   : > { %s1968_s17 = smov (%p23_p0, %s22_s17), 0  ;;  %s1970_s18 = smov (!%p23_p0, %s25_s18), %s1643_s15 }
   0x7   : > { %p152_p3 = pnand %p1064_p1, %p151_p2  ;;  %p27_p4 = scmp.ge.s32.totalorder %s1970_s18, 2 }
   0x8   : > { %p178_p5 = scmp.lt.s32.totalorder (!%p152_p3), %s1635_s13, 1  ;;  %s1068_s8 = sshll.u32 (!%p152_p3), %s1631_s12, 2 }
   0x9   : > { %s1972_s18 = smov (%p27_p4, %s1970_s18), 0  ;;  %155 = sbr.rel (%p152_p3) target bundleno = 245 (0xf5), region = 32 }
   0xa   : > { %p185_p6 = scmp.lt.s32.totalorder (!%p152_p3), %s1631_s12, 3 }
   0xe   : > { %v1510_v0 = vld [vmem:[%s1960_s1 + $0x78] sm:$0xff]  ;;  %v1509_v4 = vld [vmem:[%s1960_s1 + $0x70] sm:$0xff]  ;;  %s1974_s13 = smov (!%p178_p5, %s1635_s13), 1  ;;  %v1508_v8 = vld [vmem:[%s1960_s1 + $0x68] sm:$0xff]  ;;  %s1976_s12 = smov (!%p185_p6, %s1631_s12), 3 }
   0xf   : > { %v1518_v1 = vld [vmem:[%s1960_s1 + $0xb8] sm:$0xff]  ;;  %287 = vmatpush.bf16.msra.mxu0 %v1510_v0  ;;  %v1517_v5 = vld [vmem:[%s1960_s1 + $0xb0] sm:$0xff]  ;;  %v1516_v9 = vld [vmem:[%s1960_s1 + $0xa8] sm:$0xff]  ;;  %s1567_s23 = smul.u32 24, %s1974_s13 }
  0x10   : > { %v1526_v2 = vld [vmem:[%s1960_s1 + $0xf8] sm:$0xff]  ;;  %432 = vmatpush.bf16.msra.mxu2 %v1518_v1  ;;  %v1525_v6 = vld [vmem:[%s1960_s1 + $0xf0] sm:$0xff]  ;;  %v1524_v10 = vld [vmem:[%s1960_s1 + $0xe8] sm:$0xff] }
  0x11   : > { %v1502_v3 = vld [vmem:[%s1960_s1 + $0x38] sm:$0xff]  ;;  %515 = vmatpush.bf16.msra.mxu3 %v1526_v2  ;;  %v1501_v7 = vld [vmem:[%s1960_s1 + $0x30] sm:$0xff]  ;;  %v1500_v11 = vld [vmem:[%s1960_s1 + $0x28] sm:$0xff]  ;;  %s182_s7 = scalar_lea.vmem %s1959_s0, %s1567_s23 }
  0x12   : > { %348 = vmatpush.bf16.msra.mxu1 %v1502_v3  ;;  %v1507_v12 = vld [vmem:[%s1960_s1 + $0x60] sm:$0xff]  ;;  %v1506_v16 = vld [vmem:[%s1960_s1 + $0x58] sm:$0xff]  ;;  %s1762_s20 = scalar_lea.vmem %s182_s7, %s1068_s8  ;;  %v1505_v21 = vld [vmem:[%s1960_s1 + $0x50] sm:$0xff] }
  0x13   : > { %288 = vmatpush.bf16.msra.mxu0 %v1509_v4  ;;  %v1515_v13 = vld [vmem:[%s1960_s1 + $0xa0] sm:$0xff]  ;;  %v1514_v17 = vld [vmem:[%s1960_s1 + $0x98] sm:$0xff]  ;;  %v1513_v22 = vld [vmem:[%s1960_s1 + $0x90] sm:$0xff] }
  0x14   : > { %433 = vmatpush.bf16.msra.mxu2 %v1517_v5  ;;  %v1523_v14 = vld [vmem:[%s1960_s1 + $0xe0] sm:$0xff]  ;;  %v1522_v18 = vld [vmem:[%s1960_s1 + $0xd8] sm:$0xff]  ;;  %v1521_v23 = vld [vmem:[%s1960_s1 + $0xd0] sm:$0xff] }
  0x15   : > { %516 = vmatpush.bf16.msra.mxu3 %v1525_v6  ;;  %v1499_v15 = vld [vmem:[%s1960_s1 + $0x20] sm:$0xff]  ;;  %v1498_v19 = vld [vmem:[%s1960_s1 + $0x18] sm:$0xff]  ;;  %v1497_v25 = vld [vmem:[%s1960_s1 + $0x10] sm:$0xff] }
  0x16   : > { %349 = vmatpush.bf16.msra.mxu1 %v1501_v7  ;;  %v210_v20 = vld [vmem:[%s1762_s20] sm:$0x7]  ;;  %v1504_v28 = vld [vmem:[%s1960_s1 + $0x48] sm:$0xff]  ;;  %v1534_v39 = vld [vmem:[%s1960_s1 + $0x138] sm:$0xff] }
  0x17   : > { %289 = vmatpush.bf16.msra.mxu0 %v1508_v8  ;;  %v229_v24 = vunpack.c.l.b16 %v210_v20  ;;  %v361_v26 = vld [vmem:[%s1762_s20] sm:$0x6]  ;;  %v1512_v29 = vld [vmem:[%s1960_s1 + $0x88] sm:$0xff]  ;;  %v1550_v40 = vld [vmem:[%s1960_s1 + $0x1b8] sm:$0xff] }
  0x18   : > { %434 = vmatpush.bf16.msra.mxu2 %v1516_v9  ;;  %v380_v30 = vunpack.c.l.b16 %v361_v26  ;;  %v1520_v32 = vld [vmem:[%s1960_s1 + $0xc8] sm:$0xff]  ;;  %v1503_v34 = vld [vmem:[%s1960_s1 + $0x40] sm:$0xff]  ;;  %v1558_v43 = vld [vmem:[%s1960_s1 + $0x1f8] sm:$0xff] }
  0x19   : > { %517 = vmatpush.bf16.msra.mxu3 %v1524_v10  ;;  %v230_v27 = vpack.c.b16 %v229_v24, %v229_v24  ;;  %v1496_v33 = vld [vmem:[%s1960_s1 + $0x8] sm:$0xff]  ;;  %v1511_v35 = vld [vmem:[%s1960_s1 + $0x80] sm:$0xff]  ;;  %v1542_v44 = vld [vmem:[%s1960_s1 + $0x178] sm:$0xff] }
  0x1a   : > { %350 = vmatpush.bf16.msra.mxu1 %v1500_v11  ;;  %v381_v36 = vpack.c.b16 %v380_v30, %v380_v30  ;;  %v1519_v41 = vld [vmem:[%s1960_s1 + $0xc0] sm:$0xff]  ;;  %v1533_v47 = vld [vmem:[%s1960_s1 + $0x130] sm:$0xff]  ;;  %v1532_v53 = vld [vmem:[%s1960_s1 + $0x128] sm:$0xff] }
  0x1b   : > { %290 = vmatpush.bf16.msra.mxu0 %v1507_v12  ;;  %v234_v31 = vshll.u32 %v230_v27, 16  ;;  %v232_v37 = vshrl.u32 %v230_v27, 16  ;;  %v1495_v42 = vld [vmem:[%s1960_s1] sm:$0xff]  ;;  %v1549_v48 = vld [vmem:[%s1960_s1 + $0x1b0] sm:$0xff]  ;;  %v1548_v54 = vld [vmem:[%s1960_s1 + $0x1a8] sm:$0xff] }
  0x1c   : > { %435 = vmatpush.bf16.msra.mxu2 %v1515_v13  ;;  %v382_v45 = vrot.slane %v381_v36, 1  ;;  %v1557_v49 = vld [vmem:[%s1960_s1 + $0x1f0] sm:$0xff]  ;;  %v1198_v51 = vld [vmem:[%s1762_s20 + $0x4] sm:$0x3]  ;;  %v193_v52 = vld [vmem:[%s1762_s20] sm:$0x3] }
  0x1d   : > { %518 = vmatpush.bf16.msra.mxu3 %v1523_v14  ;;  %v236_v38 = vrot.slane %v234_v31, 1  ;;  %v1541_v50 = vld [vmem:[%s1960_s1 + $0x170] sm:$0xff]  ;;  %v1556_v55 = vld [vmem:[%s1960_s1 + $0x1e8] sm:$0xff]  ;;  %v1531_v57 = vld [vmem:[%s1960_s1 + $0x120] sm:$0xff] }
  0x1e   : > { %351 = vmatpush.bf16.msra.mxu1 %v1499_v15  ;;  %v1540_v56 = vld [vmem:[%s1960_s1 + $0x168] sm:$0xff]  ;;  %v1547_v58 = vld [vmem:[%s1960_s1 + $0x1a0] sm:$0xff]  ;;  %v1530_v0 = vld [vmem:[%s1960_s1 + $0x118] sm:$0xff] }
  0x1f   : > { %291 = vmatpush.bf16.msra.mxu0 %v1506_v16  ;;  %v237_v46 = vor.u32 %v236_v38, %v232_v37  ;;  %v1247_v59 = vld [vmem:[%s1762_s20 + $0x4] sm:$0x7]  ;;  %v1395_v62 = vld [vmem:[%s1762_s20 + $0x8] sm:$0x7]  ;;  %v1546_v1 = vld [vmem:[%s1960_s1 + $0x198] sm:$0xff] }
  0x20   : > { %436 = vmatpush.bf16.msra.mxu2 %v1514_v17  ;;  %v1555_v60 = vld [vmem:[%s1960_s1 + $0x1e0] sm:$0xff]  ;;  %v548_v63 = vunpack.c.l.b16 %v1247_v59  ;;  %v807_v2 = vunpack.c.l.b16 %v1395_v62  ;;  %v1554_v3 = vld [vmem:[%s1960_s1 + $0x1d8] sm:$0xff]  ;;  %v1529_v6 = vld [vmem:[%s1960_s1 + $0x110] sm:$0xff] }
  0x21   : > { %519 = vmatpush.bf16.msra.mxu3 %v1522_v18  ;;  %v1539_v61 = vld [vmem:[%s1960_s1 + $0x160] sm:$0xff]  ;;  %v1538_v4 = vld [vmem:[%s1960_s1 + $0x158] sm:$0xff]  ;;  %v1545_v7 = vld [vmem:[%s1960_s1 + $0x190] sm:$0xff] }
  0x22   : > { %352 = vmatpush.bf16.msra.mxu1 %v1498_v19  ;;  %v549_v5 = vpack.c.b16 %v548_v63, %v548_v63  ;;  %v808_v8 = vpack.c.b16 %v807_v2, %v807_v2  ;;  %v1553_v9 = vld [vmem:[%s1960_s1 + $0x1d0] sm:$0xff]  ;;  %v1296_v12 = vld [vmem:[%s1762_s20 + $0x4] sm:$0x6]  ;;  %v1528_v13 = vld [vmem:[%s1960_s1 + $0x108] sm:$0xff] }
  0x23   : > { %292 = vmatpush.bf16.msra.mxu0 %v1505_v21  ;;  %v1537_v10 = vld [vmem:[%s1960_s1 + $0x150] sm:$0xff]  ;;  %v1544_v14 = vld [vmem:[%s1960_s1 + $0x188] sm:$0xff]  ;;  %v639_v18 = vunpack.c.l.b16 %v1296_v12  ;;  %v1527_v21 = vld [vmem:[%s1960_s1 + $0x100] sm:$0xff] }
  0x24   : > { %437 = vmatpush.bf16.msra.mxu2 %v1513_v22  ;;  %v553_v11 = vshll.u32 %v549_v5, 16  ;;  %v812_v15 = vshll.u32 %v808_v8, 16  ;;  %v1552_v16 = vld [vmem:[%s1960_s1 + $0x1c8] sm:$0xff]  ;;  %v551_v19 = vshrl.u32 %v549_v5, 16  ;;  %v1543_v22 = vld [vmem:[%s1960_s1 + $0x180] sm:$0xff]  ;;  %v810_v24 = vshrl.u32 %v808_v8, 16 }
  0x25   : > { %520 = vmatpush.bf16.msra.mxu3 %v1521_v23  ;;  %v1536_v17 = vld [vmem:[%s1960_s1 + $0x148] sm:$0xff]  ;;  %v1566_v23 = vld [vmem:[%s1960_s1 + $0x238] sm:$0xff]  ;;  %v1551_v26 = vld [vmem:[%s1960_s1 + $0x1c0] sm:$0xff] }
  0x26   : > { %353 = vmatpush.bf16.msra.mxu1 %v1497_v25  ;;  %v555_v20 = vrot.slane %v553_v11, 1  ;;  %v814_v25 = vrot.slane %v812_v15, 1  ;;  %v1535_v27 = vld [vmem:[%s1960_s1 + $0x140] sm:$0xff]  ;;  %v1346_v30 = vld [vmem:[%s1762_s20 + $0x8] sm:$0x3]  ;;  %v1565_v31 = vld [vmem:[%s1960_s1 + $0x230] sm:$0xff] }
  0x27   : > { %293 = vmatpush.bf16.msra.mxu0 %v1504_v28  ;;  %v640_v28 = vpack.c.b16 %v639_v18, %v639_v18  ;;  %v1562_v36 = vld [vmem:[%s1960_s1 + $0x218] sm:$0xff]  ;;  %v1561_v37 = vld [vmem:[%s1960_s1 + $0x210] sm:$0xff]  ;;  %v1444_v38 = vld [vmem:[%s1762_s20 + $0x8] sm:$0x6]  ;;  %s1066_s20 = sshll.u32 %s1974_s13, 2 }
  0x28   : > { %438 = vmatpush.bf16.msra.mxu2 %v1512_v29  ;;  %v556_v29 = vor.u32 %v555_v20, %v551_v19  ;;  %s188_s9 = sadd.s32 %s1066_s20, %s1976_s12 }
  0x29   : > { %521 = vmatpush.bf16.msra.mxu3 %v1520_v32  ;;  %v815_v32 = vor.u32 %v814_v25, %v810_v24  ;;  %s1067_s10 = sshll.u32 %s188_s9, 1 }
  0x2a   : > { %354 = vmatpush.bf16.msra.mxu1 %v1496_v33  ;;  %v641_v33 = vrot.slane %v640_v28, 1  ;;  %s190_s21 = scalar_lea.vmem %s1962_s3, %s1067_s10 }
  0x2b   : > { %294 = vmatpush.bf16.msra.mxu0 %v1503_v34  ;;  %v1564_v34 = vld [vmem:[%s1960_s1 + $0x228] sm:$0xff] }
  0x2c   : > { %439 = vmatpush.bf16.msra.mxu2 %v1511_v35  ;;  %v1563_v35 = vld [vmem:[%s1960_s1 + $0x220] sm:$0xff] }
  0x2d   : > { %522 = vmatpush.bf16.msra.mxu3 %v1519_v41 }
  0x2e   : > { %355 = vmatpush.bf16.msra.mxu1 %v1495_v42  ;;  %295 = vmatmul.bf16.vlgmr.msra.gmra.mxu0 %v237_v46  ;;  %v1559_v42 = vld [vmem:[%s1960_s1 + $0x200] sm:$0xff] }
  0x2f   : > { %606 = vmatpush.bf16.msrb.mxu0 %v1534_v39  ;;  %440 = vmatmul.bf16.vlgmr.msra.gmra.mxu2 %v382_v45  ;;  %v898_v39 = vunpack.c.l.b16 %v1444_v38 }
  0x30   : > { %774 = vmatpush.bf16.msrb.mxu2 %v1550_v40  ;;  %523 = vmatmul.bf16.vlgmr.msra.gmra.mxu3 %v1198_v51  ;;  %v1560_v40 = vld [vmem:[%s1960_s1 + $0x208] sm:$0xff] }
  0x31   : > { %865 = vmatpush.bf16.msrb.mxu3 %v1558_v43  ;;  %356 = vmatmul.bf16.vlgmr.msra.gmra.mxu1 %v193_v52  ;;  %v899_v41 = vpack.c.b16 %v898_v39, %v898_v39 }
  0x32   : > { %691 = vmatpush.bf16.msrb.mxu1 %v1542_v44 }
  0x33   : > { %607 = vmatpush.bf16.msrb.mxu0 %v1533_v47  ;;  %v900_v43 = vrot.slane %v899_v41, 1 }
  0x34   : > { %775 = vmatpush.bf16.msrb.mxu2 %v1549_v48 }
  0x35   : > { %866 = vmatpush.bf16.msrb.mxu3 %v1557_v49 }
  0x36   : > { %692 = vmatpush.bf16.msrb.mxu1 %v1541_v50 }
  0x37   : > { %608 = vmatpush.bf16.msrb.mxu0 %v1532_v53 }
  0x38   : > { %776 = vmatpush.bf16.msrb.mxu2 %v1548_v54 }
  0x39   : > { %867 = vmatpush.bf16.msrb.mxu3 %v1556_v55 }
  0x3a   : > { %693 = vmatpush.bf16.msrb.mxu1 %v1540_v56 }
  0x3b   : > { %609 = vmatpush.bf16.msrb.mxu0 %v1531_v57 }
  0x3c   : > { %777 = vmatpush.bf16.msrb.mxu2 %v1547_v58 }
  0x3d   : > { %868 = vmatpush.bf16.msrb.mxu3 %v1555_v60 }
  0x3e   : > { %694 = vmatpush.bf16.msrb.mxu1 %v1539_v61 }
  0x3f   : > { %610 = vmatpush.bf16.msrb.mxu0 %v1530_v0 }
  0x40   : > { %778 = vmatpush.bf16.msrb.mxu2 %v1546_v1 }
  0x41   : > { %869 = vmatpush.bf16.msrb.mxu3 %v1554_v3  ;;  %v1608_v3 = vld [vmem:[%s1961_s2] ss:$0 sm:$0xff] }
  0x42   : > { %695 = vmatpush.bf16.msrb.mxu1 %v1538_v4 }
  0x43   : > { %611 = vmatpush.bf16.msrb.mxu0 %v1529_v6 }
  0x44   : > { %779 = vmatpush.bf16.msrb.mxu2 %v1545_v7 }
  0x45   : > { %870 = vmatpush.bf16.msrb.mxu3 %v1553_v9 }
  0x46   : > { %696 = vmatpush.bf16.msrb.mxu1 %v1537_v10 }
  0x47   : > { %612 = vmatpush.bf16.msrb.mxu0 %v1528_v13 }
  0x48   : > { %780 = vmatpush.bf16.msrb.mxu2 %v1544_v14 }
  0x49   : > { %871 = vmatpush.bf16.msrb.mxu3 %v1552_v16 }
  0x4a   : > { %697 = vmatpush.bf16.msrb.mxu1 %v1536_v17 }
  0x4b   : > { %613 = vmatpush.bf16.msrb.mxu0 %v1527_v21 }
  0x4c   : > { %781 = vmatpush.bf16.msrb.mxu2 %v1543_v22 }
  0x4d   : > { %872 = vmatpush.bf16.msrb.mxu3 %v1551_v26 }
  0x4e   : > { %698 = vmatpush.bf16.msrb.mxu1 %v1535_v27  ;;  %614 = vmatmul.bf16.vlgmr.msrb.gmra.mxu0 %v556_v29 }
  0x4f   : > { %950 = vmatpush.bf16.msra.mxu0 %v1566_v23  ;;  %782 = vmatmul.bf16.vlgmr.msrb.gmra.mxu2 %v1346_v30 }
  0x50   : > { %873 = vmatmul.bf16.vlgmr.msrb.gmra.mxu3 %v815_v32 }
  0x51   : > { %699 = vmatmul.bf16.vlgmr.msrb.gmra.mxu1 %v641_v33 }
  0x53   : > { %951 = vmatpush.bf16.msra.mxu0 %v1565_v31 }
  0x57   : > { %952 = vmatpush.bf16.msra.mxu0 %v1564_v34 }
  0x5b   : > { %953 = vmatpush.bf16.msra.mxu0 %v1563_v35 }
  0x5f   : > { %954 = vmatpush.bf16.msra.mxu0 %v1562_v36 }
  0x63   : > { %955 = vmatpush.bf16.msra.mxu0 %v1561_v37 }
  0x67   : > { %956 = vmatpush.bf16.msra.mxu0 %v1560_v40 }
  0x6b   : > { %957 = vmatpush.bf16.msra.mxu0 %v1559_v42 }
  0x6e   : > { %958 = vmatmul.bf16.vlgmr.msra.gmra.mxu0 %v900_v43 }
  0xab   : > { %v296_v44 = vpop.f32.mrf.mxu0 }
  0xae   : > { %v357_v45 = vpop.f32.mrf.mxu1 }
  0xaf   : > { %v358_v54 = vadd.f32 %v357_v45, %v296_v44 }
  0xb2   : > { %v441_v46 = vpop.f32.mrf.mxu2 }
  0xb3   : > { %v524_v47 = vpop.f32.mrf.mxu3  ;;  %v298_v48 = vpop.f32.mrf.mxu0  ;;  %v445_v56 = vadd.f32 %v441_v46, %v358_v54 }
  0xb5   : > { %v528_v60 = vadd.f32 %v524_v47, %v445_v56 }
  0xb6   : > { %v359_v49 = vpop.f32.mrf.mxu1 }
  0xba   : > { %v443_v50 = vpop.f32.mrf.mxu2 }
  0xbb   : > { %v526_v51 = vpop.f32.mrf.mxu3 }
  0xcb   : > { %v615_v52 = vpop.f32.mrf.mxu0 }
  0xcc   : > { %v619_v62 = vadd.f32 %v615_v52, %v528_v60 }
  0xce   : > { %v700_v53 = vpop.f32.mrf.mxu1 }
  0xcf   : > { %v704_v0 = vadd.f32 %v700_v53, %v619_v62 }
  0xd2   : > { %v783_v55 = vpop.f32.mrf.mxu2 }
  0xd3   : > { %v874_v57 = vpop.f32.mrf.mxu3  ;;  %v617_v58 = vpop.f32.mrf.mxu0  ;;  %v787_v1 = vadd.f32 %v783_v55, %v704_v0 }
  0xd5   : > { %v878_v2 = vadd.f32 %v874_v57, %v787_v1 }
  0xd6   : > { %v702_v59 = vpop.f32.mrf.mxu1 }
  0xda   : > { %v785_v61 = vpop.f32.mrf.mxu2 }
  0xdb   : > { %v876_v63 = vpop.f32.mrf.mxu3 }
  0xeb   : > { %v959_v4 = vpop.f32.mrf.mxu0 }
  0xec   : > { %v963_v5 = vadd.f32 %v959_v4, %v878_v2 }
  0xee   : > { %v968_v6 = vadd.f32 %v1608_v3, %v963_v5 }
  0xf0   : > { %v969_v7 = vmax.f32 %v968_v6, 0.0 }
  0xf2   : > { %v970_v8 = vpack.c.bf16 %v969_v7, %v969_v7 }
  0xf3   : > { %v961_v9 = vpop.f32.mrf.mxu0 }
  0xf4   : > { %971 = vst [vmem:[%s190_s21] sm:$0x3] %v970_v8 }
  0xf5 PF: > { %s13_s16 = sadd.s32 1, %s1647_s16   ;;  %s1963_s12 = smov %s1639_s14 }
  0xf6   : > { %p10_p7 = scmp.ge.s32.totalorder %s13_s16, 10   ;;  %s1964_s13 = smov %s1643_s15 }
  0xf7   : > { %s1965_s14 = smov %s1968_s17  ;;  %s1966_s15 = smov %s1972_s18 }
  0xf8   :  { %12 = sbr.rel (!%p10_p7) target bundleno = 3 (0x3), region = 73 }

// kernel: _lambda_.27
= control target key start
LH: loop header
LB: loop body
LE: loop exit
PB: predicated region body
PF: predicated region fallthrough
CT: control target
= control target key end

     0   :  { %s197_s1 = inlined_call_operand.vmem [shape: bf16[128,128], index: 1, kind: input, shape index: {}]   ;;  %s198_s2 = inlined_call_operand.vmem [shape: f32[1,128], index: 2, kind: input, shape index: {}]   ;;  %s199_s0 = inlined_call_operand.vmem [shape: bf16[8,128], index: 0, kind: input, shape index: {}]   ;;  %s200_s3 = inlined_call_operand.vmem [shape: bf16[8,128], index: 3, kind: output, shape index: {}]  }
   0x1   :  { %v142_v0 = vld [vmem:[%s197_s1 + $0x38] sm:$0xff]  ;;  %v141_v1 = vld [vmem:[%s197_s1 + $0x30] sm:$0xff]  ;;  %v140_v2 = vld [vmem:[%s197_s1 + $0x28] sm:$0xff] }
   0x2   :  { %83 = vmatpush.bf16.msra.mxu0 %v142_v0  ;;  %v139_v3 = vld [vmem:[%s197_s1 + $0x20] sm:$0xff]  ;;  %v138_v4 = vld [vmem:[%s197_s1 + $0x18] sm:$0xff]  ;;  %v137_v5 = vld [vmem:[%s197_s1 + $0x10] sm:$0xff] }
   0x3   :  { %v136_v6 = vld [vmem:[%s197_s1 + $0x8] sm:$0xff]  ;;  %v135_v7 = vld [vmem:[%s197_s1] sm:$0xff] }
   0x4   :  { %v14_v8 = vld [vmem:[%s199_s0] sm:$0xf] }
   0x5   :  { %v143_v9 = vld [vmem:[%s198_s2] ss:$0 sm:$0xff] }
   0x6   :  { %84 = vmatpush.bf16.msra.mxu0 %v141_v1 }
   0xa   :  { %85 = vmatpush.bf16.msra.mxu0 %v140_v2 }
   0xe   :  { %86 = vmatpush.bf16.msra.mxu0 %v139_v3 }
  0x12   :  { %87 = vmatpush.bf16.msra.mxu0 %v138_v4 }
  0x16   :  { %88 = vmatpush.bf16.msra.mxu0 %v137_v5 }
  0x1a   :  { %89 = vmatpush.bf16.msra.mxu0 %v136_v6 }
  0x1e   :  { %90 = vmatpush.bf16.msra.mxu0 %v135_v7 }
  0x21   :  { %91 = vmatmul.bf16.vlgmr.msra.gmra.mxu0 %v14_v8 }
  0x9e   :  { %v92_v10 = vpop.f32.mrf.mxu0 }
  0x9f   :  { %v93_v11 = vadd.f32 %v143_v9, %v92_v10 }
  0xa1   :  { %v96_v12 = vmax.f32 %v93_v11, 0.0 }
  0xa3   :  { %v97_v13 = vpack.c.bf16 %v96_v12, %v96_v12 }
  0xa5   :  { %98 = vst [vmem:[%s200_s3] sm:$0xf] %v97_v13 }
  0xa6   :  { %v94_v14 = vpop.f32.mrf.mxu0 }

// kernel: _lambda_.26
= control target key start
LH: loop header
LB: loop body
LE: loop exit
PB: predicated region body
PF: predicated region fallthrough
CT: control target
= control target key end

     0   :  { %s211_s1 = inlined_call_operand.vmem [shape: bf16[128,128], index: 1, kind: input, shape index: {}]   ;;  %s212_s2 = inlined_call_operand.vmem [shape: f32[1,128], index: 2, kind: input, shape index: {}]   ;;  %s213_s0 = inlined_call_operand.vmem [shape: bf16[8,128], index: 0, kind: input, shape index: {}]   ;;  %s214_s3 = inlined_call_operand.vmem [shape: bf16[8,128], index: 3, kind: input, shape index: {}]   ;;  %s215_s4 = inlined_call_operand.vmem [shape: bf16[8,128], index: 4, kind: output, shape index: {}]  }
   0x1   :  { %v148_v0 = vld [vmem:[%s211_s1 + $0x38] sm:$0xff]  ;;  %v147_v1 = vld [vmem:[%s211_s1 + $0x30] sm:$0xff]  ;;  %v146_v2 = vld [vmem:[%s211_s1 + $0x28] sm:$0xff] }
   0x2   :  { %86 = vmatpush.bf16.msra.mxu0 %v148_v0  ;;  %v145_v3 = vld [vmem:[%s211_s1 + $0x20] sm:$0xff]  ;;  %v144_v4 = vld [vmem:[%s211_s1 + $0x18] sm:$0xff]  ;;  %v143_v5 = vld [vmem:[%s211_s1 + $0x10] sm:$0xff] }
   0x3   :  { %v142_v6 = vld [vmem:[%s211_s1 + $0x8] sm:$0xff]  ;;  %v141_v7 = vld [vmem:[%s211_s1] sm:$0xff] }
   0x4   :  { %v17_v8 = vld [vmem:[%s213_s0] sm:$0xf] }
   0x5   :  { %v99_v9 = vld [vmem:[%s214_s3] sm:$0xf] }
   0x6   :  { %87 = vmatpush.bf16.msra.mxu0 %v147_v1  ;;  %v149_v10 = vld [vmem:[%s212_s2] ss:$0 sm:$0xff]  ;;  %v100_v11 = vunpack.c.l.bf16 %v99_v9 }
   0xa   :  { %88 = vmatpush.bf16.msra.mxu0 %v146_v2 }
   0xe   :  { %89 = vmatpush.bf16.msra.mxu0 %v145_v3 }
  0x12   :  { %90 = vmatpush.bf16.msra.mxu0 %v144_v4 }
  0x16   :  { %91 = vmatpush.bf16.msra.mxu0 %v143_v5 }
  0x1a   :  { %92 = vmatpush.bf16.msra.mxu0 %v142_v6 }
  0x1e   :  { %93 = vmatpush.bf16.msra.mxu0 %v141_v7 }
  0x21   :  { %94 = vmatmul.bf16.vlgmr.msra.gmra.mxu0 %v17_v8 }
  0x9e   :  { %v95_v12 = vpop.f32.mrf.mxu0 }
  0x9f   :  { %v96_v13 = vadd.f32 %v149_v10, %v95_v12 }
  0xa1   :  { %v101_v14 = vadd.f32 %v100_v11, %v96_v13 }
  0xa3   :  { %v102_v15 = vmax.f32 %v101_v14, 0.0 }
  0xa5   :  { %v103_v16 = vpack.c.bf16 %v102_v15, %v102_v15 }
  0xa6   :  { %v97_v17 = vpop.f32.mrf.mxu0 }
  0xa7   :  { %104 = vst [vmem:[%s215_s4] sm:$0xf] %v103_v16 }

// kernel: _lambda_.28
= control target key start
LH: loop header
LB: loop body
LE: loop exit
PB: predicated region body
PF: predicated region fallthrough
CT: control target
= control target key end

     0   :  { %s455_s12 = smov 0   ;;  %s457_s13 = smov 0   ;;  %s515_s0 = inlined_call_operand.vmem [shape: bf16[2,1,2,1,256], index: 0, kind: input, shape index: {}]   ;;  %s516_s1 = inlined_call_operand.vmem [shape: bf16[1,128,128], index: 1, kind: input, shape index: {}]   ;;  %s517_s2 = inlined_call_operand.vmem [shape: f32[1,128], index: 2, kind: input, shape index: {}]   ;;  %s518_s3 = inlined_call_operand.vmem [shape: bf16[2,1,1,128], index: 3, kind: output, shape index: {}]  }
   0x1   :  { %s459_s14 = smov 0  }
   0x2 LB: > { %s25_s15 = sadd.s32 1, %s429_s13  ;;  %p343_p0 = scmp.ge.s32.totalorder %s433_s14, 1  ;;  %s433_s14 = sphi %s459_s14, %s13_s14   ;;  %s429_s13 = sphi %s457_s13, %s520_s13   ;;  %s425_s12 = sphi %s455_s12, %s519_s12  }
   0x3   : > { %p27_p1 = scmp.ge.s32.totalorder %s25_s15, 2  ;;  %p150_p2 = scmp.lt.s32.totalorder %s433_s14, 3 }
   0x5   : > { %s522_s15 = smov (%p27_p1, %s25_s15), 0  ;;  %p151_p3 = pnand %p343_p0, %p150_p2 }
   0x6   : > { %p174_p4 = scmp.lt.s32.totalorder (!%p151_p3), %s425_s12, 1 }
   0x7   : > { %154 = sbr.rel (%p151_p3) target bundleno = 178 (0xb2), region = 32 }
   0xc   : > { %v386_v0 = vld [vmem:[%s516_s1 + $0x38] sm:$0xff]  ;;  %v385_v1 = vld [vmem:[%s516_s1 + $0x30] sm:$0xff]  ;;  %v384_v2 = vld [vmem:[%s516_s1 + $0x28] sm:$0xff]  ;;  %s524_s12 = smov (!%p174_p4, %s425_s12), 1  ;;  %vm266_vm0 = vcmask 1040384  }
   0xd   : > { %252 = vmatpush.bf16.msra.mxu0 %v386_v0  ;;  %v383_v3 = vld [vmem:[%s516_s1 + $0x20] sm:$0xff]  ;;  %v382_v4 = vld [vmem:[%s516_s1 + $0x18] sm:$0xff]  ;;  %v381_v5 = vld [vmem:[%s516_s1 + $0x10] sm:$0xff]  ;;  %s344_s30 = sshll.u32 %s524_s12, 2  ;;  %s183_s17 = scalar_lea.vmem %s518_s3, %s524_s12  ;;  %vm267_vm1 = vsmask.f32 256 }
   0xe   : > { %v380_v6 = vld [vmem:[%s516_s1 + $0x8] sm:$0xff]  ;;  %v379_v7 = vld [vmem:[%s516_s1] sm:$0xff]  ;;  %s177_s8 = scalar_lea.vmem %s515_s0, %s344_s30  ;;  %vm268_vm2 = vmand %vm266_vm0, %vm267_vm1 }
   0xf   : > { %v186_v8 = vld [vmem:[%s177_s8] sm:$0x1] }
  0x10   : > { %v203_v9 = vld [vmem:[%s517_s2] sm:$0x1] }
  0x11   : > { %253 = vmatpush.bf16.msra.mxu0 %v385_v1  ;;  %v269_v12 = vld [vmem:[%s183_s17] sm:$0x1] }
  0x15   : > { %254 = vmatpush.bf16.msra.mxu0 %v384_v2 }
  0x19   : > { %255 = vmatpush.bf16.msra.mxu0 %v383_v3 }
  0x1d   : > { %256 = vmatpush.bf16.msra.mxu0 %v382_v4 }
  0x21   : > { %257 = vmatpush.bf16.msra.mxu0 %v381_v5 }
  0x25   : > { %258 = vmatpush.bf16.msra.mxu0 %v380_v6 }
  0x29   : > { %259 = vmatpush.bf16.msra.mxu0 %v379_v7 }
  0x2c   : > { %260 = vmatmul.bf16.vlgmr.msra.gmra.mxu0 %v186_v8 }
  0xa9   : > { %v261_v10 = vpop.f32.mrf.mxu0 }
  0xaa   : > { %v262_v11 = vadd.f32 %v261_v10, %v203_v9 }
  0xac   : > { %v265_v13 = vpack.c.bf16 %v262_v11, %v262_v11 }
  0xae   : > { %v270_v14 = vsel %vm268_vm2, %v265_v13, %v269_v12 }
  0xaf   : > { %271 = vst [vmem:[%s183_s17] sm:$0x1] %v270_v14 }
  0xb1   : > { %v263_v15 = vpop.f32.mrf.mxu0 }
  0xb2 PF: > { %s13_s14 = sadd.s32 1, %s433_s14   ;;  %s519_s12 = smov %s429_s13 }
  0xb3   : > { %p10_p5 = scmp.ge.s32.totalorder %s13_s14, 4   ;;  %s520_s13 = smov %s522_s15 }
  0xb5   :  { %12 = sbr.rel (!%p10_p5) target bundleno = 2 (0x2), region = 63 }

// kernel: _lambda_.25
= control target key start
LH: loop header
LB: loop body
LE: loop exit
PB: predicated region body
PF: predicated region fallthrough
CT: control target
= control target key end

     0   :  { %s1649_s12 = smov 0   ;;  %s1651_s13 = smov 0   ;;  %s1943_s0 = inlined_call_operand.vmem [shape: bf16[2,3,2,3,256], index: 0, kind: input, shape index: {}]   ;;  %s1944_s1 = inlined_call_operand.vmem [shape: bf16[9,128,128], index: 1, kind: input, shape index: {}]   ;;  %s1945_s2 = inlined_call_operand.vmem [shape: f32[1,128], index: 2, kind: input, shape index: {}]   ;;  %s1946_s3 = inlined_call_operand.vmem [shape: bf16[2,2,2,128], index: 3, kind: output, shape index: {}]  }
   0x1   :  { %s1653_s14 = smov 0   ;;  %s1655_s15 = smov 0  }
   0x2   :  { %s1657_s16 = smov 0  }
   0x3 LB: > { %s22_s17 = sadd.s32 1, %s1619_s14  ;;  %s25_s18 = sadd.s32 1, %s1623_s15  ;;  %s1627_s16 = sphi %s1657_s16, %s13_s16   ;;  %s1623_s15 = sphi %s1655_s15, %s1950_s15   ;;  %s1619_s14 = sphi %s1653_s14, %s1949_s14   ;;  %s1615_s13 = sphi %s1651_s13, %s1948_s13   ;;  %s1611_s12 = sphi %s1649_s12, %s1947_s12  }
   0x4   : > { %p23_p0 = scmp.ge.s32.totalorder %s22_s17, 2  ;;  %p1041_p1 = scmp.ge.s32.totalorder %s1627_s16, 1 }
   0x5   : > { %p151_p2 = scmp.lt.s32.totalorder %s1627_s16, 5 }
   0x6   : > { %s1952_s17 = smov (%p23_p0, %s22_s17), 0  ;;  %s1954_s18 = smov (!%p23_p0, %s25_s18), %s1623_s15 }
   0x7   : > { %p152_p3 = pnand %p1041_p1, %p151_p2  ;;  %p27_p4 = scmp.ge.s32.totalorder %s1954_s18, 2 }
   0x8   : > { %p177_p5 = scmp.lt.s32.totalorder (!%p152_p3), %s1615_s13, 1  ;;  %s1473_s27 = sshll.u32 (!%p152_p3), %s1611_s12, 3 }
   0x9   : > { %s1956_s18 = smov (%p27_p4, %s1954_s18), 0  ;;  %155 = sbr.rel (%p152_p3) target bundleno = 245 (0xf5), region = 32 }
   0xa   : > { %p184_p6 = scmp.lt.s32.totalorder (!%p152_p3), %s1611_s12, 1 }
   0xe   : > { %v1489_v0 = vld [vmem:[%s1944_s1 + $0x78] sm:$0xff]  ;;  %v1488_v4 = vld [vmem:[%s1944_s1 + $0x70] sm:$0xff]  ;;  %s1958_s13 = smov (!%p177_p5, %s1615_s13), 1  ;;  %v1487_v8 = vld [vmem:[%s1944_s1 + $0x68] sm:$0xff]  ;;  %s1960_s12 = smov (!%p184_p6, %s1611_s12), 1 }
   0xf   : > { %v1497_v1 = vld [vmem:[%s1944_s1 + $0xb8] sm:$0xff]  ;;  %275 = vmatpush.bf16.msra.mxu0 %v1489_v0  ;;  %v1496_v5 = vld [vmem:[%s1944_s1 + $0xb0] sm:$0xff]  ;;  %s1547_s8 = smul.u32 24, %s1958_s13  ;;  %v1495_v9 = vld [vmem:[%s1944_s1 + $0xa8] sm:$0xff]  ;;  %s1043_s9 = sshll.u32 %s1958_s13, 1 }
  0x10   : > { %v1506_v2 = vld [vmem:[%s1944_s1 + $0xf8] sm:$0xff]  ;;  %425 = vmatpush.bf16.msra.mxu2 %v1497_v1  ;;  %v1505_v6 = vld [vmem:[%s1944_s1 + $0xf0] sm:$0xff]  ;;  %v1504_v10 = vld [vmem:[%s1944_s1 + $0xe8] sm:$0xff]  ;;  %s187_s10 = sadd.s32 %s1043_s9, %s1960_s12 }
  0x11   : > { %v1481_v3 = vld [vmem:[%s1944_s1 + $0x38] sm:$0xff]  ;;  %508 = vmatpush.bf16.msra.mxu3 %v1506_v2  ;;  %v1480_v7 = vld [vmem:[%s1944_s1 + $0x30] sm:$0xff]  ;;  %v1479_v11 = vld [vmem:[%s1944_s1 + $0x28] sm:$0xff]  ;;  %s181_s26 = scalar_lea.vmem %s1943_s0, %s1547_s8  ;;  %s188_s20 = scalar_lea.vmem %s1946_s3, %s187_s10 }
  0x12   : > { %336 = vmatpush.bf16.msra.mxu1 %v1481_v3  ;;  %v1486_v12 = vld [vmem:[%s1944_s1 + $0x60] sm:$0xff]  ;;  %s1736_s8 = scalar_lea.vmem %s181_s26, %s1473_s27  ;;  %v1485_v16 = vld [vmem:[%s1944_s1 + $0x58] sm:$0xff]  ;;  %v1484_v21 = vld [vmem:[%s1944_s1 + $0x50] sm:$0xff] }
  0x13   : > { %276 = vmatpush.bf16.msra.mxu0 %v1488_v4  ;;  %v1494_v13 = vld [vmem:[%s1944_s1 + $0xa0] sm:$0xff]  ;;  %v1493_v17 = vld [vmem:[%s1944_s1 + $0x98] sm:$0xff]  ;;  %v1492_v22 = vld [vmem:[%s1944_s1 + $0x90] sm:$0xff] }
  0x14   : > { %426 = vmatpush.bf16.msra.mxu2 %v1496_v5  ;;  %v1503_v14 = vld [vmem:[%s1944_s1 + $0xe0] sm:$0xff]  ;;  %v1502_v18 = vld [vmem:[%s1944_s1 + $0xd8] sm:$0xff]  ;;  %v1501_v23 = vld [vmem:[%s1944_s1 + $0xd0] sm:$0xff] }
  0x15   : > { %509 = vmatpush.bf16.msra.mxu3 %v1505_v6  ;;  %v1478_v15 = vld [vmem:[%s1944_s1 + $0x20] sm:$0xff]  ;;  %v1477_v19 = vld [vmem:[%s1944_s1 + $0x18] sm:$0xff]  ;;  %v1476_v24 = vld [vmem:[%s1944_s1 + $0x10] sm:$0xff] }
  0x16   : > { %337 = vmatpush.bf16.msra.mxu1 %v1480_v7  ;;  %v349_v20 = vld [vmem:[%s1736_s8] sm:$0x3]  ;;  %v1274_v25 = vld [vmem:[%s1736_s8 + $0x4] sm:$0x3]  ;;  %v1483_v26 = vld [vmem:[%s1944_s1 + $0x48] sm:$0xff] }
  0x17   : > { %277 = vmatpush.bf16.msra.mxu0 %v1487_v8  ;;  %368 = vst [vmem:[#allocation1] ss:$4 sm:$0xff] %v349_v20  ;;  %v1491_v27 = vld [vmem:[%s1944_s1 + $0x88] sm:$0xff]  ;;  %v1482_v32 = vld [vmem:[%s1944_s1 + $0x40] sm:$0xff]  ;;  %v1514_v36 = vld [vmem:[%s1944_s1 + $0x138] sm:$0xff] }
  0x18   : > { %427 = vmatpush.bf16.msra.mxu2 %v1495_v9  ;;  %v1500_v28 = vld [vmem:[%s1944_s1 + $0xc8] sm:$0xff]  ;;  %v1490_v33 = vld [vmem:[%s1944_s1 + $0x80] sm:$0xff]  ;;  %v1530_v37 = vld [vmem:[%s1944_s1 + $0x1b8] sm:$0xff] }
  0x19   : > { %510 = vmatpush.bf16.msra.mxu3 %v1504_v10  ;;  %v1475_v29 = vld [vmem:[%s1944_s1 + $0x8] sm:$0xff]  ;;  %v1499_v38 = vld [vmem:[%s1944_s1 + $0xc0] sm:$0xff]  ;;  %v1538_v40 = vld [vmem:[%s1944_s1 + $0x1f8] sm:$0xff] }
  0x1a   : > { %338 = vmatpush.bf16.msra.mxu1 %v1479_v11  ;;  %v1474_v39 = vld [vmem:[%s1944_s1] sm:$0xff]  ;;  %v1522_v41 = vld [vmem:[%s1944_s1 + $0x178] sm:$0xff]  ;;  %v1513_v43 = vld [vmem:[%s1944_s1 + $0x130] sm:$0xff] }
  0x1b   : > { %278 = vmatpush.bf16.msra.mxu0 %v1486_v12  ;;  %v1529_v44 = vld [vmem:[%s1944_s1 + $0x1b0] sm:$0xff]  ;;  %v209_v45 = vld [vmem:[%s1736_s8 + $0x2] sm:$0x1]  ;;  %v1176_v47 = vld [vmem:[%s1736_s8 + $0x4] sm:$0x1] }
  0x1c   : > { %428 = vmatpush.bf16.msra.mxu2 %v1494_v13  ;;  %v1537_v46 = vld [vmem:[%s1944_s1 + $0x1f0] sm:$0xff]  ;;  %v192_v48 = vld [vmem:[%s1736_s8] sm:$0x1]  ;;  %v1422_v51 = vld [vmem:[%s1736_s8 + $0x8] sm:$0x3] }
  0x1d   : > { %511 = vmatpush.bf16.msra.mxu3 %v1503_v14  ;;  %v1521_v49 = vld [vmem:[%s1944_s1 + $0x170] sm:$0xff]  ;;  %v1512_v52 = vld [vmem:[%s1944_s1 + $0x128] sm:$0xff]  ;;  %v1511_v56 = vld [vmem:[%s1944_s1 + $0x120] sm:$0xff] }
  0x1e   : > { %339 = vmatpush.bf16.msra.mxu1 %v1478_v15  ;;  %v369_v30 = vld.sshfl [vmem:[#allocation1] sm:$0xff pattern:$0x73625140]  ;;  %v1528_v53 = vld [vmem:[%s1944_s1 + $0x1a8] sm:$0xff]  ;;  %v1510_v60 = vld [vmem:[%s1944_s1 + $0x118] sm:$0xff] }
  0x1f   : > { %279 = vmatpush.bf16.msra.mxu0 %v1485_v16  ;;  %v372_v31 = vshll.u32 %v369_v30, 16  ;;  %621 = vst [vmem:[#allocation1] ss:$4 sm:$0xff] %v1274_v25  ;;  %v370_v34 = vshrl.u32 %v369_v30, 16  ;;  %v1536_v54 = vld [vmem:[%s1944_s1 + $0x1e8] sm:$0xff]  ;;  %v1527_v57 = vld [vmem:[%s1944_s1 + $0x1a0] sm:$0xff] }
  0x20   : > { %429 = vmatpush.bf16.msra.mxu2 %v1493_v17  ;;  %v1520_v55 = vld [vmem:[%s1944_s1 + $0x168] sm:$0xff]  ;;  %v1535_v58 = vld [vmem:[%s1944_s1 + $0x1e0] sm:$0xff]  ;;  %v1526_v61 = vld [vmem:[%s1944_s1 + $0x198] sm:$0xff] }
  0x21   : > { %512 = vmatpush.bf16.msra.mxu3 %v1502_v18  ;;  %v374_v35 = vrot.slane %v372_v31, 1  ;;  %v1519_v59 = vld [vmem:[%s1944_s1 + $0x160] sm:$0xff]  ;;  %v1534_v62 = vld [vmem:[%s1944_s1 + $0x1d8] sm:$0xff]  ;;  %v1509_v0 = vld [vmem:[%s1944_s1 + $0x110] sm:$0xff] }
  0x22   : > { %340 = vmatpush.bf16.msra.mxu1 %v1477_v19  ;;  %v1518_v63 = vld [vmem:[%s1944_s1 + $0x158] sm:$0xff]  ;;  %v1525_v1 = vld [vmem:[%s1944_s1 + $0x190] sm:$0xff]  ;;  %v1508_v4 = vld [vmem:[%s1944_s1 + $0x108] sm:$0xff] }
  0x23   : > { %280 = vmatpush.bf16.msra.mxu0 %v1484_v21  ;;  %v375_v42 = vor.u32 %v374_v35, %v370_v34  ;;  %v1533_v2 = vld [vmem:[%s1944_s1 + $0x1d0] sm:$0xff]  ;;  %v1524_v5 = vld [vmem:[%s1944_s1 + $0x188] sm:$0xff]  ;;  %v1507_v9 = vld [vmem:[%s1944_s1 + $0x100] sm:$0xff] }
  0x24   : > { %430 = vmatpush.bf16.msra.mxu2 %v1492_v22  ;;  %v1517_v3 = vld [vmem:[%s1944_s1 + $0x150] sm:$0xff]  ;;  %v1532_v6 = vld [vmem:[%s1944_s1 + $0x1c8] sm:$0xff]  ;;  %v1523_v10 = vld [vmem:[%s1944_s1 + $0x180] sm:$0xff] }
  0x25   : > { %513 = vmatpush.bf16.msra.mxu3 %v1501_v23  ;;  %v1516_v7 = vld [vmem:[%s1944_s1 + $0x148] sm:$0xff]  ;;  %v1546_v11 = vld [vmem:[%s1944_s1 + $0x238] sm:$0xff]  ;;  %v1531_v12 = vld [vmem:[%s1944_s1 + $0x1c0] sm:$0xff] }
  0x26   : > { %341 = vmatpush.bf16.msra.mxu1 %v1476_v24  ;;  %v1815_v50 = vld.sshfl [vmem:[#allocation1] sm:$0xff pattern:$0x73625140]  ;;  %v1324_v16 = vld [vmem:[%s1736_s8 + $0x8] sm:$0x1]  ;;  %v1545_v18 = vld [vmem:[%s1944_s1 + $0x230] sm:$0xff] }
  0x27   : > { %281 = vmatpush.bf16.msra.mxu0 %v1483_v26  ;;  %875 = vst [vmem:[#allocation1] ss:$4 sm:$0xff] %v1422_v51  ;;  %v625_v8 = vshll.u32 %v1815_v50, 16  ;;  %v1515_v13 = vld [vmem:[%s1944_s1 + $0x140] sm:$0xff]  ;;  %v623_v14 = vshrl.u32 %v1815_v50, 16  ;;  %v1544_v21 = vld [vmem:[%s1944_s1 + $0x228] sm:$0xff] }
  0x28   : > { %431 = vmatpush.bf16.msra.mxu2 %v1491_v27  ;;  %v1225_v17 = vld [vmem:[%s1736_s8 + $0x6] sm:$0x1]  ;;  %v1373_v19 = vld [vmem:[%s1736_s8 + $0xa] sm:$0x1]  ;;  %v1542_v23 = vld [vmem:[%s1944_s1 + $0x218] sm:$0xff] }
  0x29   : > { %514 = vmatpush.bf16.msra.mxu3 %v1500_v28  ;;  %v627_v15 = vrot.slane %v625_v8, 1  ;;  %v1543_v22 = vld [vmem:[%s1944_s1 + $0x220] sm:$0xff]  ;;  %v1541_v24 = vld [vmem:[%s1944_s1 + $0x210] sm:$0xff]  ;;  %v1540_v27 = vld [vmem:[%s1944_s1 + $0x208] sm:$0xff] }
  0x2a   : > { %342 = vmatpush.bf16.msra.mxu1 %v1475_v29  ;;  %v1539_v30 = vld [vmem:[%s1944_s1 + $0x200] sm:$0xff] }
  0x2b   : > { %282 = vmatpush.bf16.msra.mxu0 %v1482_v32  ;;  %v628_v20 = vor.u32 %v627_v15, %v623_v14 }
  0x2c   : > { %432 = vmatpush.bf16.msra.mxu2 %v1490_v33 }
  0x2d   : > { %515 = vmatpush.bf16.msra.mxu3 %v1499_v38 }
  0x2e   : > { %343 = vmatpush.bf16.msra.mxu1 %v1474_v39  ;;  %283 = vmatmul.bf16.vlgmr.msra.gmra.mxu0 %v209_v45  ;;  %v876_v25 = vld.sshfl [vmem:[#allocation1] sm:$0xff pattern:$0x73625140] }
  0x2f   : > { %588 = vmatpush.bf16.msrb.mxu0 %v1514_v36  ;;  %433 = vmatmul.bf16.vlgmr.msra.gmra.mxu2 %v375_v42  ;;  %v879_v26 = vshll.u32 %v876_v25, 16  ;;  %v877_v28 = vshrl.u32 %v876_v25, 16 }
  0x30   : > { %762 = vmatpush.bf16.msrb.mxu2 %v1530_v37  ;;  %516 = vmatmul.bf16.vlgmr.msra.gmra.mxu3 %v1176_v47 }
  0x31   : > { %842 = vmatpush.bf16.msrb.mxu3 %v1538_v40  ;;  %344 = vmatmul.bf16.vlgmr.msra.gmra.mxu1 %v192_v48  ;;  %v881_v29 = vrot.slane %v879_v26, 1 }
  0x32   : > { %678 = vmatpush.bf16.msrb.mxu1 %v1522_v41 }
  0x33   : > { %589 = vmatpush.bf16.msrb.mxu0 %v1513_v43  ;;  %v882_v31 = vor.u32 %v881_v29, %v877_v28 }
  0x34   : > { %763 = vmatpush.bf16.msrb.mxu2 %v1529_v44 }
  0x35   : > { %843 = vmatpush.bf16.msrb.mxu3 %v1537_v46 }
  0x36   : > { %679 = vmatpush.bf16.msrb.mxu1 %v1521_v49 }
  0x37   : > { %590 = vmatpush.bf16.msrb.mxu0 %v1512_v52 }
  0x38   : > { %764 = vmatpush.bf16.msrb.mxu2 %v1528_v53 }
  0x39   : > { %844 = vmatpush.bf16.msrb.mxu3 %v1536_v54 }
  0x3a   : > { %680 = vmatpush.bf16.msrb.mxu1 %v1520_v55  ;;  %v1588_v55 = vld [vmem:[%s1945_s2] ss:$0 sm:$0xff] }
  0x3b   : > { %591 = vmatpush.bf16.msrb.mxu0 %v1511_v56 }
  0x3c   : > { %765 = vmatpush.bf16.msrb.mxu2 %v1527_v57 }
  0x3d   : > { %845 = vmatpush.bf16.msrb.mxu3 %v1535_v58 }
  0x3e   : > { %681 = vmatpush.bf16.msrb.mxu1 %v1519_v59 }
  0x3f   : > { %592 = vmatpush.bf16.msrb.mxu0 %v1510_v60 }
  0x40   : > { %766 = vmatpush.bf16.msrb.mxu2 %v1526_v61 }
  0x41   : > { %846 = vmatpush.bf16.msrb.mxu3 %v1534_v62 }
  0x42   : > { %682 = vmatpush.bf16.msrb.mxu1 %v1518_v63 }
  0x43   : > { %593 = vmatpush.bf16.msrb.mxu0 %v1509_v0 }
  0x44   : > { %767 = vmatpush.bf16.msrb.mxu2 %v1525_v1 }
  0x45   : > { %847 = vmatpush.bf16.msrb.mxu3 %v1533_v2 }
  0x46   : > { %683 = vmatpush.bf16.msrb.mxu1 %v1517_v3 }
  0x47   : > { %594 = vmatpush.bf16.msrb.mxu0 %v1508_v4 }
  0x48   : > { %768 = vmatpush.bf16.msrb.mxu2 %v1524_v5 }
  0x49   : > { %848 = vmatpush.bf16.msrb.mxu3 %v1532_v6 }
  0x4a   : > { %684 = vmatpush.bf16.msrb.mxu1 %v1516_v7 }
  0x4b   : > { %595 = vmatpush.bf16.msrb.mxu0 %v1507_v9 }
  0x4c   : > { %769 = vmatpush.bf16.msrb.mxu2 %v1523_v10 }
  0x4d   : > { %849 = vmatpush.bf16.msrb.mxu3 %v1531_v12 }
  0x4e   : > { %685 = vmatpush.bf16.msrb.mxu1 %v1515_v13  ;;  %596 = vmatmul.bf16.vlgmr.msrb.gmra.mxu0 %v1225_v17 }
  0x4f   : > { %932 = vmatpush.bf16.msra.mxu0 %v1546_v11  ;;  %770 = vmatmul.bf16.vlgmr.msrb.gmra.mxu2 %v1324_v16 }
  0x50   : > { %850 = vmatmul.bf16.vlgmr.msrb.gmra.mxu3 %v1373_v19 }
  0x51   : > { %686 = vmatmul.bf16.vlgmr.msrb.gmra.mxu1 %v628_v20 }
  0x53   : > { %933 = vmatpush.bf16.msra.mxu0 %v1545_v18 }
  0x57   : > { %934 = vmatpush.bf16.msra.mxu0 %v1544_v21 }
  0x5b   : > { %935 = vmatpush.bf16.msra.mxu0 %v1543_v22 }
  0x5f   : > { %936 = vmatpush.bf16.msra.mxu0 %v1542_v23 }
  0x63   : > { %937 = vmatpush.bf16.msra.mxu0 %v1541_v24 }
  0x67   : > { %938 = vmatpush.bf16.msra.mxu0 %v1540_v27 }
  0x6b   : > { %939 = vmatpush.bf16.msra.mxu0 %v1539_v30 }
  0x6e   : > { %940 = vmatmul.bf16.vlgmr.msra.gmra.mxu0 %v882_v31 }
  0xab   : > { %v284_v32 = vpop.f32.mrf.mxu0 }
  0xae   : > { %v345_v33 = vpop.f32.mrf.mxu1 }
  0xaf   : > { %v346_v42 = vadd.f32 %v345_v33, %v284_v32 }
  0xb2   : > { %v434_v34 = vpop.f32.mrf.mxu2 }
  0xb3   : > { %v517_v35 = vpop.f32.mrf.mxu3  ;;  %v286_v36 = vpop.f32.mrf.mxu0  ;;  %v438_v44 = vadd.f32 %v434_v34, %v346_v42 }
  0xb5   : > { %v521_v48 = vadd.f32 %v517_v35, %v438_v44 }
  0xb6   : > { %v347_v37 = vpop.f32.mrf.mxu1 }
  0xba   : > { %v436_v38 = vpop.f32.mrf.mxu2 }
  0xbb   : > { %v519_v39 = vpop.f32.mrf.mxu3 }
  0xcb   : > { %v597_v40 = vpop.f32.mrf.mxu0 }
  0xcc   : > { %v601_v50 = vadd.f32 %v597_v40, %v521_v48 }
  0xce   : > { %v687_v41 = vpop.f32.mrf.mxu1 }
  0xcf   : > { %v691_v52 = vadd.f32 %v687_v41, %v601_v50 }
  0xd2   : > { %v771_v43 = vpop.f32.mrf.mxu2 }
  0xd3   : > { %v851_v45 = vpop.f32.mrf.mxu3  ;;  %v599_v46 = vpop.f32.mrf.mxu0  ;;  %v775_v53 = vadd.f32 %v771_v43, %v691_v52 }
  0xd5   : > { %v855_v54 = vadd.f32 %v851_v45, %v775_v53 }
  0xd6   : > { %v689_v47 = vpop.f32.mrf.mxu1 }
  0xda   : > { %v773_v49 = vpop.f32.mrf.mxu2 }
  0xdb   : > { %v853_v51 = vpop.f32.mrf.mxu3 }
  0xeb   : > { %v941_v56 = vpop.f32.mrf.mxu0 }
  0xec   : > { %v945_v57 = vadd.f32 %v941_v56, %v855_v54 }
  0xee   : > { %v950_v58 = vadd.f32 %v1588_v55, %v945_v57 }
  0xf0   : > { %v951_v59 = vmax.f32 %v950_v58, 0.0 }
  0xf2   : > { %v952_v60 = vpack.c.bf16 %v951_v59, %v951_v59 }
  0xf3   : > { %v943_v61 = vpop.f32.mrf.mxu0 }
  0xf4   : > { %953 = vst [vmem:[%s188_s20] sm:$0x1] %v952_v60 }
  0xf5 PF: > { %s13_s16 = sadd.s32 1, %s1627_s16   ;;  %s1947_s12 = smov %s1619_s14 }
  0xf6   : > { %p10_p7 = scmp.ge.s32.totalorder %s13_s16, 6   ;;  %s1948_s13 = smov %s1623_s15 }
  0xf7   : > { %s1949_s14 = smov %s1952_s17  ;;  %s1950_s15 = smov %s1956_s18 }
  0xf8   :  { %12 = sbr.rel (!%p10_p7) target bundleno = 3 (0x3), region = 73 }

// kernel: _lambda_.31
= control target key start
LH: loop header
LB: loop body
LE: loop exit
PB: predicated region body
PF: predicated region fallthrough
CT: control target
= control target key end

     0   :  { %s197_s1 = inlined_call_operand.vmem [shape: bf16[128,128], index: 1, kind: input, shape index: {}]   ;;  %s198_s2 = inlined_call_operand.vmem [shape: f32[1,128], index: 2, kind: input, shape index: {}]   ;;  %s199_s0 = inlined_call_operand.vmem [shape: bf16[2,128], index: 0, kind: input, shape index: {}]   ;;  %s200_s3 = inlined_call_operand.vmem [shape: bf16[2,128], index: 3, kind: output, shape index: {}]  }
   0x1   :  { %v142_v0 = vld [vmem:[%s197_s1 + $0x38] sm:$0xff]  ;;  %v141_v1 = vld [vmem:[%s197_s1 + $0x30] sm:$0xff]  ;;  %v140_v2 = vld [vmem:[%s197_s1 + $0x28] sm:$0xff] }
   0x2   :  { %83 = vmatpush.bf16.msra.mxu0 %v142_v0  ;;  %v139_v3 = vld [vmem:[%s197_s1 + $0x20] sm:$0xff]  ;;  %v138_v4 = vld [vmem:[%s197_s1 + $0x18] sm:$0xff]  ;;  %v137_v5 = vld [vmem:[%s197_s1 + $0x10] sm:$0xff] }
   0x3   :  { %v136_v6 = vld [vmem:[%s197_s1 + $0x8] sm:$0xff]  ;;  %v135_v7 = vld [vmem:[%s197_s1] sm:$0xff] }
   0x4   :  { %v14_v8 = vld [vmem:[%s199_s0] sm:$0x1] }
   0x5   :  { %v143_v9 = vld [vmem:[%s198_s2] ss:$0 sm:$0xff] }
   0x6   :  { %84 = vmatpush.bf16.msra.mxu0 %v141_v1 }
   0xa   :  { %85 = vmatpush.bf16.msra.mxu0 %v140_v2 }
   0xe   :  { %86 = vmatpush.bf16.msra.mxu0 %v139_v3 }
  0x12   :  { %87 = vmatpush.bf16.msra.mxu0 %v138_v4 }
  0x16   :  { %88 = vmatpush.bf16.msra.mxu0 %v137_v5 }
  0x1a   :  { %89 = vmatpush.bf16.msra.mxu0 %v136_v6 }
  0x1e   :  { %90 = vmatpush.bf16.msra.mxu0 %v135_v7 }
  0x21   :  { %91 = vmatmul.bf16.vlgmr.msra.gmra.mxu0 %v14_v8 }
  0x9e   :  { %v92_v10 = vpop.f32.mrf.mxu0 }
  0x9f   :  { %v93_v11 = vadd.f32 %v143_v9, %v92_v10 }
  0xa1   :  { %v96_v12 = vmax.f32 %v93_v11, 0.0 }
  0xa3   :  { %v97_v13 = vpack.c.bf16 %v96_v12, %v96_v12 }
  0xa5   :  { %98 = vst [vmem:[%s200_s3] sm:$0x1] %v97_v13 }
  0xa6   :  { %v94_v14 = vpop.f32.mrf.mxu0 }

// kernel: _lambda_.29
= control target key start
LH: loop header
LB: loop body
LE: loop exit
PB: predicated region body
PF: predicated region fallthrough
CT: control target
= control target key end

     0   :  { %s1574_s12 = smov 0   ;;  %s1576_s13 = smov 0   ;;  %s1845_s0 = inlined_call_operand.vmem [shape: bf16[2,2,2,2,256], index: 0, kind: input, shape index: {}]   ;;  %s1846_s1 = inlined_call_operand.vmem [shape: bf16[9,128,128], index: 1, kind: input, shape index: {}]   ;;  %s1847_s2 = inlined_call_operand.vmem [shape: f32[1,128], index: 2, kind: input, shape index: {}]   ;;  %s1848_s3 = inlined_call_operand.vmem [shape: bf16[2,1,1,128], index: 3, kind: output, shape index: {}]  }
   0x1   :  { %s1578_s14 = smov 0  }
   0x2 LB: > { %s25_s15 = sadd.s32 1, %s1548_s13  ;;  %p1010_p0 = scmp.ge.s32.totalorder %s1552_s14, 1  ;;  %s1552_s14 = sphi %s1578_s14, %s13_s14   ;;  %s1548_s13 = sphi %s1576_s13, %s1850_s13   ;;  %s1544_s12 = sphi %s1574_s12, %s1849_s12  }
   0x3   : > { %p27_p1 = scmp.ge.s32.totalorder %s25_s15, 2  ;;  %p150_p2 = scmp.lt.s32.totalorder %s1552_s14, 3 }
   0x5   : > { %s1852_s15 = smov (%p27_p1, %s25_s15), 0  ;;  %p151_p3 = pnand %p1010_p0, %p150_p2 }
   0x6   : > { %p174_p4 = scmp.lt.s32.totalorder (!%p151_p3), %s1544_s12, 1 }
   0x7   : > { %154 = sbr.rel (%p151_p3) target bundleno = 244 (0xf4), region = 32 }
   0xc   : > { %v1449_v0 = vld [vmem:[%s1846_s1 + $0x78] sm:$0xff]  ;;  %v1448_v4 = vld [vmem:[%s1846_s1 + $0x70] sm:$0xff]  ;;  %s1854_s12 = smov (!%p174_p4, %s1544_s12), 1  ;;  %v1447_v8 = vld [vmem:[%s1846_s1 + $0x68] sm:$0xff]  ;;  %vm927_vm0 = vcmask 1040384  }
   0xd   : > { %v1457_v1 = vld [vmem:[%s1846_s1 + $0xb8] sm:$0xff]  ;;  %269 = vmatpush.bf16.msra.mxu0 %v1449_v0  ;;  %v1456_v5 = vld [vmem:[%s1846_s1 + $0xb0] sm:$0xff]  ;;  %v1455_v9 = vld [vmem:[%s1846_s1 + $0xa8] sm:$0xff]  ;;  %s1011_s17 = sshll.u32 %s1854_s12, 3  ;;  %s183_s7 = scalar_lea.vmem %s1848_s3, %s1854_s12  ;;  %vm928_vm1 = vsmask.f32 256 }
   0xe   : > { %v1465_v2 = vld [vmem:[%s1846_s1 + $0xf8] sm:$0xff]  ;;  %414 = vmatpush.bf16.msra.mxu2 %v1457_v1  ;;  %v1464_v6 = vld [vmem:[%s1846_s1 + $0xf0] sm:$0xff]  ;;  %v1463_v10 = vld [vmem:[%s1846_s1 + $0xe8] sm:$0xff]  ;;  %s1646_s28 = scalar_lea.vmem %s1845_s0, %s1011_s17 }
   0xf   : > { %v1441_v3 = vld [vmem:[%s1846_s1 + $0x38] sm:$0xff]  ;;  %496 = vmatpush.bf16.msra.mxu3 %v1465_v2  ;;  %v1440_v7 = vld [vmem:[%s1846_s1 + $0x30] sm:$0xff]  ;;  %v1439_v11 = vld [vmem:[%s1846_s1 + $0x28] sm:$0xff] }
  0x10   : > { %330 = vmatpush.bf16.msra.mxu1 %v1441_v3  ;;  %v1446_v12 = vld [vmem:[%s1846_s1 + $0x60] sm:$0xff]  ;;  %v1445_v16 = vld [vmem:[%s1846_s1 + $0x58] sm:$0xff]  ;;  %v1444_v21 = vld [vmem:[%s1846_s1 + $0x50] sm:$0xff] }
  0x11   : > { %270 = vmatpush.bf16.msra.mxu0 %v1448_v4  ;;  %v1454_v13 = vld [vmem:[%s1846_s1 + $0xa0] sm:$0xff]  ;;  %v1453_v17 = vld [vmem:[%s1846_s1 + $0x98] sm:$0xff]  ;;  %v1452_v22 = vld [vmem:[%s1846_s1 + $0x90] sm:$0xff] }
  0x12   : > { %415 = vmatpush.bf16.msra.mxu2 %v1456_v5  ;;  %v1462_v14 = vld [vmem:[%s1846_s1 + $0xe0] sm:$0xff]  ;;  %v1461_v18 = vld [vmem:[%s1846_s1 + $0xd8] sm:$0xff]  ;;  %v1460_v23 = vld [vmem:[%s1846_s1 + $0xd0] sm:$0xff] }
  0x13   : > { %497 = vmatpush.bf16.msra.mxu3 %v1464_v6  ;;  %v1438_v15 = vld [vmem:[%s1846_s1 + $0x20] sm:$0xff]  ;;  %v1437_v19 = vld [vmem:[%s1846_s1 + $0x18] sm:$0xff]  ;;  %v1436_v24 = vld [vmem:[%s1846_s1 + $0x10] sm:$0xff] }
  0x14   : > { %331 = vmatpush.bf16.msra.mxu1 %v1440_v7  ;;  %v186_v20 = vld [vmem:[%s1646_s28] sm:$0x1]  ;;  %v1443_v25 = vld [vmem:[%s1846_s1 + $0x48] sm:$0xff]  ;;  %v1140_v30 = vld [vmem:[%s1646_s28 + $0x2] sm:$0x1] }
  0x15   : > { %271 = vmatpush.bf16.msra.mxu0 %v1447_v8  ;;  %361 = vst [vmem:[#allocation1] ss:$9 sm:$0xff] %v186_v20  ;;  %v1451_v26 = vld [vmem:[%s1846_s1 + $0x88] sm:$0xff]  ;;  %v1442_v31 = vld [vmem:[%s1846_s1 + $0x40] sm:$0xff]  ;;  %v1473_v33 = vld [vmem:[%s1846_s1 + $0x138] sm:$0xff] }
  0x16   : > { %416 = vmatpush.bf16.msra.mxu2 %v1455_v9  ;;  %v1459_v27 = vld [vmem:[%s1846_s1 + $0xc8] sm:$0xff]  ;;  %v1450_v32 = vld [vmem:[%s1846_s1 + $0x80] sm:$0xff]  ;;  %v1489_v34 = vld [vmem:[%s1846_s1 + $0x1b8] sm:$0xff] }
  0x17   : > { %498 = vmatpush.bf16.msra.mxu3 %v1463_v10  ;;  %v1435_v28 = vld [vmem:[%s1846_s1 + $0x8] sm:$0xff]  ;;  %v1458_v35 = vld [vmem:[%s1846_s1 + $0xc0] sm:$0xff]  ;;  %v1497_v37 = vld [vmem:[%s1846_s1 + $0x1f8] sm:$0xff] }
  0x18   : > { %332 = vmatpush.bf16.msra.mxu1 %v1439_v11  ;;  %v1434_v36 = vld [vmem:[%s1846_s1] sm:$0xff]  ;;  %v1481_v38 = vld [vmem:[%s1846_s1 + $0x178] sm:$0xff]  ;;  %v1472_v40 = vld [vmem:[%s1846_s1 + $0x130] sm:$0xff] }
  0x19   : > { %272 = vmatpush.bf16.msra.mxu0 %v1446_v12  ;;  %v1488_v41 = vld [vmem:[%s1846_s1 + $0x1b0] sm:$0xff]  ;;  %v203_v42 = vld [vmem:[%s1646_s28 + $0x1] sm:$0x1]  ;;  %v1718_v43 = vld [vmem:[%s1646_s28 + $0x4] sm:$0x1] }
  0x1a   : > { %417 = vmatpush.bf16.msra.mxu2 %v1454_v13  ;;  %v1496_v45 = vld [vmem:[%s1846_s1 + $0x1f0] sm:$0xff]  ;;  %v1471_v47 = vld [vmem:[%s1846_s1 + $0x128] sm:$0xff]  ;;  %v1470_v51 = vld [vmem:[%s1846_s1 + $0x120] sm:$0xff] }
  0x1b   : > { %499 = vmatpush.bf16.msra.mxu3 %v1462_v14  ;;  %v1480_v46 = vld [vmem:[%s1846_s1 + $0x170] sm:$0xff]  ;;  %v1487_v48 = vld [vmem:[%s1846_s1 + $0x1a8] sm:$0xff]  ;;  %v1486_v52 = vld [vmem:[%s1846_s1 + $0x1a0] sm:$0xff] }
  0x1c   : > { %333 = vmatpush.bf16.msra.mxu1 %v1438_v15  ;;  %v362_v29 = vld [vmem:[#allocation1] sm:$0xff]  ;;  %v1495_v49 = vld [vmem:[%s1846_s1 + $0x1e8] sm:$0xff]  ;;  %v1469_v55 = vld [vmem:[%s1846_s1 + $0x118] sm:$0xff] }
  0x1d   : > { %273 = vmatpush.bf16.msra.mxu0 %v1445_v16  ;;  %608 = vst [vmem:[#allocation1] ss:$9 sm:$0xff] %v1140_v30  ;;  %v363_v39 = vshrl.u32 %v362_v29, 16  ;;  %v1479_v50 = vld [vmem:[%s1846_s1 + $0x168] sm:$0xff]  ;;  %v1494_v53 = vld [vmem:[%s1846_s1 + $0x1e0] sm:$0xff]  ;;  %v1485_v56 = vld [vmem:[%s1846_s1 + $0x198] sm:$0xff] }
  0x1e   : > { %418 = vmatpush.bf16.msra.mxu2 %v1453_v17  ;;  %v1478_v54 = vld [vmem:[%s1846_s1 + $0x160] sm:$0xff]  ;;  %v1493_v57 = vld [vmem:[%s1846_s1 + $0x1d8] sm:$0xff]  ;;  %v1468_v59 = vld [vmem:[%s1846_s1 + $0x110] sm:$0xff] }
  0x1f   : > { %500 = vmatpush.bf16.msra.mxu3 %v1461_v18  ;;  %v1477_v58 = vld [vmem:[%s1846_s1 + $0x158] sm:$0xff]  ;;  %v1484_v60 = vld [vmem:[%s1846_s1 + $0x190] sm:$0xff]  ;;  %v1467_v63 = vld [vmem:[%s1846_s1 + $0x108] sm:$0xff] }
  0x20   : > { %334 = vmatpush.bf16.msra.mxu1 %v1437_v19  ;;  %v1492_v61 = vld [vmem:[%s1846_s1 + $0x1d0] sm:$0xff]  ;;  %v1483_v0 = vld [vmem:[%s1846_s1 + $0x188] sm:$0xff]  ;;  %v1466_v3 = vld [vmem:[%s1846_s1 + $0x100] sm:$0xff] }
  0x21   : > { %274 = vmatpush.bf16.msra.mxu0 %v1444_v21  ;;  %v1476_v62 = vld [vmem:[%s1846_s1 + $0x150] sm:$0xff]  ;;  %v1491_v1 = vld [vmem:[%s1846_s1 + $0x1c8] sm:$0xff]  ;;  %v1482_v4 = vld [vmem:[%s1846_s1 + $0x180] sm:$0xff] }
  0x22   : > { %419 = vmatpush.bf16.msra.mxu2 %v1452_v22  ;;  %v1475_v2 = vld [vmem:[%s1846_s1 + $0x148] sm:$0xff]  ;;  %v1505_v5 = vld [vmem:[%s1846_s1 + $0x238] sm:$0xff]  ;;  %v1490_v6 = vld [vmem:[%s1846_s1 + $0x1c0] sm:$0xff] }
  0x23   : > { %501 = vmatpush.bf16.msra.mxu3 %v1460_v23  ;;  %v1474_v7 = vld [vmem:[%s1846_s1 + $0x140] sm:$0xff]  ;;  %v1504_v9 = vld [vmem:[%s1846_s1 + $0x230] sm:$0xff]  ;;  %v1503_v12 = vld [vmem:[%s1846_s1 + $0x228] sm:$0xff] }
  0x24   : > { %335 = vmatpush.bf16.msra.mxu1 %v1436_v24  ;;  %v1720_v44 = vld [vmem:[#allocation1] sm:$0xff]  ;;  %v1501_v14 = vld [vmem:[%s1846_s1 + $0x218] sm:$0xff]  ;;  %v1500_v15 = vld [vmem:[%s1846_s1 + $0x210] sm:$0xff] }
  0x25   : > { %275 = vmatpush.bf16.msra.mxu0 %v1443_v25  ;;  %856 = vst [vmem:[#allocation1] ss:$9 sm:$0xff] %v1718_v43  ;;  %v1189_v8 = vld [vmem:[%s1646_s28 + $0x3] sm:$0x1]  ;;  %v1335_v10 = vld [vmem:[%s1646_s28 + $0x5] sm:$0x1]  ;;  %vm929_vm2 = vmand %vm927_vm0, %vm928_vm1 }
  0x26   : > { %420 = vmatpush.bf16.msra.mxu2 %v1451_v26  ;;  %v610_v11 = vshrl.u32 %v1720_v44, 16  ;;  %v1502_v13 = vld [vmem:[%s1846_s1 + $0x220] sm:$0xff]  ;;  %v1499_v16 = vld [vmem:[%s1846_s1 + $0x208] sm:$0xff] }
  0x27   : > { %502 = vmatpush.bf16.msra.mxu3 %v1459_v27  ;;  %v1498_v17 = vld [vmem:[%s1846_s1 + $0x200] sm:$0xff] }
  0x28   : > { %336 = vmatpush.bf16.msra.mxu1 %v1435_v28  ;;  %v923_v44 = vld [vmem:[%s1847_s2] sm:$0x1] }
  0x29   : > { %276 = vmatpush.bf16.msra.mxu0 %v1442_v31 }
  0x2a   : > { %421 = vmatpush.bf16.msra.mxu2 %v1450_v32 }
  0x2b   : > { %503 = vmatpush.bf16.msra.mxu3 %v1458_v35 }
  0x2c   : > { %337 = vmatpush.bf16.msra.mxu1 %v1434_v36  ;;  %277 = vmatmul.bf16.vlgmr.msra.gmra.mxu0 %v203_v42  ;;  %v857_v18 = vld [vmem:[#allocation1] sm:$0xff] }
  0x2d   : > { %576 = vmatpush.bf16.msrb.mxu0 %v1473_v33  ;;  %422 = vmatmul.bf16.vlgmr.msra.gmra.mxu2 %v363_v39  ;;  %v858_v19 = vshrl.u32 %v857_v18, 16 }
  0x2e   : > { %744 = vmatpush.bf16.msrb.mxu2 %v1489_v34  ;;  %504 = vmatmul.bf16.vlgmr.msra.gmra.mxu3 %v1140_v30 }
  0x2f   : > { %824 = vmatpush.bf16.msrb.mxu3 %v1497_v37  ;;  %338 = vmatmul.bf16.vlgmr.msra.gmra.mxu1 %v186_v20 }
  0x30   : > { %661 = vmatpush.bf16.msrb.mxu1 %v1481_v38 }
  0x31   : > { %577 = vmatpush.bf16.msrb.mxu0 %v1472_v40 }
  0x32   : > { %745 = vmatpush.bf16.msrb.mxu2 %v1488_v41 }
  0x33   : > { %825 = vmatpush.bf16.msrb.mxu3 %v1496_v45 }
  0x34   : > { %662 = vmatpush.bf16.msrb.mxu1 %v1480_v46 }
  0x35   : > { %578 = vmatpush.bf16.msrb.mxu0 %v1471_v47 }
  0x36   : > { %746 = vmatpush.bf16.msrb.mxu2 %v1487_v48  ;;  %v930_v48 = vld [vmem:[%s183_s7] sm:$0x1] }
  0x37   : > { %826 = vmatpush.bf16.msrb.mxu3 %v1495_v49 }
  0x38   : > { %663 = vmatpush.bf16.msrb.mxu1 %v1479_v50 }
  0x39   : > { %579 = vmatpush.bf16.msrb.mxu0 %v1470_v51 }
  0x3a   : > { %747 = vmatpush.bf16.msrb.mxu2 %v1486_v52 }
  0x3b   : > { %827 = vmatpush.bf16.msrb.mxu3 %v1494_v53 }
  0x3c   : > { %664 = vmatpush.bf16.msrb.mxu1 %v1478_v54 }
  0x3d   : > { %580 = vmatpush.bf16.msrb.mxu0 %v1469_v55 }
  0x3e   : > { %748 = vmatpush.bf16.msrb.mxu2 %v1485_v56 }
  0x3f   : > { %828 = vmatpush.bf16.msrb.mxu3 %v1493_v57 }
  0x40   : > { %665 = vmatpush.bf16.msrb.mxu1 %v1477_v58 }
  0x41   : > { %581 = vmatpush.bf16.msrb.mxu0 %v1468_v59 }
  0x42   : > { %749 = vmatpush.bf16.msrb.mxu2 %v1484_v60 }
  0x43   : > { %829 = vmatpush.bf16.msrb.mxu3 %v1492_v61 }
  0x44   : > { %666 = vmatpush.bf16.msrb.mxu1 %v1476_v62 }
  0x45   : > { %582 = vmatpush.bf16.msrb.mxu0 %v1467_v63 }
  0x46   : > { %750 = vmatpush.bf16.msrb.mxu2 %v1483_v0 }
  0x47   : > { %830 = vmatpush.bf16.msrb.mxu3 %v1491_v1 }
  0x48   : > { %667 = vmatpush.bf16.msrb.mxu1 %v1475_v2 }
  0x49   : > { %583 = vmatpush.bf16.msrb.mxu0 %v1466_v3 }
  0x4a   : > { %751 = vmatpush.bf16.msrb.mxu2 %v1482_v4 }
  0x4b   : > { %831 = vmatpush.bf16.msrb.mxu3 %v1490_v6 }
  0x4c   : > { %668 = vmatpush.bf16.msrb.mxu1 %v1474_v7  ;;  %584 = vmatmul.bf16.vlgmr.msrb.gmra.mxu0 %v1189_v8 }
  0x4d   : > { %909 = vmatpush.bf16.msra.mxu0 %v1505_v5  ;;  %752 = vmatmul.bf16.vlgmr.msrb.gmra.mxu2 %v1718_v43 }
  0x4e   : > { %832 = vmatmul.bf16.vlgmr.msrb.gmra.mxu3 %v1335_v10 }
  0x4f   : > { %669 = vmatmul.bf16.vlgmr.msrb.gmra.mxu1 %v610_v11 }
  0x51   : > { %910 = vmatpush.bf16.msra.mxu0 %v1504_v9 }
  0x55   : > { %911 = vmatpush.bf16.msra.mxu0 %v1503_v12 }
  0x59   : > { %912 = vmatpush.bf16.msra.mxu0 %v1502_v13 }
  0x5d   : > { %913 = vmatpush.bf16.msra.mxu0 %v1501_v14 }
  0x61   : > { %914 = vmatpush.bf16.msra.mxu0 %v1500_v15 }
  0x65   : > { %915 = vmatpush.bf16.msra.mxu0 %v1499_v16 }
  0x69   : > { %916 = vmatpush.bf16.msra.mxu0 %v1498_v17 }
  0x6c   : > { %917 = vmatmul.bf16.vlgmr.msra.gmra.mxu0 %v858_v19 }
  0xa9   : > { %v278_v20 = vpop.f32.mrf.mxu0 }
  0xac   : > { %v339_v21 = vpop.f32.mrf.mxu1 }
  0xad   : > { %v340_v30 = vadd.f32 %v339_v21, %v278_v20 }
  0xb0   : > { %v423_v22 = vpop.f32.mrf.mxu2 }
  0xb1   : > { %v505_v23 = vpop.f32.mrf.mxu3  ;;  %v280_v24 = vpop.f32.mrf.mxu0  ;;  %v427_v32 = vadd.f32 %v423_v22, %v340_v30 }
  0xb3   : > { %v509_v36 = vadd.f32 %v505_v23, %v427_v32 }
  0xb4   : > { %v341_v25 = vpop.f32.mrf.mxu1 }
  0xb8   : > { %v425_v26 = vpop.f32.mrf.mxu2 }
  0xb9   : > { %v507_v27 = vpop.f32.mrf.mxu3 }
  0xc9   : > { %v585_v28 = vpop.f32.mrf.mxu0 }
  0xca   : > { %v589_v38 = vadd.f32 %v585_v28, %v509_v36 }
  0xcc   : > { %v670_v29 = vpop.f32.mrf.mxu1 }
  0xcd   : > { %v674_v40 = vadd.f32 %v670_v29, %v589_v38 }
  0xd0   : > { %v753_v31 = vpop.f32.mrf.mxu2 }
  0xd1   : > { %v833_v33 = vpop.f32.mrf.mxu3  ;;  %v587_v34 = vpop.f32.mrf.mxu0  ;;  %v757_v41 = vadd.f32 %v753_v31, %v674_v40 }
  0xd3   : > { %v837_v42 = vadd.f32 %v833_v33, %v757_v41 }
  0xd4   : > { %v672_v35 = vpop.f32.mrf.mxu1 }
  0xd8   : > { %v755_v37 = vpop.f32.mrf.mxu2 }
  0xd9   : > { %v835_v39 = vpop.f32.mrf.mxu3 }
  0xe9   : > { %v918_v43 = vpop.f32.mrf.mxu0 }
  0xea   : > { %v922_v45 = vadd.f32 %v918_v43, %v837_v42 }
  0xec   : > { %v924_v46 = vadd.f32 %v923_v44, %v922_v45 }
  0xee   : > { %v925_v47 = vmax.f32 %v924_v46, 0.0 }
  0xf0   : > { %v926_v49 = vpack.c.bf16 %v925_v47, %v925_v47 }
  0xf1   : > { %v920_v50 = vpop.f32.mrf.mxu0 }
  0xf2   : > { %v931_v51 = vsel %vm929_vm2, %v926_v49, %v930_v48 }
  0xf3   : > { %932 = vst [vmem:[%s183_s7] sm:$0x1] %v931_v51 }
  0xf4 PF: > { %s13_s14 = sadd.s32 1, %s1552_s14   ;;  %s1849_s12 = smov %s1548_s13 }
  0xf5   : > { %p10_p5 = scmp.ge.s32.totalorder %s13_s14, 4   ;;  %s1850_s13 = smov %s1852_s15 }
  0xf7   :  { %12 = sbr.rel (!%p10_p5) target bundleno = 2 (0x2), region = 73 }

// kernel: _lambda_.30
= control target key start
LH: loop header
LB: loop body
LE: loop exit
PB: predicated region body
PF: predicated region fallthrough
CT: control target
= control target key end

     0   :  { %s211_s1 = inlined_call_operand.vmem [shape: bf16[128,128], index: 1, kind: input, shape index: {}]   ;;  %s212_s2 = inlined_call_operand.vmem [shape: f32[1,128], index: 2, kind: input, shape index: {}]   ;;  %s213_s0 = inlined_call_operand.vmem [shape: bf16[2,128], index: 0, kind: input, shape index: {}]   ;;  %s214_s3 = inlined_call_operand.vmem [shape: bf16[2,128], index: 3, kind: input, shape index: {}]   ;;  %s215_s4 = inlined_call_operand.vmem [shape: bf16[2,128], index: 4, kind: output, shape index: {}]  }
   0x1   :  { %v148_v0 = vld [vmem:[%s211_s1 + $0x38] sm:$0xff]  ;;  %v147_v1 = vld [vmem:[%s211_s1 + $0x30] sm:$0xff]  ;;  %v146_v2 = vld [vmem:[%s211_s1 + $0x28] sm:$0xff] }
   0x2   :  { %86 = vmatpush.bf16.msra.mxu0 %v148_v0  ;;  %v145_v3 = vld [vmem:[%s211_s1 + $0x20] sm:$0xff]  ;;  %v144_v4 = vld [vmem:[%s211_s1 + $0x18] sm:$0xff]  ;;  %v143_v5 = vld [vmem:[%s211_s1 + $0x10] sm:$0xff] }
   0x3   :  { %v142_v6 = vld [vmem:[%s211_s1 + $0x8] sm:$0xff]  ;;  %v141_v7 = vld [vmem:[%s211_s1] sm:$0xff] }
   0x4   :  { %v17_v8 = vld [vmem:[%s213_s0] sm:$0x1] }
   0x5   :  { %v99_v9 = vld [vmem:[%s214_s3] sm:$0x1] }
   0x6   :  { %87 = vmatpush.bf16.msra.mxu0 %v147_v1  ;;  %v149_v10 = vld [vmem:[%s212_s2] ss:$0 sm:$0xff]  ;;  %v100_v11 = vunpack.c.l.bf16 %v99_v9 }
   0xa   :  { %88 = vmatpush.bf16.msra.mxu0 %v146_v2 }
   0xe   :  { %89 = vmatpush.bf16.msra.mxu0 %v145_v3 }
  0x12   :  { %90 = vmatpush.bf16.msra.mxu0 %v144_v4 }
  0x16   :  { %91 = vmatpush.bf16.msra.mxu0 %v143_v5 }
  0x1a   :  { %92 = vmatpush.bf16.msra.mxu0 %v142_v6 }
  0x1e   :  { %93 = vmatpush.bf16.msra.mxu0 %v141_v7 }
  0x21   :  { %94 = vmatmul.bf16.vlgmr.msra.gmra.mxu0 %v17_v8 }
  0x9e   :  { %v95_v12 = vpop.f32.mrf.mxu0 }
  0x9f   :  { %v96_v13 = vadd.f32 %v149_v10, %v95_v12 }
  0xa1   :  { %v101_v14 = vadd.f32 %v100_v11, %v96_v13 }
  0xa3   :  { %v102_v15 = vmax.f32 %v101_v14, 0.0 }
  0xa5   :  { %v103_v16 = vpack.c.bf16 %v102_v15, %v102_v15 }
  0xa6   :  { %v97_v17 = vpop.f32.mrf.mxu0 }
  0xa7   :  { %104 = vst [vmem:[%s215_s4] sm:$0x1] %v103_v16 }

// kernel: _lambda_.18
= control target key start
LH: loop header
LB: loop body
LE: loop exit
PB: predicated region body
PF: predicated region fallthrough
CT: control target
= control target key end

     0   :  { %8 = vsyncpa [#allocation3], 0  ;;  %s7134_s0 = inlined_call_operand.vmem [shape: bf16[2,11,2,11,256], index: 0, kind: input, shape index: {}]   ;;  %s7135_s1 = inlined_call_operand.hbm [shape: bf16[49,128,128], index: 1, kind: input, shape index: {}]   ;;  %s7136_s2 = inlined_call_operand.hbm [shape: f32[1,128], index: 2, kind: input, shape index: {}]   ;;  %s7137_s3 = inlined_call_operand.vmem [shape: bf16[2,8,8,128], index: 3, kind: output, shape index: {}]  }
   0x1   :  { %9 = vsyncpa [#allocation5], 0  ;;  %s6888_s12 = smov 0   ;;  %s6890_s13 = smov 0  }
   0x2   :  { %s6892_s14 = smov 0   ;;  %s6894_s15 = smov 0  }
   0x3   :  { %s6896_s16 = smov 0  }
   0x4 LB: > { %s4648_s17 = sadd.s32 4294967295, %s6862_s16   ;;  %s24_s18 = sadd.s32 1, %s6854_s14  ;;  %s6862_s16 = sphi %s6896_s16, %s15_s16   ;;  %s6858_s15 = sphi %s6894_s15, %s7143_s15   ;;  %s6854_s14 = sphi %s6892_s14, %s7142_s14   ;;  %s6850_s13 = sphi %s6890_s13, %s7141_s13   ;;  %s6846_s12 = sphi %s6888_s12, %s7140_s12  }
   0x5   : > { %p25_p0 = scmp.ge.s32.totalorder %s24_s18, 8  ;;  %s27_s19 = sadd.s32 1, %s6858_s15 }
   0x6   : > { %p4650_p1 = scmp.ge.s32.totalorder %s6862_s16, 1  ;;  %p128_p2 = scmp.lt.s32.totalorder %s6862_s16, 17 }
   0x7   : > { %s7145_s18 = smov (%p25_p0, %s24_s18), 0  ;;  %s7147_s19 = smov (!%p25_p0, %s27_s19), %s6858_s15 }
   0x8   : > { %p6921_p3 = pnand %p4650_p1, %p128_p2  ;;  %p29_p4 = scmp.ge.s32.totalorder %s7147_s19, 2 }
   0x9   : > { %p6925_p5 = scmp.eq.s32.totalorder %s4648_s17, 0  ;;  %s139_s24 = sshll.u32 %s7135_s1, 4  ;;  %s140_s24 = int_to_ptr.hbm [resolvable:$true] %s139_s24 }
   0xa   : > { %p6700_p6 = pneg %p6921_p3  ;;  %s7149_s19 = smov (%p29_p4, %s7147_s19), 0 }
   0xb   : > { %s6864_s25 = smov [#allocation2]   ;;  %s6865_s27 = smov 64  }
   0xc   : > { %s141_s26 = sshll.u32 %s6864_s25, 4  ;;  %p6701_p7 = pnand %p6925_p5, %p6700_p6  ;;  %s142_s26 = int_to_ptr.vmem [resolvable:$true] %s141_s26 }
   0xd   : > { %s6866_s28 = smov 4   ;;  %s154_s4 = sshll.u32 %s7136_s2, 4  ;;  %s155_s4 = int_to_ptr.hbm [resolvable:$true] %s154_s4 }
   0xe   : > { %6703 = dma.hbm_to_vmem [thread:$0]  (!%p6701_p7), %s140_s24, 50176, %s142_s26, [#allocation3], %s6865_s27, %s6865_s27, %s6866_s28  }
   0xf   : > { %s6867_s5 = smov [#allocation4]   ;;  %177 = sbr.rel (%p6921_p3) target bundleno = 574 (0x23e), region = 32 }
  0x10   : > { %s156_s6 = sshll.u32 %s6867_s5, 4  ;;  %s157_s6 = int_to_ptr.vmem [resolvable:$true] %s156_s6 }
  0x11   : > { %6706 = dma.hbm_to_vmem [thread:$0]  (!%p6701_p7), %s155_s4, 16, %s157_s6, [#allocation5]  }
  0x14   : > { %6837 = dma.done.wait (%p6925_p5), [#allocation3], 50176  }
  0x15   : > { %6839 = vsyncadd (%p6925_p5), [#allocation3], 4294917120 }
  0x16   : > { %6841 = dma.done.wait (%p6925_p5), [#allocation5], 16  }
  0x17   : > { %6843 = vsyncadd (%p6925_p5), [#allocation5], 4294967280  ;;  %p210_p8 = scmp.lt.s32.totalorder %s6850_s13, 1  ;;  %v6311_v0 = vld [vmem:[#allocation2 + $0x78] sm:$0xff]  ;;  %v6310_v4 = vld [vmem:[#allocation2 + $0x70] sm:$0xff]  ;;  %s6295_s11 = sshll.u32 %s6846_s12, 5 }
  0x18   : > { %v6319_v1 = vld [vmem:[#allocation2 + $0xb8] sm:$0xff]  ;;  %309 = vmatpush.bf16.msra.mxu0 %v6311_v0  ;;  %v6318_v5 = vld [vmem:[#allocation2 + $0xb0] sm:$0xff]  ;;  %v6309_v8 = vld [vmem:[#allocation2 + $0x68] sm:$0xff]  ;;  %p217_p9 = scmp.lt.s32.totalorder %s6846_s12, 7 }
  0x19   : > { %v6303_v2 = vld [vmem:[#allocation2 + $0x38] sm:$0xff]  ;;  %463 = vmatpush.bf16.msra.mxu2 %v6319_v1  ;;  %s7151_s13 = smov (!%p210_p8, %s6850_s13), 1  ;;  %v6302_v6 = vld [vmem:[#allocation2 + $0x30] sm:$0xff]  ;;  %v6317_v9 = vld [vmem:[#allocation2 + $0xa8] sm:$0xff] }
  0x1a   : > { %v6327_v3 = vld [vmem:[#allocation2 + $0xf8] sm:$0xff]  ;;  %370 = vmatpush.bf16.msra.mxu1 %v6303_v2  ;;  %v6326_v7 = vld [vmem:[#allocation2 + $0xf0] sm:$0xff]  ;;  %s6691_s7 = smul.u32 352, %s7151_s13  ;;  %v6301_v10 = vld [vmem:[#allocation2 + $0x28] sm:$0xff]  ;;  %s7153_s12 = smov (!%p217_p9, %s6846_s12), 7 }
  0x1b   : > { %557 = vmatpush.bf16.msra.mxu3 %v6327_v3  ;;  %v6325_v11 = vld [vmem:[#allocation2 + $0xe8] sm:$0xff]  ;;  %v6308_v12 = vld [vmem:[#allocation2 + $0x60] sm:$0xff]  ;;  %v6307_v16 = vld [vmem:[#allocation2 + $0x58] sm:$0xff]  ;;  %s4658_s20 = sshll.u32 %s7151_s13, 3 }
  0x1c   : > { %310 = vmatpush.bf16.msra.mxu0 %v6310_v4  ;;  %v6316_v13 = vld [vmem:[#allocation2 + $0xa0] sm:$0xff]  ;;  %s214_s10 = scalar_lea.vmem %s7134_s0, %s6691_s7  ;;  %v6315_v17 = vld [vmem:[#allocation2 + $0x98] sm:$0xff]  ;;  %v6306_v24 = vld [vmem:[#allocation2 + $0x50] sm:$0xff]  ;;  %s220_s21 = sadd.s32 %s4658_s20, %s7153_s12 }
  0x1d   : > { %464 = vmatpush.bf16.msra.mxu2 %v6318_v5  ;;  %v6300_v14 = vld [vmem:[#allocation2 + $0x20] sm:$0xff]  ;;  %s6960_s17 = scalar_lea.vmem %s214_s10, %s6295_s11  ;;  %v6299_v18 = vld [vmem:[#allocation2 + $0x18] sm:$0xff]  ;;  %v6314_v25 = vld [vmem:[#allocation2 + $0x90] sm:$0xff]  ;;  %s4659_s22 = sshll.u32 %s220_s21, 2 }
  0x1e   : > { %371 = vmatpush.bf16.msra.mxu1 %v6302_v6  ;;  %v6324_v15 = vld [vmem:[#allocation2 + $0xe0] sm:$0xff]  ;;  %v6323_v19 = vld [vmem:[#allocation2 + $0xd8] sm:$0xff]  ;;  %v6964_v21 = vld [vmem:[%s6960_s17 + $0x8] sm:$0x1]  ;;  %s222_s25 = scalar_lea.vmem %s7137_s3, %s4659_s22 }
  0x1f   : > { %558 = vmatpush.bf16.msra.mxu3 %v6326_v7  ;;  %v383_v20 = vld [vmem:[%s6960_s17] sm:$0xff]   ;;  %v405_v26 = vunpack.c.l.b16 %v6964_v21  ;;  %v6968_v27 = vld [vmem:[%s6960_s17 + $0xc] sm:$0x1]  ;;  %v6298_v28 = vld [vmem:[#allocation2 + $0x10] sm:$0xff] }
  0x20   : > { %311 = vmatpush.bf16.msra.mxu0 %v6309_v8  ;;  %v404_v22 = vunpack.c.l.b16 %v383_v20  ;;  %v498_v23 = vunpack.c.h.b16 %v383_v20  ;;  %v6322_v29 = vld [vmem:[#allocation2 + $0xd0] sm:$0xff]  ;;  %v499_v30 = vunpack.c.l.b16 %v6968_v27  ;;  %v6305_v33 = vld [vmem:[#allocation2 + $0x48] sm:$0xff]  ;;  %v6304_v39 = vld [vmem:[#allocation2 + $0x40] sm:$0xff] }
  0x21   : > { %465 = vmatpush.bf16.msra.mxu2 %v6317_v9  ;;  %v6313_v34 = vld [vmem:[#allocation2 + $0x88] sm:$0xff]  ;;  %v6312_v40 = vld [vmem:[#allocation2 + $0x80] sm:$0xff]  ;;  %v6335_v43 = vld [vmem:[#allocation2 + $0x138] sm:$0xff] }
  0x22   : > { %372 = vmatpush.bf16.msra.mxu1 %v6301_v10  ;;  %v406_v31 = vpack.c.b16 %v405_v26, %v404_v22  ;;  %v500_v32 = vpack.c.b16 %v499_v30, %v498_v23  ;;  %v6297_v36 = vld [vmem:[#allocation2 + $0x8] sm:$0xff]  ;;  %v6351_v44 = vld [vmem:[#allocation2 + $0x1b8] sm:$0xff]  ;;  %v6296_v45 = vld [vmem:[#allocation2] sm:$0xff] }
  0x23   : > { %559 = vmatpush.bf16.msra.mxu3 %v6325_v11  ;;  %v6321_v37 = vld [vmem:[#allocation2 + $0xc8] sm:$0xff]  ;;  %v6320_v46 = vld [vmem:[#allocation2 + $0xc0] sm:$0xff]  ;;  %v6343_v49 = vld [vmem:[#allocation2 + $0x178] sm:$0xff] }
  0x24   : > { %312 = vmatpush.bf16.msra.mxu0 %v6308_v12  ;;  %v410_v35 = vshll.u32 %v406_v31, 16  ;;  %v504_v38 = vshll.u32 %v500_v32, 16  ;;  %v408_v41 = vshrl.u32 %v406_v31, 16  ;;  %v502_v47 = vshrl.u32 %v500_v32, 16  ;;  %v6360_v50 = vld [vmem:[#allocation2 + $0x1f8] sm:$0xff]  ;;  %v6334_v52 = vld [vmem:[#allocation2 + $0x130] sm:$0xff] }
  0x25   : > { %466 = vmatpush.bf16.msra.mxu2 %v6316_v13  ;;  %v6350_v53 = vld [vmem:[#allocation2 + $0x1b0] sm:$0xff]  ;;  %v243_v54 = vld [vmem:[%s6960_s17 + $0x4] sm:$0xf]  ;;  %v226_v58 = vld [vmem:[%s6960_s17] sm:$0xf] }
  0x26   : > { %373 = vmatpush.bf16.msra.mxu1 %v6300_v14  ;;  %v412_v42 = vrot.slane %v410_v35, 1  ;;  %v506_v48 = vrot.slane %v504_v38, 1  ;;  %v6342_v56 = vld [vmem:[#allocation2 + $0x170] sm:$0xff]  ;;  %v6333_v59 = vld [vmem:[#allocation2 + $0x128] sm:$0xff]  ;;  %v6332_v63 = vld [vmem:[#allocation2 + $0x120] sm:$0xff] }
  0x27   : > { %560 = vmatpush.bf16.msra.mxu3 %v6324_v15  ;;  %v6359_v57 = vld [vmem:[#allocation2 + $0x1f0] sm:$0xff]  ;;  %v6349_v60 = vld [vmem:[#allocation2 + $0x1a8] sm:$0xff]  ;;  %v6348_v0 = vld [vmem:[#allocation2 + $0x1a0] sm:$0xff] }
  0x28   : > { %313 = vmatpush.bf16.msra.mxu0 %v6307_v16  ;;  %v413_v51 = vor.u32 %v412_v42, %v408_v41  ;;  %v507_v55 = vor.u32 %v506_v48, %v502_v47  ;;  %v6341_v61 = vld [vmem:[#allocation2 + $0x168] sm:$0xff]  ;;  %v571_v1 = vld [vmem:[%s6960_s17] sm:$0xe]  ;;  %v6331_v5 = vld [vmem:[#allocation2 + $0x118] sm:$0xff] }
  0x29   : > { %467 = vmatpush.bf16.msra.mxu2 %v6315_v17  ;;  %v6358_v62 = vld [vmem:[#allocation2 + $0x1e8] sm:$0xff]  ;;  %v6340_v3 = vld [vmem:[#allocation2 + $0x160] sm:$0xff]  ;;  %v6347_v6 = vld [vmem:[#allocation2 + $0x198] sm:$0xff]  ;;  %v590_v7 = vunpack.c.l.b16 %v571_v1 }
  0x2a   : > { %374 = vmatpush.bf16.msra.mxu1 %v6299_v18  ;;  %v741_v2 = vld [vmem:[%s6960_s17 + $0x8] sm:$0x3]  ;;  %v6357_v4 = vld [vmem:[#allocation2 + $0x1e0] sm:$0xff]  ;;  %v6339_v9 = vld [vmem:[#allocation2 + $0x158] sm:$0xff] }
  0x2b   : > { %561 = vmatpush.bf16.msra.mxu3 %v6323_v19  ;;  %v760_v8 = vunpack.c.l.b16 %v741_v2  ;;  %v6356_v10 = vld [vmem:[#allocation2 + $0x1d8] sm:$0xff]  ;;  %v6330_v11 = vld [vmem:[#allocation2 + $0x110] sm:$0xff]  ;;  %v656_v16 = vld [vmem:[%s6960_s17 + $0x4] sm:$0xe]  ;;  %v591_v32 = vpack.c.b16 %v405_v26, %v590_v7 }
  0x2c   : > { %314 = vmatpush.bf16.msra.mxu0 %v6306_v24  ;;  %v6346_v12 = vld [vmem:[#allocation2 + $0x190] sm:$0xff]  ;;  %v6329_v17 = vld [vmem:[#allocation2 + $0x108] sm:$0xff]  ;;  %v675_v24 = vunpack.c.l.b16 %v656_v16  ;;  %v6336_v35 = vld [vmem:[#allocation2 + $0x140] sm:$0xff] }
  0x2d   : > { %468 = vmatpush.bf16.msra.mxu2 %v6314_v25  ;;  %v761_v13 = vpack.c.b16 %v760_v8, %v590_v7  ;;  %v6338_v14 = vld [vmem:[#allocation2 + $0x150] sm:$0xff]  ;;  %v6345_v18 = vld [vmem:[#allocation2 + $0x188] sm:$0xff]  ;;  %v6328_v25 = vld [vmem:[#allocation2 + $0x100] sm:$0xff]  ;;  %v592_v41 = vrot.slane %v591_v32, 1 }
  0x2e   : > { %375 = vmatpush.bf16.msra.mxu1 %v6298_v28  ;;  %v6355_v15 = vld [vmem:[#allocation2 + $0x1d0] sm:$0xff]  ;;  %v6337_v22 = vld [vmem:[#allocation2 + $0x148] sm:$0xff]  ;;  %v6344_v28 = vld [vmem:[#allocation2 + $0x180] sm:$0xff] }
  0x2f   : > { %562 = vmatpush.bf16.msra.mxu3 %v6322_v29  ;;  %v763_v19 = vshrl.u32 %v761_v13, 16  ;;  %v766_v20 = vshll.u32 %v761_v13, 16  ;;  %v6354_v23 = vld [vmem:[#allocation2 + $0x1c8] sm:$0xff]  ;;  %v6376_v38 = vld [vmem:[#allocation2 + $0x278] sm:$0xff]  ;;  %v6367_v21 = vld [vmem:[#allocation2 + $0x230] sm:$0xff] }
  0x30   : > { %315 = vmatpush.bf16.msra.mxu0 %v6305_v33  ;;  %v6368_v33 = vld [vmem:[#allocation2 + $0x238] sm:$0xff]  ;;  %v6383_v26 = vld [vmem:[#allocation2 + $0x2b0] sm:$0xff]  ;;  %v6390_v47 = vld [vmem:[#allocation2 + $0x2e8] sm:$0xff] }
  0x31   : > { %469 = vmatpush.bf16.msra.mxu2 %v6313_v34  ;;  %v765_v29 = vrot.slane %v763_v19, 1  ;;  %v768_v31 = vrot.slane %v766_v20, 2  ;;  %v6384_v34 = vld [vmem:[#allocation2 + $0x2b8] sm:$0xff]  ;;  %v6391_v27 = vld [vmem:[#allocation2 + $0x2f0] sm:$0xff]  ;;  %v6365_v48 = vld [vmem:[#allocation2 + $0x220] sm:$0xff] }
  0x32   : > { %376 = vmatpush.bf16.msra.mxu1 %v6297_v36  ;;  %v6353_v36 = vld [vmem:[#allocation2 + $0x1c0] sm:$0xff]  ;;  %v6379_v1 = vld [vmem:[#allocation2 + $0x290] sm:$0xff]  ;;  %v6362_v7 = vld [vmem:[#allocation2 + $0x208] sm:$0xff] }
  0x33   : > { %563 = vmatpush.bf16.msra.mxu3 %v6321_v37  ;;  %v676_v37 = vpack.c.b16 %v499_v30, %v675_v24  ;;  %v6366_v30 = vld [vmem:[#allocation2 + $0x228] sm:$0xff]  ;;  %v6377_v16 = vld [vmem:[#allocation2 + $0x280] sm:$0xff] }
  0x34   : > { %316 = vmatpush.bf16.msra.mxu0 %v6304_v39  ;;  %v6392_v39 = vld [vmem:[#allocation2 + $0x2f8] sm:$0xff]  ;;  %v6378_v8 = vld [vmem:[#allocation2 + $0x288] sm:$0xff]  ;;  %v6385_v24 = vld [vmem:[#allocation2 + $0x2c0] sm:$0xff] }
  0x35   : > { %470 = vmatpush.bf16.msra.mxu2 %v6312_v40  ;;  %v769_v40 = vor.u32 %v768_v31, %v765_v29  ;;  %v677_v42 = vrot.slane %v676_v37, 1  ;;  %v6408_v29 = vld [vmem:[#allocation2 + $0x378] sm:$0xff]  ;;  %v6423_v37 = vld [vmem:[#allocation2 + $0x3f0] sm:$0xff] }
  0x36   : > { %377 = vmatpush.bf16.msra.mxu1 %v6296_v45  ;;  %v6382_v45 = vld [vmem:[#allocation2 + $0x2a8] sm:$0xff]  ;;  %v6424_v31 = vld [vmem:[#allocation2 + $0x3f8] sm:$0xff] }
  0x37   : > { %564 = vmatpush.bf16.msra.mxu3 %v6320_v46  ;;  %317 = vmatmul.bf16.vlgmr.msra.gmra.mxu0 %v243_v54  ;;  %v6374_v46 = vld [vmem:[#allocation2 + $0x268] sm:$0xff]  ;;  %v4955_v54 = vld [vmem:[%s6960_s17 + $0x18] sm:$0x1] }
  0x38   : > { %642 = vmatpush.bf16.msrb.mxu0 %v6335_v43  ;;  %471 = vmatmul.bf16.vlgmr.msra.gmra.mxu2 %v413_v51  ;;  %v4888_v43 = vld [vmem:[%s6960_s17 + $0x10] sm:$0xf]  ;;  %v6987_v51 = vld [vmem:[%s6960_s17 + $0x1c] sm:$0x1] }
  0x39   : > { %819 = vmatpush.bf16.msrb.mxu2 %v6351_v44  ;;  %378 = vmatmul.bf16.vlgmr.msra.gmra.mxu1 %v226_v58  ;;  %v6375_v44 = vld [vmem:[#allocation2 + $0x270] sm:$0xff]  ;;  %v6380_v58 = vld [vmem:[#allocation2 + $0x298] sm:$0xff] }
  0x3a   : > { %727 = vmatpush.bf16.msrb.mxu1 %v6343_v49  ;;  %565 = vmatmul.bf16.vlgmr.msra.gmra.mxu3 %v507_v55  ;;  %v6381_v49 = vld [vmem:[#allocation2 + $0x2a0] sm:$0xff] }
  0x3b   : > { %902 = vmatpush.bf16.msrb.mxu3 %v6360_v50  ;;  %v4988_v50 = vld [vmem:[%s6960_s17 + $0x10] sm:$0xff]  }
  0x3c   : > { %643 = vmatpush.bf16.msrb.mxu0 %v6334_v52  ;;  %v6373_v52 = vld [vmem:[#allocation2 + $0x260] sm:$0xff]  ;;  %v1111_v55 = vunpack.c.h.b16 %v4988_v50 }
  0x3d   : > { %820 = vmatpush.bf16.msrb.mxu2 %v6350_v53  ;;  %v6389_v53 = vld [vmem:[#allocation2 + $0x2e0] sm:$0xff] }
  0x3e   : > { %728 = vmatpush.bf16.msrb.mxu1 %v6342_v56  ;;  %v1112_v56 = vunpack.c.l.b16 %v6987_v51  ;;  %v6440_v51 = vld [vmem:[#allocation2 + $0x478] sm:$0xff] }
  0x3f   : > { %903 = vmatpush.bf16.msrb.mxu3 %v6359_v57  ;;  %v6364_v57 = vld [vmem:[#allocation2 + $0x218] sm:$0xff] }
  0x40   : > { %644 = vmatpush.bf16.msrb.mxu0 %v6333_v59  ;;  %v1017_v59 = vunpack.c.l.b16 %v4988_v50  ;;  %v5055_v50 = vld [vmem:[%s6960_s17 + $0x14] sm:$0xe] }
  0x41   : > { %821 = vmatpush.bf16.msrb.mxu2 %v6349_v60  ;;  %v1018_v60 = vunpack.c.l.b16 %v4955_v54  ;;  %v6419_v54 = vld [vmem:[#allocation2 + $0x3d0] sm:$0xff] }
  0x42   : > { %729 = vmatpush.bf16.msrb.mxu1 %v6341_v61  ;;  %v6372_v61 = vld [vmem:[#allocation2 + $0x258] sm:$0xff] }
  0x43   : > { %904 = vmatpush.bf16.msrb.mxu3 %v6358_v62  ;;  %v6388_v62 = vld [vmem:[#allocation2 + $0x2d8] sm:$0xff]  ;;  %v1019_v2 = vpack.c.b16 %v1018_v60, %v1017_v59 }
  0x44   : > { %645 = vmatpush.bf16.msrb.mxu0 %v6332_v63  ;;  %v1113_v63 = vpack.c.b16 %v1112_v56, %v1111_v55  ;;  %v1288_v55 = vunpack.c.l.b16 %v5055_v50  ;;  %v6450_v50 = vld [vmem:[#allocation2 + $0x4c8] sm:$0xff] }
  0x45   : > { %822 = vmatpush.bf16.msrb.mxu2 %v6348_v0  ;;  %v6363_v0 = vld [vmem:[#allocation2 + $0x210] sm:$0xff]  ;;  %v1021_v19 = vshrl.u32 %v1019_v2, 16 }
  0x46   : > { %730 = vmatpush.bf16.msrb.mxu1 %v6340_v3  ;;  %v6371_v3 = vld [vmem:[#allocation2 + $0x250] sm:$0xff]  ;;  %v1115_v13 = vshrl.u32 %v1113_v63, 16 }
  0x47   : > { %905 = vmatpush.bf16.msrb.mxu3 %v6357_v4  ;;  %v6387_v4 = vld [vmem:[#allocation2 + $0x2d0] sm:$0xff] }
  0x48   : > { %646 = vmatpush.bf16.msrb.mxu0 %v6331_v5  ;;  %v6994_v5 = vld [vmem:[%s6960_s17 + $0x10] sm:$0xe] }
  0x49   : > { %823 = vmatpush.bf16.msrb.mxu2 %v6347_v6  ;;  %v1117_v6 = vshll.u32 %v1113_v63, 16  ;;  %v1289_v63 = vpack.c.b16 %v1112_v56, %v1288_v55  ;;  %v6456_v56 = vld [vmem:[#allocation2 + $0x4f8] sm:$0xff]  ;;  %v6425_v55 = vld [vmem:[#allocation2 + $0x400] sm:$0xff] }
  0x4a   : > { %731 = vmatpush.bf16.msrb.mxu1 %v6339_v9  ;;  %v1023_v9 = vshll.u32 %v1019_v2, 16  ;;  %v6432_v2 = vld [vmem:[#allocation2 + $0x438] sm:$0xff] }
  0x4b   : > { %906 = vmatpush.bf16.msrb.mxu3 %v6356_v10  ;;  %v1203_v10 = vunpack.c.l.b16 %v6994_v5 }
  0x4c   : > { %647 = vmatpush.bf16.msrb.mxu0 %v6330_v11  ;;  %v6370_v11 = vld [vmem:[#allocation2 + $0x248] sm:$0xff]  ;;  %v1025_v20 = vrot.slane %v1023_v9, 1  ;;  %v5122_v9 = vld [vmem:[%s6960_s17 + $0x20] sm:$0xf] }
  0x4d   : > { %824 = vmatpush.bf16.msrb.mxu2 %v6346_v12  ;;  %v6386_v12 = vld [vmem:[#allocation2 + $0x2c8] sm:$0xff] }
  0x4e   : > { %732 = vmatpush.bf16.msrb.mxu1 %v6338_v14  ;;  %v1119_v14 = vrot.slane %v1117_v6, 1  ;;  %v1026_v32 = vor.u32 %v1025_v20, %v1021_v19  ;;  %v6401_v6 = vld [vmem:[#allocation2 + $0x340] sm:$0xff]  ;;  %v6454_v19 = vld [vmem:[#allocation2 + $0x4e8] sm:$0xff] }
  0x4f   : > { %907 = vmatpush.bf16.msrb.mxu3 %v6355_v15  ;;  %v6361_v15 = vld [vmem:[#allocation2 + $0x200] sm:$0xff] }
  0x50   : > { %648 = vmatpush.bf16.msrb.mxu0 %v6329_v17  ;;  %v6400_v17 = vld [vmem:[#allocation2 + $0x338] sm:$0xff]  ;;  %v6429_v20 = vld [vmem:[#allocation2 + $0x420] sm:$0xff] }
  0x51   : > { %825 = vmatpush.bf16.msrb.mxu2 %v6345_v18  ;;  %v6416_v18 = vld [vmem:[#allocation2 + $0x3b8] sm:$0xff] }
  0x52   : > { %733 = vmatpush.bf16.msrb.mxu1 %v6337_v22  ;;  %v1204_v22 = vpack.c.b16 %v1018_v60, %v1203_v10 }
  0x53   : > { %908 = vmatpush.bf16.msrb.mxu3 %v6354_v23  ;;  %v6369_v23 = vld [vmem:[#allocation2 + $0x240] sm:$0xff] }
  0x54   : > { %649 = vmatpush.bf16.msrb.mxu0 %v6328_v25  ;;  %v1120_v25 = vor.u32 %v1119_v14, %v1115_v13  ;;  %v6447_v13 = vld [vmem:[#allocation2 + $0x4b0] sm:$0xff] }
  0x55   : > { %826 = vmatpush.bf16.msrb.mxu2 %v6344_v28  ;;  %v4921_v28 = vld [vmem:[%s6960_s17 + $0x14] sm:$0xf] }
  0x56   : > { %734 = vmatpush.bf16.msrb.mxu1 %v6336_v35  ;;  %v6415_v35 = vld [vmem:[#allocation2 + $0x3b0] sm:$0xff] }
  0x57   : > { %909 = vmatpush.bf16.msrb.mxu3 %v6353_v36  ;;  %650 = vmatmul.bf16.vlgmr.msrb.gmra.mxu0 %v592_v41  ;;  %v6407_v36 = vld [vmem:[#allocation2 + $0x370] sm:$0xff]  ;;  %v6422_v41 = vld [vmem:[#allocation2 + $0x3e8] sm:$0xff] }
  0x58   : > { %982 = vmatpush.bf16.msra.mxu0 %v6368_v33  ;;  %827 = vmatmul.bf16.vlgmr.msrb.gmra.mxu2 %v769_v40  ;;  %v1205_v33 = vrot.slane %v1204_v22, 1  ;;  %v6406_v40 = vld [vmem:[#allocation2 + $0x368] sm:$0xff]  ;;  %v6439_v14 = vld [vmem:[#allocation2 + $0x470] sm:$0xff]  ;;  %v6445_v22 = vld [vmem:[#allocation2 + $0x4a0] sm:$0xff] }
  0x59   : > { %1170 = vmatpush.bf16.msra.mxu2 %v6384_v34  ;;  %735 = vmatmul.bf16.vlgmr.msrb.gmra.mxu1 %v677_v42  ;;  %v6399_v34 = vld [vmem:[#allocation2 + $0x330] sm:$0xff]  ;;  %v6405_v42 = vld [vmem:[#allocation2 + $0x360] sm:$0xff] }
  0x5a   : > { %1076 = vmatpush.bf16.msra.mxu1 %v6376_v38  ;;  %910 = vmatmul.bf16.vlgmr.msrb.gmra.mxu3 %v4888_v43  ;;  %v6398_v38 = vld [vmem:[#allocation2 + $0x328] sm:$0xff]  ;;  %v6421_v43 = vld [vmem:[#allocation2 + $0x3e0] sm:$0xff] }
  0x5b   : > { %1255 = vmatpush.bf16.msra.mxu3 %v6392_v39  ;;  %v6414_v39 = vld [vmem:[#allocation2 + $0x3a8] sm:$0xff] }
  0x5c   : > { %983 = vmatpush.bf16.msra.mxu0 %v6367_v21  ;;  %v6397_v21 = vld [vmem:[#allocation2 + $0x320] sm:$0xff] }
  0x5d   : > { %1171 = vmatpush.bf16.msra.mxu2 %v6383_v26  ;;  %v6413_v26 = vld [vmem:[#allocation2 + $0x3a0] sm:$0xff] }
  0x5e   : > { %1077 = vmatpush.bf16.msra.mxu1 %v6375_v44  ;;  %v5088_v44 = vld [vmem:[%s6960_s17 + $0x18] sm:$0x3] }
  0x5f   : > { %1256 = vmatpush.bf16.msra.mxu3 %v6391_v27  ;;  %v6396_v27 = vld [vmem:[#allocation2 + $0x318] sm:$0xff] }
  0x60   : > { %984 = vmatpush.bf16.msra.mxu0 %v6366_v30  ;;  %v6412_v30 = vld [vmem:[#allocation2 + $0x398] sm:$0xff] }
  0x61   : > { %1172 = vmatpush.bf16.msra.mxu2 %v6382_v45  ;;  %v1373_v45 = vunpack.c.l.b16 %v5088_v44  ;;  %v5289_v44 = vld [vmem:[%s6960_s17 + $0x24] sm:$0xe] }
  0x62   : > { %1078 = vmatpush.bf16.msra.mxu1 %v6374_v46  ;;  %v6404_v46 = vld [vmem:[#allocation2 + $0x358] sm:$0xff] }
  0x63   : > { %1257 = vmatpush.bf16.msra.mxu3 %v6390_v47  ;;  %v6420_v47 = vld [vmem:[#allocation2 + $0x3d8] sm:$0xff] }
  0x64   : > { %985 = vmatpush.bf16.msra.mxu0 %v6365_v48  ;;  %v6395_v48 = vld [vmem:[#allocation2 + $0x310] sm:$0xff] }
  0x65   : > { %1173 = vmatpush.bf16.msra.mxu2 %v6381_v49  ;;  %v6411_v49 = vld [vmem:[#allocation2 + $0x390] sm:$0xff] }
  0x66   : > { %1079 = vmatpush.bf16.msra.mxu1 %v6373_v52  ;;  %v1374_v52 = vpack.c.b16 %v1373_v45, %v1203_v10  ;;  %v6426_v45 = vld [vmem:[#allocation2 + $0x408] sm:$0xff] }
  0x67   : > { %1258 = vmatpush.bf16.msra.mxu3 %v6389_v53  ;;  %v6403_v53 = vld [vmem:[#allocation2 + $0x350] sm:$0xff] }
  0x68   : > { %986 = vmatpush.bf16.msra.mxu0 %v6364_v57  ;;  %v6394_v57 = vld [vmem:[#allocation2 + $0x308] sm:$0xff]  ;;  %v1376_v59 = vshrl.u32 %v1374_v52, 16  ;;  %v1379_v60 = vshll.u32 %v1374_v52, 16 }
  0x69   : > { %1174 = vmatpush.bf16.msra.mxu2 %v6380_v58  ;;  %v6410_v58 = vld [vmem:[#allocation2 + $0x388] sm:$0xff] }
  0x6a   : > { %1080 = vmatpush.bf16.msra.mxu1 %v6372_v61  ;;  %v6402_v61 = vld [vmem:[#allocation2 + $0x348] sm:$0xff]  ;;  %v1381_v5 = vrot.slane %v1379_v60, 2 }
  0x6b   : > { %1259 = vmatpush.bf16.msra.mxu3 %v6388_v62  ;;  %v6418_v62 = vld [vmem:[#allocation2 + $0x3c8] sm:$0xff] }
  0x6c   : > { %987 = vmatpush.bf16.msra.mxu0 %v6363_v0  ;;  %v6393_v0 = vld [vmem:[#allocation2 + $0x300] sm:$0xff] }
  0x6d   : > { %1175 = vmatpush.bf16.msra.mxu2 %v6379_v1  ;;  %v6409_v1 = vld [vmem:[#allocation2 + $0x380] sm:$0xff] }
  0x6e   : > { %1081 = vmatpush.bf16.msra.mxu1 %v6371_v3  ;;  %v6448_v3 = vld [vmem:[#allocation2 + $0x4b8] sm:$0xff] }
  0x6f   : > { %1260 = vmatpush.bf16.msra.mxu3 %v6387_v4  ;;  %v1378_v4 = vrot.slane %v1376_v59, 1  ;;  %v6481_v59 = vld [vmem:[#allocation2 + $0x5b8] sm:$0xff] }
  0x70   : > { %988 = vmatpush.bf16.msra.mxu0 %v6362_v7  ;;  %v6417_v7 = vld [vmem:[#allocation2 + $0x3c0] sm:$0xff] }
  0x71   : > { %1176 = vmatpush.bf16.msra.mxu2 %v6378_v8  ;;  %v1290_v8 = vrot.slane %v1289_v63, 1  ;;  %v1382_v10 = vor.u32 %v1381_v5, %v1378_v4  ;;  %v6433_v63 = vld [vmem:[#allocation2 + $0x440] sm:$0xff]  ;;  %v6489_v4 = vld [vmem:[#allocation2 + $0x5f8] sm:$0xff] }
  0x72   : > { %1082 = vmatpush.bf16.msra.mxu1 %v6370_v11  ;;  %v5155_v11 = vld [vmem:[%s6960_s17 + $0x24] sm:$0xf] }
  0x73   : > { %1261 = vmatpush.bf16.msra.mxu3 %v6386_v12  ;;  %v6431_v12 = vld [vmem:[#allocation2 + $0x430] sm:$0xff] }
  0x74   : > { %989 = vmatpush.bf16.msra.mxu0 %v6361_v15  ;;  %v6455_v15 = vld [vmem:[#allocation2 + $0x4f0] sm:$0xff] }
  0x75   : > { %1177 = vmatpush.bf16.msra.mxu2 %v6377_v16  ;;  %v6430_v16 = vld [vmem:[#allocation2 + $0x428] sm:$0xff] }
  0x76   : > { %1083 = vmatpush.bf16.msra.mxu1 %v6369_v23  ;;  %v5188_v23 = vld [vmem:[%s6960_s17 + $0x20] sm:$0xff]  }
  0x77   : > { %1262 = vmatpush.bf16.msra.mxu3 %v6385_v24  ;;  %990 = vmatmul.bf16.vlgmr.msra.gmra.mxu0 %v4921_v28  ;;  %v5189_v24 = vld [vmem:[%s6960_s17 + $0x28] sm:$0x1]  ;;  %v6453_v28 = vld [vmem:[#allocation2 + $0x4e0] sm:$0xff] }
  0x78   : > { %1340 = vmatpush.bf16.msrb.mxu0 %v6400_v17  ;;  %1178 = vmatmul.bf16.vlgmr.msra.gmra.mxu2 %v1120_v25  ;;  %v6446_v17 = vld [vmem:[#allocation2 + $0x4a8] sm:$0xff]  ;;  %v6437_v25 = vld [vmem:[#allocation2 + $0x460] sm:$0xff] }
  0x79   : > { %1516 = vmatpush.bf16.msrb.mxu2 %v6416_v18  ;;  %1084 = vmatmul.bf16.vlgmr.msra.gmra.mxu1 %v1026_v32  ;;  %v6438_v18 = vld [vmem:[#allocation2 + $0x468] sm:$0xff]  ;;  %v1632_v32 = vunpack.c.l.b16 %v5189_v24  ;;  %v6460_v24 = vld [vmem:[#allocation2 + $0x518] sm:$0xff] }
  0x7a   : > { %1432 = vmatpush.bf16.msrb.mxu1 %v6408_v29  ;;  %1263 = vmatmul.bf16.vlgmr.msra.gmra.mxu3 %v1205_v33  ;;  %v5223_v29 = vld [vmem:[%s6960_s17 + $0x2c] sm:$0x1]  ;;  %v6428_v33 = vld [vmem:[#allocation2 + $0x418] sm:$0xff] }
  0x7b   : > { %1596 = vmatpush.bf16.msrb.mxu3 %v6424_v31  ;;  %v1631_v31 = vunpack.c.l.b16 %v5188_v23 }
  0x7c   : > { %1341 = vmatpush.bf16.msrb.mxu0 %v6399_v34  ;;  %v6444_v34 = vld [vmem:[#allocation2 + $0x498] sm:$0xff] }
  0x7d   : > { %1517 = vmatpush.bf16.msrb.mxu2 %v6415_v35  ;;  %v1725_v35 = vunpack.c.h.b16 %v5188_v23 }
  0x7e   : > { %1433 = vmatpush.bf16.msrb.mxu1 %v6407_v36  ;;  %v1726_v36 = vunpack.c.l.b16 %v5223_v29 }
  0x7f   : > { %1597 = vmatpush.bf16.msrb.mxu3 %v6423_v37  ;;  %v6436_v37 = vld [vmem:[#allocation2 + $0x458] sm:$0xff] }
  0x80   : > { %1342 = vmatpush.bf16.msrb.mxu0 %v6398_v38  ;;  %v6452_v38 = vld [vmem:[#allocation2 + $0x4d8] sm:$0xff] }
  0x81   : > { %1518 = vmatpush.bf16.msrb.mxu2 %v6414_v39  ;;  %v1633_v39 = vpack.c.b16 %v1632_v32, %v1631_v31 }
  0x82   : > { %1434 = vmatpush.bf16.msrb.mxu1 %v6406_v40  ;;  %v6427_v40 = vld [vmem:[#allocation2 + $0x410] sm:$0xff] }
  0x83   : > { %1598 = vmatpush.bf16.msrb.mxu3 %v6422_v41  ;;  %v6443_v41 = vld [vmem:[#allocation2 + $0x490] sm:$0xff]  ;;  %v1635_v52 = vshrl.u32 %v1633_v39, 16 }
  0x84   : > { %1343 = vmatpush.bf16.msrb.mxu0 %v6397_v21  ;;  %v7012_v21 = vld [vmem:[%s6960_s17 + $0x20] sm:$0xe] }
  0x85   : > { %1519 = vmatpush.bf16.msrb.mxu2 %v6413_v26  ;;  %v1727_v26 = vpack.c.b16 %v1726_v36, %v1725_v35 }
  0x86   : > { %1435 = vmatpush.bf16.msrb.mxu1 %v6405_v42  ;;  %v6435_v42 = vld [vmem:[#allocation2 + $0x450] sm:$0xff] }
  0x87   : > { %1599 = vmatpush.bf16.msrb.mxu3 %v6421_v43  ;;  %v6451_v43 = vld [vmem:[#allocation2 + $0x4d0] sm:$0xff]  ;;  %v1729_v60 = vshrl.u32 %v1727_v26, 16 }
  0x88   : > { %1344 = vmatpush.bf16.msrb.mxu0 %v6396_v27  ;;  %v1637_v27 = vshll.u32 %v1633_v39, 16 }
  0x89   : > { %1520 = vmatpush.bf16.msrb.mxu2 %v6412_v30  ;;  %v1817_v30 = vunpack.c.l.b16 %v7012_v21 }
  0x8a   : > { %1436 = vmatpush.bf16.msrb.mxu1 %v6404_v46  ;;  %v6442_v46 = vld [vmem:[#allocation2 + $0x488] sm:$0xff] }
  0x8b   : > { %1600 = vmatpush.bf16.msrb.mxu3 %v6420_v47  ;;  %v1731_v47 = vshll.u32 %v1727_v26, 16  ;;  %v6468_v26 = vld [vmem:[#allocation2 + $0x550] sm:$0xff] }
  0x8c   : > { %1345 = vmatpush.bf16.msrb.mxu0 %v6395_v48  ;;  %v1902_v48 = vunpack.c.l.b16 %v5289_v44 }
  0x8d   : > { %1521 = vmatpush.bf16.msrb.mxu2 %v6411_v49  ;;  %v6434_v49 = vld [vmem:[#allocation2 + $0x448] sm:$0xff] }
  0x8e   : > { %1437 = vmatpush.bf16.msrb.mxu1 %v6403_v53  ;;  %v1639_v53 = vrot.slane %v1637_v27, 1 }
  0x8f   : > { %1601 = vmatpush.bf16.msrb.mxu3 %v6419_v54  ;;  %v1818_v54 = vpack.c.b16 %v1632_v32, %v1817_v30  ;;  %v6469_v32 = vld [vmem:[#allocation2 + $0x558] sm:$0xff] }
  0x90   : > { %1346 = vmatpush.bf16.msrb.mxu0 %v6394_v57  ;;  %v6441_v57 = vld [vmem:[#allocation2 + $0x480] sm:$0xff] }
  0x91   : > { %1522 = vmatpush.bf16.msrb.mxu2 %v6410_v58  ;;  %v6464_v58 = vld [vmem:[#allocation2 + $0x538] sm:$0xff] }
  0x92   : > { %1438 = vmatpush.bf16.msrb.mxu1 %v6402_v61  ;;  %v1733_v61 = vrot.slane %v1731_v47, 1  ;;  %v6467_v47 = vld [vmem:[#allocation2 + $0x548] sm:$0xff] }
  0x93   : > { %1602 = vmatpush.bf16.msrb.mxu3 %v6418_v62  ;;  %v1903_v62 = vpack.c.b16 %v1726_v36, %v1902_v48  ;;  %v6459_v36 = vld [vmem:[#allocation2 + $0x510] sm:$0xff]  ;;  %v6483_v48 = vld [vmem:[#allocation2 + $0x5c8] sm:$0xff] }
  0x94   : > { %1347 = vmatpush.bf16.msrb.mxu0 %v6393_v0  ;;  %v6449_v0 = vld [vmem:[#allocation2 + $0x4c0] sm:$0xff]  ;;  %v1734_v5 = vor.u32 %v1733_v61, %v1729_v60 }
  0x95   : > { %1523 = vmatpush.bf16.msrb.mxu2 %v6409_v1  ;;  %v1640_v1 = vor.u32 %v1639_v53, %v1635_v52  ;;  %v6457_v53 = vld [vmem:[#allocation2 + $0x500] sm:$0xff] }
  0x96   : > { %1439 = vmatpush.bf16.msrb.mxu1 %v6401_v6  ;;  %v1904_v6 = vrot.slane %v1903_v62, 1  ;;  %v6466_v61 = vld [vmem:[#allocation2 + $0x540] sm:$0xff] }
  0x97   : > { %1603 = vmatpush.bf16.msrb.mxu3 %v6417_v7  ;;  %1348 = vmatmul.bf16.vlgmr.msrb.gmra.mxu0 %v1290_v8  ;;  %v6463_v7 = vld [vmem:[#allocation2 + $0x530] sm:$0xff]  ;;  %v6482_v62 = vld [vmem:[#allocation2 + $0x5c0] sm:$0xff] }
  0x98   : > { %1690 = vmatpush.bf16.msra.mxu0 %v6432_v2  ;;  %1524 = vmatmul.bf16.vlgmr.msrb.gmra.mxu2 %v5122_v9  ;;  %v1819_v2 = vrot.slane %v1818_v54, 1  ;;  %v6480_v8 = vld [vmem:[#allocation2 + $0x5b0] sm:$0xff]  ;;  %v6474_v54 = vld [vmem:[#allocation2 + $0x580] sm:$0xff] }
  0x99   : > { %1869 = vmatpush.bf16.msra.mxu2 %v6448_v3  ;;  %1440 = vmatmul.bf16.vlgmr.msrb.gmra.mxu1 %v1382_v10  ;;  %v6473_v3 = vld [vmem:[#allocation2 + $0x578] sm:$0xff]  ;;  %v6472_v9 = vld [vmem:[#allocation2 + $0x570] sm:$0xff]  ;;  %v6479_v10 = vld [vmem:[#allocation2 + $0x5a8] sm:$0xff] }
  0x9a   : > { %1784 = vmatpush.bf16.msra.mxu1 %v6440_v51  ;;  %1604 = vmatmul.bf16.vlgmr.msrb.gmra.mxu3 %v5155_v11  ;;  %v6488_v51 = vld [vmem:[#allocation2 + $0x5f0] sm:$0xff]  ;;  %v6471_v11 = vld [vmem:[#allocation2 + $0x568] sm:$0xff] }
  0x9b   : > { %1954 = vmatpush.bf16.msra.mxu3 %v6456_v56  ;;  %v6462_v56 = vld [vmem:[#allocation2 + $0x528] sm:$0xff] }
  0x9c   : > { %1691 = vmatpush.bf16.msra.mxu0 %v6431_v12  ;;  %v6487_v12 = vld [vmem:[#allocation2 + $0x5e8] sm:$0xff] }
  0x9d   : > { %1870 = vmatpush.bf16.msra.mxu2 %v6447_v13  ;;  %v6461_v13 = vld [vmem:[#allocation2 + $0x520] sm:$0xff] }
  0x9e   : > { %1785 = vmatpush.bf16.msra.mxu1 %v6439_v14  ;;  %v6478_v14 = vld [vmem:[#allocation2 + $0x5a0] sm:$0xff] }
  0x9f   : > { %1955 = vmatpush.bf16.msra.mxu3 %v6455_v15  ;;  %v5322_v15 = vld [vmem:[%s6960_s17 + $0x28] sm:$0x3] }
  0xa0   : > { %1692 = vmatpush.bf16.msra.mxu0 %v6430_v16  ;;  %v6470_v16 = vld [vmem:[#allocation2 + $0x560] sm:$0xff]  ;;  %v1987_v23 = vunpack.c.l.b16 %v5322_v15 }
  0xa1   : > { %1871 = vmatpush.bf16.msra.mxu2 %v6446_v17  ;;  %v6502_v15 = vld [vmem:[#allocation2 + $0x660] sm:$0xff] }
  0xa2   : > { %1786 = vmatpush.bf16.msra.mxu1 %v6438_v18  ;;  %v6486_v18 = vld [vmem:[#allocation2 + $0x5e0] sm:$0xff] }
  0xa3   : > { %1956 = vmatpush.bf16.msra.mxu3 %v6454_v19  ;;  %v7020_v19 = vld [vmem:[%s6960_s17 + $0x30] sm:$0xff]  }
  0xa4   : > { %1693 = vmatpush.bf16.msra.mxu0 %v6429_v20  ;;  %v7023_v20 = vld [vmem:[%s6960_s17 + $0x38] sm:$0x1]  ;;  %v2244_v29 = vunpack.c.l.b16 %v7020_v19 }
  0xa5   : > { %1872 = vmatpush.bf16.msra.mxu2 %v6445_v22  ;;  %v2245_v31 = vunpack.c.l.b16 %v7023_v20  ;;  %v6528_v20 = vld [vmem:[#allocation2 + $0x730] sm:$0xff] }
  0xa6   : > { %1787 = vmatpush.bf16.msra.mxu1 %v6437_v25  ;;  %v6477_v25 = vld [vmem:[#allocation2 + $0x598] sm:$0xff] }
  0xa7   : > { %1957 = vmatpush.bf16.msra.mxu3 %v6453_v28  ;;  %v2246_v39 = vpack.c.b16 %v2245_v31, %v2244_v29  ;;  %v6493_v29 = vld [vmem:[#allocation2 + $0x618] sm:$0xff] }
  0xa8   : > { %1694 = vmatpush.bf16.msra.mxu0 %v6428_v33  ;;  %v6485_v33 = vld [vmem:[#allocation2 + $0x5d8] sm:$0xff] }
  0xa9   : > { %1873 = vmatpush.bf16.msra.mxu2 %v6444_v34  ;;  %v1988_v34 = vpack.c.b16 %v1987_v23, %v1817_v30  ;;  %v6458_v30 = vld [vmem:[#allocation2 + $0x508] sm:$0xff]  ;;  %v5557_v23 = vld [vmem:[%s6960_s17 + $0x38] sm:$0x3] }
  0xaa   : > { %1788 = vmatpush.bf16.msra.mxu1 %v6436_v37  ;;  %v6476_v37 = vld [vmem:[#allocation2 + $0x590] sm:$0xff] }
  0xab   : > { %1958 = vmatpush.bf16.msra.mxu3 %v6452_v38  ;;  %v1990_v44 = vshrl.u32 %v1988_v34, 16  ;;  %v1993_v21 = vshll.u32 %v1988_v34, 16  ;;  %v2600_v34 = vunpack.c.l.b16 %v5557_v23  ;;  %v5657_v23 = vld [vmem:[%s6960_s17 + $0x40] sm:$0xff]  }
  0xac   : > { %1695 = vmatpush.bf16.msra.mxu0 %v6427_v40 }
  0xad   : > { %1874 = vmatpush.bf16.msra.mxu2 %v6443_v41 }
  0xae   : > { %1789 = vmatpush.bf16.msra.mxu1 %v6435_v42  ;;  %v6484_v42 = vld [vmem:[#allocation2 + $0x5d0] sm:$0xff] }
  0xaf   : > { %1959 = vmatpush.bf16.msra.mxu3 %v6451_v43 }
  0xb0   : > { %1696 = vmatpush.bf16.msra.mxu0 %v6426_v45  ;;  %v6475_v45 = vld [vmem:[#allocation2 + $0x588] sm:$0xff] }
  0xb1   : > { %1875 = vmatpush.bf16.msra.mxu2 %v6442_v46  ;;  %v2250_v46 = vshll.u32 %v2246_v39, 16 }
  0xb2   : > { %1790 = vmatpush.bf16.msra.mxu1 %v6434_v49  ;;  %v1992_v49 = vrot.slane %v1990_v44, 1 }
  0xb3   : > { %1960 = vmatpush.bf16.msra.mxu3 %v6450_v50  ;;  %v1995_v50 = vrot.slane %v1993_v21, 2  ;;  %v6500_v21 = vld [vmem:[#allocation2 + $0x650] sm:$0xff] }
  0xb4   : > { %1697 = vmatpush.bf16.msra.mxu0 %v6425_v55  ;;  %v318_v17 = vpop.f32.mrf.mxu0  ;;  %v6497_v55 = vld [vmem:[#allocation2 + $0x638] sm:$0xff] }
  0xb5   : > { %1876 = vmatpush.bf16.msra.mxu2 %v6441_v57  ;;  %v6513_v57 = vld [vmem:[#allocation2 + $0x6b8] sm:$0xff] }
  0xb6   : > { %1791 = vmatpush.bf16.msra.mxu1 %v6433_v63  ;;  %v379_v22 = vpop.f32.mrf.mxu1  ;;  %v1996_v63 = vor.u32 %v1995_v50, %v1992_v49 }
  0xb7   : > { %1961 = vmatpush.bf16.msra.mxu3 %v6449_v0  ;;  %1698 = vmatmul.bf16.vlgmr.msra.gmra.mxu0 %v1640_v1  ;;  %v380_v28 = vadd.f32 %v379_v22, %v318_v17  ;;  %v5390_v0 = vld [vmem:[%s6960_s17 + $0x34] sm:$0xf]  ;;  %v6505_v1 = vld [vmem:[#allocation2 + $0x678] sm:$0xff]  ;;  %v6518_v17 = vld [vmem:[#allocation2 + $0x6e0] sm:$0xff] }
  0xb8   : > { %2046 = vmatpush.bf16.msrb.mxu0 %v6464_v58  ;;  %1877 = vmatmul.bf16.vlgmr.msra.gmra.mxu2 %v1819_v2  ;;  %v2248_v58 = vshrl.u32 %v2246_v39, 16  ;;  %v6521_v2 = vld [vmem:[#allocation2 + $0x6f8] sm:$0xff]  ;;  %v5491_v22 = vld [vmem:[%s6960_s17 + $0x30] sm:$0xe] }
  0xb9   : > { %2209 = vmatpush.bf16.msrb.mxu2 %v6481_v59  ;;  %1792 = vmatmul.bf16.vlgmr.msra.gmra.mxu1 %v1734_v5  ;;  %v2252_v59 = vrot.slane %v2250_v46, 1  ;;  %v6496_v5 = vld [vmem:[#allocation2 + $0x630] sm:$0xff] }
  0xba   : > { %2129 = vmatpush.bf16.msrb.mxu1 %v6473_v3  ;;  %1962 = vmatmul.bf16.vlgmr.msra.gmra.mxu3 %v1904_v6  ;;  %v6512_v6 = vld [vmem:[#allocation2 + $0x6b0] sm:$0xff] }
  0xbb   : > { %2303 = vmatpush.bf16.msrb.mxu3 %v6489_v4  ;;  %v472_v35 = vpop.f32.mrf.mxu2  ;;  %v2253_v3 = vor.u32 %v2252_v59, %v2248_v58  ;;  %v5357_v4 = vld [vmem:[%s6960_s17 + $0x30] sm:$0xf]  ;;  %v6490_v59 = vld [vmem:[#allocation2 + $0x600] sm:$0xff] }
  0xbc   : > { %2047 = vmatpush.bf16.msrb.mxu0 %v6463_v7  ;;  %v476_v38 = vadd.f32 %v472_v35, %v380_v28  ;;  %v320_v41 = vpop.f32.mrf.mxu0  ;;  %v6504_v7 = vld [vmem:[#allocation2 + $0x670] sm:$0xff]  ;;  %v6501_v35 = vld [vmem:[#allocation2 + $0x658] sm:$0xff] }
  0xbd   : > { %2210 = vmatpush.bf16.msrb.mxu2 %v6480_v8  ;;  %v566_v40 = vpop.f32.mrf.mxu3  ;;  %v6520_v8 = vld [vmem:[#allocation2 + $0x6f0] sm:$0xff] }
  0xbe   : > { %2130 = vmatpush.bf16.msrb.mxu1 %v6472_v9  ;;  %v7031_v43 = vadd.f32 %v566_v40, %v476_v38  ;;  %v381_v27 = vpop.f32.mrf.mxu1  ;;  %v6495_v9 = vld [vmem:[#allocation2 + $0x628] sm:$0xff]  ;;  %v6492_v40 = vld [vmem:[#allocation2 + $0x610] sm:$0xff] }
  0xbf   : > { %2304 = vmatpush.bf16.msrb.mxu3 %v6488_v51  ;;  %v6511_v51 = vld [vmem:[#allocation2 + $0x6a8] sm:$0xff]  ;;  %v6508_v41 = vld [vmem:[#allocation2 + $0x690] sm:$0xff] }
  0xc0   : > { %2048 = vmatpush.bf16.msrb.mxu0 %v6462_v56  ;;  %v6503_v56 = vld [vmem:[#allocation2 + $0x668] sm:$0xff]  ;;  %v6516_v27 = vld [vmem:[#allocation2 + $0x6d0] sm:$0xff] }
  0xc1   : > { %2211 = vmatpush.bf16.msrb.mxu2 %v6479_v10  ;;  %v6519_v10 = vld [vmem:[#allocation2 + $0x6e8] sm:$0xff] }
  0xc2   : > { %2131 = vmatpush.bf16.msrb.mxu1 %v6471_v11  ;;  %v6494_v11 = vld [vmem:[#allocation2 + $0x620] sm:$0xff] }
  0xc3   : > { %2305 = vmatpush.bf16.msrb.mxu3 %v6487_v12  ;;  %v474_v52 = vpop.f32.mrf.mxu2  ;;  %v6510_v12 = vld [vmem:[#allocation2 + $0x6a0] sm:$0xff] }
  0xc4   : > { %2049 = vmatpush.bf16.msrb.mxu0 %v6461_v13  ;;  %v6499_v52 = vld [vmem:[#allocation2 + $0x648] sm:$0xff] }
  0xc5   : > { %2212 = vmatpush.bf16.msrb.mxu2 %v6478_v14  ;;  %v568_v60 = vpop.f32.mrf.mxu3  ;;  %v5458_v14 = vld [vmem:[%s6960_s17 + $0x3c] sm:$0x1] }
  0xc6   : > { %2132 = vmatpush.bf16.msrb.mxu1 %v6470_v16  ;;  %v2339_v28 = vunpack.c.l.b16 %v5458_v14  ;;  %v6506_v60 = vld [vmem:[#allocation2 + $0x680] sm:$0xff]  ;;  %v6551_v14 = vld [vmem:[#allocation2 + $0x7e8] sm:$0xff] }
  0xc7   : > { %2306 = vmatpush.bf16.msrb.mxu3 %v6486_v18 }
  0xc8   : > { %2050 = vmatpush.bf16.msrb.mxu0 %v6460_v24 }
  0xc9   : > { %2213 = vmatpush.bf16.msrb.mxu2 %v6477_v25  ;;  %v2338_v25 = vunpack.c.h.b16 %v7020_v19 }
  0xca   : > { %2133 = vmatpush.bf16.msrb.mxu1 %v6469_v32  ;;  %v6509_v32 = vld [vmem:[#allocation2 + $0x698] sm:$0xff] }
  0xcb   : > { %2307 = vmatpush.bf16.msrb.mxu3 %v6485_v33  ;;  %v2430_v33 = vunpack.c.l.b16 %v5491_v22  ;;  %v2340_v39 = vpack.c.b16 %v2339_v28, %v2338_v25 }
  0xcc   : > { %2051 = vmatpush.bf16.msrb.mxu0 %v6459_v36  ;;  %v6517_v36 = vld [vmem:[#allocation2 + $0x6d8] sm:$0xff] }
  0xcd   : > { %2214 = vmatpush.bf16.msrb.mxu2 %v6476_v37  ;;  %v2601_v44 = vpack.c.b16 %v2600_v34, %v2430_v33 }
  0xce   : > { %2134 = vmatpush.bf16.msrb.mxu1 %v6468_v26  ;;  %v5524_v26 = vld [vmem:[%s6960_s17 + $0x34] sm:$0xe] }
  0xcf   : > { %2308 = vmatpush.bf16.msrb.mxu3 %v6484_v42  ;;  %v2515_v46 = vunpack.c.l.b16 %v5524_v26  ;;  %v2603_v49 = vshrl.u32 %v2601_v44, 16  ;;  %v2606_v50 = vshll.u32 %v2601_v44, 16 }
  0xd0   : > { %2052 = vmatpush.bf16.msrb.mxu0 %v6458_v30 }
  0xd1   : > { %2215 = vmatpush.bf16.msrb.mxu2 %v6475_v45  ;;  %v2344_v45 = vshll.u32 %v2340_v39, 16  ;;  %v2516_v58 = vpack.c.b16 %v2339_v28, %v2515_v46  ;;  %v6534_v28 = vld [vmem:[#allocation2 + $0x760] sm:$0xff]  ;;  %v6532_v46 = vld [vmem:[#allocation2 + $0x750] sm:$0xff] }
  0xd2   : > { %2135 = vmatpush.bf16.msrb.mxu1 %v6467_v47  ;;  %v6491_v47 = vld [vmem:[#allocation2 + $0x608] sm:$0xff] }
  0xd3   : > { %2309 = vmatpush.bf16.msrb.mxu3 %v6483_v48  ;;  %v6507_v48 = vld [vmem:[#allocation2 + $0x688] sm:$0xff] }
  0xd4   : > { %2053 = vmatpush.bf16.msrb.mxu0 %v6457_v53  ;;  %v651_v13 = vpop.f32.mrf.mxu0  ;;  %v6515_v53 = vld [vmem:[#allocation2 + $0x6c8] sm:$0xff] }
  0xd5   : > { %2216 = vmatpush.bf16.msrb.mxu2 %v6474_v54  ;;  %v655_v16 = vadd.f32 %v651_v13, %v7031_v43  ;;  %v6535_v13 = vld [vmem:[#allocation2 + $0x768] sm:$0xff] }
  0xd6   : > { %2136 = vmatpush.bf16.msrb.mxu1 %v6466_v61  ;;  %v736_v18 = vpop.f32.mrf.mxu1 }
  0xd7   : > { %2310 = vmatpush.bf16.msrb.mxu3 %v6482_v62  ;;  %2054 = vmatmul.bf16.vlgmr.msrb.gmra.mxu0 %v1996_v63  ;;  %v740_v24 = vadd.f32 %v736_v18, %v655_v16  ;;  %v6529_v62 = vld [vmem:[#allocation2 + $0x738] sm:$0xff]  ;;  %v6542_v18 = vld [vmem:[#allocation2 + $0x7a0] sm:$0xff] }
  0xd8   : > { %2397 = vmatpush.bf16.msra.mxu0 %v6497_v55  ;;  %2217 = vmatmul.bf16.vlgmr.msrb.gmra.mxu2 %v5390_v0  ;;  %v2342_v55 = vshrl.u32 %v2340_v39, 16  ;;  %v6545_v63 = vld [vmem:[#allocation2 + $0x7b8] sm:$0xff]  ;;  %v2431_v0 = vpack.c.b16 %v2245_v31, %v2430_v33  ;;  %v6544_v31 = vld [vmem:[#allocation2 + $0x7b0] sm:$0xff]  ;;  %v2858_v33 = vunpack.c.l.b16 %v5657_v23  ;;  %v2952_v39 = vunpack.c.h.b16 %v5657_v23  ;;  %v5791_v23 = vld [vmem:[%s6960_s17 + $0x48] sm:$0x3] }
  0xd9   : > { %2567 = vmatpush.bf16.msra.mxu2 %v6513_v57  ;;  %2137 = vmatmul.bf16.vlgmr.msrb.gmra.mxu1 %v5357_v4  ;;  %v2346_v57 = vrot.slane %v2344_v45, 1  ;;  %v6514_v4 = vld [vmem:[#allocation2 + $0x6c0] sm:$0xff] }
  0xda   : > { %2482 = vmatpush.bf16.msra.mxu1 %v6505_v1  ;;  %2311 = vmatmul.bf16.vlgmr.msrb.gmra.mxu3 %v2253_v3  ;;  %v2605_v1 = vrot.slane %v2603_v49, 1  ;;  %v6498_v3 = vld [vmem:[#allocation2 + $0x640] sm:$0xff]  ;;  %v6523_v49 = vld [vmem:[#allocation2 + $0x708] sm:$0xff] }
  0xdb   : > { %2659 = vmatpush.bf16.msra.mxu3 %v6521_v2  ;;  %v828_v37 = vpop.f32.mrf.mxu2  ;;  %v2608_v2 = vrot.slane %v2606_v50, 2  ;;  %v6539_v50 = vld [vmem:[#allocation2 + $0x788] sm:$0xff] }
  0xdc   : > { %2398 = vmatpush.bf16.msra.mxu0 %v6496_v5  ;;  %v832_v38 = vadd.f32 %v828_v37, %v740_v24  ;;  %v653_v42 = vpop.f32.mrf.mxu0  ;;  %v2347_v5 = vor.u32 %v2346_v57, %v2342_v55  ;;  %v7048_v24 = vld [vmem:[%s6960_s17 + $0x48] sm:$0x1] }
  0xdd   : > { %2568 = vmatpush.bf16.msra.mxu2 %v6512_v6  ;;  %v911_v19 = vpop.f32.mrf.mxu3  ;;  %v2517_v6 = vrot.slane %v2516_v58, 1  ;;  %v2859_v34 = vunpack.c.l.b16 %v7048_v24  ;;  %v6547_v55 = vld [vmem:[#allocation2 + $0x7c8] sm:$0xff]  ;;  %v6602_v24 = vld [vmem:[#allocation2 + $0x978] sm:$0xff] }
  0xde   : > { %2483 = vmatpush.bf16.msra.mxu1 %v6504_v7  ;;  %v7041_v43 = vadd.f32 %v911_v19, %v832_v38  ;;  %v738_v30 = vpop.f32.mrf.mxu1  ;;  %v6537_v7 = vld [vmem:[#allocation2 + $0x778] sm:$0xff] }
  0xdf   : > { %2660 = vmatpush.bf16.msra.mxu3 %v6520_v8  ;;  %v6553_v8 = vld [vmem:[#allocation2 + $0x7f8] sm:$0xff]  ;;  %v2860_v44 = vpack.c.b16 %v2859_v34, %v2858_v33 }
  0xe0   : > { %2399 = vmatpush.bf16.msra.mxu0 %v6495_v9  ;;  %v2432_v9 = vrot.slane %v2431_v0, 1  ;;  %v6549_v19 = vld [vmem:[#allocation2 + $0x7d8] sm:$0xff] }
  0xe1   : > { %2569 = vmatpush.bf16.msra.mxu2 %v6511_v51  ;;  %v2609_v51 = vor.u32 %v2608_v2, %v2605_v1  ;;  %v2862_v58 = vshrl.u32 %v2860_v44, 16  ;;  %v6530_v2 = vld [vmem:[#allocation2 + $0x740] sm:$0xff] }
  0xe2   : > { %2484 = vmatpush.bf16.msra.mxu1 %v6503_v56  ;;  %v6536_v56 = vld [vmem:[#allocation2 + $0x770] sm:$0xff] }
  0xe3   : > { %2661 = vmatpush.bf16.msra.mxu3 %v6519_v10  ;;  %v830_v54 = vpop.f32.mrf.mxu2  ;;  %v6552_v10 = vld [vmem:[#allocation2 + $0x7f0] sm:$0xff] }
  0xe4   : > { %2400 = vmatpush.bf16.msra.mxu0 %v6494_v11  ;;  %v6527_v11 = vld [vmem:[#allocation2 + $0x728] sm:$0xff] }
  0xe5   : > { %2570 = vmatpush.bf16.msra.mxu2 %v6510_v12  ;;  %v913_v61 = vpop.f32.mrf.mxu3  ;;  %v6543_v12 = vld [vmem:[#allocation2 + $0x7a8] sm:$0xff] }
  0xe6   : > { %2485 = vmatpush.bf16.msra.mxu1 %v6502_v15  ;;  %v6531_v54 = vld [vmem:[#allocation2 + $0x748] sm:$0xff]  ;;  %v6538_v61 = vld [vmem:[#allocation2 + $0x780] sm:$0xff] }
  0xe7   : > { %2662 = vmatpush.bf16.msra.mxu3 %v6518_v17  ;;  %v6526_v17 = vld [vmem:[#allocation2 + $0x720] sm:$0xff] }
  0xe8   : > { %2401 = vmatpush.bf16.msra.mxu0 %v6493_v29  ;;  %v6550_v29 = vld [vmem:[#allocation2 + $0x7e0] sm:$0xff] }
  0xe9   : > { %2571 = vmatpush.bf16.msra.mxu2 %v6509_v32  ;;  %v7051_v32 = vld [vmem:[%s6960_s17 + $0x4c] sm:$0x1] }
  0xea   : > { %2486 = vmatpush.bf16.msra.mxu1 %v6501_v35  ;;  %v6525_v35 = vld [vmem:[#allocation2 + $0x718] sm:$0xff] }
  0xeb   : > { %2663 = vmatpush.bf16.msra.mxu3 %v6517_v36  ;;  %v6541_v36 = vld [vmem:[#allocation2 + $0x798] sm:$0xff] }
  0xec   : > { %2402 = vmatpush.bf16.msra.mxu0 %v6492_v40  ;;  %v2953_v40 = vunpack.c.l.b16 %v7051_v32  ;;  %v6609_v32 = vld [vmem:[#allocation2 + $0x9b0] sm:$0xff] }
  0xed   : > { %2572 = vmatpush.bf16.msra.mxu2 %v6508_v41  ;;  %v6533_v41 = vld [vmem:[#allocation2 + $0x758] sm:$0xff] }
  0xee   : > { %2487 = vmatpush.bf16.msra.mxu1 %v6500_v21  ;;  %v6524_v21 = vld [vmem:[#allocation2 + $0x710] sm:$0xff]  ;;  %v2954_v45 = vpack.c.b16 %v2953_v40, %v2952_v39 }
  0xef   : > { %2664 = vmatpush.bf16.msra.mxu3 %v6516_v27  ;;  %v6540_v27 = vld [vmem:[#allocation2 + $0x790] sm:$0xff] }
  0xf0   : > { %2403 = vmatpush.bf16.msra.mxu0 %v6491_v47  ;;  %v6548_v47 = vld [vmem:[#allocation2 + $0x7d0] sm:$0xff]  ;;  %v2956_v0 = vshrl.u32 %v2954_v45, 16 }
  0xf1   : > { %2573 = vmatpush.bf16.msra.mxu2 %v6507_v48  ;;  %v2864_v48 = vshll.u32 %v2860_v44, 16 }
  0xf2   : > { %2488 = vmatpush.bf16.msra.mxu1 %v6499_v52 }
  0xf3   : > { %2665 = vmatpush.bf16.msra.mxu3 %v6515_v53  ;;  %v2958_v53 = vshll.u32 %v2954_v45, 16  ;;  %v6564_v45 = vld [vmem:[#allocation2 + $0x850] sm:$0xff] }
  0xf4   : > { %2404 = vmatpush.bf16.msra.mxu0 %v6490_v59  ;;  %v991_v15 = vpop.f32.mrf.mxu0  ;;  %v2866_v59 = vrot.slane %v2864_v48, 1 }
  0xf5   : > { %2574 = vmatpush.bf16.msra.mxu2 %v6506_v60  ;;  %v995_v16 = vadd.f32 %v991_v15, %v7041_v43  ;;  %v6522_v60 = vld [vmem:[#allocation2 + $0x700] sm:$0xff]  ;;  %v2960_v1 = vrot.slane %v2958_v53, 1 }
  0xf6   : > { %2489 = vmatpush.bf16.msra.mxu1 %v6498_v3  ;;  %v1085_v22 = vpop.f32.mrf.mxu1  ;;  %v6546_v3 = vld [vmem:[#allocation2 + $0x7c0] sm:$0xff] }
  0xf7   : > { %2666 = vmatpush.bf16.msra.mxu3 %v6514_v4  ;;  %2405 = vmatmul.bf16.vlgmr.msra.gmra.mxu0 %v2347_v5  ;;  %v1089_v25 = vadd.f32 %v1085_v22, %v995_v16  ;;  %v2867_v4 = vor.u32 %v2866_v59, %v2862_v58  ;;  %v5591_v5 = vld [vmem:[%s6960_s17 + $0x40] sm:$0xf] }
  0xf8   : > { %2743 = vmatpush.bf16.msrb.mxu0 %v6529_v62  ;;  %2575 = vmatmul.bf16.vlgmr.msra.gmra.mxu2 %v2517_v6  ;;  %v6561_v62 = vld [vmem:[#allocation2 + $0x838] sm:$0xff]  ;;  %v6558_v16 = vld [vmem:[#allocation2 + $0x820] sm:$0xff] }
  0xf9   : > { %2917 = vmatpush.bf16.msrb.mxu2 %v6545_v63  ;;  %2490 = vmatmul.bf16.vlgmr.msra.gmra.mxu1 %v2432_v9  ;;  %v6577_v63 = vld [vmem:[#allocation2 + $0x8b8] sm:$0xff]  ;;  %v5624_v9 = vld [vmem:[%s6960_s17 + $0x44] sm:$0xf]  ;;  %v5725_v22 = vld [vmem:[%s6960_s17 + $0x40] sm:$0xe] }
  0xfa   : > { %2823 = vmatpush.bf16.msrb.mxu1 %v6537_v7  ;;  %2667 = vmatmul.bf16.vlgmr.msra.gmra.mxu3 %v2609_v51  ;;  %v6569_v6 = vld [vmem:[#allocation2 + $0x878] sm:$0xff]  ;;  %v6560_v51 = vld [vmem:[#allocation2 + $0x830] sm:$0xff]  ;;  %v3044_v33 = vunpack.c.l.b16 %v5725_v22  ;;  %v6599_v22 = vld [vmem:[#allocation2 + $0x960] sm:$0xff] }
  0xfb   : > { %3011 = vmatpush.bf16.msrb.mxu3 %v6553_v8  ;;  %v1179_v37 = vpop.f32.mrf.mxu2  ;;  %v6586_v7 = vld [vmem:[#allocation2 + $0x8f8] sm:$0xff]  ;;  %v2961_v8 = vor.u32 %v2960_v1, %v2956_v0 }
  0xfc   : > { %2744 = vmatpush.bf16.msrb.mxu0 %v6528_v20  ;;  %v1183_v38 = vadd.f32 %v1179_v37, %v1089_v25  ;;  %v993_v42 = vpop.f32.mrf.mxu0  ;;  %v6576_v20 = vld [vmem:[#allocation2 + $0x8b0] sm:$0xff]  ;;  %v6573_v37 = vld [vmem:[#allocation2 + $0x898] sm:$0xff]  ;;  %v3045_v59 = vpack.c.b16 %v2859_v34, %v3044_v33 }
  0xfd   : > { %2918 = vmatpush.bf16.msrb.mxu2 %v6544_v31  ;;  %v1264_v26 = vpop.f32.mrf.mxu3  ;;  %v6568_v31 = vld [vmem:[#allocation2 + $0x870] sm:$0xff]  ;;  %v6594_v0 = vld [vmem:[#allocation2 + $0x938] sm:$0xff] }
  0xfe   : > { %2824 = vmatpush.bf16.msrb.mxu1 %v6536_v56  ;;  %v7055_v43 = vadd.f32 %v1264_v26, %v1183_v38  ;;  %v1087_v30 = vpop.f32.mrf.mxu1  ;;  %v6585_v56 = vld [vmem:[#allocation2 + $0x8f0] sm:$0xff]  ;;  %v6610_v1 = vld [vmem:[#allocation2 + $0x9b8] sm:$0xff] }
  0xff   : > { %3012 = vmatpush.bf16.msrb.mxu3 %v6552_v10  ;;  %v6559_v10 = vld [vmem:[#allocation2 + $0x828] sm:$0xff]  ;;  %v6618_v34 = vld [vmem:[#allocation2 + $0x9f8] sm:$0xff] }
 0x100   : > { %2745 = vmatpush.bf16.msrb.mxu0 %v6527_v11  ;;  %v6575_v11 = vld [vmem:[#allocation2 + $0x8a8] sm:$0xff] }
 0x101   : > { %2919 = vmatpush.bf16.msrb.mxu2 %v6543_v12  ;;  %v6567_v12 = vld [vmem:[#allocation2 + $0x868] sm:$0xff] }
 0x102   : > { %2825 = vmatpush.bf16.msrb.mxu1 %v6535_v13  ;;  %v6584_v13 = vld [vmem:[#allocation2 + $0x8e8] sm:$0xff] }
 0x103   : > { %3013 = vmatpush.bf16.msrb.mxu3 %v6551_v14  ;;  %v1181_v52 = vpop.f32.mrf.mxu2 }
 0x104   : > { %2746 = vmatpush.bf16.msrb.mxu0 %v6526_v17  ;;  %v6574_v17 = vld [vmem:[#allocation2 + $0x8a0] sm:$0xff]  ;;  %v6571_v52 = vld [vmem:[#allocation2 + $0x888] sm:$0xff] }
 0x105   : > { %2920 = vmatpush.bf16.msrb.mxu2 %v6542_v18  ;;  %v1266_v57 = vpop.f32.mrf.mxu3 }
 0x106   : > { %2826 = vmatpush.bf16.msrb.mxu1 %v6534_v28  ;;  %v6566_v28 = vld [vmem:[#allocation2 + $0x860] sm:$0xff]  ;;  %v6580_v57 = vld [vmem:[#allocation2 + $0x8c8] sm:$0xff] }
 0x107   : > { %3014 = vmatpush.bf16.msrb.mxu3 %v6550_v29  ;;  %v6583_v29 = vld [vmem:[#allocation2 + $0x8e0] sm:$0xff] }
 0x108   : > { %2747 = vmatpush.bf16.msrb.mxu0 %v6525_v35  ;;  %v3214_v35 = vunpack.c.l.b16 %v5791_v23  ;;  %v6615_v23 = vld [vmem:[#allocation2 + $0x9e0] sm:$0xff] }
 0x109   : > { %2921 = vmatpush.bf16.msrb.mxu2 %v6541_v36  ;;  %v6557_v36 = vld [vmem:[#allocation2 + $0x818] sm:$0xff] }
 0x10a   : > { %2827 = vmatpush.bf16.msrb.mxu1 %v6533_v41  ;;  %v6565_v41 = vld [vmem:[#allocation2 + $0x858] sm:$0xff]  ;;  %v3215_v44 = vpack.c.b16 %v3214_v35, %v3044_v33 }
 0x10b   : > { %3015 = vmatpush.bf16.msrb.mxu3 %v6549_v19  ;;  %v6582_v19 = vld [vmem:[#allocation2 + $0x8d8] sm:$0xff] }
 0x10c   : > { %2748 = vmatpush.bf16.msrb.mxu0 %v6524_v21  ;;  %v6556_v21 = vld [vmem:[#allocation2 + $0x810] sm:$0xff]  ;;  %v3217_v48 = vshrl.u32 %v3215_v44, 16  ;;  %v6590_v33 = vld [vmem:[#allocation2 + $0x918] sm:$0xff] }
 0x10d   : > { %2922 = vmatpush.bf16.msrb.mxu2 %v6540_v27  ;;  %v6572_v27 = vld [vmem:[#allocation2 + $0x890] sm:$0xff]  ;;  %v6606_v35 = vld [vmem:[#allocation2 + $0x998] sm:$0xff] }
 0x10e   : > { %2828 = vmatpush.bf16.msrb.mxu1 %v6532_v46  ;;  %v6581_v46 = vld [vmem:[#allocation2 + $0x8d0] sm:$0xff] }
 0x10f   : > { %3016 = vmatpush.bf16.msrb.mxu3 %v6548_v47  ;;  %v5758_v47 = vld [vmem:[%s6960_s17 + $0x44] sm:$0xe] }
 0x110   : > { %2749 = vmatpush.bf16.msrb.mxu0 %v6523_v49  ;;  %v3220_v49 = vshll.u32 %v3215_v44, 16 }
 0x111   : > { %2923 = vmatpush.bf16.msrb.mxu2 %v6539_v50  ;;  %v6555_v50 = vld [vmem:[#allocation2 + $0x808] sm:$0xff] }
 0x112   : > { %2829 = vmatpush.bf16.msrb.mxu1 %v6531_v54  ;;  %v3129_v54 = vunpack.c.l.b16 %v5758_v47  ;;  %v6613_v47 = vld [vmem:[#allocation2 + $0x9d0] sm:$0xff] }
 0x113   : > { %3017 = vmatpush.bf16.msrb.mxu3 %v6547_v55  ;;  %v6563_v55 = vld [vmem:[#allocation2 + $0x848] sm:$0xff] }
 0x114   : > { %2750 = vmatpush.bf16.msrb.mxu0 %v6522_v60  ;;  %v1349_v14 = vpop.f32.mrf.mxu0  ;;  %v3219_v60 = vrot.slane %v3217_v48, 1  ;;  %v7086_v48 = vld [vmem:[%s6960_s17 + $0x50] sm:$0xe] }
 0x115   : > { %2924 = vmatpush.bf16.msrb.mxu2 %v6538_v61  ;;  %v1353_v15 = vadd.f32 %v1349_v14, %v7055_v43  ;;  %v3222_v61 = vrot.slane %v3220_v49, 2  ;;  %v6607_v14 = vld [vmem:[#allocation2 + $0x9a0] sm:$0xff] }
 0x116   : > { %2830 = vmatpush.bf16.msrb.mxu1 %v6530_v2  ;;  %v1441_v18 = vpop.f32.mrf.mxu1  ;;  %v3130_v2 = vpack.c.b16 %v2953_v40, %v3129_v54  ;;  %v6601_v40 = vld [vmem:[#allocation2 + $0x970] sm:$0xff] }
 0x117   : > { %3018 = vmatpush.bf16.msrb.mxu3 %v6546_v3  ;;  %2751 = vmatmul.bf16.vlgmr.msrb.gmra.mxu0 %v5591_v5  ;;  %v1445_v25 = vadd.f32 %v1441_v18, %v1353_v15  ;;  %v6562_v3 = vld [vmem:[#allocation2 + $0x840] sm:$0xff]  ;;  %v3046_v5 = vrot.slane %v3045_v59, 1 }
 0x118   : > { %3096 = vmatpush.bf16.msra.mxu0 %v6561_v62  ;;  %2925 = vmatmul.bf16.vlgmr.msrb.gmra.mxu2 %v2867_v4  ;;  %v6554_v62 = vld [vmem:[#allocation2 + $0x800] sm:$0xff] }
 0x119   : > { %3273 = vmatpush.bf16.msra.mxu2 %v6577_v63  ;;  %2831 = vmatmul.bf16.vlgmr.msrb.gmra.mxu1 %v5624_v9  ;;  %v6570_v63 = vld [vmem:[#allocation2 + $0x880] sm:$0xff]  ;;  %v6593_v9 = vld [vmem:[#allocation2 + $0x930] sm:$0xff] }
 0x11a   : > { %3181 = vmatpush.bf16.msra.mxu1 %v6569_v6  ;;  %3019 = vmatmul.bf16.vlgmr.msrb.gmra.mxu3 %v2961_v8  ;;  %v6579_v4 = vld [vmem:[#allocation2 + $0x8c0] sm:$0xff]  ;;  %v3223_v6 = vor.u32 %v3222_v61, %v3219_v60  ;;  %v5826_v8 = vld [vmem:[%s6960_s17 + $0x50] sm:$0xf] }
 0x11b   : > { %3356 = vmatpush.bf16.msra.mxu3 %v6586_v7  ;;  %v1525_v38 = vpop.f32.mrf.mxu2  ;;  %v3131_v7 = vrot.slane %v3130_v2, 1 }
 0x11c   : > { %3097 = vmatpush.bf16.msra.mxu0 %v6560_v51  ;;  %v1529_v39 = vadd.f32 %v1525_v38, %v1445_v25  ;;  %v1351_v42 = vpop.f32.mrf.mxu0  ;;  %v6617_v51 = vld [vmem:[#allocation2 + $0x9f0] sm:$0xff]  ;;  %v5893_v25 = vld [vmem:[%s6960_s17 + $0x58] sm:$0x1] }
 0x11d   : > { %3274 = vmatpush.bf16.msra.mxu2 %v6576_v20  ;;  %v1605_v26 = vpop.f32.mrf.mxu3  ;;  %v6592_v20 = vld [vmem:[#allocation2 + $0x928] sm:$0xff] }
 0x11e   : > { %3182 = vmatpush.bf16.msra.mxu1 %v6568_v31  ;;  %v7066_v43 = vadd.f32 %v1605_v26, %v1529_v39  ;;  %v1443_v30 = vpop.f32.mrf.mxu1  ;;  %v6608_v31 = vld [vmem:[#allocation2 + $0x9a8] sm:$0xff]  ;;  %v3472_v39 = vunpack.c.l.b16 %v5893_v25  ;;  %v6647_v25 = vld [vmem:[#allocation2 + $0xae0] sm:$0xff] }
 0x11f   : > { %3357 = vmatpush.bf16.msra.mxu3 %v6585_v56  ;;  %v6600_v56 = vld [vmem:[#allocation2 + $0x968] sm:$0xff] }
 0x120   : > { %3098 = vmatpush.bf16.msra.mxu0 %v6559_v10  ;;  %v6616_v10 = vld [vmem:[#allocation2 + $0x9e8] sm:$0xff] }
 0x121   : > { %3275 = vmatpush.bf16.msra.mxu2 %v6575_v11 }
 0x122   : > { %3183 = vmatpush.bf16.msra.mxu1 %v6567_v12 }
 0x123   : > { %3358 = vmatpush.bf16.msra.mxu3 %v6584_v13  ;;  %v1527_v53 = vpop.f32.mrf.mxu2  ;;  %v6591_v13 = vld [vmem:[#allocation2 + $0x920] sm:$0xff] }
 0x124   : > { %3099 = vmatpush.bf16.msra.mxu0 %v6558_v16  ;;  %v5926_v16 = vld [vmem:[%s6960_s17 + $0x50] sm:$0xff]  }
 0x125   : > { %3276 = vmatpush.bf16.msra.mxu2 %v6574_v17  ;;  %v1607_v58 = vpop.f32.mrf.mxu3  ;;  %v7077_v17 = vld [vmem:[%s6960_s17 + $0x5c] sm:$0x1]  ;;  %v3471_v38 = vunpack.c.l.b16 %v5926_v16 }
 0x126   : > { %3184 = vmatpush.bf16.msra.mxu1 %v6566_v28  ;;  %v3565_v28 = vunpack.c.h.b16 %v5926_v16  ;;  %v6612_v58 = vld [vmem:[#allocation2 + $0x9c8] sm:$0xff]  ;;  %v6639_v16 = vld [vmem:[#allocation2 + $0xaa0] sm:$0xff] }
 0x127   : > { %3359 = vmatpush.bf16.msra.mxu3 %v6583_v29  ;;  %v3566_v29 = vunpack.c.l.b16 %v7077_v17  ;;  %v6666_v17 = vld [vmem:[#allocation2 + $0xb78] sm:$0xff] }
 0x128   : > { %3100 = vmatpush.bf16.msra.mxu0 %v6557_v36 }
 0x129   : > { %3277 = vmatpush.bf16.msra.mxu2 %v6573_v37  ;;  %v3567_v44 = vpack.c.b16 %v3566_v29, %v3565_v28  ;;  %v6026_v28 = vld [vmem:[%s6960_s17 + $0x58] sm:$0x3] }
 0x12a   : > { %3185 = vmatpush.bf16.msra.mxu1 %v6565_v41  ;;  %v6598_v41 = vld [vmem:[#allocation2 + $0x958] sm:$0xff] }
 0x12b   : > { %3360 = vmatpush.bf16.msra.mxu3 %v6582_v19  ;;  %v6614_v19 = vld [vmem:[#allocation2 + $0x9d8] sm:$0xff]  ;;  %v3571_v49 = vshll.u32 %v3567_v44, 16  ;;  %v3569_v60 = vshrl.u32 %v3567_v44, 16  ;;  %v6637_v44 = vld [vmem:[#allocation2 + $0xa90] sm:$0xff] }
 0x12c   : > { %3101 = vmatpush.bf16.msra.mxu0 %v6556_v21  ;;  %v6589_v21 = vld [vmem:[#allocation2 + $0x910] sm:$0xff] }
 0x12d   : > { %3278 = vmatpush.bf16.msra.mxu2 %v6572_v27  ;;  %v6605_v27 = vld [vmem:[#allocation2 + $0x990] sm:$0xff]  ;;  %v3573_v61 = vrot.slane %v3571_v49, 1  ;;  %v6620_v49 = vld [vmem:[#allocation2 + $0xa08] sm:$0xff] }
 0x12e   : > { %3186 = vmatpush.bf16.msra.mxu1 %v6564_v45  ;;  %v3473_v45 = vpack.c.b16 %v3472_v39, %v3471_v38  ;;  %v3827_v38 = vunpack.c.l.b16 %v6026_v28  ;;  %v6670_v28 = vld [vmem:[#allocation2 + $0xb98] sm:$0xff] }
 0x12f   : > { %3361 = vmatpush.bf16.msra.mxu3 %v6581_v46  ;;  %v6597_v46 = vld [vmem:[#allocation2 + $0x950] sm:$0xff] }
 0x130   : > { %3102 = vmatpush.bf16.msra.mxu0 %v6555_v50  ;;  %v6588_v50 = vld [vmem:[#allocation2 + $0x908] sm:$0xff]  ;;  %v3477_v54 = vshll.u32 %v3473_v45, 16  ;;  %v3475_v2 = vshrl.u32 %v3473_v45, 16  ;;  %v6629_v45 = vld [vmem:[#allocation2 + $0xa50] sm:$0xff] }
 0x131   : > { %3279 = vmatpush.bf16.msra.mxu2 %v6571_v52  ;;  %v6604_v52 = vld [vmem:[#allocation2 + $0x988] sm:$0xff] }
 0x132   : > { %3187 = vmatpush.bf16.msra.mxu1 %v6563_v55  ;;  %v3657_v55 = vunpack.c.l.b16 %v7086_v48 }
 0x133   : > { %3362 = vmatpush.bf16.msra.mxu3 %v6580_v57  ;;  %v6596_v57 = vld [vmem:[#allocation2 + $0x948] sm:$0xff] }
 0x134   : > { %3103 = vmatpush.bf16.msra.mxu0 %v6554_v62  ;;  %v1699_v11 = vpop.f32.mrf.mxu0  ;;  %v6587_v62 = vld [vmem:[#allocation2 + $0x900] sm:$0xff] }
 0x135   : > { %3280 = vmatpush.bf16.msra.mxu2 %v6570_v63  ;;  %v1703_v12 = vadd.f32 %v1699_v11, %v7066_v43  ;;  %v6603_v63 = vld [vmem:[#allocation2 + $0x980] sm:$0xff]  ;;  %v6632_v11 = vld [vmem:[#allocation2 + $0xa68] sm:$0xff] }
 0x136   : > { %3188 = vmatpush.bf16.msra.mxu1 %v6562_v3  ;;  %v1793_v15 = vpop.f32.mrf.mxu1  ;;  %v3479_v3 = vrot.slane %v3477_v54, 1 }
 0x137   : > { %3363 = vmatpush.bf16.msra.mxu3 %v6579_v4  ;;  %3104 = vmatmul.bf16.vlgmr.msra.gmra.mxu0 %v3046_v5  ;;  %v1797_v18 = vadd.f32 %v1793_v15, %v1703_v12  ;;  %v3658_v4 = vpack.c.b16 %v3472_v39, %v3657_v55  ;;  %v6595_v5 = vld [vmem:[#allocation2 + $0x940] sm:$0xff]  ;;  %v6648_v12 = vld [vmem:[#allocation2 + $0xae8] sm:$0xff]  ;;  %v6630_v39 = vld [vmem:[#allocation2 + $0xa58] sm:$0xff] }
 0x138   : > { %3436 = vmatpush.bf16.msrb.mxu0 %v6594_v0  ;;  %3281 = vmatmul.bf16.vlgmr.msra.gmra.mxu2 %v3223_v6  ;;  %v6626_v0 = vld [vmem:[#allocation2 + $0xa38] sm:$0xff]  ;;  %v6611_v6 = vld [vmem:[#allocation2 + $0x9c0] sm:$0xff] }
 0x139   : > { %3624 = vmatpush.bf16.msrb.mxu2 %v6610_v1  ;;  %3189 = vmatmul.bf16.vlgmr.msra.gmra.mxu1 %v3131_v7  ;;  %v6642_v1 = vld [vmem:[#allocation2 + $0xab8] sm:$0xff]  ;;  %v6623_v15 = vld [vmem:[#allocation2 + $0xa20] sm:$0xff] }
 0x13a   : > { %3530 = vmatpush.bf16.msrb.mxu1 %v6602_v24  ;;  %3364 = vmatmul.bf16.vlgmr.msra.gmra.mxu3 %v5826_v8  ;;  %v3574_v24 = vor.u32 %v3573_v61, %v3569_v60  ;;  %v6634_v7 = vld [vmem:[#allocation2 + $0xa78] sm:$0xff]  ;;  %v6635_v60 = vld [vmem:[#allocation2 + $0xa80] sm:$0xff] }
 0x13b   : > { %3709 = vmatpush.bf16.msrb.mxu3 %v6618_v34  ;;  %v1878_v36 = vpop.f32.mrf.mxu2  ;;  %v5859_v34 = vld [vmem:[%s6960_s17 + $0x54] sm:$0xf]  ;;  %v6650_v8 = vld [vmem:[#allocation2 + $0xaf8] sm:$0xff] }
 0x13c   : > { %3437 = vmatpush.bf16.msrb.mxu0 %v6593_v9  ;;  %v1882_v37 = vadd.f32 %v1878_v36, %v1797_v18  ;;  %v1701_v42 = vpop.f32.mrf.mxu0  ;;  %v3480_v9 = vor.u32 %v3479_v3, %v3475_v2  ;;  %v6658_v61 = vld [vmem:[#allocation2 + $0xb38] sm:$0xff]  ;;  %v6643_v2 = vld [vmem:[#allocation2 + $0xac0] sm:$0xff] }
 0x13d   : > { %3625 = vmatpush.bf16.msrb.mxu2 %v6609_v32  ;;  %v1963_v26 = vpop.f32.mrf.mxu3  ;;  %v3659_v32 = vrot.slane %v3658_v4, 1  ;;  %v6060_v4 = vld [vmem:[%s6960_s17 + $0x60] sm:$0xf] }
 0x13e   : > { %3531 = vmatpush.bf16.msrb.mxu1 %v6601_v40  ;;  %v7081_v43 = vadd.f32 %v1963_v26, %v1882_v37  ;;  %v1795_v30 = vpop.f32.mrf.mxu1  ;;  %v6625_v40 = vld [vmem:[#allocation2 + $0xa30] sm:$0xff] }
 0x13f   : > { %3710 = vmatpush.bf16.msrb.mxu3 %v6617_v51  ;;  %v6641_v51 = vld [vmem:[#allocation2 + $0xab0] sm:$0xff]  ;;  %v3828_v30 = vpack.c.b16 %v3827_v38, %v3657_v55  ;;  %v6619_v55 = vld [vmem:[#allocation2 + $0xa00] sm:$0xff]  ;;  %v6662_v38 = vld [vmem:[#allocation2 + $0xb58] sm:$0xff] }
 0x140   : > { %3438 = vmatpush.bf16.msrb.mxu0 %v6592_v20  ;;  %v6633_v20 = vld [vmem:[#allocation2 + $0xa70] sm:$0xff] }
 0x141   : > { %3626 = vmatpush.bf16.msrb.mxu2 %v6608_v31  ;;  %v6649_v31 = vld [vmem:[#allocation2 + $0xaf0] sm:$0xff]  ;;  %v3833_v54 = vshll.u32 %v3828_v30, 16 }
 0x142   : > { %3532 = vmatpush.bf16.msrb.mxu1 %v6600_v56  ;;  %v6624_v56 = vld [vmem:[#allocation2 + $0xa28] sm:$0xff] }
 0x143   : > { %3711 = vmatpush.bf16.msrb.mxu3 %v6616_v10  ;;  %v1880_v53 = vpop.f32.mrf.mxu2  ;;  %v6640_v10 = vld [vmem:[#allocation2 + $0xaa8] sm:$0xff] }
 0x144   : > { %3439 = vmatpush.bf16.msrb.mxu0 %v6591_v13  ;;  %v3830_v53 = vshrl.u32 %v3828_v30, 16 }
 0x145   : > { %3627 = vmatpush.bf16.msrb.mxu2 %v6607_v14  ;;  %v1965_v59 = vpop.f32.mrf.mxu3 }
 0x146   : > { %3533 = vmatpush.bf16.msrb.mxu1 %v6599_v22 }
 0x147   : > { %3712 = vmatpush.bf16.msrb.mxu3 %v6615_v23  ;;  %v6631_v23 = vld [vmem:[#allocation2 + $0xa60] sm:$0xff] }
 0x148   : > { %3440 = vmatpush.bf16.msrb.mxu0 %v6590_v33  ;;  %v6622_v33 = vld [vmem:[#allocation2 + $0xa18] sm:$0xff] }
 0x149   : > { %3628 = vmatpush.bf16.msrb.mxu2 %v6606_v35  ;;  %v6638_v35 = vld [vmem:[#allocation2 + $0xa98] sm:$0xff] }
 0x14a   : > { %3534 = vmatpush.bf16.msrb.mxu1 %v6598_v41  ;;  %v6646_v41 = vld [vmem:[#allocation2 + $0xad8] sm:$0xff] }
 0x14b   : > { %3713 = vmatpush.bf16.msrb.mxu3 %v6614_v19 }
 0x14c   : > { %3441 = vmatpush.bf16.msrb.mxu0 %v6589_v21  ;;  %v5993_v21 = vld [vmem:[%s6960_s17 + $0x54] sm:$0xe] }
 0x14d   : > { %3629 = vmatpush.bf16.msrb.mxu2 %v6605_v27 }
 0x14e   : > { %3535 = vmatpush.bf16.msrb.mxu1 %v6597_v46  ;;  %v6645_v46 = vld [vmem:[#allocation2 + $0xad0] sm:$0xff] }
 0x14f   : > { %3714 = vmatpush.bf16.msrb.mxu3 %v6613_v47  ;;  %v3742_v47 = vunpack.c.l.b16 %v5993_v21  ;;  %v7108_v21 = vld [vmem:[%s6960_s17 + $0x60] sm:$0xe] }
 0x150   : > { %3442 = vmatpush.bf16.msrb.mxu0 %v6588_v50  ;;  %v6636_v50 = vld [vmem:[#allocation2 + $0xa88] sm:$0xff] }
 0x151   : > { %3630 = vmatpush.bf16.msrb.mxu2 %v6604_v52  ;;  %v3743_v48 = vpack.c.b16 %v3566_v29, %v3742_v47  ;;  %v6682_v29 = vld [vmem:[#allocation2 + $0xbf8] sm:$0xff]  ;;  %v6227_v47 = vld [vmem:[%s6960_s17 + $0x64] sm:$0xe] }
 0x152   : > { %3536 = vmatpush.bf16.msrb.mxu1 %v6596_v57  ;;  %v6628_v57 = vld [vmem:[#allocation2 + $0xa48] sm:$0xff] }
 0x153   : > { %3715 = vmatpush.bf16.msrb.mxu3 %v6612_v58  ;;  %v6644_v58 = vld [vmem:[#allocation2 + $0xac8] sm:$0xff]  ;;  %v3744_v3 = vrot.slane %v3743_v48, 1 }
 0x154   : > { %3443 = vmatpush.bf16.msrb.mxu0 %v6587_v62  ;;  %v2055_v13 = vpop.f32.mrf.mxu0  ;;  %v6674_v62 = vld [vmem:[#allocation2 + $0xbb8] sm:$0xff]  ;;  %v6676_v48 = vld [vmem:[#allocation2 + $0xbc8] sm:$0xff] }
 0x155   : > { %3631 = vmatpush.bf16.msrb.mxu2 %v6603_v63  ;;  %v2059_v14 = vadd.f32 %v2055_v13, %v7081_v43  ;;  %v6621_v43 = vld [vmem:[#allocation2 + $0xa10] sm:$0xff]  ;;  %v3832_v63 = vrot.slane %v3830_v53, 1  ;;  %v6127_v13 = vld [vmem:[%s6960_s17 + $0x68] sm:$0x1] }
 0x156   : > { %3537 = vmatpush.bf16.msrb.mxu1 %v6595_v5  ;;  %v2138_v18 = vpop.f32.mrf.mxu1  ;;  %v6668_v53 = vld [vmem:[#allocation2 + $0xb88] sm:$0xff] }
 0x157   : > { %3716 = vmatpush.bf16.msrb.mxu3 %v6611_v6  ;;  %3444 = vmatmul.bf16.vlgmr.msrb.gmra.mxu0 %v5859_v34  ;;  %v2142_v22 = vadd.f32 %v2138_v18, %v2059_v14  ;;  %v6093_v6 = vld [vmem:[%s6960_s17 + $0x64] sm:$0xf]  ;;  %v6673_v34 = vld [vmem:[#allocation2 + $0xbb0] sm:$0xff]  ;;  %v6161_v18 = vld [vmem:[%s6960_s17 + $0x6c] sm:$0x1] }
 0x158   : > { %3794 = vmatpush.bf16.msra.mxu0 %v6626_v0  ;;  %3632 = vmatmul.bf16.vlgmr.msrb.gmra.mxu2 %v3574_v24  ;;  %v3835_v0 = vrot.slane %v3833_v54, 2  ;;  %v6657_v24 = vld [vmem:[#allocation2 + $0xb30] sm:$0xff] }
 0x159   : > { %3970 = vmatpush.bf16.msra.mxu2 %v6642_v1  ;;  %3538 = vmatmul.bf16.vlgmr.msrb.gmra.mxu1 %v3480_v9  ;;  %v6627_v1 = vld [vmem:[#allocation2 + $0xa40] sm:$0xff]  ;;  %v6656_v9 = vld [vmem:[#allocation2 + $0xb28] sm:$0xff] }
 0x15a   : > { %3886 = vmatpush.bf16.msra.mxu1 %v6634_v7  ;;  %3717 = vmatmul.bf16.vlgmr.msrb.gmra.mxu3 %v3659_v32  ;;  %v3836_v5 = vor.u32 %v3835_v0, %v3832_v63  ;;  %v6665_v7 = vld [vmem:[#allocation2 + $0xb70] sm:$0xff]  ;;  %v6672_v32 = vld [vmem:[#allocation2 + $0xba8] sm:$0xff]  ;;  %v6651_v63 = vld [vmem:[#allocation2 + $0xb00] sm:$0xff] }
 0x15b   : > { %4050 = vmatpush.bf16.msra.mxu3 %v6650_v8  ;;  %v2218_v36 = vpop.f32.mrf.mxu2  ;;  %v6681_v8 = vld [vmem:[#allocation2 + $0xbf0] sm:$0xff]  ;;  %v6667_v0 = vld [vmem:[#allocation2 + $0xb80] sm:$0xff] }
 0x15c   : > { %3795 = vmatpush.bf16.msra.mxu0 %v6625_v40  ;;  %v2222_v37 = vadd.f32 %v2218_v36, %v2142_v22  ;;  %v2057_v26 = vpop.f32.mrf.mxu0  ;;  %v6664_v40 = vld [vmem:[#allocation2 + $0xb68] sm:$0xff] }
 0x15d   : > { %3971 = vmatpush.bf16.msra.mxu2 %v6641_v51  ;;  %v2312_v19 = vpop.f32.mrf.mxu3  ;;  %v6680_v51 = vld [vmem:[#allocation2 + $0xbe8] sm:$0xff] }
 0x15e   : > { %3887 = vmatpush.bf16.msra.mxu1 %v6633_v20  ;;  %v7094_v42 = vadd.f32 %v2312_v19, %v2222_v37  ;;  %v2140_v27 = vpop.f32.mrf.mxu1  ;;  %v4180_v37 = vunpack.c.l.b16 %v6161_v18  ;;  %v6685_v18 = vld [vmem:[#allocation2 + $0xc10] sm:$0xff] }
 0x15f   : > { %4051 = vmatpush.bf16.msra.mxu3 %v6649_v31 }
 0x160   : > { %3796 = vmatpush.bf16.msra.mxu0 %v6624_v56  ;;  %v6655_v56 = vld [vmem:[#allocation2 + $0xb20] sm:$0xff] }
 0x161   : > { %3972 = vmatpush.bf16.msra.mxu2 %v6640_v10  ;;  %v6671_v10 = vld [vmem:[#allocation2 + $0xba0] sm:$0xff] }
 0x162   : > { %3888 = vmatpush.bf16.msra.mxu1 %v6632_v11 }
 0x163   : > { %4052 = vmatpush.bf16.msra.mxu3 %v6648_v12  ;;  %v2220_v52 = vpop.f32.mrf.mxu2  ;;  %v6126_v12 = vld [vmem:[%s6960_s17 + $0x60] sm:$0xff]  }
 0x164   : > { %3797 = vmatpush.bf16.msra.mxu0 %v6623_v15  ;;  %v6663_v15 = vld [vmem:[#allocation2 + $0xb60] sm:$0xff]  ;;  %v4085_v22 = vunpack.c.l.b16 %v6126_v12  ;;  %v4179_v36 = vunpack.c.h.b16 %v6126_v12  ;;  %v6652_v52 = vld [vmem:[#allocation2 + $0xb08] sm:$0xff] }
 0x165   : > { %3973 = vmatpush.bf16.msra.mxu2 %v6639_v16  ;;  %v2314_v59 = vpop.f32.mrf.mxu3  ;;  %v6679_v16 = vld [vmem:[#allocation2 + $0xbe0] sm:$0xff] }
 0x166   : > { %3889 = vmatpush.bf16.msra.mxu1 %v6631_v23  ;;  %v4086_v23 = vunpack.c.l.b16 %v6127_v13  ;;  %v4181_v30 = vpack.c.b16 %v4180_v37, %v4179_v36  ;;  %v6660_v59 = vld [vmem:[#allocation2 + $0xb48] sm:$0xff] }
 0x167   : > { %4053 = vmatpush.bf16.msra.mxu3 %v6647_v25  ;;  %v6654_v25 = vld [vmem:[#allocation2 + $0xb18] sm:$0xff] }
 0x168   : > { %3798 = vmatpush.bf16.msra.mxu0 %v6622_v33 }
 0x169   : > { %3974 = vmatpush.bf16.msra.mxu2 %v6638_v35 }
 0x16a   : > { %3890 = vmatpush.bf16.msra.mxu1 %v6630_v39  ;;  %v6678_v39 = vld [vmem:[#allocation2 + $0xbd8] sm:$0xff] }
 0x16b   : > { %4054 = vmatpush.bf16.msra.mxu3 %v6646_v41 }
 0x16c   : > { %3799 = vmatpush.bf16.msra.mxu0 %v6621_v43  ;;  %v6653_v43 = vld [vmem:[#allocation2 + $0xb10] sm:$0xff] }
 0x16d   : > { %3975 = vmatpush.bf16.msra.mxu2 %v6637_v44  ;;  %v6669_v44 = vld [vmem:[#allocation2 + $0xb90] sm:$0xff] }
 0x16e   : > { %3891 = vmatpush.bf16.msra.mxu1 %v6629_v45  ;;  %v6661_v45 = vld [vmem:[#allocation2 + $0xb50] sm:$0xff] }
 0x16f   : > { %4055 = vmatpush.bf16.msra.mxu3 %v6645_v46  ;;  %v6677_v46 = vld [vmem:[#allocation2 + $0xbd0] sm:$0xff] }
 0x170   : > { %3800 = vmatpush.bf16.msra.mxu0 %v6620_v49 }
 0x171   : > { %3976 = vmatpush.bf16.msra.mxu2 %v6636_v50  ;;  %v4271_v50 = vunpack.c.l.b16 %v7108_v21 }
 0x172   : > { %3892 = vmatpush.bf16.msra.mxu1 %v6628_v57  ;;  %v4185_v57 = vshll.u32 %v4181_v30, 16 }
 0x173   : > { %4056 = vmatpush.bf16.msra.mxu3 %v6644_v58  ;;  %v4356_v58 = vunpack.c.l.b16 %v6227_v47 }
 0x174   : > { %3801 = vmatpush.bf16.msra.mxu0 %v6619_v55  ;;  %v2406_v20 = vpop.f32.mrf.mxu0 }
 0x175   : > { %3977 = vmatpush.bf16.msra.mxu2 %v6635_v60  ;;  %v2410_v31 = vadd.f32 %v2406_v20, %v7094_v42  ;;  %v4087_v42 = vpack.c.b16 %v4086_v23, %v4085_v22 }
 0x176   : > { %3893 = vmatpush.bf16.msra.mxu1 %v6627_v1  ;;  %v2491_v11 = vpop.f32.mrf.mxu1  ;;  %v6690_v1 = vld [vmem:[#allocation2 + $0xc38] sm:$0xff] }
 0x177   : > { %4057 = vmatpush.bf16.msra.mxu3 %v6643_v2  ;;  %3802 = vmatmul.bf16.vlgmr.msra.gmra.mxu0 %v3744_v3  ;;  %v2495_v14 = vadd.f32 %v2491_v11, %v2410_v31  ;;  %v4091_v49 = vshll.u32 %v4087_v42, 16  ;;  %v4089_v60 = vshrl.u32 %v4087_v42, 16  ;;  %v4183_v2 = vshrl.u32 %v4181_v30, 16 }
 0x178   : > { %4144 = vmatpush.bf16.msrb.mxu0 %v6658_v61  ;;  %3978 = vmatmul.bf16.vlgmr.msra.gmra.mxu2 %v6060_v4  ;;  %v4187_v3 = vrot.slane %v4185_v57, 1  ;;  %v4357_v4 = vpack.c.b16 %v4180_v37, %v4356_v58 }
 0x179   : > { %4323 = vmatpush.bf16.msrb.mxu2 %v6674_v62  ;;  %3894 = vmatmul.bf16.vlgmr.msra.gmra.mxu1 %v3836_v5  ;;  %v4093_v61 = vrot.slane %v4091_v49, 1  ;;  %v4272_v62 = vpack.c.b16 %v4086_v23, %v4271_v50 }
 0x17a   : > { %4238 = vmatpush.bf16.msrb.mxu1 %v6666_v17  ;;  %4058 = vmatmul.bf16.vlgmr.msra.gmra.mxu3 %v6093_v6  ;;  %v6659_v17 = vld [vmem:[#allocation2 + $0xb40] sm:$0xff] }
 0x17b   : > { %4408 = vmatpush.bf16.msrb.mxu3 %v6682_v29  ;;  %v2576_v33 = vpop.f32.mrf.mxu2  ;;  %v6675_v29 = vld [vmem:[#allocation2 + $0xbc0] sm:$0xff]  ;;  %v4094_v5 = vor.u32 %v4093_v61, %v4089_v60  ;;  %v4273_v6 = vrot.slane %v4272_v62, 1 }
 0x17c   : > { %4145 = vmatpush.bf16.msrb.mxu0 %v6657_v24  ;;  %v2580_v35 = vadd.f32 %v2576_v33, %v2495_v14  ;;  %v2408_v19 = vpop.f32.mrf.mxu0  ;;  %v4188_v24 = vor.u32 %v4187_v3, %v4183_v2 }
 0x17d   : > { %4324 = vmatpush.bf16.msrb.mxu2 %v6673_v34  ;;  %v2668_v41 = vpop.f32.mrf.mxu3  ;;  %v4358_v34 = vrot.slane %v4357_v4, 1 }
 0x17e   : > { %4239 = vmatpush.bf16.msrb.mxu1 %v6665_v7  ;;  %v2672_v26 = vadd.f32 %v2668_v41, %v2580_v35  ;;  %v2493_v27 = vpop.f32.mrf.mxu1  ;;  %v6689_v7 = vld [vmem:[#allocation2 + $0xc30] sm:$0xff] }
 0x17f   : > { %4409 = vmatpush.bf16.msrb.mxu3 %v6681_v8  ;;  %v6688_v8 = vld [vmem:[#allocation2 + $0xc28] sm:$0xff] }
 0x180   : > { %4146 = vmatpush.bf16.msrb.mxu0 %v6656_v9 }
 0x181   : > { %4325 = vmatpush.bf16.msrb.mxu2 %v6672_v32 }
 0x182   : > { %4240 = vmatpush.bf16.msrb.mxu1 %v6664_v40  ;;  %v6260_v40 = vld [vmem:[%s6960_s17 + $0x68] sm:$0x3] }
 0x183   : > { %4410 = vmatpush.bf16.msrb.mxu3 %v6680_v51  ;;  %v2578_v54 = vpop.f32.mrf.mxu2  ;;  %v6687_v51 = vld [vmem:[#allocation2 + $0xc20] sm:$0xff] }
 0x184   : > { %4147 = vmatpush.bf16.msrb.mxu0 %v6655_v56  ;;  %v4441_v56 = vunpack.c.l.b16 %v6260_v40 }
 0x185   : > { %4326 = vmatpush.bf16.msrb.mxu2 %v6671_v10  ;;  %v2670_v55 = vpop.f32.mrf.mxu3  ;;  %v6686_v10 = vld [vmem:[#allocation2 + $0xc18] sm:$0xff] }
 0x186   : > { %4241 = vmatpush.bf16.msrb.mxu1 %v6663_v15  ;;  %v4442_v15 = vpack.c.b16 %v4441_v56, %v4271_v50 }
 0x187   : > { %4411 = vmatpush.bf16.msrb.mxu3 %v6679_v16 }
 0x188   : > { %4148 = vmatpush.bf16.msrb.mxu0 %v6654_v25  ;;  %v4444_v23 = vshrl.u32 %v4442_v15, 16  ;;  %v4447_v25 = vshll.u32 %v4442_v15, 16 }
 0x189   : > { %4327 = vmatpush.bf16.msrb.mxu2 %v6670_v28  ;;  %v6684_v28 = vld [vmem:[#allocation2 + $0xc08] sm:$0xff] }
 0x18a   : > { %4242 = vmatpush.bf16.msrb.mxu1 %v6662_v38  ;;  %v4446_v36 = vrot.slane %v4444_v23, 1  ;;  %v4449_v37 = vrot.slane %v4447_v25, 2  ;;  %v6683_v38 = vld [vmem:[#allocation2 + $0xc00] sm:$0xff] }
 0x18b   : > { %4412 = vmatpush.bf16.msrb.mxu3 %v6678_v39 }
 0x18c   : > { %4149 = vmatpush.bf16.msrb.mxu0 %v6653_v43  ;;  %v4450_v39 = vor.u32 %v4449_v37, %v4446_v36 }
 0x18d   : > { %4328 = vmatpush.bf16.msrb.mxu2 %v6669_v44 }
 0x18e   : > { %4243 = vmatpush.bf16.msrb.mxu1 %v6661_v45 }
 0x18f   : > { %4413 = vmatpush.bf16.msrb.mxu3 %v6677_v46 }
 0x190   : > { %4150 = vmatpush.bf16.msrb.mxu0 %v6652_v52 }
 0x191   : > { %4329 = vmatpush.bf16.msrb.mxu2 %v6668_v53 }
 0x192   : > { %4244 = vmatpush.bf16.msrb.mxu1 %v6660_v59 }
 0x193   : > { %4414 = vmatpush.bf16.msrb.mxu3 %v6676_v48 }
 0x194   : > { %4151 = vmatpush.bf16.msrb.mxu0 %v6651_v63  ;;  %v2752_v9 = vpop.f32.mrf.mxu0 }
 0x195   : > { %4330 = vmatpush.bf16.msrb.mxu2 %v6667_v0  ;;  %v2756_v32 = vadd.f32 %v2752_v9, %v2672_v26 }
 0x196   : > { %4245 = vmatpush.bf16.msrb.mxu1 %v6659_v17  ;;  %v2832_v20 = vpop.f32.mrf.mxu1 }
 0x197   : > { %4415 = vmatpush.bf16.msrb.mxu3 %v6675_v29  ;;  %4152 = vmatmul.bf16.vlgmr.msrb.gmra.mxu0 %v4094_v5  ;;  %v2836_v31 = vadd.f32 %v2832_v20, %v2756_v32 }
 0x198   : > { %4500 = vmatpush.bf16.msra.mxu0 %v6690_v1  ;;  %4331 = vmatmul.bf16.vlgmr.msrb.gmra.mxu2 %v4273_v6 }
 0x199   : > { %4246 = vmatmul.bf16.vlgmr.msrb.gmra.mxu1 %v4188_v24 }
 0x19a   : > { %4416 = vmatmul.bf16.vlgmr.msrb.gmra.mxu3 %v4358_v34 }
 0x19b   : > { %v2926_v11 = vpop.f32.mrf.mxu2 }
 0x19c   : > { %4501 = vmatpush.bf16.msra.mxu0 %v6689_v7  ;;  %v2930_v12 = vadd.f32 %v2926_v11, %v2836_v31  ;;  %v2754_v14 = vpop.f32.mrf.mxu0 }
 0x19d   : > { %v3020_v13 = vpop.f32.mrf.mxu3 }
 0x19e   : > { %v3024_v16 = vadd.f32 %v3020_v13, %v2930_v12  ;;  %v2834_v22 = vpop.f32.mrf.mxu1  ;;  %v6755_v12 = vld [vmem:[#allocation4] ss:$0 sm:$0xff] }
 0x1a0   : > { %4502 = vmatpush.bf16.msra.mxu0 %v6688_v8 }
 0x1a3   : > { %v2928_v33 = vpop.f32.mrf.mxu2 }
 0x1a4   : > { %4503 = vmatpush.bf16.msra.mxu0 %v6687_v51 }
 0x1a5   : > { %v3022_v35 = vpop.f32.mrf.mxu3 }
 0x1a8   : > { %4504 = vmatpush.bf16.msra.mxu0 %v6686_v10 }
 0x1ac   : > { %4505 = vmatpush.bf16.msra.mxu0 %v6685_v18 }
 0x1b0   : > { %4506 = vmatpush.bf16.msra.mxu0 %v6684_v28 }
 0x1b4   : > { %4507 = vmatpush.bf16.msra.mxu0 %v6683_v38  ;;  %v3105_v41 = vpop.f32.mrf.mxu0 }
 0x1b5   : > { %v3109_v19 = vadd.f32 %v3105_v41, %v3024_v16 }
 0x1b6   : > { %v3190_v26 = vpop.f32.mrf.mxu1 }
 0x1b7   : > { %4508 = vmatmul.bf16.vlgmr.msra.gmra.mxu0 %v4450_v39  ;;  %v3194_v42 = vadd.f32 %v3190_v26, %v3109_v19 }
 0x1bb   : > { %v3282_v43 = vpop.f32.mrf.mxu2 }
 0x1bc   : > { %v3286_v44 = vadd.f32 %v3282_v43, %v3194_v42  ;;  %v3107_v27 = vpop.f32.mrf.mxu0 }
 0x1bd   : > { %v3365_v21 = vpop.f32.mrf.mxu3 }
 0x1be   : > { %v3369_v30 = vadd.f32 %v3365_v21, %v3286_v44  ;;  %v3192_v45 = vpop.f32.mrf.mxu1 }
 0x1c3   : > { %v3284_v46 = vpop.f32.mrf.mxu2 }
 0x1c5   : > { %v3367_v47 = vpop.f32.mrf.mxu3 }
 0x1d4   : > { %v3445_v49 = vpop.f32.mrf.mxu0 }
 0x1d5   : > { %v3449_v50 = vadd.f32 %v3445_v49, %v3369_v30 }
 0x1d6   : > { %v3539_v52 = vpop.f32.mrf.mxu1 }
 0x1d7   : > { %v3543_v53 = vadd.f32 %v3539_v52, %v3449_v50 }
 0x1db   : > { %v3633_v54 = vpop.f32.mrf.mxu2 }
 0x1dc   : > { %v3637_v57 = vadd.f32 %v3633_v54, %v3543_v53  ;;  %v3447_v59 = vpop.f32.mrf.mxu0 }
 0x1dd   : > { %v3718_v58 = vpop.f32.mrf.mxu3 }
 0x1de   : > { %v3722_v48 = vadd.f32 %v3718_v58, %v3637_v57  ;;  %v3541_v55 = vpop.f32.mrf.mxu1 }
 0x1e3   : > { %v3635_v60 = vpop.f32.mrf.mxu2 }
 0x1e5   : > { %v3720_v61 = vpop.f32.mrf.mxu3 }
 0x1f4   : > { %v3803_v62 = vpop.f32.mrf.mxu0 }
 0x1f5   : > { %v3807_v24 = vadd.f32 %v3803_v62, %v3722_v48 }
 0x1f6   : > { %v3895_v63 = vpop.f32.mrf.mxu1 }
 0x1f7   : > { %v3899_v9 = vadd.f32 %v3895_v63, %v3807_v24 }
 0x1fb   : > { %v3979_v0 = vpop.f32.mrf.mxu2 }
 0x1fc   : > { %v3805_v2 = vpop.f32.mrf.mxu0  ;;  %v3983_v32 = vadd.f32 %v3979_v0, %v3899_v9 }
 0x1fd   : > { %v4059_v1 = vpop.f32.mrf.mxu3 }
 0x1fe   : > { %v3897_v3 = vpop.f32.mrf.mxu1  ;;  %v4063_v20 = vadd.f32 %v4059_v1, %v3983_v32 }
 0x203   : > { %v3981_v4 = vpop.f32.mrf.mxu2 }
 0x205   : > { %v4061_v17 = vpop.f32.mrf.mxu3 }
 0x214   : > { %v4153_v29 = vpop.f32.mrf.mxu0 }
 0x215   : > { %v4157_v31 = vadd.f32 %v4153_v29, %v4063_v20 }
 0x216   : > { %v4247_v5 = vpop.f32.mrf.mxu1 }
 0x217   : > { %v4251_v56 = vadd.f32 %v4247_v5, %v4157_v31 }
 0x21b   : > { %v4332_v6 = vpop.f32.mrf.mxu2 }
 0x21c   : > { %v4155_v7 = vpop.f32.mrf.mxu0  ;;  %v4336_v10 = vadd.f32 %v4332_v6, %v4251_v56 }
 0x21d   : > { %v4417_v34 = vpop.f32.mrf.mxu3 }
 0x21e   : > { %v4249_v8 = vpop.f32.mrf.mxu1  ;;  %v4421_v11 = vadd.f32 %v4417_v34, %v4336_v10 }
 0x223   : > { %v4334_v40 = vpop.f32.mrf.mxu2 }
 0x225   : > { %v4419_v51 = vpop.f32.mrf.mxu3 }
 0x234   : > { %v4509_v13 = vpop.f32.mrf.mxu0 }
 0x235   : > { %v4513_v14 = vadd.f32 %v4509_v13, %v4421_v11 }
 0x237   : > { %v4518_v15 = vadd.f32 %v6755_v12, %v4513_v14 }
 0x239   : > { %v4519_v16 = vmax.f32 %v4518_v15, 0.0 }
 0x23b   : > { %v4520_v18 = vpack.c.bf16 %v4519_v16, %v4519_v16 }
 0x23c   : > { %v4511_v22 = vpop.f32.mrf.mxu0 }
 0x23d   : > { %4521 = vst [vmem:[%s222_s25] sm:$0xf] %v4520_v18 }
 0x23e PF: > { %s15_s16 = sadd.s32 1, %s6862_s16   ;;  %s7140_s12 = smov %s6854_s14 }
 0x23f   : > { %p12_p10 = scmp.ge.s32.totalorder %s15_s16, 18   ;;  %s7141_s13 = smov %s6858_s15 }
 0x240   : > { %s7142_s14 = smov %s7145_s18  ;;  %s7143_s15 = smov %s7149_s19 }
 0x241   :  { %14 = sbr.rel (!%p12_p10) target bundleno = 4 (0x4), region = 126 }
 0x246   :  { %4549 = vsyncpa [#allocation3], 1 }
 0x247   :  { %4551 = vsyncpa [#allocation3 + $0x1], 1 }
 0x248   :  { %4552 = vsyncpa [#allocation5], 1 }

// kernel: _lambda_.32
= control target key start
LH: loop header
LB: loop body
LE: loop exit
PB: predicated region body
PF: predicated region fallthrough
CT: control target
= control target key end

     0   :  { %s573_s12 = smov 0   ;;  %s575_s13 = smov 0   ;;  %s715_s0 = inlined_call_operand.vmem [shape: bf16[2,1,2,1,256], index: 0, kind: input, shape index: {}]   ;;  %s716_s1 = inlined_call_operand.vmem [shape: bf16[1,128,256], index: 1, kind: input, shape index: {}]   ;;  %s717_s2 = inlined_call_operand.vmem [shape: f32[1,256], index: 2, kind: input, shape index: {}]   ;;  %s718_s3 = inlined_call_operand.vmem [shape: bf16[2,1,1,256], index: 3, kind: output, shape index: {}]  }
   0x1   :  { %s577_s14 = smov 0  }
   0x2 LB: > { %s25_s15 = sadd.s32 1, %s547_s13  ;;  %p420_p0 = scmp.ge.s32.totalorder %s551_s14, 1  ;;  %s551_s14 = sphi %s577_s14, %s13_s14   ;;  %s547_s13 = sphi %s575_s13, %s720_s13   ;;  %s543_s12 = sphi %s573_s12, %s719_s12  }
   0x3   : > { %p27_p1 = scmp.ge.s32.totalorder %s25_s15, 2  ;;  %p150_p2 = scmp.lt.s32.totalorder %s551_s14, 3 }
   0x5   : > { %s722_s15 = smov (%p27_p1, %s25_s15), 0  ;;  %p151_p3 = pnand %p420_p0, %p150_p2 }
   0x6   : > { %p176_p4 = scmp.lt.s32.totalorder (!%p151_p3), %s543_s12, 1 }
   0x7   : > { %154 = sbr.rel (%p151_p3) target bundleno = 182 (0xb6), region = 32 }
   0xc   : > { %v481_v0 = vld [vmem:[%s716_s1 + $0x70] sm:$0xf]  ;;  %v504_v1 = vld [vmem:[%s716_s1 + $0x74] sm:$0xf0]  ;;  %v503_v2 = vld [vmem:[%s716_s1 + $0x74] sm:$0xf] }
   0xd   : > { %v482_v3 = vor.u32 %v504_v1, %v481_v0  ;;  %v483_v4 = vld [vmem:[%s716_s1 + $0x78] sm:$0xf0]  ;;  %v473_v5 = vld [vmem:[%s716_s1 + $0x60] sm:$0xf]  ;;  %v502_v6 = vld [vmem:[%s716_s1 + $0x64] sm:$0xf0] }
   0xe   : > { %v486_v7 = vor.u32 %v503_v2, %v483_v4  ;;  %v501_v8 = vld [vmem:[%s716_s1 + $0x64] sm:$0xf]  ;;  %v475_v9 = vld [vmem:[%s716_s1 + $0x68] sm:$0xf0]  ;;  %v474_v10 = vor.u32 %v502_v6, %v473_v5  ;;  %v465_v12 = vld [vmem:[%s716_s1 + $0x50] sm:$0xf] }
   0xf   : > { %293 = vmatpush.bf16.msra.mxu0 %v482_v3  ;;  %v478_v11 = vor.u32 %v501_v8, %v475_v9  ;;  %v500_v13 = vld [vmem:[%s716_s1 + $0x54] sm:$0xf0]  ;;  %v499_v14 = vld [vmem:[%s716_s1 + $0x54] sm:$0xf]  ;;  %v467_v15 = vld [vmem:[%s716_s1 + $0x58] sm:$0xf0] }
  0x10   : > { %306 = vmatpush.bf16.msra.mxu1 %v486_v7  ;;  %v466_v16 = vor.u32 %v500_v13, %v465_v12  ;;  %v470_v17 = vor.u32 %v499_v14, %v467_v15  ;;  %v457_v18 = vld [vmem:[%s716_s1 + $0x40] sm:$0xf]  ;;  %v498_v19 = vld [vmem:[%s716_s1 + $0x44] sm:$0xf0]  ;;  %v497_v20 = vld [vmem:[%s716_s1 + $0x44] sm:$0xf] }
  0x11   : > { %v459_v21 = vld [vmem:[%s716_s1 + $0x48] sm:$0xf0]  ;;  %v458_v22 = vor.u32 %v498_v19, %v457_v18  ;;  %v449_v24 = vld [vmem:[%s716_s1 + $0x30] sm:$0xf]  ;;  %v496_v25 = vld [vmem:[%s716_s1 + $0x34] sm:$0xf0] }
  0x12   : > { %v462_v23 = vor.u32 %v497_v20, %v459_v21  ;;  %v495_v26 = vld [vmem:[%s716_s1 + $0x34] sm:$0xf]  ;;  %v451_v27 = vld [vmem:[%s716_s1 + $0x38] sm:$0xf0]  ;;  %v450_v28 = vor.u32 %v496_v25, %v449_v24  ;;  %v441_v30 = vld [vmem:[%s716_s1 + $0x20] sm:$0xf] }
  0x13   : > { %294 = vmatpush.bf16.msra.mxu0 %v474_v10  ;;  %v454_v29 = vor.u32 %v495_v26, %v451_v27  ;;  %v494_v31 = vld [vmem:[%s716_s1 + $0x24] sm:$0xf0]  ;;  %v493_v32 = vld [vmem:[%s716_s1 + $0x24] sm:$0xf]  ;;  %v443_v33 = vld [vmem:[%s716_s1 + $0x28] sm:$0xf0] }
  0x14   : > { %307 = vmatpush.bf16.msra.mxu1 %v478_v11  ;;  %v442_v34 = vor.u32 %v494_v31, %v441_v30  ;;  %v446_v35 = vor.u32 %v493_v32, %v443_v33  ;;  %v433_v36 = vld [vmem:[%s716_s1 + $0x10] sm:$0xf]  ;;  %v492_v37 = vld [vmem:[%s716_s1 + $0x14] sm:$0xf0]  ;;  %v491_v38 = vld [vmem:[%s716_s1 + $0x14] sm:$0xf] }
  0x15   : > { %v435_v39 = vld [vmem:[%s716_s1 + $0x18] sm:$0xf0]  ;;  %s724_s12 = smov (!%p176_p4, %s543_s12), 1  ;;  %v434_v40 = vor.u32 %v492_v37, %v433_v36  ;;  %v425_v42 = vld [vmem:[%s716_s1] sm:$0xf]  ;;  %vm322_vm0 = vcmask 1040384  }
  0x16   : > { %v438_v41 = vor.u32 %v491_v38, %v435_v39  ;;  %v490_v43 = vld [vmem:[%s716_s1 + $0x4] sm:$0xf0]  ;;  %v489_v44 = vld [vmem:[%s716_s1 + $0x4] sm:$0xf]  ;;  %v427_v45 = vld [vmem:[%s716_s1 + $0x8] sm:$0xf0] }
  0x17   : > { %295 = vmatpush.bf16.msra.mxu0 %v466_v16  ;;  %s421_s7 = sshll.u32 %s724_s12, 2  ;;  %v426_v46 = vor.u32 %v490_v43, %v425_v42  ;;  %v430_v47 = vor.u32 %v489_v44, %v427_v45  ;;  %v207_v49 = vld [vmem:[%s717_s2] sm:$0x3]  ;;  %vm328_vm1 = vsmask.f32 256  ;;  %s422_s17 = sshll.u32 %s724_s12, 1 }
  0x18   : > { %308 = vmatpush.bf16.msra.mxu1 %v470_v17  ;;  %s179_s10 = scalar_lea.vmem %s715_s0, %s421_s7  ;;  %v289_v50 = vperm.slane %v207_v49, 0  ;;  %v290_v51 = vperm.slane %v207_v49, 1  ;;  %vm330_vm2 = vcmask 1041409   ;;  %vm331_vm3 = vsmask.f32 1280  ;;  %vm329_vm4 = vmand %vm322_vm0, %vm328_vm1  ;;  %s187_s20 = scalar_lea.vmem %s718_s3, %s422_s17 }
  0x19   : > { %v190_v48 = vld [vmem:[%s179_s10] sm:$0x1]  ;;  %vm332_vm5 = vmand %vm330_vm2, %vm331_vm3 }
  0x1a   : > { %v334_v57 = vld [vmem:[%s187_s20] sm:$0x3]  ;;  %vm333_vm6 = vmor %vm332_vm5, %vm329_vm4 }
  0x1b   : > { %296 = vmatpush.bf16.msra.mxu0 %v458_v22 }
  0x1c   : > { %309 = vmatpush.bf16.msra.mxu1 %v462_v23 }
  0x1f   : > { %297 = vmatpush.bf16.msra.mxu0 %v450_v28 }
  0x20   : > { %310 = vmatpush.bf16.msra.mxu1 %v454_v29 }
  0x23   : > { %298 = vmatpush.bf16.msra.mxu0 %v442_v34 }
  0x24   : > { %311 = vmatpush.bf16.msra.mxu1 %v446_v35 }
  0x27   : > { %299 = vmatpush.bf16.msra.mxu0 %v434_v40 }
  0x28   : > { %312 = vmatpush.bf16.msra.mxu1 %v438_v41 }
  0x2b   : > { %300 = vmatpush.bf16.msra.mxu0 %v426_v46 }
  0x2c   : > { %313 = vmatpush.bf16.msra.mxu1 %v430_v47 }
  0x2e   : > { %301 = vmatmul.bf16.vlgmr.msra.gmra.mxu0 %v190_v48 }
  0x2f   : > { %314 = vmatmul.bf16.vlgmr.msra.gmra.mxu1 %v190_v48 }
  0xab   : > { %v302_v52 = vpop.f32.mrf.mxu0 }
  0xac   : > { %v303_v53 = vadd.f32 %v302_v52, %v289_v50  ;;  %v315_v54 = vpop.f32.mrf.mxu1 }
  0xad   : > { %v316_v55 = vadd.f32 %v315_v54, %v290_v51 }
  0xaf   : > { %v319_v56 = vpack.c.bf16 %v316_v55, %v303_v53 }
  0xb1   : > { %v321_v58 = vrot.slane %v319_v56, 3 }
  0xb3   : > { %v325_v59 = vsel %vm322_vm0, %v319_v56, %v321_v58  ;;  %v304_v60 = vpop.f32.mrf.mxu0 }
  0xb4   : > { %v335_v61 = vsel %vm333_vm6, %v325_v59, %v334_v57  ;;  %v317_v62 = vpop.f32.mrf.mxu1 }
  0xb5   : > { %336 = vst [vmem:[%s187_s20] sm:$0x3] %v335_v61 }
  0xb6 PF: > { %s13_s14 = sadd.s32 1, %s551_s14   ;;  %s719_s12 = smov %s547_s13 }
  0xb7   : > { %p10_p5 = scmp.ge.s32.totalorder %s13_s14, 4   ;;  %s720_s13 = smov %s722_s15 }
  0xb9   :  { %12 = sbr.rel (!%p10_p5) target bundleno = 2 (0x2), region = 63 }

// kernel: _lambda_.35
= control target key start
LH: loop header
LB: loop body
LE: loop exit
PB: predicated region body
PF: predicated region fallthrough
CT: control target
= control target key end

     0   :  { %v34_v1 = vlaneseq  ;;  %s113_s0 = inlined_call_operand.vmem [shape: bf16[2,1,256], index: 0, kind: input, shape index: {}]   ;;  %s114_s1 = inlined_call_operand.hbm [shape: f32[2,1,256], index: 1, kind: output, shape index: {}]  }
   0x1   :  { %v9_v0 = vld [vmem:[%s113_s0] sm:$0x3]  ;;  %v10_v3 = vld [vmem:[%s113_s0 + $0x2] sm:$0x3] }
   0x2   :  { %v11_v2 = vunpack.c.l.bf16 %v9_v0 }
   0x3   :  { %6 = vsyncpa [#allocation3], 0  ;;  %vm23_vm0 = vcmask 1040384   ;;  %vm25_vm1 = vcmask 1042434   ;;  %v12_v4 = vunpack.c.l.bf16 %v10_v3  ;;  %s87_s10 = smov [#allocation2]   ;;  %s46_s14 = sshll.u32 %s114_s1, 4  ;;  %s47_s14 = int_to_ptr.hbm [resolvable:$true] %s46_s14 }
   0x4   :  { %s44_s11 = sshll.u32 %s87_s10, 4  ;;  %v17_v5 = vrot.slane %v11_v2, 1  ;;  %v18_v6 = vrot.slane %v11_v2, 2  ;;  %v19_v7 = vrot.slane %v11_v2, 3  ;;  %vm27_vm2 = vcmask 1041408   ;;  %s88_s0 = smov 32   ;;  %s45_s11 = int_to_ptr.vmem [resolvable:$true] %s44_s11 }
   0x5   :  { %vm36_vm3 = vcmp.lt.s32.totalorder %v34_v1, 256  ;;  %v20_v8 = vrot.slane %v12_v4, 1  ;;  %v21_v9 = vrot.slane %v12_v4, 2  ;;  %v22_v10 = vrot.slane %v12_v4, 3  ;;  %s89_s1 = smov 2  }
   0x6   :  { %v24_v11 = vsel %vm23_vm0, %v11_v2, %v17_v5  ;;  %v26_v12 = vsel %vm25_vm1, %v18_v6, %v19_v7 }
   0x7   :  { %v28_v13 = vsel %vm27_vm2, %v24_v11, %v26_v12  ;;  %v29_v14 = vsel %vm23_vm0, %v12_v4, %v20_v8  ;;  %v30_v15 = vsel %vm25_vm1, %v21_v9, %v22_v10 }
   0x8   :  { %38 = vst.msk [vmem:[#allocation2] sm:$0x3] %vm36_vm3, %v28_v13  ;;  %v31_v16 = vsel %vm27_vm2, %v29_v14, %v30_v15 }
   0x9   :  { %39 = vst.msk [vmem:[#allocation2 + $0x2] sm:$0x3] %vm36_vm3, %v31_v16 }
   0xa   :  { %52 = dma.vmem_to_hbm [thread:$0]  %s45_s11, 64, %s47_s14, [#allocation3], %s88_s0, %s88_s0, %s89_s1  }
   0xb   :  { %85 = dma.done.wait [#allocation3], 64  }
   0xc   :  { %86 = vsyncadd [#allocation3], 4294967232 }
   0xd   :  { %57 = vsyncpa [#allocation3], 1 }

// kernel: _lambda_.34
= control target key start
LH: loop header
LB: loop body
LE: loop exit
PB: predicated region body
PF: predicated region fallthrough
CT: control target
= control target key end

     0   :  { %vm161_vm0 = vcmask 1040384   ;;  %s384_s1 = inlined_call_operand.vmem [shape: bf16[128,256], index: 1, kind: input, shape index: {}]   ;;  %s385_s0 = inlined_call_operand.vmem [shape: bf16[2,128], index: 0, kind: input, shape index: {}]   ;;  %s386_s3 = inlined_call_operand.vmem [shape: bf16[2,256], index: 3, kind: input, shape index: {}]   ;;  %s387_s2 = inlined_call_operand.vmem [shape: f32[1,256], index: 2, kind: input, shape index: {}]   ;;  %s388_s4 = inlined_call_operand.vmem [shape: bf16[2,256], index: 4, kind: output, shape index: {}]  }
   0x1   :  { %v229_v0 = vld [vmem:[%s384_s1 + $0x70] sm:$0xf]  ;;  %v250_v1 = vld [vmem:[%s384_s1 + $0x74] sm:$0xf0]  ;;  %v249_v2 = vld [vmem:[%s384_s1 + $0x74] sm:$0xf] }
   0x2   :  { %v230_v3 = vor.u32 %v250_v1, %v229_v0  ;;  %v231_v4 = vld [vmem:[%s384_s1 + $0x78] sm:$0xf0]  ;;  %v221_v5 = vld [vmem:[%s384_s1 + $0x60] sm:$0xf]  ;;  %v248_v6 = vld [vmem:[%s384_s1 + $0x64] sm:$0xf0] }
   0x3   :  { %v234_v7 = vor.u32 %v249_v2, %v231_v4  ;;  %v247_v8 = vld [vmem:[%s384_s1 + $0x64] sm:$0xf]  ;;  %v223_v9 = vld [vmem:[%s384_s1 + $0x68] sm:$0xf0]  ;;  %v222_v10 = vor.u32 %v248_v6, %v221_v5  ;;  %v213_v12 = vld [vmem:[%s384_s1 + $0x50] sm:$0xf] }
   0x4   :  { %120 = vmatpush.bf16.msra.mxu0 %v230_v3  ;;  %v226_v11 = vor.u32 %v247_v8, %v223_v9  ;;  %v246_v13 = vld [vmem:[%s384_s1 + $0x54] sm:$0xf0]  ;;  %v245_v14 = vld [vmem:[%s384_s1 + $0x54] sm:$0xf]  ;;  %v215_v15 = vld [vmem:[%s384_s1 + $0x58] sm:$0xf0] }
   0x5   :  { %133 = vmatpush.bf16.msra.mxu1 %v234_v7  ;;  %v214_v16 = vor.u32 %v246_v13, %v213_v12  ;;  %v218_v17 = vor.u32 %v245_v14, %v215_v15  ;;  %v205_v18 = vld [vmem:[%s384_s1 + $0x40] sm:$0xf]  ;;  %v244_v19 = vld [vmem:[%s384_s1 + $0x44] sm:$0xf0]  ;;  %v243_v20 = vld [vmem:[%s384_s1 + $0x44] sm:$0xf] }
   0x6   :  { %v207_v21 = vld [vmem:[%s384_s1 + $0x48] sm:$0xf0]  ;;  %v206_v22 = vor.u32 %v244_v19, %v205_v18  ;;  %v197_v24 = vld [vmem:[%s384_s1 + $0x30] sm:$0xf]  ;;  %v242_v25 = vld [vmem:[%s384_s1 + $0x34] sm:$0xf0] }
   0x7   :  { %v210_v23 = vor.u32 %v243_v20, %v207_v21  ;;  %v241_v26 = vld [vmem:[%s384_s1 + $0x34] sm:$0xf]  ;;  %v199_v27 = vld [vmem:[%s384_s1 + $0x38] sm:$0xf0]  ;;  %v198_v28 = vor.u32 %v242_v25, %v197_v24  ;;  %v189_v30 = vld [vmem:[%s384_s1 + $0x20] sm:$0xf] }
   0x8   :  { %121 = vmatpush.bf16.msra.mxu0 %v222_v10  ;;  %v202_v29 = vor.u32 %v241_v26, %v199_v27  ;;  %v240_v31 = vld [vmem:[%s384_s1 + $0x24] sm:$0xf0]  ;;  %v239_v32 = vld [vmem:[%s384_s1 + $0x24] sm:$0xf]  ;;  %v191_v33 = vld [vmem:[%s384_s1 + $0x28] sm:$0xf0] }
   0x9   :  { %134 = vmatpush.bf16.msra.mxu1 %v226_v11  ;;  %v190_v34 = vor.u32 %v240_v31, %v189_v30  ;;  %v194_v35 = vor.u32 %v239_v32, %v191_v33  ;;  %v181_v36 = vld [vmem:[%s384_s1 + $0x10] sm:$0xf]  ;;  %v238_v37 = vld [vmem:[%s384_s1 + $0x14] sm:$0xf0]  ;;  %v237_v38 = vld [vmem:[%s384_s1 + $0x14] sm:$0xf] }
   0xa   :  { %v183_v39 = vld [vmem:[%s384_s1 + $0x18] sm:$0xf0]  ;;  %v182_v40 = vor.u32 %v238_v37, %v181_v36  ;;  %v173_v42 = vld [vmem:[%s384_s1] sm:$0xf]  ;;  %v236_v43 = vld [vmem:[%s384_s1 + $0x4] sm:$0xf0] }
   0xb   :  { %v186_v41 = vor.u32 %v237_v38, %v183_v39  ;;  %v235_v44 = vld [vmem:[%s384_s1 + $0x4] sm:$0xf]  ;;  %v175_v45 = vld [vmem:[%s384_s1 + $0x8] sm:$0xf0]  ;;  %v174_v46 = vor.u32 %v236_v43, %v173_v42  ;;  %v17_v48 = vld [vmem:[%s385_s0] sm:$0x1] }
   0xc   :  { %122 = vmatpush.bf16.msra.mxu0 %v214_v16  ;;  %v178_v47 = vor.u32 %v235_v44, %v175_v45  ;;  %v146_v49 = vld [vmem:[%s386_s3] sm:$0x3] }
   0xd   :  { %135 = vmatpush.bf16.msra.mxu1 %v218_v17  ;;  %v147_v50 = vunpack.c.l.bf16 %v146_v49  ;;  %v34_v51 = vld [vmem:[%s387_s2] sm:$0x3] }
   0xe   :  { %v36_v52 = vperm.slane %v34_v51, 0  ;;  %v37_v53 = vperm.slane %v34_v51, 1 }
   0xf   :  { %149 = vst [vmem:[#allocation1] ss:$4 sm:$0xff] %v147_v50 }
  0x10   :  { %123 = vmatpush.bf16.msra.mxu0 %v206_v22 }
  0x11   :  { %136 = vmatpush.bf16.msra.mxu1 %v210_v23 }
  0x14   :  { %124 = vmatpush.bf16.msra.mxu0 %v198_v28 }
  0x15   :  { %137 = vmatpush.bf16.msra.mxu1 %v202_v29 }
  0x16   :  { %v150_v55 = vld.sshfl [vmem:[#allocation1] sm:$0xff pattern:$0x73625140]  ;;  %v151_v58 = vld.sshfl [vmem:[#allocation1 + $0x8] sm:$0xff pattern:$0x73625140] }
  0x18   :  { %125 = vmatpush.bf16.msra.mxu0 %v190_v34 }
  0x19   :  { %138 = vmatpush.bf16.msra.mxu1 %v194_v35 }
  0x1c   :  { %126 = vmatpush.bf16.msra.mxu0 %v182_v40 }
  0x1d   :  { %139 = vmatpush.bf16.msra.mxu1 %v186_v41 }
  0x20   :  { %127 = vmatpush.bf16.msra.mxu0 %v174_v46 }
  0x21   :  { %140 = vmatpush.bf16.msra.mxu1 %v178_v47 }
  0x23   :  { %128 = vmatmul.bf16.vlgmr.msra.gmra.mxu0 %v17_v48 }
  0x24   :  { %141 = vmatmul.bf16.vlgmr.msra.gmra.mxu1 %v17_v48 }
  0xa0   :  { %v129_v54 = vpop.f32.mrf.mxu0 }
  0xa1   :  { %v130_v56 = vadd.f32 %v129_v54, %v36_v52  ;;  %v142_v57 = vpop.f32.mrf.mxu1 }
  0xa2   :  { %v143_v59 = vadd.f32 %v142_v57, %v37_v53 }
  0xa3   :  { %v154_v60 = vadd.f32 %v150_v55, %v130_v56 }
  0xa4   :  { %v155_v61 = vadd.f32 %v151_v58, %v143_v59 }
  0xa5   :  { %v156_v62 = vmax.f32 %v154_v60, 0.0 }
  0xa6   :  { %v157_v63 = vmax.f32 %v155_v61, 0.0 }
  0xa8   :  { %v158_v0 = vpack.c.bf16 %v157_v63, %v156_v62  ;;  %v131_v1 = vpop.f32.mrf.mxu0 }
  0xa9   :  { %v144_v2 = vpop.f32.mrf.mxu1 }
  0xaa   :  { %v160_v3 = vrot.slane %v158_v0, 3 }
  0xac   :  { %v164_v4 = vsel %vm161_vm0, %v158_v0, %v160_v3 }
  0xad   :  { %166 = vst [vmem:[%s388_s4] sm:$0x3] %v164_v4 }

</bundles_post_ra>
